<compile_context>
chip_gen: v7x
topology: tpu7x:2x2x1
jax: 0.10.0
libtpu: 0.0.40
codegen_flags: <defaults>
</compile_context>

<pallas_src>
import functools
import math

import jax
import jax.numpy as jnp
from jax.experimental import pallas as pl
from jax.experimental.pallas import tpu as pltpu

# ----------------------------- scaled-down model config -----------------------------
BATCH = 2
C_IN = 3
IMG = 32            # real BLIP: 384
PATCH = 16          # same as real BLIP
D_VIS = 128         # real: 768 (vit='base'); head_dim kept at 64 like the real model
VIS_HEADS = 2       # real: 12
VIS_DEPTH = 2       # real: 12
VIS_MLP = 4 * D_VIS
VOCAB = 128         # real: ~30524 after added special tokens
T_TXT = 8
D_TXT = 128         # real: 768
TXT_HEADS = 2
TXT_LAYERS = 2      # real: 12
TXT_INTER = 4 * D_TXT
MAX_POS = 32


# ------------------------------ in-kernel math helpers ------------------------------
def _ln(x, g, b, eps):
    # LayerNorm in f32 (mean/var on the VPU/XLU, rsqrt on the EUP).
    mu = jnp.mean(x, axis=-1, keepdims=True)
    xc = x - mu
    var = jnp.mean(xc * xc, axis=-1, keepdims=True)
    return xc * jax.lax.rsqrt(var + eps) * g + b


def _dense(x, w_bf16, b_f32):
    # bf16 MXU matmul with f32 accumulation, bias add in f32.
    y = jnp.dot(x.astype(jnp.bfloat16), w_bf16, preferred_element_type=jnp.float32)
    return y + b_f32


def _erf(x):
    # Abramowitz–Stegun 7.1.26 rational approximation of erf (|abs err| <= 1.5e-7):
    # matches torch's exact-erf GELU to f32 noise while using only exp/mul/add in-kernel.
    p = 0.3275911
    a1, a2, a3, a4, a5 = 0.254829592, -0.284496736, 1.421413741, -1.453152027, 1.061405429
    s = jnp.where(x >= 0.0, 1.0, -1.0)
    z = jnp.abs(x)
    t = 1.0 / (1.0 + p * z)
    poly = ((((a5 * t + a4) * t + a3) * t + a2) * t + a1) * t
    return s * (1.0 - poly * jnp.exp(-(z * z)))


def _gelu(x):
    # exact (erf-based) GELU, matching torch.nn.GELU / BERT "gelu"
    return 0.5 * x * (1.0 + _erf(x * (1.0 / math.sqrt(2.0))))


def _mha(q, k, v, bias, num_heads):
    """q:(Tq,D), k/v:(Tk,D) f32; bias:(Tq,Tk) additive or None. Returns (Tq,D) f32.

    Heads are stacked into a leading batch dim so scores / softmax / context run as
    single head-batched MXU+VPU ops instead of a per-head matmul chain; the softmax
    normalization uses the EUP approximate reciprocal."""
    tq, d = q.shape
    dh = d // num_heads
    scale = 1.0 / math.sqrt(dh)

    def split(x):  # (T, D) -> (H, T, dh) bf16
        return jnp.stack([x[:, h * dh:(h + 1) * dh] for h in range(num_heads)],
                         axis=0).astype(jnp.bfloat16)

    qh, kh, vh = split(q), split(k), split(v)
    s = jnp.einsum("hqd,hkd->hqk", qh, kh, preferred_element_type=jnp.float32) * scale
    if bias is not None:
        s = s + bias[None]
    s = s - jnp.max(s, axis=-1, keepdims=True)            # stable softmax (matches F.softmax)
    p = jnp.exp(s)
    p = p * pl.reciprocal(jnp.sum(p, axis=-1, keepdims=True), approx=True)
    ctx = jnp.einsum("hqk,hkd->hqd", p.astype(jnp.bfloat16), vh,
                     preferred_element_type=jnp.float32)   # (H, Tq, dh)
    return jnp.concatenate([ctx[h] for h in range(num_heads)], axis=-1)


# ----------------------------------- Pallas kernels -----------------------------------
def _vit_kernel(patches_ref, pw_ref, pb_ref, cls_ref, pos_ref,
                ln1g_ref, ln1b_ref, wqkv_ref, bqkv_ref, wo_ref, bo_ref,
                ln2g_ref, ln2b_ref, w1_ref, b1_ref, w2_ref, b2_ref,
                nrm_g_ref, nrm_b_ref, out_ref,
                *, depth, num_heads, n_img_tok, batch, eps):
    """Whole timm-style ViT tower in one kernel invocation.

    Layers are unrolled in-kernel over the stacked (L, ...) weights; batch is flattened
    into the matmul M dimension; only attention is evaluated per batch element."""
    d = pw_ref.shape[1]
    n_tok = n_img_tok + 1

    # patch-embed conv (stride == kernel) as a single matmul over all B*Np patches
    pe = _dense(patches_ref[...], pw_ref[...], pb_ref[...])            # (B*Np, D) f32

    # [cls; patches] + pos per batch element, flattened to (B*n_tok, D)
    pos = pos_ref[...]
    rows = []
    for b in range(batch):
        xb = jnp.concatenate(
            [cls_ref[...], pe[b * n_img_tok:(b + 1) * n_img_tok]], axis=0)
        rows.append(xb + pos)
    x = jnp.concatenate(rows, axis=0)                                  # (B*n_tok, D)

    for l in range(depth):                                             # unrolled (depth=2)
        h = _ln(x, ln1g_ref[l], ln1b_ref[l], eps)
        qkv = _dense(h, wqkv_ref[l], bqkv_ref[l])                      # fused timm qkv
        ctx = []
        for b in range(batch):
            sl = slice(b * n_tok, (b + 1) * n_tok)
            ctx.append(_mha(qkv[sl, :d], qkv[sl, d:2 * d], qkv[sl, 2 * d:],
                            None, num_heads))
        x = x + _dense(jnp.concatenate(ctx, axis=0), wo_ref[l], bo_ref[l])
        h = _ln(x, ln2g_ref[l], ln2b_ref[l], eps)
        f = _gelu(_dense(h, w1_ref[l], b1_ref[l]))
        x = x + _dense(f, w2_ref[l], b2_ref[l])

    # final ViT LayerNorm folded in; emit bf16 (only consumed by bf16 MXU ops downstream)
    out_ref[...] = _ln(x, nrm_g_ref[...], nrm_b_ref[...], eps).astype(out_ref.dtype)


def _text_kernel(cap_len_ref,                                           # SMEM (B,) int32
                 embs_ref, pos_ref, mask_ref, enc_ref,
                 eln_g_ref, eln_b_ref,
                 s_wqkv_ref, s_bqkv_ref, s_wo_ref, s_bo_ref, sln_g_ref, sln_b_ref,
                 c_wq_ref, c_bq_ref, c_wkv_ref, c_bkv_ref, c_wo_ref, c_bo_ref,
                 cln_g_ref, cln_b_ref,
                 i_w_ref, i_b_ref, o_w_ref, o_b_ref, fln_g_ref, fln_b_ref,
                 heat_w_ref, heat_b_ref,
                 out_ref,
                 *, layers, num_heads, batch, t_txt, n_enc, eps):
    """BLIP med BertLMHeadModel trunk + loc gather + 'simple' heat decoder, fully fused.

    embeddings(+pos, LN) -> [causal+padding self-attn, cross-attn over image tokens,
    GELU FFN, each with add&LN] x L -> gather row cap_len-2 -> Linear(D, H*W)."""
    d = embs_ref.shape[1]

    # --- embeddings: word emb (gathered in wrapper) + position emb, LayerNorm ---
    pos = jnp.concatenate([pos_ref[...]] * batch, axis=0)               # (B*T, D)
    h = _ln(embs_ref[...] + pos, eln_g_ref[...], eln_b_ref[...], eps)

    # --- per-batch causal AND key-padding additive bias (HF -10000 convention),
    #     built once in-kernel from the (B, T) mask; constant across layers ---
    row = jax.lax.broadcasted_iota(jnp.int32, (t_txt, t_txt), 0)
    col = jax.lax.broadcasted_iota(jnp.int32, (t_txt, t_txt), 1)
    mask = mask_ref[...]                                                 # (B, T) f32
    biases = [jnp.where((col <= row) & (mask[b:b + 1, :] > 0.0), 0.0, -10000.0)
              for b in range(batch)]

    enc = enc_ref[...]                                                   # (B*N, D) bf16

    for l in range(layers):                                              # unrolled (layers=2)
        # --- decoder self-attention ---
        qkv = _dense(h, s_wqkv_ref[l], s_bqkv_ref[l])
        a = []
        for b in range(batch):
            sl = slice(b * t_txt, (b + 1) * t_txt)
            a.append(_mha(qkv[sl, :d], qkv[sl, d:2 * d], qkv[sl, 2 * d:],
                          biases[b], num_heads))
        a = jnp.concatenate(a, axis=0)
        h = _ln(h + _dense(a, s_wo_ref[l], s_bo_ref[l]),
                sln_g_ref[l], sln_b_ref[l], eps)

        # --- cross-attention over image tokens (encoder mask all ones -> no bias) ---
        q = _dense(h, c_wq_ref[l], c_bq_ref[l])
        kv = _dense(enc, c_wkv_ref[l], c_bkv_ref[l])                     # fused K/V projection
        c = []
        for b in range(batch):
            slq = slice(b * t_txt, (b + 1) * t_txt)
            slk = slice(b * n_enc, (b + 1) * n_enc)
            c.append(_mha(q[slq], kv[slk, :d], kv[slk, d:], None, num_heads))
        c = jnp.concatenate(c, axis=0)
        h = _ln(h + _dense(c, c_wo_ref[l], c_bo_ref[l]),
                cln_g_ref[l], cln_b_ref[l], eps)

        # --- GELU FFN ---
        f = _dense(_gelu(_dense(h, i_w_ref[l], i_b_ref[l])), o_w_ref[l], o_b_ref[l])
        h = _ln(h + f, fln_g_ref[l], fln_b_ref[l], eps)

    # --- loc_embed = last_hidden[b, cap_len[b]-2]  (masked-sum row gather from SMEM scalar)
    #     followed by the 'simple' heat decoder Linear(D, H*W), all in-kernel ---
    rid = jax.lax.broadcasted_iota(jnp.int32, (t_txt, 1), 0)
    locs = []
    for b in range(batch):
        idx = cap_len_ref[b] - 2
        hb = h[b * t_txt:(b + 1) * t_txt]
        locs.append(jnp.sum(jnp.where(rid == idx, hb, 0.0), axis=0, keepdims=True))
    loc = jnp.concatenate(locs, axis=0)                                  # (B, D)
    out_ref[...] = _dense(loc, heat_w_ref[...], heat_b_ref[...]).astype(out_ref.dtype)


# ----------------------------------- Pallas wrappers -----------------------------------
def vit_forward(image, p):
    """One pallas_call for the whole visual encoder; returns (B*(Np+1), D) bf16 tokens."""
    b, c, hh, ww = image.shape
    nh, nw = hh // PATCH, ww // PATCH
    n_img_tok = nh * nw
    n_tok = n_img_tok + 1
    # patchify in Conv2d weight order (c, kh, kw); stride==kernel conv == matmul
    patches = image.reshape(b, c, nh, PATCH, nw, PATCH).transpose(0, 2, 4, 1, 3, 5)
    patches = patches.reshape(b * n_img_tok, c * PATCH * PATCH)
    args = (patches, p["patch_w"], p["patch_b"], p["cls"], p["pos"],
            p["ln1_g"], p["ln1_b"], p["wqkv"], p["bqkv"], p["wo"], p["bo"],
            p["ln2_g"], p["ln2_b"], p["w1"], p["b1"], p["w2"], p["b2"],
            p["norm_g"], p["norm_b"])
    return pl.pallas_call(
        functools.partial(_vit_kernel, depth=VIS_DEPTH, num_heads=VIS_HEADS,
                          n_img_tok=n_img_tok, batch=b, eps=1e-6),
        out_shape=jax.ShapeDtypeStruct((b * n_tok, D_VIS), jnp.bfloat16),
    )(*args)


def text_and_heat_forward(text, attn_mask, cap_len, enc_tokens, p, heat):
    """One pallas_call for the text-decoder trunk + loc gather + heat Linear."""
    b, t = text.shape
    n_enc = enc_tokens.shape[0] // b
    # word-embedding lookup is XLA glue (see TODO at top); everything after is in-kernel
    embs = p["word_emb"][text].reshape(b * t, D_TXT)
    args = (cap_len.astype(jnp.int32), embs, p["pos_emb"][:t],
            attn_mask.astype(jnp.float32), enc_tokens,
            p["eln_g"], p["eln_b"],
            p["s_wqkv"], p["s_bqkv"], p["s_wo"], p["s_bo"], p["sln_g"], p["sln_b"],
            p["c_wq"], p["c_bq"], p["c_wkv"], p["c_bkv"], p["c_wo"], p["c_bo"],
            p["cln_g"], p["cln_b"],
            p["i_w"], p["i_b"], p["o_w"], p["o_b"], p["fln_g"], p["fln_b"],
            heat["w"], heat["b"])
    in_specs = ([pl.BlockSpec(memory_space=pltpu.MemorySpace.SMEM)]      # cap_len scalars
                + [pl.BlockSpec(memory_space=pltpu.MemorySpace.VMEM)] * (len(args) - 1))
    return pl.pallas_call(
        functools.partial(_text_kernel, layers=TXT_LAYERS, num_heads=TXT_HEADS,
                          batch=b, t_txt=t, n_enc=n_enc, eps=1e-12),
        out_shape=jax.ShapeDtypeStruct((b, IMG * IMG), jnp.float32),
        in_specs=in_specs,
    )(*args)


def blip_decoder_forward(params, image, text, attn_mask, cap_len):
    b, _, h, w = image.shape
    image_tokens = vit_forward(image, params["vit"])                    # (B*N_tok, D) bf16
    heatmap = text_and_heat_forward(text, attn_mask, cap_len, image_tokens,
                                    params["txt"], params["heat"])      # (B, H*W)
    return heatmap.reshape(b, h, w)


# -------------------------------- deterministic init --------------------------------
def _w(key, fan_in, fan_out):
    # weight matrices stored bf16 (MXU operands); biases and LN params stay f32
    return (0.02 * jax.random.normal(key, (fan_in, fan_out), jnp.float32)).astype(jnp.bfloat16)


def _wstack(keys, n, fan_in, fan_out):
    return jnp.stack([_w(next(keys), fan_in, fan_out) for _ in range(n)])


def init_params(key):
    keys = iter(jax.random.split(key, 64))
    n_tok = (IMG // PATCH) ** 2 + 1
    lv, lt = VIS_DEPTH, TXT_LAYERS
    zeros = lambda *s: jnp.zeros(s, jnp.float32)
    ones = lambda *s: jnp.ones(s, jnp.float32)
    vit = {
        "patch_w": _w(next(keys), C_IN * PATCH * PATCH, D_VIS), "patch_b": zeros(1, D_VIS),
        "cls": 0.02 * jax.random.normal(next(keys), (1, D_VIS), jnp.float32),
        "pos": 0.02 * jax.random.normal(next(keys), (n_tok, D_VIS), jnp.float32),
        "ln1_g": ones(lv, 1, D_VIS), "ln1_b": zeros(lv, 1, D_VIS),
        "wqkv": _wstack(keys, lv, D_VIS, 3 * D_VIS), "bqkv": zeros(lv, 1, 3 * D_VIS),
        "wo": _wstack(keys, lv, D_VIS, D_VIS), "bo": zeros(lv, 1, D_VIS),
        "ln2_g": ones(lv, 1, D_VIS), "ln2_b": zeros(lv, 1, D_VIS),
        "w1": _wstack(keys, lv, D_VIS, VIS_MLP), "b1": zeros(lv, 1, VIS_MLP),
        "w2": _wstack(keys, lv, VIS_MLP, D_VIS), "b2": zeros(lv, 1, D_VIS),
        "norm_g": ones(1, D_VIS), "norm_b": zeros(1, D_VIS),
    }
    txt = {
        "word_emb": 0.02 * jax.random.normal(next(keys), (VOCAB, D_TXT), jnp.float32),
        "pos_emb": 0.02 * jax.random.normal(next(keys), (MAX_POS, D_TXT), jnp.float32),
        "eln_g": ones(1, D_TXT), "eln_b": zeros(1, D_TXT),
        "s_wqkv": _wstack(keys, lt, D_TXT, 3 * D_TXT), "s_bqkv": zeros(lt, 1, 3 * D_TXT),
        "s_wo": _wstack(keys, lt, D_TXT, D_TXT), "s_bo": zeros(lt, 1, D_TXT),
        "sln_g": ones(lt, 1, D_TXT), "sln_b": zeros(lt, 1, D_TXT),
        "c_wq": _wstack(keys, lt, D_TXT, D_TXT), "c_bq": zeros(lt, 1, D_TXT),
        "c_wkv": _wstack(keys, lt, D_VIS, 2 * D_TXT), "c_bkv": zeros(lt, 1, 2 * D_TXT),
        "c_wo": _wstack(keys, lt, D_TXT, D_TXT), "c_bo": zeros(lt, 1, D_TXT),
        "cln_g": ones(lt, 1, D_TXT), "cln_b": zeros(lt, 1, D_TXT),
        "i_w": _wstack(keys, lt, D_TXT, TXT_INTER), "i_b": zeros(lt, 1, TXT_INTER),
        "o_w": _wstack(keys, lt, TXT_INTER, D_TXT), "o_b": zeros(lt, 1, D_TXT),
        "fln_g": ones(lt, 1, D_TXT), "fln_b": zeros(lt, 1, D_TXT),
    }
    heat = {"w": _w(next(keys), D_TXT, IMG * IMG), "b": zeros(1, IMG * IMG)}
    return {"vit": vit, "txt": txt, "heat": heat}


# ----------------------------------------- main -----------------------------------------
if __name__ == "__main__":
    root = jax.random.PRNGKey(0)
    kp, ki, kt = jax.random.split(root, 3)
    params = init_params(kp)

    image = jax.random.normal(ki, (BATCH, C_IN, IMG, IMG), jnp.float32)
    text = jax.random.randint(kt, (BATCH, T_TXT), 0, VOCAB, dtype=jnp.int32)
    attn_mask = jnp.array([[1, 1, 1, 1, 1, 1, 0, 0],
                           [1, 1, 1, 1, 1, 1, 1, 0]], jnp.int32)
    cap_len = jnp.array([6, 7], jnp.int32)

    fwd = jax.jit(blip_decoder_forward)
    heatmap = fwd(params, image, text, attn_mask, cap_len)
    jax.block_until_ready(heatmap)
    assert heatmap.shape == (BATCH, IMG, IMG) and heatmap.dtype == jnp.float32
    assert bool(jnp.all(jnp.isfinite(heatmap)))
    print("KERNEL_OK")
</pallas_src>

<mosaic_0001>
module attributes {stable_mosaic.version = 11 : i64} {
  func.func @_vit_kernel(%arg0: memref<8x768xf32, #tpu.memory_space<vmem>>, %arg1: memref<768x128xbf16, #tpu.memory_space<vmem>>, %arg2: memref<1x128xf32, #tpu.memory_space<vmem>>, %arg3: memref<1x128xf32, #tpu.memory_space<vmem>>, %arg4: memref<5x128xf32, #tpu.memory_space<vmem>>, %arg5: memref<2x1x128xf32, #tpu.memory_space<vmem>>, %arg6: memref<2x1x128xf32, #tpu.memory_space<vmem>>, %arg7: memref<2x128x384xbf16, #tpu.memory_space<vmem>>, %arg8: memref<2x1x384xf32, #tpu.memory_space<vmem>>, %arg9: memref<2x128x128xbf16, #tpu.memory_space<vmem>>, %arg10: memref<2x1x128xf32, #tpu.memory_space<vmem>>, %arg11: memref<2x1x128xf32, #tpu.memory_space<vmem>>, %arg12: memref<2x1x128xf32, #tpu.memory_space<vmem>>, %arg13: memref<2x128x512xbf16, #tpu.memory_space<vmem>>, %arg14: memref<2x1x512xf32, #tpu.memory_space<vmem>>, %arg15: memref<2x512x128xbf16, #tpu.memory_space<vmem>>, %arg16: memref<2x1x128xf32, #tpu.memory_space<vmem>>, %arg17: memref<1x128xf32, #tpu.memory_space<vmem>>, %arg18: memref<1x128xf32, #tpu.memory_space<vmem>>, %arg19: memref<10x128xbf16, #tpu.memory_space<vmem>>) attributes {dimension_semantics = [], scalar_prefetch = 0 : i64, scratch_operands = 0 : i64, tpu.core_type = #tpu.core_type<tc>} {
    %c0 = arith.constant 0 : index
    %c0_0 = arith.constant 0 : index
    %0 = vector.load %arg0[%c0, %c0_0] : memref<8x768xf32, #tpu.memory_space<vmem>>, vector<8x768xf32>
    %c0_1 = arith.constant 0 : index
    %c0_2 = arith.constant 0 : index
    %1 = vector.load %arg1[%c0_1, %c0_2] : memref<768x128xbf16, #tpu.memory_space<vmem>>, vector<768x128xbf16>
    %c0_3 = arith.constant 0 : index
    %c0_4 = arith.constant 0 : index
    %2 = vector.load %arg2[%c0_3, %c0_4] : memref<1x128xf32, #tpu.memory_space<vmem>>, vector<1x128xf32>
    %3 = arith.truncf %0 : vector<8x768xf32> to vector<8x768xbf16>
    %cst = arith.constant dense<0.000000e+00> : vector<8x128xf32>
    %4 = tpu.matmul %3, %1, %cst {dimension_numbers = #tpu.dot_dimension_numbers<[1], [0], [0], [1], [0, 0, 1, 1], [], []>} : vector<8x768xbf16>, vector<768x128xbf16>, vector<8x128xf32> -> vector<8x128xf32>
    %5 = vector.broadcast %2 : vector<1x128xf32> to vector<8x128xf32>
    %6 = arith.addf %4, %5 : vector<8x128xf32>
    %c0_5 = arith.constant 0 : index
    %c0_6 = arith.constant 0 : index
    %7 = vector.load %arg4[%c0_5, %c0_6] : memref<5x128xf32, #tpu.memory_space<vmem>>, vector<5x128xf32>
    %c0_7 = arith.constant 0 : index
    %c0_8 = arith.constant 0 : index
    %8 = vector.load %arg3[%c0_7, %c0_8] : memref<1x128xf32, #tpu.memory_space<vmem>>, vector<1x128xf32>
    %9 = vector.extract_strided_slice %6 {offsets = [0, 0], sizes = [4, 128], strides = [1, 1]} : vector<8x128xf32> to vector<4x128xf32>
    %10 = tpu.concatenate %8, %9 in 0 : vector<1x128xf32>, vector<4x128xf32> -> vector<5x128xf32>
    %11 = arith.addf %10, %7 : vector<5x128xf32>
    %c0_9 = arith.constant 0 : index
    %c0_10 = arith.constant 0 : index
    %12 = vector.load %arg3[%c0_9, %c0_10] : memref<1x128xf32, #tpu.memory_space<vmem>>, vector<1x128xf32>
    %13 = vector.extract_strided_slice %6 {offsets = [4, 0], sizes = [4, 128], strides = [1, 1]} : vector<8x128xf32> to vector<4x128xf32>
    %14 = tpu.concatenate %12, %13 in 0 : vector<1x128xf32>, vector<4x128xf32> -> vector<5x128xf32>
    %15 = arith.addf %14, %7 : vector<5x128xf32>
    %16 = tpu.concatenate %11, %15 in 0 : vector<5x128xf32>, vector<5x128xf32> -> vector<10x128xf32>
    %c0_11 = arith.constant 0 : index
    %c0_12 = arith.constant 0 : index
    %c0_13 = arith.constant 0 : index
    %17 = vector.load %arg5[%c0_11, %c0_12, %c0_13] : memref<2x1x128xf32, #tpu.memory_space<vmem>>, vector<1x1x128xf32>
    %18 = vector.shape_cast %17 : vector<1x1x128xf32> to vector<1x128xf32>
    %c0_14 = arith.constant 0 : index
    %c0_15 = arith.constant 0 : index
    %c0_16 = arith.constant 0 : index
    %19 = vector.load %arg6[%c0_14, %c0_15, %c0_16] : memref<2x1x128xf32, #tpu.memory_space<vmem>>, vector<1x1x128xf32>
    %20 = vector.shape_cast %19 : vector<1x1x128xf32> to vector<1x128xf32>
    %cst_17 = arith.constant dense<0.000000e+00> : vector<10xf32>
    %21 = vector.multi_reduction <add>, %16, %cst_17 [1] : vector<10x128xf32> to vector<10xf32>
    %22 = vector.shape_cast %21 : vector<10xf32> to vector<10x1xf32>
    %cst_18 = arith.constant 1.280000e+02 : f32
    %23 = vector.broadcast %cst_18 : f32 to vector<10x1xf32>
    %24 = arith.divf %22, %23 : vector<10x1xf32>
    %25 = vector.broadcast %24 : vector<10x1xf32> to vector<10x128xf32>
    %26 = arith.subf %16, %25 : vector<10x128xf32>
    %27 = arith.mulf %26, %26 : vector<10x128xf32>
    %cst_19 = arith.constant dense<0.000000e+00> : vector<10xf32>
    %28 = vector.multi_reduction <add>, %27, %cst_19 [1] : vector<10x128xf32> to vector<10xf32>
    %29 = vector.shape_cast %28 : vector<10xf32> to vector<10x1xf32>
    %cst_20 = arith.constant 1.280000e+02 : f32
    %30 = vector.broadcast %cst_20 : f32 to vector<10x1xf32>
    %31 = arith.divf %29, %30 : vector<10x1xf32>
    %cst_21 = arith.constant 9.99999997E-7 : f32
    %32 = vector.broadcast %cst_21 : f32 to vector<10x1xf32>
    %33 = arith.addf %31, %32 : vector<10x1xf32>
    %34 = math.rsqrt %33 : vector<10x1xf32>
    %35 = vector.broadcast %34 : vector<10x1xf32> to vector<10x128xf32>
    %36 = arith.mulf %26, %35 : vector<10x128xf32>
    %37 = vector.broadcast %18 : vector<1x128xf32> to vector<10x128xf32>
    %38 = arith.mulf %36, %37 : vector<10x128xf32>
    %39 = vector.broadcast %20 : vector<1x128xf32> to vector<10x128xf32>
    %40 = arith.addf %38, %39 : vector<10x128xf32>
    %c0_22 = arith.constant 0 : index
    %c0_23 = arith.constant 0 : index
    %c0_24 = arith.constant 0 : index
    %41 = vector.load %arg7[%c0_22, %c0_23, %c0_24] : memref<2x128x384xbf16, #tpu.memory_space<vmem>>, vector<1x128x384xbf16>
    %42 = vector.shape_cast %41 : vector<1x128x384xbf16> to vector<128x384xbf16>
    %c0_25 = arith.constant 0 : index
    %c0_26 = arith.constant 0 : index
    %c0_27 = arith.constant 0 : index
    %43 = vector.load %arg8[%c0_25, %c0_26, %c0_27] : memref<2x1x384xf32, #tpu.memory_space<vmem>>, vector<1x1x384xf32>
    %44 = vector.shape_cast %43 : vector<1x1x384xf32> to vector<1x384xf32>
    %45 = arith.truncf %40 : vector<10x128xf32> to vector<10x128xbf16>
    %cst_28 = arith.constant dense<0.000000e+00> : vector<10x384xf32>
    %46 = tpu.matmul %45, %42, %cst_28 {dimension_numbers = #tpu.dot_dimension_numbers<[1], [0], [0], [1], [0, 0, 1, 1], [], []>} : vector<10x128xbf16>, vector<128x384xbf16>, vector<10x384xf32> -> vector<10x384xf32>
    %47 = vector.broadcast %44 : vector<1x384xf32> to vector<10x384xf32>
    %48 = arith.addf %46, %47 : vector<10x384xf32>
    %49 = vector.extract_strided_slice %48 {offsets = [0, 0], sizes = [5, 128], strides = [1, 1]} : vector<10x384xf32> to vector<5x128xf32>
    %50 = vector.extract_strided_slice %48 {offsets = [0, 128], sizes = [5, 128], strides = [1, 1]} : vector<10x384xf32> to vector<5x128xf32>
    %51 = vector.extract_strided_slice %48 {offsets = [0, 256], sizes = [5, 128], strides = [1, 1]} : vector<10x384xf32> to vector<5x128xf32>
    %52 = vector.extract_strided_slice %49 {offsets = [0, 0], sizes = [5, 64], strides = [1, 1]} : vector<5x128xf32> to vector<5x64xf32>
    %53 = vector.extract_strided_slice %49 {offsets = [0, 64], sizes = [5, 64], strides = [1, 1]} : vector<5x128xf32> to vector<5x64xf32>
    %54 = vector.shape_cast %52 : vector<5x64xf32> to vector<1x5x64xf32>
    %55 = vector.shape_cast %53 : vector<5x64xf32> to vector<1x5x64xf32>
    %56 = tpu.concatenate %54, %55 in 0 : vector<1x5x64xf32>, vector<1x5x64xf32> -> vector<2x5x64xf32>
    %57 = arith.truncf %56 : vector<2x5x64xf32> to vector<2x5x64xbf16>
    %58 = vector.extract_strided_slice %50 {offsets = [0, 0], sizes = [5, 64], strides = [1, 1]} : vector<5x128xf32> to vector<5x64xf32>
    %59 = vector.extract_strided_slice %50 {offsets = [0, 64], sizes = [5, 64], strides = [1, 1]} : vector<5x128xf32> to vector<5x64xf32>
    %60 = vector.shape_cast %58 : vector<5x64xf32> to vector<1x5x64xf32>
    %61 = vector.shape_cast %59 : vector<5x64xf32> to vector<1x5x64xf32>
    %62 = tpu.concatenate %60, %61 in 0 : vector<1x5x64xf32>, vector<1x5x64xf32> -> vector<2x5x64xf32>
    %63 = arith.truncf %62 : vector<2x5x64xf32> to vector<2x5x64xbf16>
    %64 = vector.extract_strided_slice %51 {offsets = [0, 0], sizes = [5, 64], strides = [1, 1]} : vector<5x128xf32> to vector<5x64xf32>
    %65 = vector.extract_strided_slice %51 {offsets = [0, 64], sizes = [5, 64], strides = [1, 1]} : vector<5x128xf32> to vector<5x64xf32>
    %66 = vector.shape_cast %64 : vector<5x64xf32> to vector<1x5x64xf32>
    %67 = vector.shape_cast %65 : vector<5x64xf32> to vector<1x5x64xf32>
    %68 = tpu.concatenate %66, %67 in 0 : vector<1x5x64xf32>, vector<1x5x64xf32> -> vector<2x5x64xf32>
    %69 = arith.truncf %68 : vector<2x5x64xf32> to vector<2x5x64xbf16>
    "tpu.trace_start"() <{level = 10 : i32, message = "hqd,hkd->hqk"}> : () -> ()
    %cst_29 = arith.constant dense<0.000000e+00> : vector<2x5x5xf32>
    %70 = tpu.matmul %57, %63, %cst_29 {dimension_numbers = #tpu.dot_dimension_numbers<[2], [2], [1], [1], [0, 0, 0, 1, 1, 1], [0], [0]>} : vector<2x5x64xbf16>, vector<2x5x64xbf16>, vector<2x5x5xf32> -> vector<2x5x5xf32>
    "tpu.trace_stop"() : () -> ()
    %cst_30 = arith.constant 1.250000e-01 : f32
    %71 = vector.broadcast %cst_30 : f32 to vector<2x5x5xf32>
    %72 = arith.mulf %70, %71 : vector<2x5x5xf32>
    %cst_31 = arith.constant dense<0xFF800000> : vector<2x5xf32>
    %73 = vector.multi_reduction <maximumf>, %72, %cst_31 [2] : vector<2x5x5xf32> to vector<2x5xf32>
    %74 = vector.shape_cast %73 : vector<2x5xf32> to vector<2x5x1xf32>
    %75 = vector.broadcast %74 : vector<2x5x1xf32> to vector<2x5x5xf32>
    %76 = arith.subf %72, %75 : vector<2x5x5xf32>
    %77 = math.exp %76 : vector<2x5x5xf32>
    %cst_32 = arith.constant dense<0.000000e+00> : vector<2x5xf32>
    %78 = vector.multi_reduction <add>, %77, %cst_32 [2] : vector<2x5x5xf32> to vector<2x5xf32>
    %79 = vector.shape_cast %78 : vector<2x5xf32> to vector<2x5x1xf32>
    %80 = tpu.reciprocal %79 {approx = true} : vector<2x5x1xf32> -> vector<2x5x1xf32>
    %81 = vector.broadcast %80 : vector<2x5x1xf32> to vector<2x5x5xf32>
    %82 = arith.mulf %77, %81 : vector<2x5x5xf32>
    %83 = arith.truncf %82 : vector<2x5x5xf32> to vector<2x5x5xbf16>
    "tpu.trace_start"() <{level = 10 : i32, message = "hqk,hkd->hqd"}> : () -> ()
    %cst_33 = arith.constant dense<0.000000e+00> : vector<2x5x64xf32>
    %84 = tpu.matmul %83, %69, %cst_33 {dimension_numbers = #tpu.dot_dimension_numbers<[2], [1], [1], [2], [0, 0, 0, 1, 1, 2], [0], [0]>} : vector<2x5x5xbf16>, vector<2x5x64xbf16>, vector<2x5x64xf32> -> vector<2x5x64xf32>
    "tpu.trace_stop"() : () -> ()
    %85 = vector.extract_strided_slice %84 {offsets = [0, 0, 0], sizes = [1, 5, 64], strides = [1, 1, 1]} : vector<2x5x64xf32> to vector<1x5x64xf32>
    %86 = vector.shape_cast %85 : vector<1x5x64xf32> to vector<5x64xf32>
    %87 = vector.extract_strided_slice %84 {offsets = [1, 0, 0], sizes = [1, 5, 64], strides = [1, 1, 1]} : vector<2x5x64xf32> to vector<1x5x64xf32>
    %88 = vector.shape_cast %87 : vector<1x5x64xf32> to vector<5x64xf32>
    %89 = tpu.concatenate %86, %88 in 1 : vector<5x64xf32>, vector<5x64xf32> -> vector<5x128xf32>
    %90 = vector.extract_strided_slice %48 {offsets = [5, 0], sizes = [5, 128], strides = [1, 1]} : vector<10x384xf32> to vector<5x128xf32>
    %91 = vector.extract_strided_slice %48 {offsets = [5, 128], sizes = [5, 128], strides = [1, 1]} : vector<10x384xf32> to vector<5x128xf32>
    %92 = vector.extract_strided_slice %48 {offsets = [5, 256], sizes = [5, 128], strides = [1, 1]} : vector<10x384xf32> to vector<5x128xf32>
    %93 = vector.extract_strided_slice %90 {offsets = [0, 0], sizes = [5, 64], strides = [1, 1]} : vector<5x128xf32> to vector<5x64xf32>
    %94 = vector.extract_strided_slice %90 {offsets = [0, 64], sizes = [5, 64], strides = [1, 1]} : vector<5x128xf32> to vector<5x64xf32>
    %95 = vector.shape_cast %93 : vector<5x64xf32> to vector<1x5x64xf32>
    %96 = vector.shape_cast %94 : vector<5x64xf32> to vector<1x5x64xf32>
    %97 = tpu.concatenate %95, %96 in 0 : vector<1x5x64xf32>, vector<1x5x64xf32> -> vector<2x5x64xf32>
    %98 = arith.truncf %97 : vector<2x5x64xf32> to vector<2x5x64xbf16>
    %99 = vector.extract_strided_slice %91 {offsets = [0, 0], sizes = [5, 64], strides = [1, 1]} : vector<5x128xf32> to vector<5x64xf32>
    %100 = vector.extract_strided_slice %91 {offsets = [0, 64], sizes = [5, 64], strides = [1, 1]} : vector<5x128xf32> to vector<5x64xf32>
    %101 = vector.shape_cast %99 : vector<5x64xf32> to vector<1x5x64xf32>
    %102 = vector.shape_cast %100 : vector<5x64xf32> to vector<1x5x64xf32>
    %103 = tpu.concatenate %101, %102 in 0 : vector<1x5x64xf32>, vector<1x5x64xf32> -> vector<2x5x64xf32>
    %104 = arith.truncf %103 : vector<2x5x64xf32> to vector<2x5x64xbf16>
    %105 = vector.extract_strided_slice %92 {offsets = [0, 0], sizes = [5, 64], strides = [1, 1]} : vector<5x128xf32> to vector<5x64xf32>
    %106 = vector.extract_strided_slice %92 {offsets = [0, 64], sizes = [5, 64], strides = [1, 1]} : vector<5x128xf32> to vector<5x64xf32>
    %107 = vector.shape_cast %105 : vector<5x64xf32> to vector<1x5x64xf32>
    %108 = vector.shape_cast %106 : vector<5x64xf32> to vector<1x5x64xf32>
    %109 = tpu.concatenate %107, %108 in 0 : vector<1x5x64xf32>, vector<1x5x64xf32> -> vector<2x5x64xf32>
    %110 = arith.truncf %109 : vector<2x5x64xf32> to vector<2x5x64xbf16>
    "tpu.trace_start"() <{level = 10 : i32, message = "hqd,hkd->hqk"}> : () -> ()
    %cst_34 = arith.constant dense<0.000000e+00> : vector<2x5x5xf32>
    %111 = tpu.matmul %98, %104, %cst_34 {dimension_numbers = #tpu.dot_dimension_numbers<[2], [2], [1], [1], [0, 0, 0, 1, 1, 1], [0], [0]>} : vector<2x5x64xbf16>, vector<2x5x64xbf16>, vector<2x5x5xf32> -> vector<2x5x5xf32>
    "tpu.trace_stop"() : () -> ()
    %cst_35 = arith.constant 1.250000e-01 : f32
    %112 = vector.broadcast %cst_35 : f32 to vector<2x5x5xf32>
    %113 = arith.mulf %111, %112 : vector<2x5x5xf32>
    %cst_36 = arith.constant dense<0xFF800000> : vector<2x5xf32>
    %114 = vector.multi_reduction <maximumf>, %113, %cst_36 [2] : vector<2x5x5xf32> to vector<2x5xf32>
    %115 = vector.shape_cast %114 : vector<2x5xf32> to vector<2x5x1xf32>
    %116 = vector.broadcast %115 : vector<2x5x1xf32> to vector<2x5x5xf32>
    %117 = arith.subf %113, %116 : vector<2x5x5xf32>
    %118 = math.exp %117 : vector<2x5x5xf32>
    %cst_37 = arith.constant dense<0.000000e+00> : vector<2x5xf32>
    %119 = vector.multi_reduction <add>, %118, %cst_37 [2] : vector<2x5x5xf32> to vector<2x5xf32>
    %120 = vector.shape_cast %119 : vector<2x5xf32> to vector<2x5x1xf32>
    %121 = tpu.reciprocal %120 {approx = true} : vector<2x5x1xf32> -> vector<2x5x1xf32>
    %122 = vector.broadcast %121 : vector<2x5x1xf32> to vector<2x5x5xf32>
    %123 = arith.mulf %118, %122 : vector<2x5x5xf32>
    %124 = arith.truncf %123 : vector<2x5x5xf32> to vector<2x5x5xbf16>
    "tpu.trace_start"() <{level = 10 : i32, message = "hqk,hkd->hqd"}> : () -> ()
    %cst_38 = arith.constant dense<0.000000e+00> : vector<2x5x64xf32>
    %125 = tpu.matmul %124, %110, %cst_38 {dimension_numbers = #tpu.dot_dimension_numbers<[2], [1], [1], [2], [0, 0, 0, 1, 1, 2], [0], [0]>} : vector<2x5x5xbf16>, vector<2x5x64xbf16>, vector<2x5x64xf32> -> vector<2x5x64xf32>
    "tpu.trace_stop"() : () -> ()
    %126 = vector.extract_strided_slice %125 {offsets = [0, 0, 0], sizes = [1, 5, 64], strides = [1, 1, 1]} : vector<2x5x64xf32> to vector<1x5x64xf32>
    %127 = vector.shape_cast %126 : vector<1x5x64xf32> to vector<5x64xf32>
    %128 = vector.extract_strided_slice %125 {offsets = [1, 0, 0], sizes = [1, 5, 64], strides = [1, 1, 1]} : vector<2x5x64xf32> to vector<1x5x64xf32>
    %129 = vector.shape_cast %128 : vector<1x5x64xf32> to vector<5x64xf32>
    %130 = tpu.concatenate %127, %129 in 1 : vector<5x64xf32>, vector<5x64xf32> -> vector<5x128xf32>
    %131 = tpu.concatenate %89, %130 in 0 : vector<5x128xf32>, vector<5x128xf32> -> vector<10x128xf32>
    %c0_39 = arith.constant 0 : index
    %c0_40 = arith.constant 0 : index
    %c0_41 = arith.constant 0 : index
    %132 = vector.load %arg9[%c0_39, %c0_40, %c0_41] : memref<2x128x128xbf16, #tpu.memory_space<vmem>>, vector<1x128x128xbf16>
    %133 = vector.shape_cast %132 : vector<1x128x128xbf16> to vector<128x128xbf16>
    %c0_42 = arith.constant 0 : index
    %c0_43 = arith.constant 0 : index
    %c0_44 = arith.constant 0 : index
    %134 = vector.load %arg10[%c0_42, %c0_43, %c0_44] : memref<2x1x128xf32, #tpu.memory_space<vmem>>, vector<1x1x128xf32>
    %135 = vector.shape_cast %134 : vector<1x1x128xf32> to vector<1x128xf32>
    %136 = arith.truncf %131 : vector<10x128xf32> to vector<10x128xbf16>
    %cst_45 = arith.constant dense<0.000000e+00> : vector<10x128xf32>
    %137 = tpu.matmul %136, %133, %cst_45 {dimension_numbers = #tpu.dot_dimension_numbers<[1], [0], [0], [1], [0, 0, 1, 1], [], []>} : vector<10x128xbf16>, vector<128x128xbf16>, vector<10x128xf32> -> vector<10x128xf32>
    %138 = vector.broadcast %135 : vector<1x128xf32> to vector<10x128xf32>
    %139 = arith.addf %137, %138 : vector<10x128xf32>
    %140 = arith.addf %16, %139 : vector<10x128xf32>
    %c0_46 = arith.constant 0 : index
    %c0_47 = arith.constant 0 : index
    %c0_48 = arith.constant 0 : index
    %141 = vector.load %arg11[%c0_46, %c0_47, %c0_48] : memref<2x1x128xf32, #tpu.memory_space<vmem>>, vector<1x1x128xf32>
    %142 = vector.shape_cast %141 : vector<1x1x128xf32> to vector<1x128xf32>
    %c0_49 = arith.constant 0 : index
    %c0_50 = arith.constant 0 : index
    %c0_51 = arith.constant 0 : index
    %143 = vector.load %arg12[%c0_49, %c0_50, %c0_51] : memref<2x1x128xf32, #tpu.memory_space<vmem>>, vector<1x1x128xf32>
    %144 = vector.shape_cast %143 : vector<1x1x128xf32> to vector<1x128xf32>
    %cst_52 = arith.constant dense<0.000000e+00> : vector<10xf32>
    %145 = vector.multi_reduction <add>, %140, %cst_52 [1] : vector<10x128xf32> to vector<10xf32>
    %146 = vector.shape_cast %145 : vector<10xf32> to vector<10x1xf32>
    %cst_53 = arith.constant 1.280000e+02 : f32
    %147 = vector.broadcast %cst_53 : f32 to vector<10x1xf32>
    %148 = arith.divf %146, %147 : vector<10x1xf32>
    %149 = vector.broadcast %148 : vector<10x1xf32> to vector<10x128xf32>
    %150 = arith.subf %140, %149 : vector<10x128xf32>
    %151 = arith.mulf %150, %150 : vector<10x128xf32>
    %cst_54 = arith.constant dense<0.000000e+00> : vector<10xf32>
    %152 = vector.multi_reduction <add>, %151, %cst_54 [1] : vector<10x128xf32> to vector<10xf32>
    %153 = vector.shape_cast %152 : vector<10xf32> to vector<10x1xf32>
    %cst_55 = arith.constant 1.280000e+02 : f32
    %154 = vector.broadcast %cst_55 : f32 to vector<10x1xf32>
    %155 = arith.divf %153, %154 : vector<10x1xf32>
    %cst_56 = arith.constant 9.99999997E-7 : f32
    %156 = vector.broadcast %cst_56 : f32 to vector<10x1xf32>
    %157 = arith.addf %155, %156 : vector<10x1xf32>
    %158 = math.rsqrt %157 : vector<10x1xf32>
    %159 = vector.broadcast %158 : vector<10x1xf32> to vector<10x128xf32>
    %160 = arith.mulf %150, %159 : vector<10x128xf32>
    %161 = vector.broadcast %142 : vector<1x128xf32> to vector<10x128xf32>
    %162 = arith.mulf %160, %161 : vector<10x128xf32>
    %163 = vector.broadcast %144 : vector<1x128xf32> to vector<10x128xf32>
    %164 = arith.addf %162, %163 : vector<10x128xf32>
    %c0_57 = arith.constant 0 : index
    %c0_58 = arith.constant 0 : index
    %c0_59 = arith.constant 0 : index
    %165 = vector.load %arg13[%c0_57, %c0_58, %c0_59] : memref<2x128x512xbf16, #tpu.memory_space<vmem>>, vector<1x128x512xbf16>
    %166 = vector.shape_cast %165 : vector<1x128x512xbf16> to vector<128x512xbf16>
    %c0_60 = arith.constant 0 : index
    %c0_61 = arith.constant 0 : index
    %c0_62 = arith.constant 0 : index
    %167 = vector.load %arg14[%c0_60, %c0_61, %c0_62] : memref<2x1x512xf32, #tpu.memory_space<vmem>>, vector<1x1x512xf32>
    %168 = vector.shape_cast %167 : vector<1x1x512xf32> to vector<1x512xf32>
    %169 = arith.truncf %164 : vector<10x128xf32> to vector<10x128xbf16>
    %cst_63 = arith.constant dense<0.000000e+00> : vector<10x512xf32>
    %170 = tpu.matmul %169, %166, %cst_63 {dimension_numbers = #tpu.dot_dimension_numbers<[1], [0], [0], [1], [0, 0, 1, 1], [], []>} : vector<10x128xbf16>, vector<128x512xbf16>, vector<10x512xf32> -> vector<10x512xf32>
    %171 = vector.broadcast %168 : vector<1x512xf32> to vector<10x512xf32>
    %172 = arith.addf %170, %171 : vector<10x512xf32>
    %cst_64 = arith.constant 5.000000e-01 : f32
    %173 = vector.broadcast %cst_64 : f32 to vector<10x512xf32>
    %174 = arith.mulf %173, %172 : vector<10x512xf32>
    %cst_65 = arith.constant 0.707106769 : f32
    %175 = vector.broadcast %cst_65 : f32 to vector<10x512xf32>
    %176 = arith.mulf %172, %175 : vector<10x512xf32>
    %cst_66 = arith.constant 0.000000e+00 : f32
    %177 = vector.broadcast %cst_66 : f32 to vector<10x512xf32>
    %178 = arith.cmpf oge, %176, %177 : vector<10x512xf32>
    %cst_67 = arith.constant 1.000000e+00 : f32
    %cst_68 = arith.constant -1.000000e+00 : f32
    %179 = vector.broadcast %cst_67 : f32 to vector<10x512xf32>
    %180 = vector.broadcast %cst_68 : f32 to vector<10x512xf32>
    %181 = arith.select %178, %179, %180 : vector<10x512xi1>, vector<10x512xf32>
    %182 = math.absf %176 : vector<10x512xf32>
    %cst_69 = arith.constant 0.327591091 : f32
    %183 = vector.broadcast %cst_69 : f32 to vector<10x512xf32>
    %184 = arith.mulf %183, %182 : vector<10x512xf32>
    %cst_70 = arith.constant 1.000000e+00 : f32
    %185 = vector.broadcast %cst_70 : f32 to vector<10x512xf32>
    %186 = arith.addf %185, %184 : vector<10x512xf32>
    %cst_71 = arith.constant 1.000000e+00 : f32
    %187 = vector.broadcast %cst_71 : f32 to vector<10x512xf32>
    %188 = arith.divf %187, %186 : vector<10x512xf32>
    %cst_72 = arith.constant 1.06140542 : f32
    %189 = vector.broadcast %cst_72 : f32 to vector<10x512xf32>
    %190 = arith.mulf %189, %188 : vector<10x512xf32>
    %cst_73 = arith.constant -1.45315206 : f32
    %191 = vector.broadcast %cst_73 : f32 to vector<10x512xf32>
    %192 = arith.addf %190, %191 : vector<10x512xf32>
    %193 = arith.mulf %192, %188 : vector<10x512xf32>
    %cst_74 = arith.constant 1.42141378 : f32
    %194 = vector.broadcast %cst_74 : f32 to vector<10x512xf32>
    %195 = arith.addf %193, %194 : vector<10x512xf32>
    %196 = arith.mulf %195, %188 : vector<10x512xf32>
    %cst_75 = arith.constant -0.284496725 : f32
    %197 = vector.broadcast %cst_75 : f32 to vector<10x512xf32>
    %198 = arith.addf %196, %197 : vector<10x512xf32>
    %199 = arith.mulf %198, %188 : vector<10x512xf32>
    %cst_76 = arith.constant 0.254829586 : f32
    %200 = vector.broadcast %cst_76 : f32 to vector<10x512xf32>
    %201 = arith.addf %199, %200 : vector<10x512xf32>
    %202 = arith.mulf %201, %188 : vector<10x512xf32>
    %203 = arith.mulf %182, %182 : vector<10x512xf32>
    %cst_77 = arith.constant 0.000000e+00 : f32
    %204 = vector.broadcast %cst_77 : f32 to vector<10x512xf32>
    %205 = arith.subf %204, %203 : vector<10x512xf32>
    %206 = math.exp %205 : vector<10x512xf32>
    %207 = arith.mulf %202, %206 : vector<10x512xf32>
    %cst_78 = arith.constant 1.000000e+00 : f32
    %208 = vector.broadcast %cst_78 : f32 to vector<10x512xf32>
    %209 = arith.subf %208, %207 : vector<10x512xf32>
    %210 = arith.mulf %181, %209 : vector<10x512xf32>
    %cst_79 = arith.constant 1.000000e+00 : f32
    %211 = vector.broadcast %cst_79 : f32 to vector<10x512xf32>
    %212 = arith.addf %211, %210 : vector<10x512xf32>
    %213 = arith.mulf %174, %212 : vector<10x512xf32>
    %c0_80 = arith.constant 0 : index
    %c0_81 = arith.constant 0 : index
    %c0_82 = arith.constant 0 : index
    %214 = vector.load %arg15[%c0_80, %c0_81, %c0_82] : memref<2x512x128xbf16, #tpu.memory_space<vmem>>, vector<1x512x128xbf16>
    %215 = vector.shape_cast %214 : vector<1x512x128xbf16> to vector<512x128xbf16>
    %c0_83 = arith.constant 0 : index
    %c0_84 = arith.constant 0 : index
    %c0_85 = arith.constant 0 : index
    %216 = vector.load %arg16[%c0_83, %c0_84, %c0_85] : memref<2x1x128xf32, #tpu.memory_space<vmem>>, vector<1x1x128xf32>
    %217 = vector.shape_cast %216 : vector<1x1x128xf32> to vector<1x128xf32>
    %218 = arith.truncf %213 : vector<10x512xf32> to vector<10x512xbf16>
    %cst_86 = arith.constant dense<0.000000e+00> : vector<10x128xf32>
    %219 = tpu.matmul %218, %215, %cst_86 {dimension_numbers = #tpu.dot_dimension_numbers<[1], [0], [0], [1], [0, 0, 1, 1], [], []>} : vector<10x512xbf16>, vector<512x128xbf16>, vector<10x128xf32> -> vector<10x128xf32>
    %220 = vector.broadcast %217 : vector<1x128xf32> to vector<10x128xf32>
    %221 = arith.addf %219, %220 : vector<10x128xf32>
    %222 = arith.addf %140, %221 : vector<10x128xf32>
    %c1 = arith.constant 1 : index
    %c0_87 = arith.constant 0 : index
    %c0_88 = arith.constant 0 : index
    %223 = vector.load %arg5[%c1, %c0_87, %c0_88] : memref<2x1x128xf32, #tpu.memory_space<vmem>>, vector<1x1x128xf32>
    %224 = vector.shape_cast %223 : vector<1x1x128xf32> to vector<1x128xf32>
    %c1_89 = arith.constant 1 : index
    %c0_90 = arith.constant 0 : index
    %c0_91 = arith.constant 0 : index
    %225 = vector.load %arg6[%c1_89, %c0_90, %c0_91] : memref<2x1x128xf32, #tpu.memory_space<vmem>>, vector<1x1x128xf32>
    %226 = vector.shape_cast %225 : vector<1x1x128xf32> to vector<1x128xf32>
    %cst_92 = arith.constant dense<0.000000e+00> : vector<10xf32>
    %227 = vector.multi_reduction <add>, %222, %cst_92 [1] : vector<10x128xf32> to vector<10xf32>
    %228 = vector.shape_cast %227 : vector<10xf32> to vector<10x1xf32>
    %cst_93 = arith.constant 1.280000e+02 : f32
    %229 = vector.broadcast %cst_93 : f32 to vector<10x1xf32>
    %230 = arith.divf %228, %229 : vector<10x1xf32>
    %231 = vector.broadcast %230 : vector<10x1xf32> to vector<10x128xf32>
    %232 = arith.subf %222, %231 : vector<10x128xf32>
    %233 = arith.mulf %232, %232 : vector<10x128xf32>
    %cst_94 = arith.constant dense<0.000000e+00> : vector<10xf32>
    %234 = vector.multi_reduction <add>, %233, %cst_94 [1] : vector<10x128xf32> to vector<10xf32>
    %235 = vector.shape_cast %234 : vector<10xf32> to vector<10x1xf32>
    %cst_95 = arith.constant 1.280000e+02 : f32
    %236 = vector.broadcast %cst_95 : f32 to vector<10x1xf32>
    %237 = arith.divf %235, %236 : vector<10x1xf32>
    %cst_96 = arith.constant 9.99999997E-7 : f32
    %238 = vector.broadcast %cst_96 : f32 to vector<10x1xf32>
    %239 = arith.addf %237, %238 : vector<10x1xf32>
    %240 = math.rsqrt %239 : vector<10x1xf32>
    %241 = vector.broadcast %240 : vector<10x1xf32> to vector<10x128xf32>
    %242 = arith.mulf %232, %241 : vector<10x128xf32>
    %243 = vector.broadcast %224 : vector<1x128xf32> to vector<10x128xf32>
    %244 = arith.mulf %242, %243 : vector<10x128xf32>
    %245 = vector.broadcast %226 : vector<1x128xf32> to vector<10x128xf32>
    %246 = arith.addf %244, %245 : vector<10x128xf32>
    %c1_97 = arith.constant 1 : index
    %c0_98 = arith.constant 0 : index
    %c0_99 = arith.constant 0 : index
    %247 = vector.load %arg7[%c1_97, %c0_98, %c0_99] : memref<2x128x384xbf16, #tpu.memory_space<vmem>>, vector<1x128x384xbf16>
    %248 = vector.shape_cast %247 : vector<1x128x384xbf16> to vector<128x384xbf16>
    %c1_100 = arith.constant 1 : index
    %c0_101 = arith.constant 0 : index
    %c0_102 = arith.constant 0 : index
    %249 = vector.load %arg8[%c1_100, %c0_101, %c0_102] : memref<2x1x384xf32, #tpu.memory_space<vmem>>, vector<1x1x384xf32>
    %250 = vector.shape_cast %249 : vector<1x1x384xf32> to vector<1x384xf32>
    %251 = arith.truncf %246 : vector<10x128xf32> to vector<10x128xbf16>
    %cst_103 = arith.constant dense<0.000000e+00> : vector<10x384xf32>
    %252 = tpu.matmul %251, %248, %cst_103 {dimension_numbers = #tpu.dot_dimension_numbers<[1], [0], [0], [1], [0, 0, 1, 1], [], []>} : vector<10x128xbf16>, vector<128x384xbf16>, vector<10x384xf32> -> vector<10x384xf32>
    %253 = vector.broadcast %250 : vector<1x384xf32> to vector<10x384xf32>
    %254 = arith.addf %252, %253 : vector<10x384xf32>
    %255 = vector.extract_strided_slice %254 {offsets = [0, 0], sizes = [5, 128], strides = [1, 1]} : vector<10x384xf32> to vector<5x128xf32>
    %256 = vector.extract_strided_slice %254 {offsets = [0, 128], sizes = [5, 128], strides = [1, 1]} : vector<10x384xf32> to vector<5x128xf32>
    %257 = vector.extract_strided_slice %254 {offsets = [0, 256], sizes = [5, 128], strides = [1, 1]} : vector<10x384xf32> to vector<5x128xf32>
    %258 = vector.extract_strided_slice %255 {offsets = [0, 0], sizes = [5, 64], strides = [1, 1]} : vector<5x128xf32> to vector<5x64xf32>
    %259 = vector.extract_strided_slice %255 {offsets = [0, 64], sizes = [5, 64], strides = [1, 1]} : vector<5x128xf32> to vector<5x64xf32>
    %260 = vector.shape_cast %258 : vector<5x64xf32> to vector<1x5x64xf32>
    %261 = vector.shape_cast %259 : vector<5x64xf32> to vector<1x5x64xf32>
    %262 = tpu.concatenate %260, %261 in 0 : vector<1x5x64xf32>, vector<1x5x64xf32> -> vector<2x5x64xf32>
    %263 = arith.truncf %262 : vector<2x5x64xf32> to vector<2x5x64xbf16>
    %264 = vector.extract_strided_slice %256 {offsets = [0, 0], sizes = [5, 64], strides = [1, 1]} : vector<5x128xf32> to vector<5x64xf32>
    %265 = vector.extract_strided_slice %256 {offsets = [0, 64], sizes = [5, 64], strides = [1, 1]} : vector<5x128xf32> to vector<5x64xf32>
    %266 = vector.shape_cast %264 : vector<5x64xf32> to vector<1x5x64xf32>
    %267 = vector.shape_cast %265 : vector<5x64xf32> to vector<1x5x64xf32>
    %268 = tpu.concatenate %266, %267 in 0 : vector<1x5x64xf32>, vector<1x5x64xf32> -> vector<2x5x64xf32>
    %269 = arith.truncf %268 : vector<2x5x64xf32> to vector<2x5x64xbf16>
    %270 = vector.extract_strided_slice %257 {offsets = [0, 0], sizes = [5, 64], strides = [1, 1]} : vector<5x128xf32> to vector<5x64xf32>
    %271 = vector.extract_strided_slice %257 {offsets = [0, 64], sizes = [5, 64], strides = [1, 1]} : vector<5x128xf32> to vector<5x64xf32>
    %272 = vector.shape_cast %270 : vector<5x64xf32> to vector<1x5x64xf32>
    %273 = vector.shape_cast %271 : vector<5x64xf32> to vector<1x5x64xf32>
    %274 = tpu.concatenate %272, %273 in 0 : vector<1x5x64xf32>, vector<1x5x64xf32> -> vector<2x5x64xf32>
    %275 = arith.truncf %274 : vector<2x5x64xf32> to vector<2x5x64xbf16>
    "tpu.trace_start"() <{level = 10 : i32, message = "hqd,hkd->hqk"}> : () -> ()
    %cst_104 = arith.constant dense<0.000000e+00> : vector<2x5x5xf32>
    %276 = tpu.matmul %263, %269, %cst_104 {dimension_numbers = #tpu.dot_dimension_numbers<[2], [2], [1], [1], [0, 0, 0, 1, 1, 1], [0], [0]>} : vector<2x5x64xbf16>, vector<2x5x64xbf16>, vector<2x5x5xf32> -> vector<2x5x5xf32>
    "tpu.trace_stop"() : () -> ()
    %cst_105 = arith.constant 1.250000e-01 : f32
    %277 = vector.broadcast %cst_105 : f32 to vector<2x5x5xf32>
    %278 = arith.mulf %276, %277 : vector<2x5x5xf32>
    %cst_106 = arith.constant dense<0xFF800000> : vector<2x5xf32>
    %279 = vector.multi_reduction <maximumf>, %278, %cst_106 [2] : vector<2x5x5xf32> to vector<2x5xf32>
    %280 = vector.shape_cast %279 : vector<2x5xf32> to vector<2x5x1xf32>
    %281 = vector.broadcast %280 : vector<2x5x1xf32> to vector<2x5x5xf32>
    %282 = arith.subf %278, %281 : vector<2x5x5xf32>
    %283 = math.exp %282 : vector<2x5x5xf32>
    %cst_107 = arith.constant dense<0.000000e+00> : vector<2x5xf32>
    %284 = vector.multi_reduction <add>, %283, %cst_107 [2] : vector<2x5x5xf32> to vector<2x5xf32>
    %285 = vector.shape_cast %284 : vector<2x5xf32> to vector<2x5x1xf32>
    %286 = tpu.reciprocal %285 {approx = true} : vector<2x5x1xf32> -> vector<2x5x1xf32>
    %287 = vector.broadcast %286 : vector<2x5x1xf32> to vector<2x5x5xf32>
    %288 = arith.mulf %283, %287 : vector<2x5x5xf32>
    %289 = arith.truncf %288 : vector<2x5x5xf32> to vector<2x5x5xbf16>
    "tpu.trace_start"() <{level = 10 : i32, message = "hqk,hkd->hqd"}> : () -> ()
    %cst_108 = arith.constant dense<0.000000e+00> : vector<2x5x64xf32>
    %290 = tpu.matmul %289, %275, %cst_108 {dimension_numbers = #tpu.dot_dimension_numbers<[2], [1], [1], [2], [0, 0, 0, 1, 1, 2], [0], [0]>} : vector<2x5x5xbf16>, vector<2x5x64xbf16>, vector<2x5x64xf32> -> vector<2x5x64xf32>
    "tpu.trace_stop"() : () -> ()
    %291 = vector.extract_strided_slice %290 {offsets = [0, 0, 0], sizes = [1, 5, 64], strides = [1, 1, 1]} : vector<2x5x64xf32> to vector<1x5x64xf32>
    %292 = vector.shape_cast %291 : vector<1x5x64xf32> to vector<5x64xf32>
    %293 = vector.extract_strided_slice %290 {offsets = [1, 0, 0], sizes = [1, 5, 64], strides = [1, 1, 1]} : vector<2x5x64xf32> to vector<1x5x64xf32>
    %294 = vector.shape_cast %293 : vector<1x5x64xf32> to vector<5x64xf32>
    %295 = tpu.concatenate %292, %294 in 1 : vector<5x64xf32>, vector<5x64xf32> -> vector<5x128xf32>
    %296 = vector.extract_strided_slice %254 {offsets = [5, 0], sizes = [5, 128], strides = [1, 1]} : vector<10x384xf32> to vector<5x128xf32>
    %297 = vector.extract_strided_slice %254 {offsets = [5, 128], sizes = [5, 128], strides = [1, 1]} : vector<10x384xf32> to vector<5x128xf32>
    %298 = vector.extract_strided_slice %254 {offsets = [5, 256], sizes = [5, 128], strides = [1, 1]} : vector<10x384xf32> to vector<5x128xf32>
    %299 = vector.extract_strided_slice %296 {offsets = [0, 0], sizes = [5, 64], strides = [1, 1]} : vector<5x128xf32> to vector<5x64xf32>
    %300 = vector.extract_strided_slice %296 {offsets = [0, 64], sizes = [5, 64], strides = [1, 1]} : vector<5x128xf32> to vector<5x64xf32>
    %301 = vector.shape_cast %299 : vector<5x64xf32> to vector<1x5x64xf32>
    %302 = vector.shape_cast %300 : vector<5x64xf32> to vector<1x5x64xf32>
    %303 = tpu.concatenate %301, %302 in 0 : vector<1x5x64xf32>, vector<1x5x64xf32> -> vector<2x5x64xf32>
    %304 = arith.truncf %303 : vector<2x5x64xf32> to vector<2x5x64xbf16>
    %305 = vector.extract_strided_slice %297 {offsets = [0, 0], sizes = [5, 64], strides = [1, 1]} : vector<5x128xf32> to vector<5x64xf32>
    %306 = vector.extract_strided_slice %297 {offsets = [0, 64], sizes = [5, 64], strides = [1, 1]} : vector<5x128xf32> to vector<5x64xf32>
    %307 = vector.shape_cast %305 : vector<5x64xf32> to vector<1x5x64xf32>
    %308 = vector.shape_cast %306 : vector<5x64xf32> to vector<1x5x64xf32>
    %309 = tpu.concatenate %307, %308 in 0 : vector<1x5x64xf32>, vector<1x5x64xf32> -> vector<2x5x64xf32>
    %310 = arith.truncf %309 : vector<2x5x64xf32> to vector<2x5x64xbf16>
    %311 = vector.extract_strided_slice %298 {offsets = [0, 0], sizes = [5, 64], strides = [1, 1]} : vector<5x128xf32> to vector<5x64xf32>
    %312 = vector.extract_strided_slice %298 {offsets = [0, 64], sizes = [5, 64], strides = [1, 1]} : vector<5x128xf32> to vector<5x64xf32>
    %313 = vector.shape_cast %311 : vector<5x64xf32> to vector<1x5x64xf32>
    %314 = vector.shape_cast %312 : vector<5x64xf32> to vector<1x5x64xf32>
    %315 = tpu.concatenate %313, %314 in 0 : vector<1x5x64xf32>, vector<1x5x64xf32> -> vector<2x5x64xf32>
    %316 = arith.truncf %315 : vector<2x5x64xf32> to vector<2x5x64xbf16>
    "tpu.trace_start"() <{level = 10 : i32, message = "hqd,hkd->hqk"}> : () -> ()
    %cst_109 = arith.constant dense<0.000000e+00> : vector<2x5x5xf32>
    %317 = tpu.matmul %304, %310, %cst_109 {dimension_numbers = #tpu.dot_dimension_numbers<[2], [2], [1], [1], [0, 0, 0, 1, 1, 1], [0], [0]>} : vector<2x5x64xbf16>, vector<2x5x64xbf16>, vector<2x5x5xf32> -> vector<2x5x5xf32>
    "tpu.trace_stop"() : () -> ()
    %cst_110 = arith.constant 1.250000e-01 : f32
    %318 = vector.broadcast %cst_110 : f32 to vector<2x5x5xf32>
    %319 = arith.mulf %317, %318 : vector<2x5x5xf32>
    %cst_111 = arith.constant dense<0xFF800000> : vector<2x5xf32>
    %320 = vector.multi_reduction <maximumf>, %319, %cst_111 [2] : vector<2x5x5xf32> to vector<2x5xf32>
    %321 = vector.shape_cast %320 : vector<2x5xf32> to vector<2x5x1xf32>
    %322 = vector.broadcast %321 : vector<2x5x1xf32> to vector<2x5x5xf32>
    %323 = arith.subf %319, %322 : vector<2x5x5xf32>
    %324 = math.exp %323 : vector<2x5x5xf32>
    %cst_112 = arith.constant dense<0.000000e+00> : vector<2x5xf32>
    %325 = vector.multi_reduction <add>, %324, %cst_112 [2] : vector<2x5x5xf32> to vector<2x5xf32>
    %326 = vector.shape_cast %325 : vector<2x5xf32> to vector<2x5x1xf32>
    %327 = tpu.reciprocal %326 {approx = true} : vector<2x5x1xf32> -> vector<2x5x1xf32>
    %328 = vector.broadcast %327 : vector<2x5x1xf32> to vector<2x5x5xf32>
    %329 = arith.mulf %324, %328 : vector<2x5x5xf32>
    %330 = arith.truncf %329 : vector<2x5x5xf32> to vector<2x5x5xbf16>
    "tpu.trace_start"() <{level = 10 : i32, message = "hqk,hkd->hqd"}> : () -> ()
    %cst_113 = arith.constant dense<0.000000e+00> : vector<2x5x64xf32>
    %331 = tpu.matmul %330, %316, %cst_113 {dimension_numbers = #tpu.dot_dimension_numbers<[2], [1], [1], [2], [0, 0, 0, 1, 1, 2], [0], [0]>} : vector<2x5x5xbf16>, vector<2x5x64xbf16>, vector<2x5x64xf32> -> vector<2x5x64xf32>
    "tpu.trace_stop"() : () -> ()
    %332 = vector.extract_strided_slice %331 {offsets = [0, 0, 0], sizes = [1, 5, 64], strides = [1, 1, 1]} : vector<2x5x64xf32> to vector<1x5x64xf32>
    %333 = vector.shape_cast %332 : vector<1x5x64xf32> to vector<5x64xf32>
    %334 = vector.extract_strided_slice %331 {offsets = [1, 0, 0], sizes = [1, 5, 64], strides = [1, 1, 1]} : vector<2x5x64xf32> to vector<1x5x64xf32>
    %335 = vector.shape_cast %334 : vector<1x5x64xf32> to vector<5x64xf32>
    %336 = tpu.concatenate %333, %335 in 1 : vector<5x64xf32>, vector<5x64xf32> -> vector<5x128xf32>
    %337 = tpu.concatenate %295, %336 in 0 : vector<5x128xf32>, vector<5x128xf32> -> vector<10x128xf32>
    %c1_114 = arith.constant 1 : index
    %c0_115 = arith.constant 0 : index
    %c0_116 = arith.constant 0 : index
    %338 = vector.load %arg9[%c1_114, %c0_115, %c0_116] : memref<2x128x128xbf16, #tpu.memory_space<vmem>>, vector<1x128x128xbf16>
    %339 = vector.shape_cast %338 : vector<1x128x128xbf16> to vector<128x128xbf16>
    %c1_117 = arith.constant 1 : index
    %c0_118 = arith.constant 0 : index
    %c0_119 = arith.constant 0 : index
    %340 = vector.load %arg10[%c1_117, %c0_118, %c0_119] : memref<2x1x128xf32, #tpu.memory_space<vmem>>, vector<1x1x128xf32>
    %341 = vector.shape_cast %340 : vector<1x1x128xf32> to vector<1x128xf32>
    %342 = arith.truncf %337 : vector<10x128xf32> to vector<10x128xbf16>
    %cst_120 = arith.constant dense<0.000000e+00> : vector<10x128xf32>
    %343 = tpu.matmul %342, %339, %cst_120 {dimension_numbers = #tpu.dot_dimension_numbers<[1], [0], [0], [1], [0, 0, 1, 1], [], []>} : vector<10x128xbf16>, vector<128x128xbf16>, vector<10x128xf32> -> vector<10x128xf32>
    %344 = vector.broadcast %341 : vector<1x128xf32> to vector<10x128xf32>
    %345 = arith.addf %343, %344 : vector<10x128xf32>
    %346 = arith.addf %222, %345 : vector<10x128xf32>
    %c1_121 = arith.constant 1 : index
    %c0_122 = arith.constant 0 : index
    %c0_123 = arith.constant 0 : index
    %347 = vector.load %arg11[%c1_121, %c0_122, %c0_123] : memref<2x1x128xf32, #tpu.memory_space<vmem>>, vector<1x1x128xf32>
    %348 = vector.shape_cast %347 : vector<1x1x128xf32> to vector<1x128xf32>
    %c1_124 = arith.constant 1 : index
    %c0_125 = arith.constant 0 : index
    %c0_126 = arith.constant 0 : index
    %349 = vector.load %arg12[%c1_124, %c0_125, %c0_126] : memref<2x1x128xf32, #tpu.memory_space<vmem>>, vector<1x1x128xf32>
    %350 = vector.shape_cast %349 : vector<1x1x128xf32> to vector<1x128xf32>
    %cst_127 = arith.constant dense<0.000000e+00> : vector<10xf32>
    %351 = vector.multi_reduction <add>, %346, %cst_127 [1] : vector<10x128xf32> to vector<10xf32>
    %352 = vector.shape_cast %351 : vector<10xf32> to vector<10x1xf32>
    %cst_128 = arith.constant 1.280000e+02 : f32
    %353 = vector.broadcast %cst_128 : f32 to vector<10x1xf32>
    %354 = arith.divf %352, %353 : vector<10x1xf32>
    %355 = vector.broadcast %354 : vector<10x1xf32> to vector<10x128xf32>
    %356 = arith.subf %346, %355 : vector<10x128xf32>
    %357 = arith.mulf %356, %356 : vector<10x128xf32>
    %cst_129 = arith.constant dense<0.000000e+00> : vector<10xf32>
    %358 = vector.multi_reduction <add>, %357, %cst_129 [1] : vector<10x128xf32> to vector<10xf32>
    %359 = vector.shape_cast %358 : vector<10xf32> to vector<10x1xf32>
    %cst_130 = arith.constant 1.280000e+02 : f32
    %360 = vector.broadcast %cst_130 : f32 to vector<10x1xf32>
    %361 = arith.divf %359, %360 : vector<10x1xf32>
    %cst_131 = arith.constant 9.99999997E-7 : f32
    %362 = vector.broadcast %cst_131 : f32 to vector<10x1xf32>
    %363 = arith.addf %361, %362 : vector<10x1xf32>
    %364 = math.rsqrt %363 : vector<10x1xf32>
    %365 = vector.broadcast %364 : vector<10x1xf32> to vector<10x128xf32>
    %366 = arith.mulf %356, %365 : vector<10x128xf32>
    %367 = vector.broadcast %348 : vector<1x128xf32> to vector<10x128xf32>
    %368 = arith.mulf %366, %367 : vector<10x128xf32>
    %369 = vector.broadcast %350 : vector<1x128xf32> to vector<10x128xf32>
    %370 = arith.addf %368, %369 : vector<10x128xf32>
    %c1_132 = arith.constant 1 : index
    %c0_133 = arith.constant 0 : index
    %c0_134 = arith.constant 0 : index
    %371 = vector.load %arg13[%c1_132, %c0_133, %c0_134] : memref<2x128x512xbf16, #tpu.memory_space<vmem>>, vector<1x128x512xbf16>
    %372 = vector.shape_cast %371 : vector<1x128x512xbf16> to vector<128x512xbf16>
    %c1_135 = arith.constant 1 : index
    %c0_136 = arith.constant 0 : index
    %c0_137 = arith.constant 0 : index
    %373 = vector.load %arg14[%c1_135, %c0_136, %c0_137] : memref<2x1x512xf32, #tpu.memory_space<vmem>>, vector<1x1x512xf32>
    %374 = vector.shape_cast %373 : vector<1x1x512xf32> to vector<1x512xf32>
    %375 = arith.truncf %370 : vector<10x128xf32> to vector<10x128xbf16>
    %cst_138 = arith.constant dense<0.000000e+00> : vector<10x512xf32>
    %376 = tpu.matmul %375, %372, %cst_138 {dimension_numbers = #tpu.dot_dimension_numbers<[1], [0], [0], [1], [0, 0, 1, 1], [], []>} : vector<10x128xbf16>, vector<128x512xbf16>, vector<10x512xf32> -> vector<10x512xf32>
    %377 = vector.broadcast %374 : vector<1x512xf32> to vector<10x512xf32>
    %378 = arith.addf %376, %377 : vector<10x512xf32>
    %cst_139 = arith.constant 5.000000e-01 : f32
    %379 = vector.broadcast %cst_139 : f32 to vector<10x512xf32>
    %380 = arith.mulf %379, %378 : vector<10x512xf32>
    %cst_140 = arith.constant 0.707106769 : f32
    %381 = vector.broadcast %cst_140 : f32 to vector<10x512xf32>
    %382 = arith.mulf %378, %381 : vector<10x512xf32>
    %cst_141 = arith.constant 0.000000e+00 : f32
    %383 = vector.broadcast %cst_141 : f32 to vector<10x512xf32>
    %384 = arith.cmpf oge, %382, %383 : vector<10x512xf32>
    %cst_142 = arith.constant 1.000000e+00 : f32
    %cst_143 = arith.constant -1.000000e+00 : f32
    %385 = vector.broadcast %cst_142 : f32 to vector<10x512xf32>
    %386 = vector.broadcast %cst_143 : f32 to vector<10x512xf32>
    %387 = arith.select %384, %385, %386 : vector<10x512xi1>, vector<10x512xf32>
    %388 = math.absf %382 : vector<10x512xf32>
    %cst_144 = arith.constant 0.327591091 : f32
    %389 = vector.broadcast %cst_144 : f32 to vector<10x512xf32>
    %390 = arith.mulf %389, %388 : vector<10x512xf32>
    %cst_145 = arith.constant 1.000000e+00 : f32
    %391 = vector.broadcast %cst_145 : f32 to vector<10x512xf32>
    %392 = arith.addf %391, %390 : vector<10x512xf32>
    %cst_146 = arith.constant 1.000000e+00 : f32
    %393 = vector.broadcast %cst_146 : f32 to vector<10x512xf32>
    %394 = arith.divf %393, %392 : vector<10x512xf32>
    %cst_147 = arith.constant 1.06140542 : f32
    %395 = vector.broadcast %cst_147 : f32 to vector<10x512xf32>
    %396 = arith.mulf %395, %394 : vector<10x512xf32>
    %cst_148 = arith.constant -1.45315206 : f32
    %397 = vector.broadcast %cst_148 : f32 to vector<10x512xf32>
    %398 = arith.addf %396, %397 : vector<10x512xf32>
    %399 = arith.mulf %398, %394 : vector<10x512xf32>
    %cst_149 = arith.constant 1.42141378 : f32
    %400 = vector.broadcast %cst_149 : f32 to vector<10x512xf32>
    %401 = arith.addf %399, %400 : vector<10x512xf32>
    %402 = arith.mulf %401, %394 : vector<10x512xf32>
    %cst_150 = arith.constant -0.284496725 : f32
    %403 = vector.broadcast %cst_150 : f32 to vector<10x512xf32>
    %404 = arith.addf %402, %403 : vector<10x512xf32>
    %405 = arith.mulf %404, %394 : vector<10x512xf32>
    %cst_151 = arith.constant 0.254829586 : f32
    %406 = vector.broadcast %cst_151 : f32 to vector<10x512xf32>
    %407 = arith.addf %405, %406 : vector<10x512xf32>
    %408 = arith.mulf %407, %394 : vector<10x512xf32>
    %409 = arith.mulf %388, %388 : vector<10x512xf32>
    %cst_152 = arith.constant 0.000000e+00 : f32
    %410 = vector.broadcast %cst_152 : f32 to vector<10x512xf32>
    %411 = arith.subf %410, %409 : vector<10x512xf32>
    %412 = math.exp %411 : vector<10x512xf32>
    %413 = arith.mulf %408, %412 : vector<10x512xf32>
    %cst_153 = arith.constant 1.000000e+00 : f32
    %414 = vector.broadcast %cst_153 : f32 to vector<10x512xf32>
    %415 = arith.subf %414, %413 : vector<10x512xf32>
    %416 = arith.mulf %387, %415 : vector<10x512xf32>
    %cst_154 = arith.constant 1.000000e+00 : f32
    %417 = vector.broadcast %cst_154 : f32 to vector<10x512xf32>
    %418 = arith.addf %417, %416 : vector<10x512xf32>
    %419 = arith.mulf %380, %418 : vector<10x512xf32>
    %c1_155 = arith.constant 1 : index
    %c0_156 = arith.constant 0 : index
    %c0_157 = arith.constant 0 : index
    %420 = vector.load %arg15[%c1_155, %c0_156, %c0_157] : memref<2x512x128xbf16, #tpu.memory_space<vmem>>, vector<1x512x128xbf16>
    %421 = vector.shape_cast %420 : vector<1x512x128xbf16> to vector<512x128xbf16>
    %c1_158 = arith.constant 1 : index
    %c0_159 = arith.constant 0 : index
    %c0_160 = arith.constant 0 : index
    %422 = vector.load %arg16[%c1_158, %c0_159, %c0_160] : memref<2x1x128xf32, #tpu.memory_space<vmem>>, vector<1x1x128xf32>
    %423 = vector.shape_cast %422 : vector<1x1x128xf32> to vector<1x128xf32>
    %424 = arith.truncf %419 : vector<10x512xf32> to vector<10x512xbf16>
    %cst_161 = arith.constant dense<0.000000e+00> : vector<10x128xf32>
    %425 = tpu.matmul %424, %421, %cst_161 {dimension_numbers = #tpu.dot_dimension_numbers<[1], [0], [0], [1], [0, 0, 1, 1], [], []>} : vector<10x512xbf16>, vector<512x128xbf16>, vector<10x128xf32> -> vector<10x128xf32>
    %426 = vector.broadcast %423 : vector<1x128xf32> to vector<10x128xf32>
    %427 = arith.addf %425, %426 : vector<10x128xf32>
    %428 = arith.addf %346, %427 : vector<10x128xf32>
    %c0_162 = arith.constant 0 : index
    %c0_163 = arith.constant 0 : index
    %429 = vector.load %arg17[%c0_162, %c0_163] : memref<1x128xf32, #tpu.memory_space<vmem>>, vector<1x128xf32>
    %c0_164 = arith.constant 0 : index
    %c0_165 = arith.constant 0 : index
    %430 = vector.load %arg18[%c0_164, %c0_165] : memref<1x128xf32, #tpu.memory_space<vmem>>, vector<1x128xf32>
    %cst_166 = arith.constant dense<0.000000e+00> : vector<10xf32>
    %431 = vector.multi_reduction <add>, %428, %cst_166 [1] : vector<10x128xf32> to vector<10xf32>
    %432 = vector.shape_cast %431 : vector<10xf32> to vector<10x1xf32>
    %cst_167 = arith.constant 1.280000e+02 : f32
    %433 = vector.broadcast %cst_167 : f32 to vector<10x1xf32>
    %434 = arith.divf %432, %433 : vector<10x1xf32>
    %435 = vector.broadcast %434 : vector<10x1xf32> to vector<10x128xf32>
    %436 = arith.subf %428, %435 : vector<10x128xf32>
    %437 = arith.mulf %436, %436 : vector<10x128xf32>
    %cst_168 = arith.constant dense<0.000000e+00> : vector<10xf32>
    %438 = vector.multi_reduction <add>, %437, %cst_168 [1] : vector<10x128xf32> to vector<10xf32>
    %439 = vector.shape_cast %438 : vector<10xf32> to vector<10x1xf32>
    %cst_169 = arith.constant 1.280000e+02 : f32
    %440 = vector.broadcast %cst_169 : f32 to vector<10x1xf32>
    %441 = arith.divf %439, %440 : vector<10x1xf32>
    %cst_170 = arith.constant 9.99999997E-7 : f32
    %442 = vector.broadcast %cst_170 : f32 to vector<10x1xf32>
    %443 = arith.addf %441, %442 : vector<10x1xf32>
    %444 = math.rsqrt %443 : vector<10x1xf32>
    %445 = vector.broadcast %444 : vector<10x1xf32> to vector<10x128xf32>
    %446 = arith.mulf %436, %445 : vector<10x128xf32>
    %447 = vector.broadcast %429 : vector<1x128xf32> to vector<10x128xf32>
    %448 = arith.mulf %446, %447 : vector<10x128xf32>
    %449 = vector.broadcast %430 : vector<1x128xf32> to vector<10x128xf32>
    %450 = arith.addf %448, %449 : vector<10x128xf32>
    %451 = arith.truncf %450 : vector<10x128xf32> to vector<10x128xbf16>
    %c0_171 = arith.constant 0 : index
    %c0_172 = arith.constant 0 : index
    %452 = vector.load %arg19[%c0_171, %c0_172] : memref<10x128xbf16, #tpu.memory_space<vmem>>, vector<10x128xbf16>
    tpu.vector_store %arg19[%c0_171, %c0_172], %451 {strides = array<i32>} : memref<10x128xbf16, #tpu.memory_space<vmem>>, vector<10x128xbf16>,
    return
  }
}

module attributes {stable_mosaic.version = 11 : i64} {
  func.func @_text_kernel(%arg0: memref<2xi32, #tpu.memory_space<smem>>, %arg1: memref<16x128xf32, #tpu.memory_space<vmem>>, %arg2: memref<8x128xf32, #tpu.memory_space<vmem>>, %arg3: memref<2x8xf32, #tpu.memory_space<vmem>>, %arg4: memref<10x128xbf16, #tpu.memory_space<vmem>>, %arg5: memref<1x128xf32, #tpu.memory_space<vmem>>, %arg6: memref<1x128xf32, #tpu.memory_space<vmem>>, %arg7: memref<2x128x384xbf16, #tpu.memory_space<vmem>>, %arg8: memref<2x1x384xf32, #tpu.memory_space<vmem>>, %arg9: memref<2x128x128xbf16, #tpu.memory_space<vmem>>, %arg10: memref<2x1x128xf32, #tpu.memory_space<vmem>>, %arg11: memref<2x1x128xf32, #tpu.memory_space<vmem>>, %arg12: memref<2x1x128xf32, #tpu.memory_space<vmem>>, %arg13: memref<2x128x128xbf16, #tpu.memory_space<vmem>>, %arg14: memref<2x1x128xf32, #tpu.memory_space<vmem>>, %arg15: memref<2x128x256xbf16, #tpu.memory_space<vmem>>, %arg16: memref<2x1x256xf32, #tpu.memory_space<vmem>>, %arg17: memref<2x128x128xbf16, #tpu.memory_space<vmem>>, %arg18: memref<2x1x128xf32, #tpu.memory_space<vmem>>, %arg19: memref<2x1x128xf32, #tpu.memory_space<vmem>>, %arg20: memref<2x1x128xf32, #tpu.memory_space<vmem>>, %arg21: memref<2x128x512xbf16, #tpu.memory_space<vmem>>, %arg22: memref<2x1x512xf32, #tpu.memory_space<vmem>>, %arg23: memref<2x512x128xbf16, #tpu.memory_space<vmem>>, %arg24: memref<2x1x128xf32, #tpu.memory_space<vmem>>, %arg25: memref<2x1x128xf32, #tpu.memory_space<vmem>>, %arg26: memref<2x1x128xf32, #tpu.memory_space<vmem>>, %arg27: memref<128x1024xbf16, #tpu.memory_space<vmem>>, %arg28: memref<1x1024xf32, #tpu.memory_space<vmem>>, %arg29: memref<2x1024xf32, #tpu.memory_space<vmem>>) attributes {dimension_semantics = [], scalar_prefetch = 0 : i64, scratch_operands = 0 : i64, tpu.core_type = #tpu.core_type<tc>} {
    %c0 = arith.constant 0 : index
    %c0_0 = arith.constant 0 : index
    %0 = vector.load %arg2[%c0, %c0_0] : memref<8x128xf32, #tpu.memory_space<vmem>>, vector<8x128xf32>
    %1 = tpu.concatenate %0, %0 in 0 : vector<8x128xf32>, vector<8x128xf32> -> vector<16x128xf32>
    %c0_1 = arith.constant 0 : index
    %c0_2 = arith.constant 0 : index
    %2 = vector.load %arg1[%c0_1, %c0_2] : memref<16x128xf32, #tpu.memory_space<vmem>>, vector<16x128xf32>
    %3 = arith.addf %2, %1 : vector<16x128xf32>
    %c0_3 = arith.constant 0 : index
    %c0_4 = arith.constant 0 : index
    %4 = vector.load %arg5[%c0_3, %c0_4] : memref<1x128xf32, #tpu.memory_space<vmem>>, vector<1x128xf32>
    %c0_5 = arith.constant 0 : index
    %c0_6 = arith.constant 0 : index
    %5 = vector.load %arg6[%c0_5, %c0_6] : memref<1x128xf32, #tpu.memory_space<vmem>>, vector<1x128xf32>
    %cst = arith.constant dense<0.000000e+00> : vector<16xf32>
    %6 = vector.multi_reduction <add>, %3, %cst [1] : vector<16x128xf32> to vector<16xf32>
    %7 = vector.shape_cast %6 : vector<16xf32> to vector<16x1xf32>
    %cst_7 = arith.constant 1.280000e+02 : f32
    %8 = vector.broadcast %cst_7 : f32 to vector<16x1xf32>
    %9 = arith.divf %7, %8 : vector<16x1xf32>
    %10 = vector.broadcast %9 : vector<16x1xf32> to vector<16x128xf32>
    %11 = arith.subf %3, %10 : vector<16x128xf32>
    %12 = arith.mulf %11, %11 : vector<16x128xf32>
    %cst_8 = arith.constant dense<0.000000e+00> : vector<16xf32>
    %13 = vector.multi_reduction <add>, %12, %cst_8 [1] : vector<16x128xf32> to vector<16xf32>
    %14 = vector.shape_cast %13 : vector<16xf32> to vector<16x1xf32>
    %cst_9 = arith.constant 1.280000e+02 : f32
    %15 = vector.broadcast %cst_9 : f32 to vector<16x1xf32>
    %16 = arith.divf %14, %15 : vector<16x1xf32>
    %cst_10 = arith.constant 9.99999996E-13 : f32
    %17 = vector.broadcast %cst_10 : f32 to vector<16x1xf32>
    %18 = arith.addf %16, %17 : vector<16x1xf32>
    %19 = math.rsqrt %18 : vector<16x1xf32>
    %20 = vector.broadcast %19 : vector<16x1xf32> to vector<16x128xf32>
    %21 = arith.mulf %11, %20 : vector<16x128xf32>
    %22 = vector.broadcast %4 : vector<1x128xf32> to vector<16x128xf32>
    %23 = arith.mulf %21, %22 : vector<16x128xf32>
    %24 = vector.broadcast %5 : vector<1x128xf32> to vector<16x128xf32>
    %25 = arith.addf %23, %24 : vector<16x128xf32>
    %26 = tpu.iota {dimensions = array<i32: 0>} : vector<8x8xi32>
    %27 = tpu.iota {dimensions = array<i32: 1>} : vector<8x8xi32>
    %c0_11 = arith.constant 0 : index
    %c0_12 = arith.constant 0 : index
    %28 = vector.load %arg3[%c0_11, %c0_12] : memref<2x8xf32, #tpu.memory_space<vmem>>, vector<2x8xf32>
    %29 = arith.cmpi sle, %27, %26 : vector<8x8xi32>
    %30 = vector.extract_strided_slice %28 {offsets = [0, 0], sizes = [1, 8], strides = [1, 1]} : vector<2x8xf32> to vector<1x8xf32>
    %cst_13 = arith.constant 0.000000e+00 : f32
    %31 = vector.broadcast %cst_13 : f32 to vector<1x8xf32>
    %32 = arith.cmpf ogt, %30, %31 : vector<1x8xf32>
    %33 = vector.broadcast %32 : vector<1x8xi1> to vector<8x8xi1>
    %34 = arith.andi %29, %33 : vector<8x8xi1>
    %cst_14 = arith.constant 0.000000e+00 : f32
    %cst_15 = arith.constant -1.000000e+04 : f32
    %35 = vector.broadcast %cst_14 : f32 to vector<8x8xf32>
    %36 = vector.broadcast %cst_15 : f32 to vector<8x8xf32>
    %37 = arith.select %34, %35, %36 : vector<8x8xi1>, vector<8x8xf32>
    %38 = arith.cmpi sle, %27, %26 : vector<8x8xi32>
    %39 = vector.extract_strided_slice %28 {offsets = [1, 0], sizes = [1, 8], strides = [1, 1]} : vector<2x8xf32> to vector<1x8xf32>
    %cst_16 = arith.constant 0.000000e+00 : f32
    %40 = vector.broadcast %cst_16 : f32 to vector<1x8xf32>
    %41 = arith.cmpf ogt, %39, %40 : vector<1x8xf32>
    %42 = vector.broadcast %41 : vector<1x8xi1> to vector<8x8xi1>
    %43 = arith.andi %38, %42 : vector<8x8xi1>
    %cst_17 = arith.constant 0.000000e+00 : f32
    %cst_18 = arith.constant -1.000000e+04 : f32
    %44 = vector.broadcast %cst_17 : f32 to vector<8x8xf32>
    %45 = vector.broadcast %cst_18 : f32 to vector<8x8xf32>
    %46 = arith.select %43, %44, %45 : vector<8x8xi1>, vector<8x8xf32>
    %c0_19 = arith.constant 0 : index
    %c0_20 = arith.constant 0 : index
    %47 = vector.load %arg4[%c0_19, %c0_20] : memref<10x128xbf16, #tpu.memory_space<vmem>>, vector<10x128xbf16>
    %c0_21 = arith.constant 0 : index
    %c0_22 = arith.constant 0 : index
    %c0_23 = arith.constant 0 : index
    %48 = vector.load %arg7[%c0_21, %c0_22, %c0_23] : memref<2x128x384xbf16, #tpu.memory_space<vmem>>, vector<1x128x384xbf16>
    %49 = vector.shape_cast %48 : vector<1x128x384xbf16> to vector<128x384xbf16>
    %c0_24 = arith.constant 0 : index
    %c0_25 = arith.constant 0 : index
    %c0_26 = arith.constant 0 : index
    %50 = vector.load %arg8[%c0_24, %c0_25, %c0_26] : memref<2x1x384xf32, #tpu.memory_space<vmem>>, vector<1x1x384xf32>
    %51 = vector.shape_cast %50 : vector<1x1x384xf32> to vector<1x384xf32>
    %52 = arith.truncf %25 : vector<16x128xf32> to vector<16x128xbf16>
    %cst_27 = arith.constant dense<0.000000e+00> : vector<16x384xf32>
    %53 = tpu.matmul %52, %49, %cst_27 {dimension_numbers = #tpu.dot_dimension_numbers<[1], [0], [0], [1], [0, 0, 1, 1], [], []>} : vector<16x128xbf16>, vector<128x384xbf16>, vector<16x384xf32> -> vector<16x384xf32>
    %54 = vector.broadcast %51 : vector<1x384xf32> to vector<16x384xf32>
    %55 = arith.addf %53, %54 : vector<16x384xf32>
    %56 = vector.extract_strided_slice %55 {offsets = [0, 0], sizes = [8, 128], strides = [1, 1]} : vector<16x384xf32> to vector<8x128xf32>
    %57 = vector.extract_strided_slice %55 {offsets = [0, 128], sizes = [8, 128], strides = [1, 1]} : vector<16x384xf32> to vector<8x128xf32>
    %58 = vector.extract_strided_slice %55 {offsets = [0, 256], sizes = [8, 128], strides = [1, 1]} : vector<16x384xf32> to vector<8x128xf32>
    %59 = vector.extract_strided_slice %56 {offsets = [0, 0], sizes = [8, 64], strides = [1, 1]} : vector<8x128xf32> to vector<8x64xf32>
    %60 = vector.extract_strided_slice %56 {offsets = [0, 64], sizes = [8, 64], strides = [1, 1]} : vector<8x128xf32> to vector<8x64xf32>
    %61 = vector.shape_cast %59 : vector<8x64xf32> to vector<1x8x64xf32>
    %62 = vector.shape_cast %60 : vector<8x64xf32> to vector<1x8x64xf32>
    %63 = tpu.concatenate %61, %62 in 0 : vector<1x8x64xf32>, vector<1x8x64xf32> -> vector<2x8x64xf32>
    %64 = arith.truncf %63 : vector<2x8x64xf32> to vector<2x8x64xbf16>
    %65 = vector.extract_strided_slice %57 {offsets = [0, 0], sizes = [8, 64], strides = [1, 1]} : vector<8x128xf32> to vector<8x64xf32>
    %66 = vector.extract_strided_slice %57 {offsets = [0, 64], sizes = [8, 64], strides = [1, 1]} : vector<8x128xf32> to vector<8x64xf32>
    %67 = vector.shape_cast %65 : vector<8x64xf32> to vector<1x8x64xf32>
    %68 = vector.shape_cast %66 : vector<8x64xf32> to vector<1x8x64xf32>
    %69 = tpu.concatenate %67, %68 in 0 : vector<1x8x64xf32>, vector<1x8x64xf32> -> vector<2x8x64xf32>
    %70 = arith.truncf %69 : vector<2x8x64xf32> to vector<2x8x64xbf16>
    %71 = vector.extract_strided_slice %58 {offsets = [0, 0], sizes = [8, 64], strides = [1, 1]} : vector<8x128xf32> to vector<8x64xf32>
    %72 = vector.extract_strided_slice %58 {offsets = [0, 64], sizes = [8, 64], strides = [1, 1]} : vector<8x128xf32> to vector<8x64xf32>
    %73 = vector.shape_cast %71 : vector<8x64xf32> to vector<1x8x64xf32>
    %74 = vector.shape_cast %72 : vector<8x64xf32> to vector<1x8x64xf32>
    %75 = tpu.concatenate %73, %74 in 0 : vector<1x8x64xf32>, vector<1x8x64xf32> -> vector<2x8x64xf32>
    %76 = arith.truncf %75 : vector<2x8x64xf32> to vector<2x8x64xbf16>
    "tpu.trace_start"() <{level = 10 : i32, message = "hqd,hkd->hqk"}> : () -> ()
    %cst_28 = arith.constant dense<0.000000e+00> : vector<2x8x8xf32>
    %77 = tpu.matmul %64, %70, %cst_28 {dimension_numbers = #tpu.dot_dimension_numbers<[2], [2], [1], [1], [0, 0, 0, 1, 1, 1], [0], [0]>} : vector<2x8x64xbf16>, vector<2x8x64xbf16>, vector<2x8x8xf32> -> vector<2x8x8xf32>
    "tpu.trace_stop"() : () -> ()
    %cst_29 = arith.constant 1.250000e-01 : f32
    %78 = vector.broadcast %cst_29 : f32 to vector<2x8x8xf32>
    %79 = arith.mulf %77, %78 : vector<2x8x8xf32>
    %80 = vector.shape_cast %37 : vector<8x8xf32> to vector<1x8x8xf32>
    %81 = vector.broadcast %80 : vector<1x8x8xf32> to vector<2x8x8xf32>
    %82 = arith.addf %79, %81 : vector<2x8x8xf32>
    %cst_30 = arith.constant dense<0xFF800000> : vector<2x8xf32>
    %83 = vector.multi_reduction <maximumf>, %82, %cst_30 [2] : vector<2x8x8xf32> to vector<2x8xf32>
    %84 = vector.shape_cast %83 : vector<2x8xf32> to vector<2x8x1xf32>
    %85 = vector.broadcast %84 : vector<2x8x1xf32> to vector<2x8x8xf32>
    %86 = arith.subf %82, %85 : vector<2x8x8xf32>
    %87 = math.exp %86 : vector<2x8x8xf32>
    %cst_31 = arith.constant dense<0.000000e+00> : vector<2x8xf32>
    %88 = vector.multi_reduction <add>, %87, %cst_31 [2] : vector<2x8x8xf32> to vector<2x8xf32>
    %89 = vector.shape_cast %88 : vector<2x8xf32> to vector<2x8x1xf32>
    %90 = tpu.reciprocal %89 {approx = true} : vector<2x8x1xf32> -> vector<2x8x1xf32>
    %91 = vector.broadcast %90 : vector<2x8x1xf32> to vector<2x8x8xf32>
    %92 = arith.mulf %87, %91 : vector<2x8x8xf32>
    %93 = arith.truncf %92 : vector<2x8x8xf32> to vector<2x8x8xbf16>
    "tpu.trace_start"() <{level = 10 : i32, message = "hqk,hkd->hqd"}> : () -> ()
    %cst_32 = arith.constant dense<0.000000e+00> : vector<2x8x64xf32>
    %94 = tpu.matmul %93, %76, %cst_32 {dimension_numbers = #tpu.dot_dimension_numbers<[2], [1], [1], [2], [0, 0, 0, 1, 1, 2], [0], [0]>} : vector<2x8x8xbf16>, vector<2x8x64xbf16>, vector<2x8x64xf32> -> vector<2x8x64xf32>
    "tpu.trace_stop"() : () -> ()
    %95 = vector.extract_strided_slice %94 {offsets = [0, 0, 0], sizes = [1, 8, 64], strides = [1, 1, 1]} : vector<2x8x64xf32> to vector<1x8x64xf32>
    %96 = vector.shape_cast %95 : vector<1x8x64xf32> to vector<8x64xf32>
    %97 = vector.extract_strided_slice %94 {offsets = [1, 0, 0], sizes = [1, 8, 64], strides = [1, 1, 1]} : vector<2x8x64xf32> to vector<1x8x64xf32>
    %98 = vector.shape_cast %97 : vector<1x8x64xf32> to vector<8x64xf32>
    %99 = tpu.concatenate %96, %98 in 1 : vector<8x64xf32>, vector<8x64xf32> -> vector<8x128xf32>
    %100 = vector.extract_strided_slice %55 {offsets = [8, 0], sizes = [8, 128], strides = [1, 1]} : vector<16x384xf32> to vector<8x128xf32>
    %101 = vector.extract_strided_slice %55 {offsets = [8, 128], sizes = [8, 128], strides = [1, 1]} : vector<16x384xf32> to vector<8x128xf32>
    %102 = vector.extract_strided_slice %55 {offsets = [8, 256], sizes = [8, 128], strides = [1, 1]} : vector<16x384xf32> to vector<8x128xf32>
    %103 = vector.extract_strided_slice %100 {offsets = [0, 0], sizes = [8, 64], strides = [1, 1]} : vector<8x128xf32> to vector<8x64xf32>
    %104 = vector.extract_strided_slice %100 {offsets = [0, 64], sizes = [8, 64], strides = [1, 1]} : vector<8x128xf32> to vector<8x64xf32>
    %105 = vector.shape_cast %103 : vector<8x64xf32> to vector<1x8x64xf32>
    %106 = vector.shape_cast %104 : vector<8x64xf32> to vector<1x8x64xf32>
    %107 = tpu.concatenate %105, %106 in 0 : vector<1x8x64xf32>, vector<1x8x64xf32> -> vector<2x8x64xf32>
    %108 = arith.truncf %107 : vector<2x8x64xf32> to vector<2x8x64xbf16>
    %109 = vector.extract_strided_slice %101 {offsets = [0, 0], sizes = [8, 64], strides = [1, 1]} : vector<8x128xf32> to vector<8x64xf32>
    %110 = vector.extract_strided_slice %101 {offsets = [0, 64], sizes = [8, 64], strides = [1, 1]} : vector<8x128xf32> to vector<8x64xf32>
    %111 = vector.shape_cast %109 : vector<8x64xf32> to vector<1x8x64xf32>
    %112 = vector.shape_cast %110 : vector<8x64xf32> to vector<1x8x64xf32>
    %113 = tpu.concatenate %111, %112 in 0 : vector<1x8x64xf32>, vector<1x8x64xf32> -> vector<2x8x64xf32>
    %114 = arith.truncf %113 : vector<2x8x64xf32> to vector<2x8x64xbf16>
    %115 = vector.extract_strided_slice %102 {offsets = [0, 0], sizes = [8, 64], strides = [1, 1]} : vector<8x128xf32> to vector<8x64xf32>
    %116 = vector.extract_strided_slice %102 {offsets = [0, 64], sizes = [8, 64], strides = [1, 1]} : vector<8x128xf32> to vector<8x64xf32>
    %117 = vector.shape_cast %115 : vector<8x64xf32> to vector<1x8x64xf32>
    %118 = vector.shape_cast %116 : vector<8x64xf32> to vector<1x8x64xf32>
    %119 = tpu.concatenate %117, %118 in 0 : vector<1x8x64xf32>, vector<1x8x64xf32> -> vector<2x8x64xf32>
    %120 = arith.truncf %119 : vector<2x8x64xf32> to vector<2x8x64xbf16>
    "tpu.trace_start"() <{level = 10 : i32, message = "hqd,hkd->hqk"}> : () -> ()
    %cst_33 = arith.constant dense<0.000000e+00> : vector<2x8x8xf32>
    %121 = tpu.matmul %108, %114, %cst_33 {dimension_numbers = #tpu.dot_dimension_numbers<[2], [2], [1], [1], [0, 0, 0, 1, 1, 1], [0], [0]>} : vector<2x8x64xbf16>, vector<2x8x64xbf16>, vector<2x8x8xf32> -> vector<2x8x8xf32>
    "tpu.trace_stop"() : () -> ()
    %cst_34 = arith.constant 1.250000e-01 : f32
    %122 = vector.broadcast %cst_34 : f32 to vector<2x8x8xf32>
    %123 = arith.mulf %121, %122 : vector<2x8x8xf32>
    %124 = vector.shape_cast %46 : vector<8x8xf32> to vector<1x8x8xf32>
    %125 = vector.broadcast %124 : vector<1x8x8xf32> to vector<2x8x8xf32>
    %126 = arith.addf %123, %125 : vector<2x8x8xf32>
    %cst_35 = arith.constant dense<0xFF800000> : vector<2x8xf32>
    %127 = vector.multi_reduction <maximumf>, %126, %cst_35 [2] : vector<2x8x8xf32> to vector<2x8xf32>
    %128 = vector.shape_cast %127 : vector<2x8xf32> to vector<2x8x1xf32>
    %129 = vector.broadcast %128 : vector<2x8x1xf32> to vector<2x8x8xf32>
    %130 = arith.subf %126, %129 : vector<2x8x8xf32>
    %131 = math.exp %130 : vector<2x8x8xf32>
    %cst_36 = arith.constant dense<0.000000e+00> : vector<2x8xf32>
    %132 = vector.multi_reduction <add>, %131, %cst_36 [2] : vector<2x8x8xf32> to vector<2x8xf32>
    %133 = vector.shape_cast %132 : vector<2x8xf32> to vector<2x8x1xf32>
    %134 = tpu.reciprocal %133 {approx = true} : vector<2x8x1xf32> -> vector<2x8x1xf32>
    %135 = vector.broadcast %134 : vector<2x8x1xf32> to vector<2x8x8xf32>
    %136 = arith.mulf %131, %135 : vector<2x8x8xf32>
    %137 = arith.truncf %136 : vector<2x8x8xf32> to vector<2x8x8xbf16>
    "tpu.trace_start"() <{level = 10 : i32, message = "hqk,hkd->hqd"}> : () -> ()
    %cst_37 = arith.constant dense<0.000000e+00> : vector<2x8x64xf32>
    %138 = tpu.matmul %137, %120, %cst_37 {dimension_numbers = #tpu.dot_dimension_numbers<[2], [1], [1], [2], [0, 0, 0, 1, 1, 2], [0], [0]>} : vector<2x8x8xbf16>, vector<2x8x64xbf16>, vector<2x8x64xf32> -> vector<2x8x64xf32>
    "tpu.trace_stop"() : () -> ()
    %139 = vector.extract_strided_slice %138 {offsets = [0, 0, 0], sizes = [1, 8, 64], strides = [1, 1, 1]} : vector<2x8x64xf32> to vector<1x8x64xf32>
    %140 = vector.shape_cast %139 : vector<1x8x64xf32> to vector<8x64xf32>
    %141 = vector.extract_strided_slice %138 {offsets = [1, 0, 0], sizes = [1, 8, 64], strides = [1, 1, 1]} : vector<2x8x64xf32> to vector<1x8x64xf32>
    %142 = vector.shape_cast %141 : vector<1x8x64xf32> to vector<8x64xf32>
    %143 = tpu.concatenate %140, %142 in 1 : vector<8x64xf32>, vector<8x64xf32> -> vector<8x128xf32>
    %144 = tpu.concatenate %99, %143 in 0 : vector<8x128xf32>, vector<8x128xf32> -> vector<16x128xf32>
    %c0_38 = arith.constant 0 : index
    %c0_39 = arith.constant 0 : index
    %c0_40 = arith.constant 0 : index
    %145 = vector.load %arg9[%c0_38, %c0_39, %c0_40] : memref<2x128x128xbf16, #tpu.memory_space<vmem>>, vector<1x128x128xbf16>
    %146 = vector.shape_cast %145 : vector<1x128x128xbf16> to vector<128x128xbf16>
    %c0_41 = arith.constant 0 : index
    %c0_42 = arith.constant 0 : index
    %c0_43 = arith.constant 0 : index
    %147 = vector.load %arg10[%c0_41, %c0_42, %c0_43] : memref<2x1x128xf32, #tpu.memory_space<vmem>>, vector<1x1x128xf32>
    %148 = vector.shape_cast %147 : vector<1x1x128xf32> to vector<1x128xf32>
    %149 = arith.truncf %144 : vector<16x128xf32> to vector<16x128xbf16>
    %cst_44 = arith.constant dense<0.000000e+00> : vector<16x128xf32>
    %150 = tpu.matmul %149, %146, %cst_44 {dimension_numbers = #tpu.dot_dimension_numbers<[1], [0], [0], [1], [0, 0, 1, 1], [], []>} : vector<16x128xbf16>, vector<128x128xbf16>, vector<16x128xf32> -> vector<16x128xf32>
    %151 = vector.broadcast %148 : vector<1x128xf32> to vector<16x128xf32>
    %152 = arith.addf %150, %151 : vector<16x128xf32>
    %153 = arith.addf %25, %152 : vector<16x128xf32>
    %c0_45 = arith.constant 0 : index
    %c0_46 = arith.constant 0 : index
    %c0_47 = arith.constant 0 : index
    %154 = vector.load %arg11[%c0_45, %c0_46, %c0_47] : memref<2x1x128xf32, #tpu.memory_space<vmem>>, vector<1x1x128xf32>
    %155 = vector.shape_cast %154 : vector<1x1x128xf32> to vector<1x128xf32>
    %c0_48 = arith.constant 0 : index
    %c0_49 = arith.constant 0 : index
    %c0_50 = arith.constant 0 : index
    %156 = vector.load %arg12[%c0_48, %c0_49, %c0_50] : memref<2x1x128xf32, #tpu.memory_space<vmem>>, vector<1x1x128xf32>
    %157 = vector.shape_cast %156 : vector<1x1x128xf32> to vector<1x128xf32>
    %cst_51 = arith.constant dense<0.000000e+00> : vector<16xf32>
    %158 = vector.multi_reduction <add>, %153, %cst_51 [1] : vector<16x128xf32> to vector<16xf32>
    %159 = vector.shape_cast %158 : vector<16xf32> to vector<16x1xf32>
    %cst_52 = arith.constant 1.280000e+02 : f32
    %160 = vector.broadcast %cst_52 : f32 to vector<16x1xf32>
    %161 = arith.divf %159, %160 : vector<16x1xf32>
    %162 = vector.broadcast %161 : vector<16x1xf32> to vector<16x128xf32>
    %163 = arith.subf %153, %162 : vector<16x128xf32>
    %164 = arith.mulf %163, %163 : vector<16x128xf32>
    %cst_53 = arith.constant dense<0.000000e+00> : vector<16xf32>
    %165 = vector.multi_reduction <add>, %164, %cst_53 [1] : vector<16x128xf32> to vector<16xf32>
    %166 = vector.shape_cast %165 : vector<16xf32> to vector<16x1xf32>
    %cst_54 = arith.constant 1.280000e+02 : f32
    %167 = vector.broadcast %cst_54 : f32 to vector<16x1xf32>
    %168 = arith.divf %166, %167 : vector<16x1xf32>
    %cst_55 = arith.constant 9.99999996E-13 : f32
    %169 = vector.broadcast %cst_55 : f32 to vector<16x1xf32>
    %170 = arith.addf %168, %169 : vector<16x1xf32>
    %171 = math.rsqrt %170 : vector<16x1xf32>
    %172 = vector.broadcast %171 : vector<16x1xf32> to vector<16x128xf32>
    %173 = arith.mulf %163, %172 : vector<16x128xf32>
    %174 = vector.broadcast %155 : vector<1x128xf32> to vector<16x128xf32>
    %175 = arith.mulf %173, %174 : vector<16x128xf32>
    %176 = vector.broadcast %157 : vector<1x128xf32> to vector<16x128xf32>
    %177 = arith.addf %175, %176 : vector<16x128xf32>
    %c0_56 = arith.constant 0 : index
    %c0_57 = arith.constant 0 : index
    %c0_58 = arith.constant 0 : index
    %178 = vector.load %arg13[%c0_56, %c0_57, %c0_58] : memref<2x128x128xbf16, #tpu.memory_space<vmem>>, vector<1x128x128xbf16>
    %179 = vector.shape_cast %178 : vector<1x128x128xbf16> to vector<128x128xbf16>
    %c0_59 = arith.constant 0 : index
    %c0_60 = arith.constant 0 : index
    %c0_61 = arith.constant 0 : index
    %180 = vector.load %arg14[%c0_59, %c0_60, %c0_61] : memref<2x1x128xf32, #tpu.memory_space<vmem>>, vector<1x1x128xf32>
    %181 = vector.shape_cast %180 : vector<1x1x128xf32> to vector<1x128xf32>
    %182 = arith.truncf %177 : vector<16x128xf32> to vector<16x128xbf16>
    %cst_62 = arith.constant dense<0.000000e+00> : vector<16x128xf32>
    %183 = tpu.matmul %182, %179, %cst_62 {dimension_numbers = #tpu.dot_dimension_numbers<[1], [0], [0], [1], [0, 0, 1, 1], [], []>} : vector<16x128xbf16>, vector<128x128xbf16>, vector<16x128xf32> -> vector<16x128xf32>
    %184 = vector.broadcast %181 : vector<1x128xf32> to vector<16x128xf32>
    %185 = arith.addf %183, %184 : vector<16x128xf32>
    %c0_63 = arith.constant 0 : index
    %c0_64 = arith.constant 0 : index
    %c0_65 = arith.constant 0 : index
    %186 = vector.load %arg15[%c0_63, %c0_64, %c0_65] : memref<2x128x256xbf16, #tpu.memory_space<vmem>>, vector<1x128x256xbf16>
    %187 = vector.shape_cast %186 : vector<1x128x256xbf16> to vector<128x256xbf16>
    %c0_66 = arith.constant 0 : index
    %c0_67 = arith.constant 0 : index
    %c0_68 = arith.constant 0 : index
    %188 = vector.load %arg16[%c0_66, %c0_67, %c0_68] : memref<2x1x256xf32, #tpu.memory_space<vmem>>, vector<1x1x256xf32>
    %189 = vector.shape_cast %188 : vector<1x1x256xf32> to vector<1x256xf32>
    %cst_69 = arith.constant dense<0.000000e+00> : vector<10x256xf32>
    %190 = tpu.matmul %47, %187, %cst_69 {dimension_numbers = #tpu.dot_dimension_numbers<[1], [0], [0], [1], [0, 0, 1, 1], [], []>} : vector<10x128xbf16>, vector<128x256xbf16>, vector<10x256xf32> -> vector<10x256xf32>
    %191 = vector.broadcast %189 : vector<1x256xf32> to vector<10x256xf32>
    %192 = arith.addf %190, %191 : vector<10x256xf32>
    %193 = vector.extract_strided_slice %185 {offsets = [0, 0], sizes = [8, 128], strides = [1, 1]} : vector<16x128xf32> to vector<8x128xf32>
    %194 = vector.extract_strided_slice %192 {offsets = [0, 0], sizes = [5, 128], strides = [1, 1]} : vector<10x256xf32> to vector<5x128xf32>
    %195 = vector.extract_strided_slice %192 {offsets = [0, 128], sizes = [5, 128], strides = [1, 1]} : vector<10x256xf32> to vector<5x128xf32>
    %196 = vector.extract_strided_slice %193 {offsets = [0, 0], sizes = [8, 64], strides = [1, 1]} : vector<8x128xf32> to vector<8x64xf32>
    %197 = vector.extract_strided_slice %193 {offsets = [0, 64], sizes = [8, 64], strides = [1, 1]} : vector<8x128xf32> to vector<8x64xf32>
    %198 = vector.shape_cast %196 : vector<8x64xf32> to vector<1x8x64xf32>
    %199 = vector.shape_cast %197 : vector<8x64xf32> to vector<1x8x64xf32>
    %200 = tpu.concatenate %198, %199 in 0 : vector<1x8x64xf32>, vector<1x8x64xf32> -> vector<2x8x64xf32>
    %201 = arith.truncf %200 : vector<2x8x64xf32> to vector<2x8x64xbf16>
    %202 = vector.extract_strided_slice %194 {offsets = [0, 0], sizes = [5, 64], strides = [1, 1]} : vector<5x128xf32> to vector<5x64xf32>
    %203 = vector.extract_strided_slice %194 {offsets = [0, 64], sizes = [5, 64], strides = [1, 1]} : vector<5x128xf32> to vector<5x64xf32>
    %204 = vector.shape_cast %202 : vector<5x64xf32> to vector<1x5x64xf32>
    %205 = vector.shape_cast %203 : vector<5x64xf32> to vector<1x5x64xf32>
    %206 = tpu.concatenate %204, %205 in 0 : vector<1x5x64xf32>, vector<1x5x64xf32> -> vector<2x5x64xf32>
    %207 = arith.truncf %206 : vector<2x5x64xf32> to vector<2x5x64xbf16>
    %208 = vector.extract_strided_slice %195 {offsets = [0, 0], sizes = [5, 64], strides = [1, 1]} : vector<5x128xf32> to vector<5x64xf32>
    %209 = vector.extract_strided_slice %195 {offsets = [0, 64], sizes = [5, 64], strides = [1, 1]} : vector<5x128xf32> to vector<5x64xf32>
    %210 = vector.shape_cast %208 : vector<5x64xf32> to vector<1x5x64xf32>
    %211 = vector.shape_cast %209 : vector<5x64xf32> to vector<1x5x64xf32>
    %212 = tpu.concatenate %210, %211 in 0 : vector<1x5x64xf32>, vector<1x5x64xf32> -> vector<2x5x64xf32>
    %213 = arith.truncf %212 : vector<2x5x64xf32> to vector<2x5x64xbf16>
    "tpu.trace_start"() <{level = 10 : i32, message = "hqd,hkd->hqk"}> : () -> ()
    %cst_70 = arith.constant dense<0.000000e+00> : vector<2x8x5xf32>
    %214 = tpu.matmul %201, %207, %cst_70 {dimension_numbers = #tpu.dot_dimension_numbers<[2], [2], [1], [1], [0, 0, 0, 1, 1, 1], [0], [0]>} : vector<2x8x64xbf16>, vector<2x5x64xbf16>, vector<2x8x5xf32> -> vector<2x8x5xf32>
    "tpu.trace_stop"() : () -> ()
    %cst_71 = arith.constant 1.250000e-01 : f32
    %215 = vector.broadcast %cst_71 : f32 to vector<2x8x5xf32>
    %216 = arith.mulf %214, %215 : vector<2x8x5xf32>
    %cst_72 = arith.constant dense<0xFF800000> : vector<2x8xf32>
    %217 = vector.multi_reduction <maximumf>, %216, %cst_72 [2] : vector<2x8x5xf32> to vector<2x8xf32>
    %218 = vector.shape_cast %217 : vector<2x8xf32> to vector<2x8x1xf32>
    %219 = vector.broadcast %218 : vector<2x8x1xf32> to vector<2x8x5xf32>
    %220 = arith.subf %216, %219 : vector<2x8x5xf32>
    %221 = math.exp %220 : vector<2x8x5xf32>
    %cst_73 = arith.constant dense<0.000000e+00> : vector<2x8xf32>
    %222 = vector.multi_reduction <add>, %221, %cst_73 [2] : vector<2x8x5xf32> to vector<2x8xf32>
    %223 = vector.shape_cast %222 : vector<2x8xf32> to vector<2x8x1xf32>
    %224 = tpu.reciprocal %223 {approx = true} : vector<2x8x1xf32> -> vector<2x8x1xf32>
    %225 = vector.broadcast %224 : vector<2x8x1xf32> to vector<2x8x5xf32>
    %226 = arith.mulf %221, %225 : vector<2x8x5xf32>
    %227 = arith.truncf %226 : vector<2x8x5xf32> to vector<2x8x5xbf16>
    "tpu.trace_start"() <{level = 10 : i32, message = "hqk,hkd->hqd"}> : () -> ()
    %cst_74 = arith.constant dense<0.000000e+00> : vector<2x8x64xf32>
    %228 = tpu.matmul %227, %213, %cst_74 {dimension_numbers = #tpu.dot_dimension_numbers<[2], [1], [1], [2], [0, 0, 0, 1, 1, 2], [0], [0]>} : vector<2x8x5xbf16>, vector<2x5x64xbf16>, vector<2x8x64xf32> -> vector<2x8x64xf32>
    "tpu.trace_stop"() : () -> ()
    %229 = vector.extract_strided_slice %228 {offsets = [0, 0, 0], sizes = [1, 8, 64], strides = [1, 1, 1]} : vector<2x8x64xf32> to vector<1x8x64xf32>
    %230 = vector.shape_cast %229 : vector<1x8x64xf32> to vector<8x64xf32>
    %231 = vector.extract_strided_slice %228 {offsets = [1, 0, 0], sizes = [1, 8, 64], strides = [1, 1, 1]} : vector<2x8x64xf32> to vector<1x8x64xf32>
    %232 = vector.shape_cast %231 : vector<1x8x64xf32> to vector<8x64xf32>
    %233 = tpu.concatenate %230, %232 in 1 : vector<8x64xf32>, vector<8x64xf32> -> vector<8x128xf32>
    %234 = vector.extract_strided_slice %185 {offsets = [8, 0], sizes = [8, 128], strides = [1, 1]} : vector<16x128xf32> to vector<8x128xf32>
    %235 = vector.extract_strided_slice %192 {offsets = [5, 0], sizes = [5, 128], strides = [1, 1]} : vector<10x256xf32> to vector<5x128xf32>
    %236 = vector.extract_strided_slice %192 {offsets = [5, 128], sizes = [5, 128], strides = [1, 1]} : vector<10x256xf32> to vector<5x128xf32>
    %237 = vector.extract_strided_slice %234 {offsets = [0, 0], sizes = [8, 64], strides = [1, 1]} : vector<8x128xf32> to vector<8x64xf32>
    %238 = vector.extract_strided_slice %234 {offsets = [0, 64], sizes = [8, 64], strides = [1, 1]} : vector<8x128xf32> to vector<8x64xf32>
    %239 = vector.shape_cast %237 : vector<8x64xf32> to vector<1x8x64xf32>
    %240 = vector.shape_cast %238 : vector<8x64xf32> to vector<1x8x64xf32>
    %241 = tpu.concatenate %239, %240 in 0 : vector<1x8x64xf32>, vector<1x8x64xf32> -> vector<2x8x64xf32>
    %242 = arith.truncf %241 : vector<2x8x64xf32> to vector<2x8x64xbf16>
    %243 = vector.extract_strided_slice %235 {offsets = [0, 0], sizes = [5, 64], strides = [1, 1]} : vector<5x128xf32> to vector<5x64xf32>
    %244 = vector.extract_strided_slice %235 {offsets = [0, 64], sizes = [5, 64], strides = [1, 1]} : vector<5x128xf32> to vector<5x64xf32>
    %245 = vector.shape_cast %243 : vector<5x64xf32> to vector<1x5x64xf32>
    %246 = vector.shape_cast %244 : vector<5x64xf32> to vector<1x5x64xf32>
    %247 = tpu.concatenate %245, %246 in 0 : vector<1x5x64xf32>, vector<1x5x64xf32> -> vector<2x5x64xf32>
    %248 = arith.truncf %247 : vector<2x5x64xf32> to vector<2x5x64xbf16>
    %249 = vector.extract_strided_slice %236 {offsets = [0, 0], sizes = [5, 64], strides = [1, 1]} : vector<5x128xf32> to vector<5x64xf32>
    %250 = vector.extract_strided_slice %236 {offsets = [0, 64], sizes = [5, 64], strides = [1, 1]} : vector<5x128xf32> to vector<5x64xf32>
    %251 = vector.shape_cast %249 : vector<5x64xf32> to vector<1x5x64xf32>
    %252 = vector.shape_cast %250 : vector<5x64xf32> to vector<1x5x64xf32>
    %253 = tpu.concatenate %251, %252 in 0 : vector<1x5x64xf32>, vector<1x5x64xf32> -> vector<2x5x64xf32>
    %254 = arith.truncf %253 : vector<2x5x64xf32> to vector<2x5x64xbf16>
    "tpu.trace_start"() <{level = 10 : i32, message = "hqd,hkd->hqk"}> : () -> ()
    %cst_75 = arith.constant dense<0.000000e+00> : vector<2x8x5xf32>
    %255 = tpu.matmul %242, %248, %cst_75 {dimension_numbers = #tpu.dot_dimension_numbers<[2], [2], [1], [1], [0, 0, 0, 1, 1, 1], [0], [0]>} : vector<2x8x64xbf16>, vector<2x5x64xbf16>, vector<2x8x5xf32> -> vector<2x8x5xf32>
    "tpu.trace_stop"() : () -> ()
    %cst_76 = arith.constant 1.250000e-01 : f32
    %256 = vector.broadcast %cst_76 : f32 to vector<2x8x5xf32>
    %257 = arith.mulf %255, %256 : vector<2x8x5xf32>
    %cst_77 = arith.constant dense<0xFF800000> : vector<2x8xf32>
    %258 = vector.multi_reduction <maximumf>, %257, %cst_77 [2] : vector<2x8x5xf32> to vector<2x8xf32>
    %259 = vector.shape_cast %258 : vector<2x8xf32> to vector<2x8x1xf32>
    %260 = vector.broadcast %259 : vector<2x8x1xf32> to vector<2x8x5xf32>
    %261 = arith.subf %257, %260 : vector<2x8x5xf32>
    %262 = math.exp %261 : vector<2x8x5xf32>
    %cst_78 = arith.constant dense<0.000000e+00> : vector<2x8xf32>
    %263 = vector.multi_reduction <add>, %262, %cst_78 [2] : vector<2x8x5xf32> to vector<2x8xf32>
    %264 = vector.shape_cast %263 : vector<2x8xf32> to vector<2x8x1xf32>
    %265 = tpu.reciprocal %264 {approx = true} : vector<2x8x1xf32> -> vector<2x8x1xf32>
    %266 = vector.broadcast %265 : vector<2x8x1xf32> to vector<2x8x5xf32>
    %267 = arith.mulf %262, %266 : vector<2x8x5xf32>
    %268 = arith.truncf %267 : vector<2x8x5xf32> to vector<2x8x5xbf16>
    "tpu.trace_start"() <{level = 10 : i32, message = "hqk,hkd->hqd"}> : () -> ()
    %cst_79 = arith.constant dense<0.000000e+00> : vector<2x8x64xf32>
    %269 = tpu.matmul %268, %254, %cst_79 {dimension_numbers = #tpu.dot_dimension_numbers<[2], [1], [1], [2], [0, 0, 0, 1, 1, 2], [0], [0]>} : vector<2x8x5xbf16>, vector<2x5x64xbf16>, vector<2x8x64xf32> -> vector<2x8x64xf32>
    "tpu.trace_stop"() : () -> ()
    %270 = vector.extract_strided_slice %269 {offsets = [0, 0, 0], sizes = [1, 8, 64], strides = [1, 1, 1]} : vector<2x8x64xf32> to vector<1x8x64xf32>
    %271 = vector.shape_cast %270 : vector<1x8x64xf32> to vector<8x64xf32>
    %272 = vector.extract_strided_slice %269 {offsets = [1, 0, 0], sizes = [1, 8, 64], strides = [1, 1, 1]} : vector<2x8x64xf32> to vector<1x8x64xf32>
    %273 = vector.shape_cast %272 : vector<1x8x64xf32> to vector<8x64xf32>
    %274 = tpu.concatenate %271, %273 in 1 : vector<8x64xf32>, vector<8x64xf32> -> vector<8x128xf32>
    %275 = tpu.concatenate %233, %274 in 0 : vector<8x128xf32>, vector<8x128xf32> -> vector<16x128xf32>
    %c0_80 = arith.constant 0 : index
    %c0_81 = arith.constant 0 : index
    %c0_82 = arith.constant 0 : index
    %276 = vector.load %arg17[%c0_80, %c0_81, %c0_82] : memref<2x128x128xbf16, #tpu.memory_space<vmem>>, vector<1x128x128xbf16>
    %277 = vector.shape_cast %276 : vector<1x128x128xbf16> to vector<128x128xbf16>
    %c0_83 = arith.constant 0 : index
    %c0_84 = arith.constant 0 : index
    %c0_85 = arith.constant 0 : index
    %278 = vector.load %arg18[%c0_83, %c0_84, %c0_85] : memref<2x1x128xf32, #tpu.memory_space<vmem>>, vector<1x1x128xf32>
    %279 = vector.shape_cast %278 : vector<1x1x128xf32> to vector<1x128xf32>
    %280 = arith.truncf %275 : vector<16x128xf32> to vector<16x128xbf16>
    %cst_86 = arith.constant dense<0.000000e+00> : vector<16x128xf32>
    %281 = tpu.matmul %280, %277, %cst_86 {dimension_numbers = #tpu.dot_dimension_numbers<[1], [0], [0], [1], [0, 0, 1, 1], [], []>} : vector<16x128xbf16>, vector<128x128xbf16>, vector<16x128xf32> -> vector<16x128xf32>
    %282 = vector.broadcast %279 : vector<1x128xf32> to vector<16x128xf32>
    %283 = arith.addf %281, %282 : vector<16x128xf32>
    %284 = arith.addf %177, %283 : vector<16x128xf32>
    %c0_87 = arith.constant 0 : index
    %c0_88 = arith.constant 0 : index
    %c0_89 = arith.constant 0 : index
    %285 = vector.load %arg19[%c0_87, %c0_88, %c0_89] : memref<2x1x128xf32, #tpu.memory_space<vmem>>, vector<1x1x128xf32>
    %286 = vector.shape_cast %285 : vector<1x1x128xf32> to vector<1x128xf32>
    %c0_90 = arith.constant 0 : index
    %c0_91 = arith.constant 0 : index
    %c0_92 = arith.constant 0 : index
    %287 = vector.load %arg20[%c0_90, %c0_91, %c0_92] : memref<2x1x128xf32, #tpu.memory_space<vmem>>, vector<1x1x128xf32>
    %288 = vector.shape_cast %287 : vector<1x1x128xf32> to vector<1x128xf32>
    %cst_93 = arith.constant dense<0.000000e+00> : vector<16xf32>
    %289 = vector.multi_reduction <add>, %284, %cst_93 [1] : vector<16x128xf32> to vector<16xf32>
    %290 = vector.shape_cast %289 : vector<16xf32> to vector<16x1xf32>
    %cst_94 = arith.constant 1.280000e+02 : f32
    %291 = vector.broadcast %cst_94 : f32 to vector<16x1xf32>
    %292 = arith.divf %290, %291 : vector<16x1xf32>
    %293 = vector.broadcast %292 : vector<16x1xf32> to vector<16x128xf32>
    %294 = arith.subf %284, %293 : vector<16x128xf32>
    %295 = arith.mulf %294, %294 : vector<16x128xf32>
    %cst_95 = arith.constant dense<0.000000e+00> : vector<16xf32>
    %296 = vector.multi_reduction <add>, %295, %cst_95 [1] : vector<16x128xf32> to vector<16xf32>
    %297 = vector.shape_cast %296 : vector<16xf32> to vector<16x1xf32>
    %cst_96 = arith.constant 1.280000e+02 : f32
    %298 = vector.broadcast %cst_96 : f32 to vector<16x1xf32>
    %299 = arith.divf %297, %298 : vector<16x1xf32>
    %cst_97 = arith.constant 9.99999996E-13 : f32
    %300 = vector.broadcast %cst_97 : f32 to vector<16x1xf32>
    %301 = arith.addf %299, %300 : vector<16x1xf32>
    %302 = math.rsqrt %301 : vector<16x1xf32>
    %303 = vector.broadcast %302 : vector<16x1xf32> to vector<16x128xf32>
    %304 = arith.mulf %294, %303 : vector<16x128xf32>
    %305 = vector.broadcast %286 : vector<1x128xf32> to vector<16x128xf32>
    %306 = arith.mulf %304, %305 : vector<16x128xf32>
    %307 = vector.broadcast %288 : vector<1x128xf32> to vector<16x128xf32>
    %308 = arith.addf %306, %307 : vector<16x128xf32>
    %c0_98 = arith.constant 0 : index
    %c0_99 = arith.constant 0 : index
    %c0_100 = arith.constant 0 : index
    %309 = vector.load %arg21[%c0_98, %c0_99, %c0_100] : memref<2x128x512xbf16, #tpu.memory_space<vmem>>, vector<1x128x512xbf16>
    %310 = vector.shape_cast %309 : vector<1x128x512xbf16> to vector<128x512xbf16>
    %c0_101 = arith.constant 0 : index
    %c0_102 = arith.constant 0 : index
    %c0_103 = arith.constant 0 : index
    %311 = vector.load %arg22[%c0_101, %c0_102, %c0_103] : memref<2x1x512xf32, #tpu.memory_space<vmem>>, vector<1x1x512xf32>
    %312 = vector.shape_cast %311 : vector<1x1x512xf32> to vector<1x512xf32>
    %313 = arith.truncf %308 : vector<16x128xf32> to vector<16x128xbf16>
    %cst_104 = arith.constant dense<0.000000e+00> : vector<16x512xf32>
    %314 = tpu.matmul %313, %310, %cst_104 {dimension_numbers = #tpu.dot_dimension_numbers<[1], [0], [0], [1], [0, 0, 1, 1], [], []>} : vector<16x128xbf16>, vector<128x512xbf16>, vector<16x512xf32> -> vector<16x512xf32>
    %315 = vector.broadcast %312 : vector<1x512xf32> to vector<16x512xf32>
    %316 = arith.addf %314, %315 : vector<16x512xf32>
    %cst_105 = arith.constant 5.000000e-01 : f32
    %317 = vector.broadcast %cst_105 : f32 to vector<16x512xf32>
    %318 = arith.mulf %317, %316 : vector<16x512xf32>
    %cst_106 = arith.constant 0.707106769 : f32
    %319 = vector.broadcast %cst_106 : f32 to vector<16x512xf32>
    %320 = arith.mulf %316, %319 : vector<16x512xf32>
    %cst_107 = arith.constant 0.000000e+00 : f32
    %321 = vector.broadcast %cst_107 : f32 to vector<16x512xf32>
    %322 = arith.cmpf oge, %320, %321 : vector<16x512xf32>
    %cst_108 = arith.constant 1.000000e+00 : f32
    %cst_109 = arith.constant -1.000000e+00 : f32
    %323 = vector.broadcast %cst_108 : f32 to vector<16x512xf32>
    %324 = vector.broadcast %cst_109 : f32 to vector<16x512xf32>
    %325 = arith.select %322, %323, %324 : vector<16x512xi1>, vector<16x512xf32>
    %326 = math.absf %320 : vector<16x512xf32>
    %cst_110 = arith.constant 0.327591091 : f32
    %327 = vector.broadcast %cst_110 : f32 to vector<16x512xf32>
    %328 = arith.mulf %327, %326 : vector<16x512xf32>
    %cst_111 = arith.constant 1.000000e+00 : f32
    %329 = vector.broadcast %cst_111 : f32 to vector<16x512xf32>
    %330 = arith.addf %329, %328 : vector<16x512xf32>
    %cst_112 = arith.constant 1.000000e+00 : f32
    %331 = vector.broadcast %cst_112 : f32 to vector<16x512xf32>
    %332 = arith.divf %331, %330 : vector<16x512xf32>
    %cst_113 = arith.constant 1.06140542 : f32
    %333 = vector.broadcast %cst_113 : f32 to vector<16x512xf32>
    %334 = arith.mulf %333, %332 : vector<16x512xf32>
    %cst_114 = arith.constant -1.45315206 : f32
    %335 = vector.broadcast %cst_114 : f32 to vector<16x512xf32>
    %336 = arith.addf %334, %335 : vector<16x512xf32>
    %337 = arith.mulf %336, %332 : vector<16x512xf32>
    %cst_115 = arith.constant 1.42141378 : f32
    %338 = vector.broadcast %cst_115 : f32 to vector<16x512xf32>
    %339 = arith.addf %337, %338 : vector<16x512xf32>
    %340 = arith.mulf %339, %332 : vector<16x512xf32>
    %cst_116 = arith.constant -0.284496725 : f32
    %341 = vector.broadcast %cst_116 : f32 to vector<16x512xf32>
    %342 = arith.addf %340, %341 : vector<16x512xf32>
    %343 = arith.mulf %342, %332 : vector<16x512xf32>
    %cst_117 = arith.constant 0.254829586 : f32
    %344 = vector.broadcast %cst_117 : f32 to vector<16x512xf32>
    %345 = arith.addf %343, %344 : vector<16x512xf32>
    %346 = arith.mulf %345, %332 : vector<16x512xf32>
    %347 = arith.mulf %326, %326 : vector<16x512xf32>
    %cst_118 = arith.constant 0.000000e+00 : f32
    %348 = vector.broadcast %cst_118 : f32 to vector<16x512xf32>
    %349 = arith.subf %348, %347 : vector<16x512xf32>
    %350 = math.exp %349 : vector<16x512xf32>
    %351 = arith.mulf %346, %350 : vector<16x512xf32>
    %cst_119 = arith.constant 1.000000e+00 : f32
    %352 = vector.broadcast %cst_119 : f32 to vector<16x512xf32>
    %353 = arith.subf %352, %351 : vector<16x512xf32>
    %354 = arith.mulf %325, %353 : vector<16x512xf32>
    %cst_120 = arith.constant 1.000000e+00 : f32
    %355 = vector.broadcast %cst_120 : f32 to vector<16x512xf32>
    %356 = arith.addf %355, %354 : vector<16x512xf32>
    %357 = arith.mulf %318, %356 : vector<16x512xf32>
    %c0_121 = arith.constant 0 : index
    %c0_122 = arith.constant 0 : index
    %c0_123 = arith.constant 0 : index
    %358 = vector.load %arg23[%c0_121, %c0_122, %c0_123] : memref<2x512x128xbf16, #tpu.memory_space<vmem>>, vector<1x512x128xbf16>
    %359 = vector.shape_cast %358 : vector<1x512x128xbf16> to vector<512x128xbf16>
    %c0_124 = arith.constant 0 : index
    %c0_125 = arith.constant 0 : index
    %c0_126 = arith.constant 0 : index
    %360 = vector.load %arg24[%c0_124, %c0_125, %c0_126] : memref<2x1x128xf32, #tpu.memory_space<vmem>>, vector<1x1x128xf32>
    %361 = vector.shape_cast %360 : vector<1x1x128xf32> to vector<1x128xf32>
    %362 = arith.truncf %357 : vector<16x512xf32> to vector<16x512xbf16>
    %cst_127 = arith.constant dense<0.000000e+00> : vector<16x128xf32>
    %363 = tpu.matmul %362, %359, %cst_127 {dimension_numbers = #tpu.dot_dimension_numbers<[1], [0], [0], [1], [0, 0, 1, 1], [], []>} : vector<16x512xbf16>, vector<512x128xbf16>, vector<16x128xf32> -> vector<16x128xf32>
    %364 = vector.broadcast %361 : vector<1x128xf32> to vector<16x128xf32>
    %365 = arith.addf %363, %364 : vector<16x128xf32>
    %366 = arith.addf %308, %365 : vector<16x128xf32>
    %c0_128 = arith.constant 0 : index
    %c0_129 = arith.constant 0 : index
    %c0_130 = arith.constant 0 : index
    %367 = vector.load %arg25[%c0_128, %c0_129, %c0_130] : memref<2x1x128xf32, #tpu.memory_space<vmem>>, vector<1x1x128xf32>
    %368 = vector.shape_cast %367 : vector<1x1x128xf32> to vector<1x128xf32>
    %c0_131 = arith.constant 0 : index
    %c0_132 = arith.constant 0 : index
    %c0_133 = arith.constant 0 : index
    %369 = vector.load %arg26[%c0_131, %c0_132, %c0_133] : memref<2x1x128xf32, #tpu.memory_space<vmem>>, vector<1x1x128xf32>
    %370 = vector.shape_cast %369 : vector<1x1x128xf32> to vector<1x128xf32>
    %cst_134 = arith.constant dense<0.000000e+00> : vector<16xf32>
    %371 = vector.multi_reduction <add>, %366, %cst_134 [1] : vector<16x128xf32> to vector<16xf32>
    %372 = vector.shape_cast %371 : vector<16xf32> to vector<16x1xf32>
    %cst_135 = arith.constant 1.280000e+02 : f32
    %373 = vector.broadcast %cst_135 : f32 to vector<16x1xf32>
    %374 = arith.divf %372, %373 : vector<16x1xf32>
    %375 = vector.broadcast %374 : vector<16x1xf32> to vector<16x128xf32>
    %376 = arith.subf %366, %375 : vector<16x128xf32>
    %377 = arith.mulf %376, %376 : vector<16x128xf32>
    %cst_136 = arith.constant dense<0.000000e+00> : vector<16xf32>
    %378 = vector.multi_reduction <add>, %377, %cst_136 [1] : vector<16x128xf32> to vector<16xf32>
    %379 = vector.shape_cast %378 : vector<16xf32> to vector<16x1xf32>
    %cst_137 = arith.constant 1.280000e+02 : f32
    %380 = vector.broadcast %cst_137 : f32 to vector<16x1xf32>
    %381 = arith.divf %379, %380 : vector<16x1xf32>
    %cst_138 = arith.constant 9.99999996E-13 : f32
    %382 = vector.broadcast %cst_138 : f32 to vector<16x1xf32>
    %383 = arith.addf %381, %382 : vector<16x1xf32>
    %384 = math.rsqrt %383 : vector<16x1xf32>
    %385 = vector.broadcast %384 : vector<16x1xf32> to vector<16x128xf32>
    %386 = arith.mulf %376, %385 : vector<16x128xf32>
    %387 = vector.broadcast %368 : vector<1x128xf32> to vector<16x128xf32>
    %388 = arith.mulf %386, %387 : vector<16x128xf32>
    %389 = vector.broadcast %370 : vector<1x128xf32> to vector<16x128xf32>
    %390 = arith.addf %388, %389 : vector<16x128xf32>
    %c1 = arith.constant 1 : index
    %c0_139 = arith.constant 0 : index
    %c0_140 = arith.constant 0 : index
    %391 = vector.load %arg7[%c1, %c0_139, %c0_140] : memref<2x128x384xbf16, #tpu.memory_space<vmem>>, vector<1x128x384xbf16>
    %392 = vector.shape_cast %391 : vector<1x128x384xbf16> to vector<128x384xbf16>
    %c1_141 = arith.constant 1 : index
    %c0_142 = arith.constant 0 : index
    %c0_143 = arith.constant 0 : index
    %393 = vector.load %arg8[%c1_141, %c0_142, %c0_143] : memref<2x1x384xf32, #tpu.memory_space<vmem>>, vector<1x1x384xf32>
    %394 = vector.shape_cast %393 : vector<1x1x384xf32> to vector<1x384xf32>
    %395 = arith.truncf %390 : vector<16x128xf32> to vector<16x128xbf16>
    %cst_144 = arith.constant dense<0.000000e+00> : vector<16x384xf32>
    %396 = tpu.matmul %395, %392, %cst_144 {dimension_numbers = #tpu.dot_dimension_numbers<[1], [0], [0], [1], [0, 0, 1, 1], [], []>} : vector<16x128xbf16>, vector<128x384xbf16>, vector<16x384xf32> -> vector<16x384xf32>
    %397 = vector.broadcast %394 : vector<1x384xf32> to vector<16x384xf32>
    %398 = arith.addf %396, %397 : vector<16x384xf32>
    %399 = vector.extract_strided_slice %398 {offsets = [0, 0], sizes = [8, 128], strides = [1, 1]} : vector<16x384xf32> to vector<8x128xf32>
    %400 = vector.extract_strided_slice %398 {offsets = [0, 128], sizes = [8, 128], strides = [1, 1]} : vector<16x384xf32> to vector<8x128xf32>
    %401 = vector.extract_strided_slice %398 {offsets = [0, 256], sizes = [8, 128], strides = [1, 1]} : vector<16x384xf32> to vector<8x128xf32>
    %402 = vector.extract_strided_slice %399 {offsets = [0, 0], sizes = [8, 64], strides = [1, 1]} : vector<8x128xf32> to vector<8x64xf32>
    %403 = vector.extract_strided_slice %399 {offsets = [0, 64], sizes = [8, 64], strides = [1, 1]} : vector<8x128xf32> to vector<8x64xf32>
    %404 = vector.shape_cast %402 : vector<8x64xf32> to vector<1x8x64xf32>
    %405 = vector.shape_cast %403 : vector<8x64xf32> to vector<1x8x64xf32>
    %406 = tpu.concatenate %404, %405 in 0 : vector<1x8x64xf32>, vector<1x8x64xf32> -> vector<2x8x64xf32>
    %407 = arith.truncf %406 : vector<2x8x64xf32> to vector<2x8x64xbf16>
    %408 = vector.extract_strided_slice %400 {offsets = [0, 0], sizes = [8, 64], strides = [1, 1]} : vector<8x128xf32> to vector<8x64xf32>
    %409 = vector.extract_strided_slice %400 {offsets = [0, 64], sizes = [8, 64], strides = [1, 1]} : vector<8x128xf32> to vector<8x64xf32>
    %410 = vector.shape_cast %408 : vector<8x64xf32> to vector<1x8x64xf32>
    %411 = vector.shape_cast %409 : vector<8x64xf32> to vector<1x8x64xf32>
    %412 = tpu.concatenate %410, %411 in 0 : vector<1x8x64xf32>, vector<1x8x64xf32> -> vector<2x8x64xf32>
    %413 = arith.truncf %412 : vector<2x8x64xf32> to vector<2x8x64xbf16>
    %414 = vector.extract_strided_slice %401 {offsets = [0, 0], sizes = [8, 64], strides = [1, 1]} : vector<8x128xf32> to vector<8x64xf32>
    %415 = vector.extract_strided_slice %401 {offsets = [0, 64], sizes = [8, 64], strides = [1, 1]} : vector<8x128xf32> to vector<8x64xf32>
    %416 = vector.shape_cast %414 : vector<8x64xf32> to vector<1x8x64xf32>
    %417 = vector.shape_cast %415 : vector<8x64xf32> to vector<1x8x64xf32>
    %418 = tpu.concatenate %416, %417 in 0 : vector<1x8x64xf32>, vector<1x8x64xf32> -> vector<2x8x64xf32>
    %419 = arith.truncf %418 : vector<2x8x64xf32> to vector<2x8x64xbf16>
    "tpu.trace_start"() <{level = 10 : i32, message = "hqd,hkd->hqk"}> : () -> ()
    %cst_145 = arith.constant dense<0.000000e+00> : vector<2x8x8xf32>
    %420 = tpu.matmul %407, %413, %cst_145 {dimension_numbers = #tpu.dot_dimension_numbers<[2], [2], [1], [1], [0, 0, 0, 1, 1, 1], [0], [0]>} : vector<2x8x64xbf16>, vector<2x8x64xbf16>, vector<2x8x8xf32> -> vector<2x8x8xf32>
    "tpu.trace_stop"() : () -> ()
    %cst_146 = arith.constant 1.250000e-01 : f32
    %421 = vector.broadcast %cst_146 : f32 to vector<2x8x8xf32>
    %422 = arith.mulf %420, %421 : vector<2x8x8xf32>
    %423 = vector.shape_cast %37 : vector<8x8xf32> to vector<1x8x8xf32>
    %424 = vector.broadcast %423 : vector<1x8x8xf32> to vector<2x8x8xf32>
    %425 = arith.addf %422, %424 : vector<2x8x8xf32>
    %cst_147 = arith.constant dense<0xFF800000> : vector<2x8xf32>
    %426 = vector.multi_reduction <maximumf>, %425, %cst_147 [2] : vector<2x8x8xf32> to vector<2x8xf32>
    %427 = vector.shape_cast %426 : vector<2x8xf32> to vector<2x8x1xf32>
    %428 = vector.broadcast %427 : vector<2x8x1xf32> to vector<2x8x8xf32>
    %429 = arith.subf %425, %428 : vector<2x8x8xf32>
    %430 = math.exp %429 : vector<2x8x8xf32>
    %cst_148 = arith.constant dense<0.000000e+00> : vector<2x8xf32>
    %431 = vector.multi_reduction <add>, %430, %cst_148 [2] : vector<2x8x8xf32> to vector<2x8xf32>
    %432 = vector.shape_cast %431 : vector<2x8xf32> to vector<2x8x1xf32>
    %433 = tpu.reciprocal %432 {approx = true} : vector<2x8x1xf32> -> vector<2x8x1xf32>
    %434 = vector.broadcast %433 : vector<2x8x1xf32> to vector<2x8x8xf32>
    %435 = arith.mulf %430, %434 : vector<2x8x8xf32>
    %436 = arith.truncf %435 : vector<2x8x8xf32> to vector<2x8x8xbf16>
    "tpu.trace_start"() <{level = 10 : i32, message = "hqk,hkd->hqd"}> : () -> ()
    %cst_149 = arith.constant dense<0.000000e+00> : vector<2x8x64xf32>
    %437 = tpu.matmul %436, %419, %cst_149 {dimension_numbers = #tpu.dot_dimension_numbers<[2], [1], [1], [2], [0, 0, 0, 1, 1, 2], [0], [0]>} : vector<2x8x8xbf16>, vector<2x8x64xbf16>, vector<2x8x64xf32> -> vector<2x8x64xf32>
    "tpu.trace_stop"() : () -> ()
    %438 = vector.extract_strided_slice %437 {offsets = [0, 0, 0], sizes = [1, 8, 64], strides = [1, 1, 1]} : vector<2x8x64xf32> to vector<1x8x64xf32>
    %439 = vector.shape_cast %438 : vector<1x8x64xf32> to vector<8x64xf32>
    %440 = vector.extract_strided_slice %437 {offsets = [1, 0, 0], sizes = [1, 8, 64], strides = [1, 1, 1]} : vector<2x8x64xf32> to vector<1x8x64xf32>
    %441 = vector.shape_cast %440 : vector<1x8x64xf32> to vector<8x64xf32>
    %442 = tpu.concatenate %439, %441 in 1 : vector<8x64xf32>, vector<8x64xf32> -> vector<8x128xf32>
    %443 = vector.extract_strided_slice %398 {offsets = [8, 0], sizes = [8, 128], strides = [1, 1]} : vector<16x384xf32> to vector<8x128xf32>
    %444 = vector.extract_strided_slice %398 {offsets = [8, 128], sizes = [8, 128], strides = [1, 1]} : vector<16x384xf32> to vector<8x128xf32>
    %445 = vector.extract_strided_slice %398 {offsets = [8, 256], sizes = [8, 128], strides = [1, 1]} : vector<16x384xf32> to vector<8x128xf32>
    %446 = vector.extract_strided_slice %443 {offsets = [0, 0], sizes = [8, 64], strides = [1, 1]} : vector<8x128xf32> to vector<8x64xf32>
    %447 = vector.extract_strided_slice %443 {offsets = [0, 64], sizes = [8, 64], strides = [1, 1]} : vector<8x128xf32> to vector<8x64xf32>
    %448 = vector.shape_cast %446 : vector<8x64xf32> to vector<1x8x64xf32>
    %449 = vector.shape_cast %447 : vector<8x64xf32> to vector<1x8x64xf32>
    %450 = tpu.concatenate %448, %449 in 0 : vector<1x8x64xf32>, vector<1x8x64xf32> -> vector<2x8x64xf32>
    %451 = arith.truncf %450 : vector<2x8x64xf32> to vector<2x8x64xbf16>
    %452 = vector.extract_strided_slice %444 {offsets = [0, 0], sizes = [8, 64], strides = [1, 1]} : vector<8x128xf32> to vector<8x64xf32>
    %453 = vector.extract_strided_slice %444 {offsets = [0, 64], sizes = [8, 64], strides = [1, 1]} : vector<8x128xf32> to vector<8x64xf32>
    %454 = vector.shape_cast %452 : vector<8x64xf32> to vector<1x8x64xf32>
    %455 = vector.shape_cast %453 : vector<8x64xf32> to vector<1x8x64xf32>
    %456 = tpu.concatenate %454, %455 in 0 : vector<1x8x64xf32>, vector<1x8x64xf32> -> vector<2x8x64xf32>
    %457 = arith.truncf %456 : vector<2x8x64xf32> to vector<2x8x64xbf16>
    %458 = vector.extract_strided_slice %445 {offsets = [0, 0], sizes = [8, 64], strides = [1, 1]} : vector<8x128xf32> to vector<8x64xf32>
    %459 = vector.extract_strided_slice %445 {offsets = [0, 64], sizes = [8, 64], strides = [1, 1]} : vector<8x128xf32> to vector<8x64xf32>
    %460 = vector.shape_cast %458 : vector<8x64xf32> to vector<1x8x64xf32>
    %461 = vector.shape_cast %459 : vector<8x64xf32> to vector<1x8x64xf32>
    %462 = tpu.concatenate %460, %461 in 0 : vector<1x8x64xf32>, vector<1x8x64xf32> -> vector<2x8x64xf32>
    %463 = arith.truncf %462 : vector<2x8x64xf32> to vector<2x8x64xbf16>
    "tpu.trace_start"() <{level = 10 : i32, message = "hqd,hkd->hqk"}> : () -> ()
    %cst_150 = arith.constant dense<0.000000e+00> : vector<2x8x8xf32>
    %464 = tpu.matmul %451, %457, %cst_150 {dimension_numbers = #tpu.dot_dimension_numbers<[2], [2], [1], [1], [0, 0, 0, 1, 1, 1], [0], [0]>} : vector<2x8x64xbf16>, vector<2x8x64xbf16>, vector<2x8x8xf32> -> vector<2x8x8xf32>
    "tpu.trace_stop"() : () -> ()
    %cst_151 = arith.constant 1.250000e-01 : f32
    %465 = vector.broadcast %cst_151 : f32 to vector<2x8x8xf32>
    %466 = arith.mulf %464, %465 : vector<2x8x8xf32>
    %467 = vector.shape_cast %46 : vector<8x8xf32> to vector<1x8x8xf32>
    %468 = vector.broadcast %467 : vector<1x8x8xf32> to vector<2x8x8xf32>
    %469 = arith.addf %466, %468 : vector<2x8x8xf32>
    %cst_152 = arith.constant dense<0xFF800000> : vector<2x8xf32>
    %470 = vector.multi_reduction <maximumf>, %469, %cst_152 [2] : vector<2x8x8xf32> to vector<2x8xf32>
    %471 = vector.shape_cast %470 : vector<2x8xf32> to vector<2x8x1xf32>
    %472 = vector.broadcast %471 : vector<2x8x1xf32> to vector<2x8x8xf32>
    %473 = arith.subf %469, %472 : vector<2x8x8xf32>
    %474 = math.exp %473 : vector<2x8x8xf32>
    %cst_153 = arith.constant dense<0.000000e+00> : vector<2x8xf32>
    %475 = vector.multi_reduction <add>, %474, %cst_153 [2] : vector<2x8x8xf32> to vector<2x8xf32>
    %476 = vector.shape_cast %475 : vector<2x8xf32> to vector<2x8x1xf32>
    %477 = tpu.reciprocal %476 {approx = true} : vector<2x8x1xf32> -> vector<2x8x1xf32>
    %478 = vector.broadcast %477 : vector<2x8x1xf32> to vector<2x8x8xf32>
    %479 = arith.mulf %474, %478 : vector<2x8x8xf32>
    %480 = arith.truncf %479 : vector<2x8x8xf32> to vector<2x8x8xbf16>
    "tpu.trace_start"() <{level = 10 : i32, message = "hqk,hkd->hqd"}> : () -> ()
    %cst_154 = arith.constant dense<0.000000e+00> : vector<2x8x64xf32>
    %481 = tpu.matmul %480, %463, %cst_154 {dimension_numbers = #tpu.dot_dimension_numbers<[2], [1], [1], [2], [0, 0, 0, 1, 1, 2], [0], [0]>} : vector<2x8x8xbf16>, vector<2x8x64xbf16>, vector<2x8x64xf32> -> vector<2x8x64xf32>
    "tpu.trace_stop"() : () -> ()
    %482 = vector.extract_strided_slice %481 {offsets = [0, 0, 0], sizes = [1, 8, 64], strides = [1, 1, 1]} : vector<2x8x64xf32> to vector<1x8x64xf32>
    %483 = vector.shape_cast %482 : vector<1x8x64xf32> to vector<8x64xf32>
    %484 = vector.extract_strided_slice %481 {offsets = [1, 0, 0], sizes = [1, 8, 64], strides = [1, 1, 1]} : vector<2x8x64xf32> to vector<1x8x64xf32>
    %485 = vector.shape_cast %484 : vector<1x8x64xf32> to vector<8x64xf32>
    %486 = tpu.concatenate %483, %485 in 1 : vector<8x64xf32>, vector<8x64xf32> -> vector<8x128xf32>
    %487 = tpu.concatenate %442, %486 in 0 : vector<8x128xf32>, vector<8x128xf32> -> vector<16x128xf32>
    %c1_155 = arith.constant 1 : index
    %c0_156 = arith.constant 0 : index
    %c0_157 = arith.constant 0 : index
    %488 = vector.load %arg9[%c1_155, %c0_156, %c0_157] : memref<2x128x128xbf16, #tpu.memory_space<vmem>>, vector<1x128x128xbf16>
    %489 = vector.shape_cast %488 : vector<1x128x128xbf16> to vector<128x128xbf16>
    %c1_158 = arith.constant 1 : index
    %c0_159 = arith.constant 0 : index
    %c0_160 = arith.constant 0 : index
    %490 = vector.load %arg10[%c1_158, %c0_159, %c0_160] : memref<2x1x128xf32, #tpu.memory_space<vmem>>, vector<1x1x128xf32>
    %491 = vector.shape_cast %490 : vector<1x1x128xf32> to vector<1x128xf32>
    %492 = arith.truncf %487 : vector<16x128xf32> to vector<16x128xbf16>
    %cst_161 = arith.constant dense<0.000000e+00> : vector<16x128xf32>
    %493 = tpu.matmul %492, %489, %cst_161 {dimension_numbers = #tpu.dot_dimension_numbers<[1], [0], [0], [1], [0, 0, 1, 1], [], []>} : vector<16x128xbf16>, vector<128x128xbf16>, vector<16x128xf32> -> vector<16x128xf32>
    %494 = vector.broadcast %491 : vector<1x128xf32> to vector<16x128xf32>
    %495 = arith.addf %493, %494 : vector<16x128xf32>
    %496 = arith.addf %390, %495 : vector<16x128xf32>
    %c1_162 = arith.constant 1 : index
    %c0_163 = arith.constant 0 : index
    %c0_164 = arith.constant 0 : index
    %497 = vector.load %arg11[%c1_162, %c0_163, %c0_164] : memref<2x1x128xf32, #tpu.memory_space<vmem>>, vector<1x1x128xf32>
    %498 = vector.shape_cast %497 : vector<1x1x128xf32> to vector<1x128xf32>
    %c1_165 = arith.constant 1 : index
    %c0_166 = arith.constant 0 : index
    %c0_167 = arith.constant 0 : index
    %499 = vector.load %arg12[%c1_165, %c0_166, %c0_167] : memref<2x1x128xf32, #tpu.memory_space<vmem>>, vector<1x1x128xf32>
    %500 = vector.shape_cast %499 : vector<1x1x128xf32> to vector<1x128xf32>
    %cst_168 = arith.constant dense<0.000000e+00> : vector<16xf32>
    %501 = vector.multi_reduction <add>, %496, %cst_168 [1] : vector<16x128xf32> to vector<16xf32>
    %502 = vector.shape_cast %501 : vector<16xf32> to vector<16x1xf32>
    %cst_169 = arith.constant 1.280000e+02 : f32
    %503 = vector.broadcast %cst_169 : f32 to vector<16x1xf32>
    %504 = arith.divf %502, %503 : vector<16x1xf32>
    %505 = vector.broadcast %504 : vector<16x1xf32> to vector<16x128xf32>
    %506 = arith.subf %496, %505 : vector<16x128xf32>
    %507 = arith.mulf %506, %506 : vector<16x128xf32>
    %cst_170 = arith.constant dense<0.000000e+00> : vector<16xf32>
    %508 = vector.multi_reduction <add>, %507, %cst_170 [1] : vector<16x128xf32> to vector<16xf32>
    %509 = vector.shape_cast %508 : vector<16xf32> to vector<16x1xf32>
    %cst_171 = arith.constant 1.280000e+02 : f32
    %510 = vector.broadcast %cst_171 : f32 to vector<16x1xf32>
    %511 = arith.divf %509, %510 : vector<16x1xf32>
    %cst_172 = arith.constant 9.99999996E-13 : f32
    %512 = vector.broadcast %cst_172 : f32 to vector<16x1xf32>
    %513 = arith.addf %511, %512 : vector<16x1xf32>
    %514 = math.rsqrt %513 : vector<16x1xf32>
    %515 = vector.broadcast %514 : vector<16x1xf32> to vector<16x128xf32>
    %516 = arith.mulf %506, %515 : vector<16x128xf32>
    %517 = vector.broadcast %498 : vector<1x128xf32> to vector<16x128xf32>
    %518 = arith.mulf %516, %517 : vector<16x128xf32>
    %519 = vector.broadcast %500 : vector<1x128xf32> to vector<16x128xf32>
    %520 = arith.addf %518, %519 : vector<16x128xf32>
    %c1_173 = arith.constant 1 : index
    %c0_174 = arith.constant 0 : index
    %c0_175 = arith.constant 0 : index
    %521 = vector.load %arg13[%c1_173, %c0_174, %c0_175] : memref<2x128x128xbf16, #tpu.memory_space<vmem>>, vector<1x128x128xbf16>
    %522 = vector.shape_cast %521 : vector<1x128x128xbf16> to vector<128x128xbf16>
    %c1_176 = arith.constant 1 : index
    %c0_177 = arith.constant 0 : index
    %c0_178 = arith.constant 0 : index
    %523 = vector.load %arg14[%c1_176, %c0_177, %c0_178] : memref<2x1x128xf32, #tpu.memory_space<vmem>>, vector<1x1x128xf32>
    %524 = vector.shape_cast %523 : vector<1x1x128xf32> to vector<1x128xf32>
    %525 = arith.truncf %520 : vector<16x128xf32> to vector<16x128xbf16>
    %cst_179 = arith.constant dense<0.000000e+00> : vector<16x128xf32>
    %526 = tpu.matmul %525, %522, %cst_179 {dimension_numbers = #tpu.dot_dimension_numbers<[1], [0], [0], [1], [0, 0, 1, 1], [], []>} : vector<16x128xbf16>, vector<128x128xbf16>, vector<16x128xf32> -> vector<16x128xf32>
    %527 = vector.broadcast %524 : vector<1x128xf32> to vector<16x128xf32>
    %528 = arith.addf %526, %527 : vector<16x128xf32>
    %c1_180 = arith.constant 1 : index
    %c0_181 = arith.constant 0 : index
    %c0_182 = arith.constant 0 : index
    %529 = vector.load %arg15[%c1_180, %c0_181, %c0_182] : memref<2x128x256xbf16, #tpu.memory_space<vmem>>, vector<1x128x256xbf16>
    %530 = vector.shape_cast %529 : vector<1x128x256xbf16> to vector<128x256xbf16>
    %c1_183 = arith.constant 1 : index
    %c0_184 = arith.constant 0 : index
    %c0_185 = arith.constant 0 : index
    %531 = vector.load %arg16[%c1_183, %c0_184, %c0_185] : memref<2x1x256xf32, #tpu.memory_space<vmem>>, vector<1x1x256xf32>
    %532 = vector.shape_cast %531 : vector<1x1x256xf32> to vector<1x256xf32>
    %cst_186 = arith.constant dense<0.000000e+00> : vector<10x256xf32>
    %533 = tpu.matmul %47, %530, %cst_186 {dimension_numbers = #tpu.dot_dimension_numbers<[1], [0], [0], [1], [0, 0, 1, 1], [], []>} : vector<10x128xbf16>, vector<128x256xbf16>, vector<10x256xf32> -> vector<10x256xf32>
    %534 = vector.broadcast %532 : vector<1x256xf32> to vector<10x256xf32>
    %535 = arith.addf %533, %534 : vector<10x256xf32>
    %536 = vector.extract_strided_slice %528 {offsets = [0, 0], sizes = [8, 128], strides = [1, 1]} : vector<16x128xf32> to vector<8x128xf32>
    %537 = vector.extract_strided_slice %535 {offsets = [0, 0], sizes = [5, 128], strides = [1, 1]} : vector<10x256xf32> to vector<5x128xf32>
    %538 = vector.extract_strided_slice %535 {offsets = [0, 128], sizes = [5, 128], strides = [1, 1]} : vector<10x256xf32> to vector<5x128xf32>
    %539 = vector.extract_strided_slice %536 {offsets = [0, 0], sizes = [8, 64], strides = [1, 1]} : vector<8x128xf32> to vector<8x64xf32>
    %540 = vector.extract_strided_slice %536 {offsets = [0, 64], sizes = [8, 64], strides = [1, 1]} : vector<8x128xf32> to vector<8x64xf32>
    %541 = vector.shape_cast %539 : vector<8x64xf32> to vector<1x8x64xf32>
    %542 = vector.shape_cast %540 : vector<8x64xf32> to vector<1x8x64xf32>
    %543 = tpu.concatenate %541, %542 in 0 : vector<1x8x64xf32>, vector<1x8x64xf32> -> vector<2x8x64xf32>
    %544 = arith.truncf %543 : vector<2x8x64xf32> to vector<2x8x64xbf16>
    %545 = vector.extract_strided_slice %537 {offsets = [0, 0], sizes = [5, 64], strides = [1, 1]} : vector<5x128xf32> to vector<5x64xf32>
    %546 = vector.extract_strided_slice %537 {offsets = [0, 64], sizes = [5, 64], strides = [1, 1]} : vector<5x128xf32> to vector<5x64xf32>
    %547 = vector.shape_cast %545 : vector<5x64xf32> to vector<1x5x64xf32>
    %548 = vector.shape_cast %546 : vector<5x64xf32> to vector<1x5x64xf32>
    %549 = tpu.concatenate %547, %548 in 0 : vector<1x5x64xf32>, vector<1x5x64xf32> -> vector<2x5x64xf32>
    %550 = arith.truncf %549 : vector<2x5x64xf32> to vector<2x5x64xbf16>
    %551 = vector.extract_strided_slice %538 {offsets = [0, 0], sizes = [5, 64], strides = [1, 1]} : vector<5x128xf32> to vector<5x64xf32>
    %552 = vector.extract_strided_slice %538 {offsets = [0, 64], sizes = [5, 64], strides = [1, 1]} : vector<5x128xf32> to vector<5x64xf32>
    %553 = vector.shape_cast %551 : vector<5x64xf32> to vector<1x5x64xf32>
    %554 = vector.shape_cast %552 : vector<5x64xf32> to vector<1x5x64xf32>
    %555 = tpu.concatenate %553, %554 in 0 : vector<1x5x64xf32>, vector<1x5x64xf32> -> vector<2x5x64xf32>
    %556 = arith.truncf %555 : vector<2x5x64xf32> to vector<2x5x64xbf16>
    "tpu.trace_start"() <{level = 10 : i32, message = "hqd,hkd->hqk"}> : () -> ()
    %cst_187 = arith.constant dense<0.000000e+00> : vector<2x8x5xf32>
    %557 = tpu.matmul %544, %550, %cst_187 {dimension_numbers = #tpu.dot_dimension_numbers<[2], [2], [1], [1], [0, 0, 0, 1, 1, 1], [0], [0]>} : vector<2x8x64xbf16>, vector<2x5x64xbf16>, vector<2x8x5xf32> -> vector<2x8x5xf32>
    "tpu.trace_stop"() : () -> ()
    %cst_188 = arith.constant 1.250000e-01 : f32
    %558 = vector.broadcast %cst_188 : f32 to vector<2x8x5xf32>
    %559 = arith.mulf %557, %558 : vector<2x8x5xf32>
    %cst_189 = arith.constant dense<0xFF800000> : vector<2x8xf32>
    %560 = vector.multi_reduction <maximumf>, %559, %cst_189 [2] : vector<2x8x5xf32> to vector<2x8xf32>
    %561 = vector.shape_cast %560 : vector<2x8xf32> to vector<2x8x1xf32>
    %562 = vector.broadcast %561 : vector<2x8x1xf32> to vector<2x8x5xf32>
    %563 = arith.subf %559, %562 : vector<2x8x5xf32>
    %564 = math.exp %563 : vector<2x8x5xf32>
    %cst_190 = arith.constant dense<0.000000e+00> : vector<2x8xf32>
    %565 = vector.multi_reduction <add>, %564, %cst_190 [2] : vector<2x8x5xf32> to vector<2x8xf32>
    %566 = vector.shape_cast %565 : vector<2x8xf32> to vector<2x8x1xf32>
    %567 = tpu.reciprocal %566 {approx = true} : vector<2x8x1xf32> -> vector<2x8x1xf32>
    %568 = vector.broadcast %567 : vector<2x8x1xf32> to vector<2x8x5xf32>
    %569 = arith.mulf %564, %568 : vector<2x8x5xf32>
    %570 = arith.truncf %569 : vector<2x8x5xf32> to vector<2x8x5xbf16>
    "tpu.trace_start"() <{level = 10 : i32, message = "hqk,hkd->hqd"}> : () -> ()
    %cst_191 = arith.constant dense<0.000000e+00> : vector<2x8x64xf32>
    %571 = tpu.matmul %570, %556, %cst_191 {dimension_numbers = #tpu.dot_dimension_numbers<[2], [1], [1], [2], [0, 0, 0, 1, 1, 2], [0], [0]>} : vector<2x8x5xbf16>, vector<2x5x64xbf16>, vector<2x8x64xf32> -> vector<2x8x64xf32>
    "tpu.trace_stop"() : () -> ()
    %572 = vector.extract_strided_slice %571 {offsets = [0, 0, 0], sizes = [1, 8, 64], strides = [1, 1, 1]} : vector<2x8x64xf32> to vector<1x8x64xf32>
    %573 = vector.shape_cast %572 : vector<1x8x64xf32> to vector<8x64xf32>
    %574 = vector.extract_strided_slice %571 {offsets = [1, 0, 0], sizes = [1, 8, 64], strides = [1, 1, 1]} : vector<2x8x64xf32> to vector<1x8x64xf32>
    %575 = vector.shape_cast %574 : vector<1x8x64xf32> to vector<8x64xf32>
    %576 = tpu.concatenate %573, %575 in 1 : vector<8x64xf32>, vector<8x64xf32> -> vector<8x128xf32>
    %577 = vector.extract_strided_slice %528 {offsets = [8, 0], sizes = [8, 128], strides = [1, 1]} : vector<16x128xf32> to vector<8x128xf32>
    %578 = vector.extract_strided_slice %535 {offsets = [5, 0], sizes = [5, 128], strides = [1, 1]} : vector<10x256xf32> to vector<5x128xf32>
    %579 = vector.extract_strided_slice %535 {offsets = [5, 128], sizes = [5, 128], strides = [1, 1]} : vector<10x256xf32> to vector<5x128xf32>
    %580 = vector.extract_strided_slice %577 {offsets = [0, 0], sizes = [8, 64], strides = [1, 1]} : vector<8x128xf32> to vector<8x64xf32>
    %581 = vector.extract_strided_slice %577 {offsets = [0, 64], sizes = [8, 64], strides = [1, 1]} : vector<8x128xf32> to vector<8x64xf32>
    %582 = vector.shape_cast %580 : vector<8x64xf32> to vector<1x8x64xf32>
    %583 = vector.shape_cast %581 : vector<8x64xf32> to vector<1x8x64xf32>
    %584 = tpu.concatenate %582, %583 in 0 : vector<1x8x64xf32>, vector<1x8x64xf32> -> vector<2x8x64xf32>
    %585 = arith.truncf %584 : vector<2x8x64xf32> to vector<2x8x64xbf16>
    %586 = vector.extract_strided_slice %578 {offsets = [0, 0], sizes = [5, 64], strides = [1, 1]} : vector<5x128xf32> to vector<5x64xf32>
    %587 = vector.extract_strided_slice %578 {offsets = [0, 64], sizes = [5, 64], strides = [1, 1]} : vector<5x128xf32> to vector<5x64xf32>
    %588 = vector.shape_cast %586 : vector<5x64xf32> to vector<1x5x64xf32>
    %589 = vector.shape_cast %587 : vector<5x64xf32> to vector<1x5x64xf32>
    %590 = tpu.concatenate %588, %589 in 0 : vector<1x5x64xf32>, vector<1x5x64xf32> -> vector<2x5x64xf32>
    %591 = arith.truncf %590 : vector<2x5x64xf32> to vector<2x5x64xbf16>
    %592 = vector.extract_strided_slice %579 {offsets = [0, 0], sizes = [5, 64], strides = [1, 1]} : vector<5x128xf32> to vector<5x64xf32>
    %593 = vector.extract_strided_slice %579 {offsets = [0, 64], sizes = [5, 64], strides = [1, 1]} : vector<5x128xf32> to vector<5x64xf32>
    %594 = vector.shape_cast %592 : vector<5x64xf32> to vector<1x5x64xf32>
    %595 = vector.shape_cast %593 : vector<5x64xf32> to vector<1x5x64xf32>
    %596 = tpu.concatenate %594, %595 in 0 : vector<1x5x64xf32>, vector<1x5x64xf32> -> vector<2x5x64xf32>
    %597 = arith.truncf %596 : vector<2x5x64xf32> to vector<2x5x64xbf16>
    "tpu.trace_start"() <{level = 10 : i32, message = "hqd,hkd->hqk"}> : () -> ()
    %cst_192 = arith.constant dense<0.000000e+00> : vector<2x8x5xf32>
    %598 = tpu.matmul %585, %591, %cst_192 {dimension_numbers = #tpu.dot_dimension_numbers<[2], [2], [1], [1], [0, 0, 0, 1, 1, 1], [0], [0]>} : vector<2x8x64xbf16>, vector<2x5x64xbf16>, vector<2x8x5xf32> -> vector<2x8x5xf32>
    "tpu.trace_stop"() : () -> ()
    %cst_193 = arith.constant 1.250000e-01 : f32
    %599 = vector.broadcast %cst_193 : f32 to vector<2x8x5xf32>
    %600 = arith.mulf %598, %599 : vector<2x8x5xf32>
    %cst_194 = arith.constant dense<0xFF800000> : vector<2x8xf32>
    %601 = vector.multi_reduction <maximumf>, %600, %cst_194 [2] : vector<2x8x5xf32> to vector<2x8xf32>
    %602 = vector.shape_cast %601 : vector<2x8xf32> to vector<2x8x1xf32>
    %603 = vector.broadcast %602 : vector<2x8x1xf32> to vector<2x8x5xf32>
    %604 = arith.subf %600, %603 : vector<2x8x5xf32>
    %605 = math.exp %604 : vector<2x8x5xf32>
    %cst_195 = arith.constant dense<0.000000e+00> : vector<2x8xf32>
    %606 = vector.multi_reduction <add>, %605, %cst_195 [2] : vector<2x8x5xf32> to vector<2x8xf32>
    %607 = vector.shape_cast %606 : vector<2x8xf32> to vector<2x8x1xf32>
    %608 = tpu.reciprocal %607 {approx = true} : vector<2x8x1xf32> -> vector<2x8x1xf32>
    %609 = vector.broadcast %608 : vector<2x8x1xf32> to vector<2x8x5xf32>
    %610 = arith.mulf %605, %609 : vector<2x8x5xf32>
    %611 = arith.truncf %610 : vector<2x8x5xf32> to vector<2x8x5xbf16>
    "tpu.trace_start"() <{level = 10 : i32, message = "hqk,hkd->hqd"}> : () -> ()
    %cst_196 = arith.constant dense<0.000000e+00> : vector<2x8x64xf32>
    %612 = tpu.matmul %611, %597, %cst_196 {dimension_numbers = #tpu.dot_dimension_numbers<[2], [1], [1], [2], [0, 0, 0, 1, 1, 2], [0], [0]>} : vector<2x8x5xbf16>, vector<2x5x64xbf16>, vector<2x8x64xf32> -> vector<2x8x64xf32>
    "tpu.trace_stop"() : () -> ()
    %613 = vector.extract_strided_slice %612 {offsets = [0, 0, 0], sizes = [1, 8, 64], strides = [1, 1, 1]} : vector<2x8x64xf32> to vector<1x8x64xf32>
    %614 = vector.shape_cast %613 : vector<1x8x64xf32> to vector<8x64xf32>
    %615 = vector.extract_strided_slice %612 {offsets = [1, 0, 0], sizes = [1, 8, 64], strides = [1, 1, 1]} : vector<2x8x64xf32> to vector<1x8x64xf32>
    %616 = vector.shape_cast %615 : vector<1x8x64xf32> to vector<8x64xf32>
    %617 = tpu.concatenate %614, %616 in 1 : vector<8x64xf32>, vector<8x64xf32> -> vector<8x128xf32>
    %618 = tpu.concatenate %576, %617 in 0 : vector<8x128xf32>, vector<8x128xf32> -> vector<16x128xf32>
    %c1_197 = arith.constant 1 : index
    %c0_198 = arith.constant 0 : index
    %c0_199 = arith.constant 0 : index
    %619 = vector.load %arg17[%c1_197, %c0_198, %c0_199] : memref<2x128x128xbf16, #tpu.memory_space<vmem>>, vector<1x128x128xbf16>
    %620 = vector.shape_cast %619 : vector<1x128x128xbf16> to vector<128x128xbf16>
    %c1_200 = arith.constant 1 : index
    %c0_201 = arith.constant 0 : index
    %c0_202 = arith.constant 0 : index
    %621 = vector.load %arg18[%c1_200, %c0_201, %c0_202] : memref<2x1x128xf32, #tpu.memory_space<vmem>>, vector<1x1x128xf32>
    %622 = vector.shape_cast %621 : vector<1x1x128xf32> to vector<1x128xf32>
    %623 = arith.truncf %618 : vector<16x128xf32> to vector<16x128xbf16>
    %cst_203 = arith.constant dense<0.000000e+00> : vector<16x128xf32>
    %624 = tpu.matmul %623, %620, %cst_203 {dimension_numbers = #tpu.dot_dimension_numbers<[1], [0], [0], [1], [0, 0, 1, 1], [], []>} : vector<16x128xbf16>, vector<128x128xbf16>, vector<16x128xf32> -> vector<16x128xf32>
    %625 = vector.broadcast %622 : vector<1x128xf32> to vector<16x128xf32>
    %626 = arith.addf %624, %625 : vector<16x128xf32>
    %627 = arith.addf %520, %626 : vector<16x128xf32>
    %c1_204 = arith.constant 1 : index
    %c0_205 = arith.constant 0 : index
    %c0_206 = arith.constant 0 : index
    %628 = vector.load %arg19[%c1_204, %c0_205, %c0_206] : memref<2x1x128xf32, #tpu.memory_space<vmem>>, vector<1x1x128xf32>
    %629 = vector.shape_cast %628 : vector<1x1x128xf32> to vector<1x128xf32>
    %c1_207 = arith.constant 1 : index
    %c0_208 = arith.constant 0 : index
    %c0_209 = arith.constant 0 : index
    %630 = vector.load %arg20[%c1_207, %c0_208, %c0_209] : memref<2x1x128xf32, #tpu.memory_space<vmem>>, vector<1x1x128xf32>
    %631 = vector.shape_cast %630 : vector<1x1x128xf32> to vector<1x128xf32>
    %cst_210 = arith.constant dense<0.000000e+00> : vector<16xf32>
    %632 = vector.multi_reduction <add>, %627, %cst_210 [1] : vector<16x128xf32> to vector<16xf32>
    %633 = vector.shape_cast %632 : vector<16xf32> to vector<16x1xf32>
    %cst_211 = arith.constant 1.280000e+02 : f32
    %634 = vector.broadcast %cst_211 : f32 to vector<16x1xf32>
    %635 = arith.divf %633, %634 : vector<16x1xf32>
    %636 = vector.broadcast %635 : vector<16x1xf32> to vector<16x128xf32>
    %637 = arith.subf %627, %636 : vector<16x128xf32>
    %638 = arith.mulf %637, %637 : vector<16x128xf32>
    %cst_212 = arith.constant dense<0.000000e+00> : vector<16xf32>
    %639 = vector.multi_reduction <add>, %638, %cst_212 [1] : vector<16x128xf32> to vector<16xf32>
    %640 = vector.shape_cast %639 : vector<16xf32> to vector<16x1xf32>
    %cst_213 = arith.constant 1.280000e+02 : f32
    %641 = vector.broadcast %cst_213 : f32 to vector<16x1xf32>
    %642 = arith.divf %640, %641 : vector<16x1xf32>
    %cst_214 = arith.constant 9.99999996E-13 : f32
    %643 = vector.broadcast %cst_214 : f32 to vector<16x1xf32>
    %644 = arith.addf %642, %643 : vector<16x1xf32>
    %645 = math.rsqrt %644 : vector<16x1xf32>
    %646 = vector.broadcast %645 : vector<16x1xf32> to vector<16x128xf32>
    %647 = arith.mulf %637, %646 : vector<16x128xf32>
    %648 = vector.broadcast %629 : vector<1x128xf32> to vector<16x128xf32>
    %649 = arith.mulf %647, %648 : vector<16x128xf32>
    %650 = vector.broadcast %631 : vector<1x128xf32> to vector<16x128xf32>
    %651 = arith.addf %649, %650 : vector<16x128xf32>
    %c1_215 = arith.constant 1 : index
    %c0_216 = arith.constant 0 : index
    %c0_217 = arith.constant 0 : index
    %652 = vector.load %arg21[%c1_215, %c0_216, %c0_217] : memref<2x128x512xbf16, #tpu.memory_space<vmem>>, vector<1x128x512xbf16>
    %653 = vector.shape_cast %652 : vector<1x128x512xbf16> to vector<128x512xbf16>
    %c1_218 = arith.constant 1 : index
    %c0_219 = arith.constant 0 : index
    %c0_220 = arith.constant 0 : index
    %654 = vector.load %arg22[%c1_218, %c0_219, %c0_220] : memref<2x1x512xf32, #tpu.memory_space<vmem>>, vector<1x1x512xf32>
    %655 = vector.shape_cast %654 : vector<1x1x512xf32> to vector<1x512xf32>
    %656 = arith.truncf %651 : vector<16x128xf32> to vector<16x128xbf16>
    %cst_221 = arith.constant dense<0.000000e+00> : vector<16x512xf32>
    %657 = tpu.matmul %656, %653, %cst_221 {dimension_numbers = #tpu.dot_dimension_numbers<[1], [0], [0], [1], [0, 0, 1, 1], [], []>} : vector<16x128xbf16>, vector<128x512xbf16>, vector<16x512xf32> -> vector<16x512xf32>
    %658 = vector.broadcast %655 : vector<1x512xf32> to vector<16x512xf32>
    %659 = arith.addf %657, %658 : vector<16x512xf32>
    %cst_222 = arith.constant 5.000000e-01 : f32
    %660 = vector.broadcast %cst_222 : f32 to vector<16x512xf32>
    %661 = arith.mulf %660, %659 : vector<16x512xf32>
    %cst_223 = arith.constant 0.707106769 : f32
    %662 = vector.broadcast %cst_223 : f32 to vector<16x512xf32>
    %663 = arith.mulf %659, %662 : vector<16x512xf32>
    %cst_224 = arith.constant 0.000000e+00 : f32
    %664 = vector.broadcast %cst_224 : f32 to vector<16x512xf32>
    %665 = arith.cmpf oge, %663, %664 : vector<16x512xf32>
    %cst_225 = arith.constant 1.000000e+00 : f32
    %cst_226 = arith.constant -1.000000e+00 : f32
    %666 = vector.broadcast %cst_225 : f32 to vector<16x512xf32>
    %667 = vector.broadcast %cst_226 : f32 to vector<16x512xf32>
    %668 = arith.select %665, %666, %667 : vector<16x512xi1>, vector<16x512xf32>
    %669 = math.absf %663 : vector<16x512xf32>
    %cst_227 = arith.constant 0.327591091 : f32
    %670 = vector.broadcast %cst_227 : f32 to vector<16x512xf32>
    %671 = arith.mulf %670, %669 : vector<16x512xf32>
    %cst_228 = arith.constant 1.000000e+00 : f32
    %672 = vector.broadcast %cst_228 : f32 to vector<16x512xf32>
    %673 = arith.addf %672, %671 : vector<16x512xf32>
    %cst_229 = arith.constant 1.000000e+00 : f32
    %674 = vector.broadcast %cst_229 : f32 to vector<16x512xf32>
    %675 = arith.divf %674, %673 : vector<16x512xf32>
    %cst_230 = arith.constant 1.06140542 : f32
    %676 = vector.broadcast %cst_230 : f32 to vector<16x512xf32>
    %677 = arith.mulf %676, %675 : vector<16x512xf32>
    %cst_231 = arith.constant -1.45315206 : f32
    %678 = vector.broadcast %cst_231 : f32 to vector<16x512xf32>
    %679 = arith.addf %677, %678 : vector<16x512xf32>
    %680 = arith.mulf %679, %675 : vector<16x512xf32>
    %cst_232 = arith.constant 1.42141378 : f32
    %681 = vector.broadcast %cst_232 : f32 to vector<16x512xf32>
    %682 = arith.addf %680, %681 : vector<16x512xf32>
    %683 = arith.mulf %682, %675 : vector<16x512xf32>
    %cst_233 = arith.constant -0.284496725 : f32
    %684 = vector.broadcast %cst_233 : f32 to vector<16x512xf32>
    %685 = arith.addf %683, %684 : vector<16x512xf32>
    %686 = arith.mulf %685, %675 : vector<16x512xf32>
    %cst_234 = arith.constant 0.254829586 : f32
    %687 = vector.broadcast %cst_234 : f32 to vector<16x512xf32>
    %688 = arith.addf %686, %687 : vector<16x512xf32>
    %689 = arith.mulf %688, %675 : vector<16x512xf32>
    %690 = arith.mulf %669, %669 : vector<16x512xf32>
    %cst_235 = arith.constant 0.000000e+00 : f32
    %691 = vector.broadcast %cst_235 : f32 to vector<16x512xf32>
    %692 = arith.subf %691, %690 : vector<16x512xf32>
    %693 = math.exp %692 : vector<16x512xf32>
    %694 = arith.mulf %689, %693 : vector<16x512xf32>
    %cst_236 = arith.constant 1.000000e+00 : f32
    %695 = vector.broadcast %cst_236 : f32 to vector<16x512xf32>
    %696 = arith.subf %695, %694 : vector<16x512xf32>
    %697 = arith.mulf %668, %696 : vector<16x512xf32>
    %cst_237 = arith.constant 1.000000e+00 : f32
    %698 = vector.broadcast %cst_237 : f32 to vector<16x512xf32>
    %699 = arith.addf %698, %697 : vector<16x512xf32>
    %700 = arith.mulf %661, %699 : vector<16x512xf32>
    %c1_238 = arith.constant 1 : index
    %c0_239 = arith.constant 0 : index
    %c0_240 = arith.constant 0 : index
    %701 = vector.load %arg23[%c1_238, %c0_239, %c0_240] : memref<2x512x128xbf16, #tpu.memory_space<vmem>>, vector<1x512x128xbf16>
    %702 = vector.shape_cast %701 : vector<1x512x128xbf16> to vector<512x128xbf16>
    %c1_241 = arith.constant 1 : index
    %c0_242 = arith.constant 0 : index
    %c0_243 = arith.constant 0 : index
    %703 = vector.load %arg24[%c1_241, %c0_242, %c0_243] : memref<2x1x128xf32, #tpu.memory_space<vmem>>, vector<1x1x128xf32>
    %704 = vector.shape_cast %703 : vector<1x1x128xf32> to vector<1x128xf32>
    %705 = arith.truncf %700 : vector<16x512xf32> to vector<16x512xbf16>
    %cst_244 = arith.constant dense<0.000000e+00> : vector<16x128xf32>
    %706 = tpu.matmul %705, %702, %cst_244 {dimension_numbers = #tpu.dot_dimension_numbers<[1], [0], [0], [1], [0, 0, 1, 1], [], []>} : vector<16x512xbf16>, vector<512x128xbf16>, vector<16x128xf32> -> vector<16x128xf32>
    %707 = vector.broadcast %704 : vector<1x128xf32> to vector<16x128xf32>
    %708 = arith.addf %706, %707 : vector<16x128xf32>
    %709 = arith.addf %651, %708 : vector<16x128xf32>
    %c1_245 = arith.constant 1 : index
    %c0_246 = arith.constant 0 : index
    %c0_247 = arith.constant 0 : index
    %710 = vector.load %arg25[%c1_245, %c0_246, %c0_247] : memref<2x1x128xf32, #tpu.memory_space<vmem>>, vector<1x1x128xf32>
    %711 = vector.shape_cast %710 : vector<1x1x128xf32> to vector<1x128xf32>
    %c1_248 = arith.constant 1 : index
    %c0_249 = arith.constant 0 : index
    %c0_250 = arith.constant 0 : index
    %712 = vector.load %arg26[%c1_248, %c0_249, %c0_250] : memref<2x1x128xf32, #tpu.memory_space<vmem>>, vector<1x1x128xf32>
    %713 = vector.shape_cast %712 : vector<1x1x128xf32> to vector<1x128xf32>
    %cst_251 = arith.constant dense<0.000000e+00> : vector<16xf32>
    %714 = vector.multi_reduction <add>, %709, %cst_251 [1] : vector<16x128xf32> to vector<16xf32>
    %715 = vector.shape_cast %714 : vector<16xf32> to vector<16x1xf32>
    %cst_252 = arith.constant 1.280000e+02 : f32
    %716 = vector.broadcast %cst_252 : f32 to vector<16x1xf32>
    %717 = arith.divf %715, %716 : vector<16x1xf32>
    %718 = vector.broadcast %717 : vector<16x1xf32> to vector<16x128xf32>
    %719 = arith.subf %709, %718 : vector<16x128xf32>
    %720 = arith.mulf %719, %719 : vector<16x128xf32>
    %cst_253 = arith.constant dense<0.000000e+00> : vector<16xf32>
    %721 = vector.multi_reduction <add>, %720, %cst_253 [1] : vector<16x128xf32> to vector<16xf32>
    %722 = vector.shape_cast %721 : vector<16xf32> to vector<16x1xf32>
    %cst_254 = arith.constant 1.280000e+02 : f32
    %723 = vector.broadcast %cst_254 : f32 to vector<16x1xf32>
    %724 = arith.divf %722, %723 : vector<16x1xf32>
    %cst_255 = arith.constant 9.99999996E-13 : f32
    %725 = vector.broadcast %cst_255 : f32 to vector<16x1xf32>
    %726 = arith.addf %724, %725 : vector<16x1xf32>
    %727 = math.rsqrt %726 : vector<16x1xf32>
    %728 = vector.broadcast %727 : vector<16x1xf32> to vector<16x128xf32>
    %729 = arith.mulf %719, %728 : vector<16x128xf32>
    %730 = vector.broadcast %711 : vector<1x128xf32> to vector<16x128xf32>
    %731 = arith.mulf %729, %730 : vector<16x128xf32>
    %732 = vector.broadcast %713 : vector<1x128xf32> to vector<16x128xf32>
    %733 = arith.addf %731, %732 : vector<16x128xf32>
    %734 = tpu.iota {dimensions = array<i32: 0>} : vector<8x1xi32>
    %c0_256 = arith.constant 0 : index
    %735 = memref.load %arg0[%c0_256] : memref<2xi32, #tpu.memory_space<smem>>
    %c2_i32 = arith.constant 2 : i32
    %736 = arith.subi %735, %c2_i32 : i32
    %737 = vector.extract_strided_slice %733 {offsets = [0, 0], sizes = [8, 128], strides = [1, 1]} : vector<16x128xf32> to vector<8x128xf32>
    %738 = vector.broadcast %736 : i32 to vector<8x1xi32>
    %739 = arith.cmpi eq, %734, %738 : vector<8x1xi32>
    %cst_257 = arith.constant 0.000000e+00 : f32
    %740 = vector.shape_cast %739 : vector<8x1xi1> to vector<8x1xi1>
    %741 = vector.broadcast %740 : vector<8x1xi1> to vector<8x128xi1>
    %742 = vector.broadcast %cst_257 : f32 to vector<8x128xf32>
    %743 = arith.select %741, %737, %742 : vector<8x128xi1>, vector<8x128xf32>
    %cst_258 = arith.constant dense<0.000000e+00> : vector<128xf32>
    %744 = vector.multi_reduction <add>, %743, %cst_258 [0] : vector<8x128xf32> to vector<128xf32>
    %745 = vector.shape_cast %744 : vector<128xf32> to vector<1x128xf32>
    %c1_259 = arith.constant 1 : index
    %746 = memref.load %arg0[%c1_259] : memref<2xi32, #tpu.memory_space<smem>>
    %c2_i32_260 = arith.constant 2 : i32
    %747 = arith.subi %746, %c2_i32_260 : i32
    %748 = vector.extract_strided_slice %733 {offsets = [8, 0], sizes = [8, 128], strides = [1, 1]} : vector<16x128xf32> to vector<8x128xf32>
    %749 = vector.broadcast %747 : i32 to vector<8x1xi32>
    %750 = arith.cmpi eq, %734, %749 : vector<8x1xi32>
    %cst_261 = arith.constant 0.000000e+00 : f32
    %751 = vector.shape_cast %750 : vector<8x1xi1> to vector<8x1xi1>
    %752 = vector.broadcast %751 : vector<8x1xi1> to vector<8x128xi1>
    %753 = vector.broadcast %cst_261 : f32 to vector<8x128xf32>
    %754 = arith.select %752, %748, %753 : vector<8x128xi1>, vector<8x128xf32>
    %cst_262 = arith.constant dense<0.000000e+00> : vector<128xf32>
    %755 = vector.multi_reduction <add>, %754, %cst_262 [0] : vector<8x128xf32> to vector<128xf32>
    %756 = vector.shape_cast %755 : vector<128xf32> to vector<1x128xf32>
    %757 = tpu.concatenate %745, %756 in 0 : vector<1x128xf32>, vector<1x128xf32> -> vector<2x128xf32>
    %c0_263 = arith.constant 0 : index
    %c0_264 = arith.constant 0 : index
    %758 = vector.load %arg27[%c0_263, %c0_264] : memref<128x1024xbf16, #tpu.memory_space<vmem>>, vector<128x1024xbf16>
    %c0_265 = arith.constant 0 : index
    %c0_266 = arith.constant 0 : index
    %759 = vector.load %arg28[%c0_265, %c0_266] : memref<1x1024xf32, #tpu.memory_space<vmem>>, vector<1x1024xf32>
    %760 = arith.truncf %757 : vector<2x128xf32> to vector<2x128xbf16>
    %cst_267 = arith.constant dense<0.000000e+00> : vector<2x1024xf32>
    %761 = tpu.matmul %760, %758, %cst_267 {dimension_numbers = #tpu.dot_dimension_numbers<[1], [0], [0], [1], [0, 0, 1, 1], [], []>} : vector<2x128xbf16>, vector<128x1024xbf16>, vector<2x1024xf32> -> vector<2x1024xf32>
    %762 = vector.broadcast %759 : vector<1x1024xf32> to vector<2x1024xf32>
    %763 = arith.addf %761, %762 : vector<2x1024xf32>
    %c0_268 = arith.constant 0 : index
    %c0_269 = arith.constant 0 : index
    %764 = vector.load %arg29[%c0_268, %c0_269] : memref<2x1024xf32, #tpu.memory_space<vmem>>, vector<2x1024xf32>
    tpu.vector_store %arg29[%c0_268, %c0_269], %763 {strides = array<i32>} : memref<2x1024xf32, #tpu.memory_space<vmem>>, vector<2x1024xf32>,
    return
  }
}

</mosaic_0001>

<bundles_post_ra>
// kernel: blip_decoder_forward.2
= control target key start
LH: loop header
LB: loop body
LE: loop exit
PB: predicated region body
PF: predicated region fallthrough
CT: control target
= control target key end

     0   :  { %s7156_s0 = inlined_call_operand.vmem [shape: f32[8,768], index: 0, kind: input, shape index: {}]   ;;  %s7157_s1 = inlined_call_operand.vmem [shape: bf16[768,128], index: 1, kind: input, shape index: {}]   ;;  %s7158_s2 = inlined_call_operand.vmem [shape: f32[1,128], index: 2, kind: input, shape index: {}]   ;;  %s7159_s3 = inlined_call_operand.vmem [shape: f32[1,128], index: 3, kind: input, shape index: {}]   ;;  %s7160_s4 = inlined_call_operand.vmem [shape: f32[5,128], index: 4, kind: input, shape index: {}]   ;;  %s7161_s5 = inlined_call_operand.vmem [shape: f32[2,1,128], index: 5, kind: input, shape index: {}]   ;;  %s7162_s6 = inlined_call_operand.vmem [shape: f32[2,1,128], index: 6, kind: input, shape index: {}]   ;;  %s7163_s7 = inlined_call_operand.vmem [shape: bf16[2,128,384], index: 7, kind: input, shape index: {}]   ;;  %s7164_s8 = inlined_call_operand.vmem [shape: f32[2,1,384], index: 8, kind: input, shape index: {}]   ;;  %s7165_s9 = inlined_call_operand.hbm [shape: bf16[2,128,128], index: 9, kind: input, shape index: {}]   ;;  %s7166_s10 = inlined_call_operand.vmem [shape: f32[2,1,128], index: 10, kind: input, shape index: {}]   ;;  %s7167_s11 = inlined_call_operand.vmem [shape: f32[2,1,128], index: 11, kind: input, shape index: {}]   ;;  %s7168_s12 = inlined_call_operand.vmem [shape: f32[2,1,128], index: 12, kind: input, shape index: {}]   ;;  %s7169_s13 = inlined_call_operand.vmem [shape: bf16[2,128,512], index: 13, kind: input, shape index: {}]   ;;  %s7170_s14 = inlined_call_operand.vmem [shape: f32[2,1,512], index: 14, kind: input, shape index: {}]   ;;  %s7171_s15 = inlined_call_operand.vmem [shape: bf16[2,512,128], index: 15, kind: input, shape index: {}]   ;;  %s7172_s16 = inlined_call_operand.vmem [shape: f32[2,1,128], index: 16, kind: input, shape index: {}]   ;;  %s7173_s17 = inlined_call_operand.vmem [shape: f32[1,128], index: 17, kind: input, shape index: {}]   ;;  %s7174_s18 = inlined_call_operand.vmem [shape: f32[1,128], index: 18, kind: input, shape index: {}]   ;;  %s7175_s19 = inlined_call_operand.vmem [shape: bf16[10,128], index: 19, kind: output, shape index: {}]  }
   0x1   :  { %7178 = sst [smem:[#allocation5_spill]] %s7156_s0 }
   0x2   :  { %7179 = sst [smem:[#allocation6_spill]] %s7157_s1 }
   0x3   :  { %7180 = sst [smem:[#allocation7_spill]] %s7158_s2 }
   0x4   :  { %7181 = sst [smem:[#allocation8_spill]] %s7159_s3 }
   0x5   :  { %24 = vsyncpa [#allocation3], 0  ;;  %s5633_s0 = smov [#allocation2]   ;;  %s5609_s1 = scalar_lea.hbm %s7165_s9, 2048 }
   0x6   :  { %s48_s30 = sshll.u32 %s5633_s0, 4  ;;  %p5610_p0 = scmp.ne.s32.totalorder %s7165_s9, %s5609_s1  ;;  %s49_s30 = int_to_ptr.vmem [resolvable:$true] %s48_s30 }
   0x7   :  { %p5613_p1 = scmp.lt.u32.totalorder %s5609_s1, %s7165_s9 }
   0x9   :  { %p5615_p2 = pnand %p5613_p1, %p5610_p0 }
   0xb   :  { %5618 = shalt.err (!%p5615_p2)
}
   0xc   :  { %s5619_s25 = scalar_lea.vmem %s49_s30, 2048  ;;  %p5624_p4 = scmp.lt.s32.totalorder %s49_s30, %s49_s30 }
   0xd   :  { %p5620_p3 = scmp.ne.s32.totalorder %s49_s30, %s5619_s25  ;;  %p5625_p5 = scmp.lt.s32.totalorder %s5619_s25, %s5619_s25 }
   0xf   :  { %p5626_p6 = por %p5625_p5, %p5624_p4 }
  0x11   :  { %p5627_p7 = pnand %p5626_p6, %p5620_p3 }
  0x13   :  { %5630 = shalt.err (!%p5627_p7)
}
  0x14   :  { %s5634_s3 = smov 64   ;;  %s5635_s26 = smov 4  }
  0x15   :  { %54 = dma.hbm_to_vmem [thread:$0]  %s7165_s9, 2048, %s49_s30, [#allocation3], %s5634_s3, %s5634_s3, %s5635_s26  }
  0x16   :  { %5631 = dma.done.wait [#allocation3], 2048  }
  0x17   :  { %5632 = vsyncadd [#allocation3], 4294965248  ;;  %s7182_s20 = sld [smem:[#allocation6_spill]]  ;;  %s7183_s9 = sld [smem:[#allocation5_spill]]  ;;  %vm605_vm0 = vcmask 1040384   ;;  %vm621_vm1 = vcmask 1041408  }
  0x18   :  { %s7184_s21 = sld [smem:[#allocation7_spill]]  ;;  %s7185_s1 = sld [smem:[#allocation8_spill]]  ;;  %vm615_vm2 = vcmask 1044480   ;;  %vm5638_vm3 = vmmov 0   ;;  %vm941_vm4 = vcmask 523264   ;;  %vm1065_vm5 = vcmask 1042432  }
  0x19   :  { %vm1036_vm6 = vcmask 36864   ;;  %vm1061_vm7 = vcmask 39936  }
  0x1d   :  { %v5205_v0 = vld [vmem:[%s7182_s20 + $0x40] sm:$0xff]   ;;  %v5209_v4 = vld [vmem:[%s7182_s20 + $0x48] sm:$0xff]   ;;  %v5213_v8 = vld [vmem:[%s7182_s20 + $0x50] sm:$0xff]  }
  0x1e   :  { %v5206_v1 = vld [vmem:[%s7182_s20] sm:$0xff]   ;;  %4799 = vmatprep.subr.bf16.mxu0 %v5205_v0  ;;  %v5210_v5 = vld [vmem:[%s7182_s20 + $0x8] sm:$0xff]   ;;  %v5214_v9 = vld [vmem:[%s7182_s20 + $0x10] sm:$0xff]  }
  0x1f   :  { %v5207_v2 = vld [vmem:[%s7182_s20 + $0xc0] sm:$0xff]   ;;  %4800 = vmatpush3.bf16.msra.mxu0 %v5206_v1  ;;  %v5211_v6 = vld [vmem:[%s7182_s20 + $0xc8] sm:$0xff]   ;;  %v5215_v10 = vld [vmem:[%s7182_s20 + $0xd0] sm:$0xff]  }
  0x20   :  { %v5208_v3 = vld [vmem:[%s7182_s20 + $0x80] sm:$0xff]   ;;  %4821 = vmatprep.subr.bf16.mxu1 %v5207_v2  ;;  %4801 = vmatprep.subr.bf16.mxu0 %v5209_v4  ;;  %v5212_v7 = vld [vmem:[%s7182_s20 + $0x88] sm:$0xff]   ;;  %v5216_v11 = vld [vmem:[%s7182_s20 + $0x90] sm:$0xff]  }
  0x21   :  { %4822 = vmatpush3.bf16.msra.mxu1 %v5208_v3  ;;  %v5217_v12 = vld [vmem:[%s7182_s20 + $0x58] sm:$0xff]   ;;  %v5221_v16 = vld [vmem:[%s7182_s20 + $0x60] sm:$0xff]   ;;  %v5225_v20 = vld [vmem:[%s7182_s20 + $0x68] sm:$0xff]  }
  0x22   :  { %4823 = vmatprep.subr.bf16.mxu1 %v5211_v6  ;;  %v5218_v13 = vld [vmem:[%s7182_s20 + $0x18] sm:$0xff]   ;;  %v5222_v17 = vld [vmem:[%s7182_s20 + $0x20] sm:$0xff]   ;;  %v5226_v21 = vld [vmem:[%s7182_s20 + $0x28] sm:$0xff]  }
  0x23   :  { %4802 = vmatpush3.bf16.msra.mxu0 %v5210_v5  ;;  %v5219_v14 = vld [vmem:[%s7182_s20 + $0xd8] sm:$0xff]   ;;  %v5223_v18 = vld [vmem:[%s7182_s20 + $0xe0] sm:$0xff]   ;;  %v5227_v22 = vld [vmem:[%s7182_s20 + $0xe8] sm:$0xff]  }
  0x24   :  { %4803 = vmatprep.subr.bf16.mxu0 %v5213_v8  ;;  %v5220_v15 = vld [vmem:[%s7182_s20 + $0x98] sm:$0xff]   ;;  %v5224_v19 = vld [vmem:[%s7182_s20 + $0xa0] sm:$0xff]   ;;  %v5228_v23 = vld [vmem:[%s7182_s20 + $0xa8] sm:$0xff]  }
  0x25   :  { %4824 = vmatpush3.bf16.msra.mxu1 %v5212_v7  ;;  %v5229_v24 = vld [vmem:[%s7182_s20 + $0x70] sm:$0xff]   ;;  %v5233_v28 = vld [vmem:[%s7182_s20 + $0x78] sm:$0xff]   ;;  %v78_v31 = vld [vmem:[%s7183_s9 + $0x8] sm:$0xff] }
  0x26   :  { %4825 = vmatprep.subr.bf16.mxu1 %v5215_v10  ;;  %v5230_v25 = vld [vmem:[%s7182_s20 + $0x30] sm:$0xff]   ;;  %v5234_v29 = vld [vmem:[%s7182_s20 + $0x38] sm:$0xff]   ;;  %v181_v32 = vpack.c.bf16 %v78_v31, %v78_v31  ;;  %v77_v34 = vld [vmem:[%s7183_s9] sm:$0xff] }
  0x27   :  { %4804 = vmatpush3.bf16.msra.mxu0 %v5214_v9  ;;  %v5231_v26 = vld [vmem:[%s7182_s20 + $0xf0] sm:$0xff]   ;;  %v5235_v30 = vld [vmem:[%s7182_s20 + $0xf8] sm:$0xff]   ;;  %v180_v35 = vpack.c.bf16 %v77_v34, %v77_v34  ;;  %v5237_v36 = vld [vmem:[%s7182_s20 + $0x140] sm:$0xff]  }
  0x28   :  { %4805 = vmatprep.subr.bf16.mxu0 %v5217_v12  ;;  %v5232_v27 = vld [vmem:[%s7182_s20 + $0xb0] sm:$0xff]   ;;  %v5236_v33 = vld [vmem:[%s7182_s20 + $0xb8] sm:$0xff]   ;;  %512 = vmatprep.mubr.bf16.mxu0 %v181_v32  ;;  %v5238_v39 = vld [vmem:[%s7182_s20 + $0x100] sm:$0xff]  }
  0x29   :  { %4826 = vmatpush3.bf16.msra.mxu1 %v5216_v11  ;;  %v80_v37 = vld [vmem:[%s7183_s9 + $0x18] sm:$0xff]  ;;  %v79_v40 = vld [vmem:[%s7183_s9 + $0x10] sm:$0xff]  ;;  %v5239_v42 = vld [vmem:[%s7182_s20 + $0x148] sm:$0xff]  }
  0x2a   :  { %4827 = vmatprep.subr.bf16.mxu1 %v5219_v14  ;;  %v183_v38 = vpack.c.bf16 %v80_v37, %v80_v37  ;;  %v182_v41 = vpack.c.bf16 %v79_v40, %v79_v40  ;;  %v5240_v43 = vld [vmem:[%s7182_s20 + $0x108] sm:$0xff]   ;;  %v5241_v44 = vld [vmem:[%s7182_s20 + $0x150] sm:$0xff]   ;;  %v5243_v46 = vld [vmem:[%s7182_s20 + $0x158] sm:$0xff]  }
  0x2b   :  { %4806 = vmatpush3.bf16.msra.mxu0 %v5218_v13  ;;  %v5242_v45 = vld [vmem:[%s7182_s20 + $0x110] sm:$0xff]   ;;  %v5244_v47 = vld [vmem:[%s7182_s20 + $0x118] sm:$0xff]   ;;  %v5245_v48 = vld [vmem:[%s7182_s20 + $0x160] sm:$0xff]  }
  0x2c   :  { %4807 = vmatprep.subr.bf16.mxu0 %v5221_v16  ;;  %552 = vmatprep.mubr.bf16.mxu1 %v183_v38  ;;  %v5246_v49 = vld [vmem:[%s7182_s20 + $0x120] sm:$0xff]   ;;  %v5247_v50 = vld [vmem:[%s7182_s20 + $0x168] sm:$0xff]   ;;  %v5249_v54 = vld [vmem:[%s7182_s20 + $0x170] sm:$0xff]  }
  0x2d   :  { %4828 = vmatpush3.bf16.msra.mxu1 %v5220_v15  ;;  %v82_v51 = vld [vmem:[%s7183_s9 + $0x28] sm:$0xff]  ;;  %v5250_v55 = vld [vmem:[%s7182_s20 + $0x130] sm:$0xff]   ;;  %v5251_v56 = vld [vmem:[%s7182_s20 + $0x178] sm:$0xff]  }
  0x2e   :  { %4829 = vmatprep.subr.bf16.mxu1 %v5223_v18  ;;  %v5248_v52 = vld [vmem:[%s7182_s20 + $0x128] sm:$0xff]   ;;  %v185_v53 = vpack.c.bf16 %v82_v51, %v82_v51  ;;  %v5252_v57 = vld [vmem:[%s7182_s20 + $0x138] sm:$0xff]   ;;  %v81_v58 = vld [vmem:[%s7183_s9 + $0x20] sm:$0xff] }
  0x2f   :  { %4808 = vmatpush3.bf16.msra.mxu0 %v5222_v17  ;;  %v184_v59 = vpack.c.bf16 %v81_v58, %v81_v58  ;;  %v4388_v61 = vld [vmem:[%s7184_s21] ss:$0 sm:$0xff]  ;;  %v5257_v31 = vld [vmem:[%s7163_s7 + $0x18] ss:$12 sps:$4 sm:$0xff]   ;;  %v5275_v51 = vld [vmem:[%s7163_s7 + $0x7c] ss:$12 sps:$4 sm:$0xff]  }
  0x30   :  { %4809 = vmatprep.subr.bf16.mxu0 %v5225_v20  ;;  %v601_v15 = vld [vmem:[%s7185_s1] sm:$0x1]  ;;  %v5281_v58 = vld [vmem:[%s7163_s7 + $0xa8] ss:$12 sps:$4 sm:$0xff]  }
  0x31   :  { %4830 = vmatpush3.bf16.msra.mxu1 %v5224_v19  ;;  %v600_v17 = vld [vmem:[%s7160_s4] sm:$0x1f] }
  0x32   :  { %4831 = vmatprep.subr.bf16.mxu1 %v5227_v22 }
  0x33   :  { %4810 = vmatpush3.bf16.msra.mxu0 %v5226_v21 }
  0x34   :  { %4811 = vmatprep.subr.bf16.mxu0 %v5229_v24 }
  0x35   :  { %4832 = vmatpush3.bf16.msra.mxu1 %v5228_v23 }
  0x36   :  { %4833 = vmatprep.subr.bf16.mxu1 %v5231_v26  ;;  %v5253_v26 = vld [vmem:[%s7163_s7] ss:$12 sps:$4 sm:$0xff]  }
  0x37   :  { %4812 = vmatpush3.bf16.msra.mxu0 %v5230_v25 }
  0x38   :  { %4813 = vmatprep.subr.bf16.mxu0 %v5233_v28  ;;  %v5636_v28 = vmov 0.0  }
  0x39   :  { %4834 = vmatpush3.bf16.msra.mxu1 %v5232_v27  ;;  %v5255_v27 = vld [vmem:[%s7163_s7 + $0x4] ss:$12 sps:$4 sm:$0xff]  }
  0x3a   :  { %4835 = vmatprep.subr.bf16.mxu1 %v5235_v30  ;;  %v5259_v30 = vld [vmem:[%s7163_s7 + $0x1c] ss:$12 sps:$4 sm:$0xff]  }
  0x3b   :  { %4814 = vmatpush3.bf16.msra.mxu0 %v5234_v29  ;;  %v5256_v29 = vld [vmem:[%s7163_s7 + $0x8] ss:$12 sps:$4 sm:$0xff]  }
  0x3c   :  { %4843 = vmatprep.subr.bf16.mxu0 %v5237_v36 }
  0x3d   :  { %4836 = vmatpush3.bf16.msra.mxu1 %v5236_v33 }
  0x3e   :  { %513 = vmatmul.mubr.bf16.vlgmr.msra.gmra.mrb[0].mxu0 %v180_v35  ;;  %839 = vmatprep.subr.bf16.mxu1 %v5255_v27 }
  0x3f   :  { %4844 = vmatpush3.bf16.msra.mxu0 %v5238_v39  ;;  %592 = vmatprep.mubr.bf16.mxu0 %v185_v53  ;;  %v5276_v53 = vld [vmem:[%s7163_s7 + $0x80] ss:$12 sps:$4 sm:$0xff]  }
  0x40   :  { %553 = vmatmul.mubr.bf16.vlgmr.msra.gmra.mrb[0].mxu1 %v182_v41  ;;  %4845 = vmatprep.subr.bf16.mxu0 %v5239_v42  ;;  %v5260_v41 = vld [vmem:[%s7163_s7 + $0x20] ss:$12 sps:$4 sm:$0xff]  }
  0x41   :  { %840 = vmatpush1.bf16.msra.mxu1 %v5253_v26  ;;  %v5263_v42 = vld [vmem:[%s7163_s7 + $0x34] ss:$12 sps:$4 sm:$0xff]  }
  0x42   :  { %841 = vmatprep.subr.bf16.mxu1 %v5259_v30 }
  0x43   :  { %4846 = vmatpush3.bf16.msra.mxu0 %v5240_v43  ;;  %v5261_v43 = vld [vmem:[%s7163_s7 + $0x30] ss:$12 sps:$4 sm:$0xff]  }
  0x44   :  { %4847 = vmatprep.subr.bf16.mxu0 %v5241_v44  ;;  %v5264_v44 = vld [vmem:[%s7163_s7 + $0x38] ss:$12 sps:$4 sm:$0xff]  }
  0x45   :  { %842 = vmatpush1.bf16.msra.mxu1 %v5257_v31 }
  0x46   :  { %843 = vmatprep.subr.bf16.mxu1 %v5263_v42 }
  0x47   :  { %4848 = vmatpush3.bf16.msra.mxu0 %v5242_v45  ;;  %v5267_v45 = vld [vmem:[%s7163_s7 + $0x4c] ss:$12 sps:$4 sm:$0xff]  }
  0x48   :  { %4849 = vmatprep.subr.bf16.mxu0 %v5243_v46  ;;  %v5265_v46 = vld [vmem:[%s7163_s7 + $0x48] ss:$12 sps:$4 sm:$0xff]  }
  0x49   :  { %844 = vmatpush1.bf16.msra.mxu1 %v5261_v43 }
  0x4a   :  { %845 = vmatprep.subr.bf16.mxu1 %v5267_v45 }
  0x4b   :  { %4850 = vmatpush3.bf16.msra.mxu0 %v5244_v47  ;;  %v5268_v47 = vld [vmem:[%s7163_s7 + $0x50] ss:$12 sps:$4 sm:$0xff]  }
  0x4c   :  { %4851 = vmatprep.subr.bf16.mxu0 %v5245_v48  ;;  %v5271_v48 = vld [vmem:[%s7163_s7 + $0x64] ss:$12 sps:$4 sm:$0xff]  }
  0x4d   :  { %846 = vmatpush1.bf16.msra.mxu1 %v5265_v46  ;;  %v5639_v46 = vmov 65535  }
  0x4e   :  { %847 = vmatprep.subr.bf16.mxu1 %v5271_v48 }
  0x4f   :  { %4852 = vmatpush3.bf16.msra.mxu0 %v5246_v49  ;;  %v5269_v49 = vld [vmem:[%s7163_s7 + $0x60] ss:$12 sps:$4 sm:$0xff]  }
  0x50   :  { %4853 = vmatprep.subr.bf16.mxu0 %v5247_v50  ;;  %v5272_v50 = vld [vmem:[%s7163_s7 + $0x68] ss:$12 sps:$4 sm:$0xff]  }
  0x51   :  { %848 = vmatpush1.bf16.msra.mxu1 %v5269_v49 }
  0x52   :  { %849 = vmatprep.subr.bf16.mxu1 %v5275_v51 }
  0x53   :  { %4854 = vmatpush3.bf16.msra.mxu0 %v5248_v52  ;;  %v5273_v52 = vld [vmem:[%s7163_s7 + $0x78] ss:$12 sps:$4 sm:$0xff]  }
  0x54   :  { %4855 = vmatprep.subr.bf16.mxu0 %v5249_v54  ;;  %v5279_v54 = vld [vmem:[%s7163_s7 + $0x94] ss:$12 sps:$4 sm:$0xff]  }
  0x55   :  { %850 = vmatpush1.bf16.msra.mxu1 %v5273_v52 }
  0x56   :  { %851 = vmatprep.subr.bf16.mxu1 %v5279_v54 }
  0x57   :  { %4856 = vmatpush3.bf16.msra.mxu0 %v5250_v55  ;;  %v5277_v55 = vld [vmem:[%s7163_s7 + $0x90] ss:$12 sps:$4 sm:$0xff]  }
  0x58   :  { %4857 = vmatprep.subr.bf16.mxu0 %v5251_v56  ;;  %v5280_v56 = vld [vmem:[%s7163_s7 + $0x98] ss:$12 sps:$4 sm:$0xff]  }
  0x59   :  { %852 = vmatpush1.bf16.msra.mxu1 %v5277_v55 }
  0x5b   :  { %4858 = vmatpush3.bf16.msra.mxu0 %v5252_v57  ;;  %v5283_v57 = vld [vmem:[%s7163_s7 + $0xac] ss:$12 sps:$4 sm:$0xff]  }
  0x5c   :  { %5021 = vmatprep.subr.bf16.mxu0 %v5636_v28  ;;  %853 = vmatprep.subr.bf16.mxu1 %v5283_v57 }
  0x5d   :  { %854 = vmatpush1.bf16.msra.mxu1 %v5281_v58 }
  0x5e   :  { %593 = vmatmul.mubr.bf16.vlgmr.msra.gmra.mrb[4].mxu0 %v184_v59  ;;  %v5284_v59 = vld [vmem:[%s7163_s7 + $0xb0] ss:$12 sps:$4 sm:$0xff]   ;;  %5041 = vmatprep.subr.bf16.mxu1 %v5636_v28 }
  0x5f   :  { %5022 = vmatpush3.bf16.msra.mxu0 %v5256_v29  ;;  %5037 = vmatprep.mubr.msk.bf16.mxu0 %vm5638_vm3, %v5636_v28 }
  0x60   :  { %5023 = vmatprep.subr.bf16.mxu0 %v5636_v28 }
  0x63   :  { %5024 = vmatpush3.bf16.msra.mxu0 %v5260_v41 }
  0x64   :  { %5025 = vmatprep.subr.bf16.mxu0 %v5636_v28 }
  0x67   :  { %5026 = vmatpush3.bf16.msra.mxu0 %v5264_v44 }
  0x68   :  { %5027 = vmatprep.subr.bf16.mxu0 %v5636_v28 }
  0x6b   :  { %5028 = vmatpush3.bf16.msra.mxu0 %v5268_v47  ;;  %v1066_v47 = vsel %vm621_vm1, 4294967295, %v5639_v46 }
  0x6c   :  { %5029 = vmatprep.subr.bf16.mxu0 %v5636_v28 }
  0x6f   :  { %5030 = vmatpush3.bf16.msra.mxu0 %v5272_v50  ;;  %v6096_v50 = vsel %vm1065_vm5, %v1066_v47, 0 }
  0x70   :  { %5031 = vmatprep.subr.bf16.mxu0 %v5636_v28 }
  0x73   :  { %5032 = vmatpush3.bf16.msra.mxu0 %v5276_v53 }
  0x74   :  { %5033 = vmatprep.subr.bf16.mxu0 %v5636_v28 }
  0x77   :  { %5034 = vmatpush3.bf16.msra.mxu0 %v5280_v56 }
  0x78   :  { %5035 = vmatprep.subr.bf16.mxu0 %v5636_v28 }
  0x7b   :  { %5036 = vmatpush3.bf16.msra.mxu0 %v5284_v59 }
  0x7c   :  { %5089 = vmatprep.subr.bf16.mxu0 %v5636_v28 }
 0x111   :  { %v4815_v60 = vpop.f32.mrb[0].mxu0 }
 0x112   :  { %v4816_v62 = vpop.f32.mrb[1].mxu0 }
 0x113   :  { %v4817_v63 = vadd.f32 %v4816_v62, %v4815_v60  ;;  %v4818_v0 = vpop.f32.mrb[2].mxu0  ;;  %v4837_v1 = vpop.f32.mrb[0].mxu1  ;;  %v5637_v60 = vmov 0  }
 0x114   :  { %v4819_v2 = vpop.f32.mrb[3].mxu0  ;;  %v4838_v4 = vpop.f32.mrb[1].mxu1  ;;  %871 = vmatprep.mubr.bf16.mxu1 %v5637_v60 }
 0x115   :  { %v515_v3 = vadd.f32 %v4817_v63, %v4388_v61  ;;  %v4839_v5 = vadd.f32 %v4838_v4, %v4837_v1  ;;  %v4840_v6 = vpop.f32.mrb[2].mxu1 }
 0x116   :  { %v4841_v7 = vpop.f32.mrb[3].mxu1 }
 0x117   :  { %v555_v8 = vadd.f32 %v4839_v5, %v515_v3  ;;  %v4437_v5 = vld [vmem:[%s7161_s5] ss:$0 sm:$0xff] }
 0x131   :  { %v4859_v9 = vpop.f32.mrb[4].mxu0 }
 0x132   :  { %v4860_v10 = vpop.f32.mrb[5].mxu0 }
 0x133   :  { %v4861_v11 = vadd.f32 %v4860_v10, %v4859_v9  ;;  %v4862_v12 = vpop.f32.mrb[6].mxu0  ;;  %v4438_v9 = vld [vmem:[%s7162_s6] ss:$0 sm:$0xff] }
 0x134   :  { %v4863_v13 = vpop.f32.mrb[7].mxu0 }
 0x135   :  { %v595_v14 = vadd.f32 %v4861_v11, %v555_v8 }
 0x137   :  { %v608_v16 = vrot.slane %v595_v14, 3  ;;  %v603_v18 = vrot.slane %v595_v14, 7  ;;  %v696_v14 = vlaneseq }
 0x139   :  { %v610_v19 = vsel %vm605_vm0, %v601_v15, %v608_v16  ;;  %v606_v22 = vsel %vm605_vm0, %v601_v15, %v603_v18  ;;  %v6043_v15 = vshrl.u32 %v696_v14, 7 }
 0x13a   :  { %v611_v20 = vadd.f32 %v610_v19, %v600_v17  ;;  %v607_v24 = vadd.f32 %v606_v22, %v600_v17  ;;  %v693_v17 = vld [vmem:[%s7164_s8] sm:$0x7] }
 0x13b   :  { %v6046_v16 = vsub.s32 0, %v6043_v15  ;;  %v6052_v18 = vsub.s32 1, %v6043_v15 }
 0x13c   :  { %v5926_v21 = vrot.slane %v611_v20, 3  ;;  %v6056_v20 = vsub.s32 2, %v6043_v15 }
 0x13d   :  { %v699_v19 = vrot.slane %v693_v17, %v6046_v16  ;;  %v703_v22 = vrot.slane %v693_v17, %v6052_v18 }
 0x13e   :  { %v622_v23 = vsel %vm621_vm1, %v5926_v21, 0.0  ;;  %v5932_v25 = vsel %vm615_vm2, %v607_v24, %v5926_v21  ;;  %v707_v27 = vrot.slane %v693_v17, %v6056_v20 }
 0x13f   :  { %623 = vadd.xlane.f32.xlu0 %v622_v23 }
 0x143   :  { %619 = vadd.xlane.f32.xlu0 %v5932_v25 }
 0x1cc   :  { %v624_v32 = vpop.xlane.xlu0 %623 }
 0x1cd   :  { %v627_v33 = vmul.f32 0.0078125, %v624_v32 }
 0x1cf   :  { %v5953_v36 = vsub.f32 %v5926_v21, %v627_v33 }
 0x1d0   :  { %v620_v34 = vpop.xlane.xlu0 %619 }
 0x1d1   :  { %v626_v35 = vmul.f32 0.0078125, %v620_v34  ;;  %v631_v39 = vmul.f32 %v5953_v36, %v5953_v36 }
 0x1d3   :  { %v5956_v37 = vsub.f32 %v5932_v25, %v626_v35  ;;  %v634_v40 = vsel %vm621_vm1, %v631_v39, 0.0 }
 0x1d5   :  { %v630_v38 = vmul.f32 %v5956_v37, %v5956_v37 }
 0x1d7   :  { %632 = vadd.xlane.f32.xlu1 %v630_v38 }
 0x1db   :  { %635 = vadd.xlane.f32.xlu1 %v634_v40 }
 0x264   :  { %v633_v61 = vpop.xlane.xlu1 %632 }
 0x265   :  { %v637_v62 = vmul.f32 0.0078125, %v633_v61 }
 0x267   :  { %v639_v63 = vadd.f32 1e-06, %v637_v62 }
 0x268   :  { %v636_v0 = vpop.xlane.xlu1 %635 }
 0x269   :  { %5493 = vrsqrt.f32 %v639_v63  ;;  %v638_v1 = vmul.f32 0.0078125, %v636_v0 }
 0x26b   :  { %v640_v2 = vadd.f32 1e-06, %v638_v1 }
 0x26d   :  { %5495 = vrsqrt.f32 %v640_v2 }
 0x273   :  { %v5494_v3 = vpop.eup %5493 }
 0x274   :  { %v643_v4 = vmul.f32 %v5494_v3, %v5956_v37 }
 0x276   :  { %v651_v8 = vmul.f32 %v4437_v5, %v643_v4 }
 0x277   :  { %v5496_v6 = vpop.eup %5495 }
 0x278   :  { %v644_v7 = vmul.f32 %v5496_v6, %v5953_v36  ;;  %v659_v11 = vadd.f32 %v4438_v9, %v651_v8 }
 0x27a   :  { %v652_v10 = vmul.f32 %v4437_v5, %v644_v7 }
 0x27c   :  { %v660_v12 = vadd.f32 %v4438_v9, %v652_v10 }
 0x27e   :  { %v694_v13 = vpack.c.bf16 %v660_v12, %v659_v11 }
 0x280   :  { %872 = vmatmul.mubr.bf16.vlgmr.msra.gmra.mrb[4].mxu1 %v694_v13  ;;  %5038 = vmatmul.mubr.bf16.vlgmr.msra.gmra.mrb[8].mxu0 %v694_v13 }
 0x281   :  { %5043 = vmatprep.mubr.msk.bf16.mxu1 %vm5638_vm3, %v5636_v28  ;;  %5105 = vmatprep.mubr.msk.bf16.mxu0 %vm5638_vm3, %v5636_v28 }
 0x353   :  { %v873_v23 = vpop.f32.mrb[4].mxu1  ;;  %v916_v24 = vpop.f32.mrb[8].mxu0 }
 0x354   :  { %v6059_v26 = vadd.f32 %v873_v23, %v699_v19  ;;  %v875_v29 = vpop.f32.mrb[5].mxu1  ;;  %v5039_v30 = vpop.f32.mrb[9].mxu0  ;;  %v6087_v44 = vadd.f32 %v916_v24, %v707_v27 }
 0x355   :  { %v6062_v31 = vadd.f32 %v875_v29, %v703_v22  ;;  %v877_v32 = vpop.f32.mrb[6].mxu1  ;;  %v919_v33 = vpop.f32.mrb[10].mxu0 }
 0x356   :  { %v6064_v34 = vadd.f32 %v877_v32, %v699_v19  ;;  %v6066_v35 = vadd.f32 %v919_v33, %v707_v27  ;;  %v879_v36 = vpop.f32.mrb[7].mxu1  ;;  %v5040_v37 = vpop.f32.mrb[11].mxu0  ;;  %924 = vrot.lane.b32.xlu1 %v6059_v26, %s5634_s3  ;;  %v927_v41 = vpack.c.bf16 %v6059_v26, %v6059_v26  ;;  %v939_v48 = vpack.c.bf16 %v6087_v44, %v6087_v44 }
 0x357   :  { %v933_v38 = vpack.c.bf16 %v6062_v31, %v6062_v31  ;;  %v6072_v39 = vadd.f32 %v879_v36, %v703_v22  ;;  %930 = vrot.lane.b32.xlu0 %v6062_v31, %s5634_s3 }
 0x358   :  { %v1069_v52 = vand.u32 %v6096_v50, %v939_v48 }
 0x359   :  { %v946_v40 = vsel %vm941_vm4, %v933_v38, 0  ;;  %v1172_v24 = vpack.c.bf16 %v6072_v39, %v6062_v31  ;;  %v1166_v38 = vpack.c.bf16 %v6064_v34, %v6059_v26 }
 0x35a   :  { %5042 = vmatpush3.bf16.xpose.msra.mxu1 %v946_v40 }
 0x35b   :  { %5047 = vmatprep.subr.bf16.mxu1 %v5636_v28  ;;  %v1189_v29 = vshrl.u32 %v1172_v24, 16  ;;  %v1192_v30 = vshll.u32 %v1172_v24, 16  ;;  %v1181_v47 = vshrl.u32 %v1166_v38, 16  ;;  %v1184_v48 = vshll.u32 %v1166_v38, 16 }
 0x35d   :  { %v1191_v33 = vrot.slane %v1189_v29, 2  ;;  %v1194_v36 = vrot.slane %v1192_v30, 3  ;;  %v1183_v26 = vrot.slane %v1181_v47, 2 }
 0x35f   :  { %v1195_v46 = vor.u32 %v1194_v36, %v1191_v33 }
 0x361   :  { %5044 = vmatmul.mubr.msk.bf16.vlgmr.msra.gmra.mrb[8].mxu1 %vm941_vm4, %v927_v41 }
 0x362   :  { %5049 = vmatprep.mubr.msk.bf16.mxu1 %vm5638_vm3, %v5636_v28 }
 0x3c8   :  { %v6094_v49 = vpop.permute.xlu1 %924 }
 0x3c9   :  { %v6083_v42 = vpop.permute.xlu0 %930  ;;  %v928_v51 = vpack.c.bf16 %v6094_v49, %v6094_v49 }
 0x3ca   :  { %v934_v43 = vpack.c.bf16 %v6083_v42, %v6083_v42 }
 0x3cc   :  { %v992_v45 = vsel %vm941_vm4, %v934_v43, 0 }
 0x3cd   :  { %5048 = vmatpush3.bf16.xpose.msra.mxu1 %v992_v45 }
 0x3ce   :  { %5053 = vmatprep.subr.bf16.mxu1 %v5636_v28 }
 0x3d4   :  { %5050 = vmatmul.mubr.msk.bf16.vlgmr.msra.gmra.mrb[12].mxu1 %vm941_vm4, %v928_v51 }
 0x3d5   :  { %5054 = vmatpush3.bf16.msra.mxu1 %v1069_v52  ;;  %5055 = vmatprep.mubr.msk.bf16.mxu1 %vm5638_vm3, %v5636_v28 }
 0x3d6   :  { %5059 = vmatprep.subr.bf16.mxu1 %v5636_v28 }
 0x434   :  { %v982_v53 = vpop.f32.mrb[8].mxu1 }
 0x435   :  { %v1034_v54 = vmul.f32 0.125, %v982_v53  ;;  %v5045_v55 = vpop.f32.mrb[9].mxu1 }
 0x436   :  { %v985_v56 = vpop.f32.mrb[10].mxu1 }
 0x437   :  { %v5046_v57 = vpop.f32.mrb[11].mxu1  ;;  %v1037_v58 = vsel %vm1036_vm6, %v1034_v54, -inf }
 0x438   :  { %1038 = vmax.xlane.f32.xlu1 %v1037_v58 }
 0x4a7   :  { %v1028_v59 = vpop.f32.mrb[12].mxu1 }
 0x4a8   :  { %v1035_v61 = vmul.f32 0.125, %v1028_v59  ;;  %v5051_v62 = vpop.f32.mrb[13].mxu1 }
 0x4a9   :  { %v1031_v63 = vpop.f32.mrb[14].mxu1 }
 0x4aa   :  { %v5052_v0 = vpop.f32.mrb[15].mxu1  ;;  %v1040_v1 = vsel %vm1036_vm6, %v1035_v61, -inf }
 0x4ab   :  { %1041 = vmax.xlane.f32.xlu0 %v1040_v1 }
 0x4c5   :  { %v1039_v2 = vpop.xlane.xlu1 %1038 }
 0x4c6   :  { %v1043_v3 = vsub.f32 %v1034_v54, %v1039_v2 }
 0x4c8   :  { %v1045_v4 = vmul.f32 1.442695, %v1043_v3 }
 0x4ca   :  { %5497 = vpow2.f32 %v1045_v4 }
 0x4d4   :  { %v5498_v5 = vpop.eup %5497 }
 0x4d5   :  { %v1049_v6 = vsel %vm1036_vm6, %v5498_v5, 0.0 }
 0x4d6   :  { %1050 = vadd.xlane.f32.xlu0 %v1049_v6 }
 0x4ec   :  { %936 = vrot.lane.b32.xlu0 %v6087_v44, %s5634_s3 }
 0x538   :  { %v1042_v7 = vpop.xlane.xlu0 %1041 }
 0x539   :  { %v1044_v8 = vsub.f32 %v1035_v61, %v1042_v7 }
 0x53b   :  { %v1047_v9 = vmul.f32 1.442695, %v1044_v8 }
 0x53d   :  { %5499 = vpow2.f32 %v1047_v9 }
 0x547   :  { %v5500_v10 = vpop.eup %5499 }
 0x548   :  { %v1052_v11 = vsel %vm1036_vm6, %v5500_v10, 0.0 }
 0x549   :  { %1053 = vadd.xlane.f32.xlu1 %v1052_v11 }
 0x55a   :  { %1169 = vrot.lane.b32.xlu1 %v6072_v39, %s5634_s3  ;;  %v1178_v39 = vpack.c.bf16 %v6066_v35, %v6087_v44 }
 0x55c   :  { %v1331_v55 = vshrl.u32 %v1178_v39, 16  ;;  %v1334_v56 = vshll.u32 %v1178_v39, 16 }
 0x55e   :  { %1163 = vrot.lane.b32.xlu1 %v6064_v34, %s5634_s3  ;;  %v1186_v34 = vrot.slane %v1184_v48, 3  ;;  %v1333_v61 = vrot.slane %v1331_v55, 2  ;;  %v1336_v62 = vrot.slane %v1334_v56, 3 }
 0x560   :  { %v1187_v57 = vor.u32 %v1186_v34, %v1183_v26  ;;  %v1337_v1 = vor.u32 %v1336_v62, %v1333_v61  ;;  %v5286_v61 = vld [vmem:[#allocation2 + $0x8] sm:$0xff]   ;;  %v5287_v62 = vld [vmem:[#allocation2 + $0x10] sm:$0xff]  }
 0x562   :  { %v1342_v3 = vand.u32 %v1337_v1, %v6096_v50  ;;  %v5291_v1 = vld [vmem:[#allocation2 + $0x30] sm:$0xff]  }
 0x563   :  { %v1051_v12 = vpop.xlane.xlu0 %1050 }
 0x564   :  { %5501 = vrcp.f32 %v1051_v12 }
 0x567   :  { %v6115_v13 = vpop.permute.xlu0 %936 }
 0x568   :  { %v940_v17 = vpack.c.bf16 %v6115_v13, %v6115_v13 }
 0x56a   :  { %v1115_v23 = vand.u32 %v6096_v50, %v940_v17 }
 0x56e   :  { %v5502_v14 = vpop.eup %5501 }
 0x56f   :  { %v1057_v19 = vmul.f32 %v5502_v14, %v5498_v5 }
 0x571   :  { %v1059_v22 = vpack.c.bf16 %v1057_v19, %v1057_v19 }
 0x573   :  { %5056 = vmatmul.mubr.msk.bf16.vlgmr.msra.gmra.mrb[16].mxu1 %vm1061_vm7, %v1059_v22 }
 0x574   :  { %5060 = vmatpush3.bf16.msra.mxu1 %v1115_v23  ;;  %5061 = vmatprep.mubr.msk.bf16.mxu1 %vm5638_vm3, %v5636_v28 }
 0x575   :  { %5065 = vmatprep.subr.bf16.mxu1 %v5636_v28 }
 0x5d6   :  { %v1054_v27 = vpop.xlane.xlu1 %1053 }
 0x5d7   :  { %5503 = vrcp.f32 %v1054_v27 }
 0x5da   :  { %v1170_v32 = vpop.permute.xlu1 %1169 }
 0x5db   :  { %v1173_v37 = vpack.c.bf16 %v1170_v32, %v6083_v42  ;;  %v1200_v42 = vsel %vm941_vm4, %v1195_v46, 0 }
 0x5dd   :  { %v1251_v43 = vshrl.u32 %v1173_v37, 16  ;;  %v1254_v45 = vshll.u32 %v1173_v37, 16 }
 0x5de   :  { %v1164_v51 = vpop.permute.xlu1 %1163 }
 0x5df   :  { %v1253_v52 = vrot.slane %v1251_v43, 2  ;;  %v1256_v53 = vrot.slane %v1254_v45, 3  ;;  %v1167_v54 = vpack.c.bf16 %v1164_v51, %v6094_v49 }
 0x5e1   :  { %v5504_v40 = vpop.eup %5503  ;;  %v1257_v44 = vor.u32 %v1256_v53, %v1253_v52  ;;  %v1243_v58 = vshrl.u32 %v1167_v54, 16  ;;  %v1246_v59 = vshll.u32 %v1167_v54, 16 }
 0x5e2   :  { %v1058_v41 = vmul.f32 %v5504_v40, %v5500_v10 }
 0x5e3   :  { %v1262_v63 = vsel %vm941_vm4, %v1257_v44, 0  ;;  %v1245_v0 = vrot.slane %v1243_v58, 2  ;;  %v1248_v49 = vrot.slane %v1246_v59, 3  ;;  %v5285_v59 = vld [vmem:[#allocation2] sm:$0xff]  }
 0x5e4   :  { %v1060_v31 = vpack.c.bf16 %v1058_v41, %v1058_v41  ;;  %5090 = vmatpush3.bf16.msra.mxu0 %v5285_v59  ;;  %v5314_v59 = vld [vmem:[%s7169_s13 + $0x68] ss:$16 sps:$4 sm:$0xff]  }
 0x5e5   :  { %v1249_v2 = vor.u32 %v1248_v49, %v1245_v0  ;;  %5091 = vmatprep.subr.bf16.mxu0 %v5636_v28  ;;  %v5289_v0 = vld [vmem:[#allocation2 + $0x20] sm:$0xff]   ;;  %v5290_v49 = vld [vmem:[#allocation2 + $0x28] sm:$0xff]  }
 0x5e6   :  { %5062 = vmatmul.mubr.msk.bf16.vlgmr.msra.gmra.mrb[20].mxu1 %vm1061_vm7, %v1060_v31 }
 0x5e7   :  { %5066 = vmatpush3.bf16.xpose.msra.mxu1 %v1200_v42  ;;  %5067 = vmatprep.mubr.msk.bf16.mxu1 %vm5638_vm3, %v5636_v28 }
 0x5e8   :  { %5071 = vmatprep.subr.bf16.mxu1 %v5636_v28  ;;  %5092 = vmatpush3.bf16.msra.mxu0 %v5286_v61  ;;  %v5319_v61 = vld [vmem:[%s7169_s13 + $0x84] ss:$16 sps:$4 sm:$0xff]  }
 0x5e9   :  { %5093 = vmatprep.subr.bf16.mxu0 %v5636_v28 }
 0x5ec   :  { %5094 = vmatpush3.bf16.msra.mxu0 %v5287_v62  ;;  %v5322_v62 = vld [vmem:[%s7169_s13 + $0x8c] ss:$16 sps:$4 sm:$0xff]  }
 0x5ed   :  { %5095 = vmatprep.subr.bf16.mxu0 %v5636_v28 }
 0x5ee   :  { %5068 = vmatmul.mubr.msk.bf16.vlgmr.msra.gmra.mrb[24].mxu1 %vm941_vm4, %v1187_v57 }
 0x5ef   :  { %5072 = vmatpush3.bf16.xpose.msra.mxu1 %v1262_v63  ;;  %5073 = vmatprep.mubr.msk.bf16.mxu1 %vm5638_vm3, %v5636_v28  ;;  %v5288_v63 = vld [vmem:[#allocation2 + $0x18] sm:$0xff]  }
 0x5f0   :  { %5077 = vmatprep.subr.bf16.mxu1 %v5636_v28  ;;  %5096 = vmatpush3.bf16.msra.mxu0 %v5288_v63  ;;  %v5317_v63 = vld [vmem:[%s7169_s13 + $0x80] ss:$16 sps:$4 sm:$0xff]  }
 0x5f1   :  { %5097 = vmatprep.subr.bf16.mxu0 %v5636_v28 }
 0x5f4   :  { %5098 = vmatpush3.bf16.msra.mxu0 %v5289_v0  ;;  %v5320_v0 = vld [vmem:[%s7169_s13 + $0x88] ss:$16 sps:$4 sm:$0xff]  }
 0x5f5   :  { %5099 = vmatprep.subr.bf16.mxu0 %v5636_v28 }
 0x5f6   :  { %5074 = vmatmul.mubr.msk.bf16.vlgmr.msra.gmra.mrb[28].mxu1 %vm941_vm4, %v1249_v2  ;;  %v5292_v2 = vld [vmem:[#allocation2 + $0x38] sm:$0xff]  }
 0x5f7   :  { %5078 = vmatpush3.bf16.msra.mxu1 %v1342_v3  ;;  %5079 = vmatprep.mubr.msk.bf16.mxu1 %vm5638_vm3, %v5636_v28 }
 0x5f8   :  { %5083 = vmatprep.subr.bf16.mxu1 %v5636_v28  ;;  %5100 = vmatpush3.bf16.msra.mxu0 %v5290_v49  ;;  %v5325_v49 = vld [vmem:[%s7169_s13 + $0xa4] ss:$16 sps:$4 sm:$0xff]  }
 0x5f9   :  { %5101 = vmatprep.subr.bf16.mxu0 %v5636_v28 }
 0x5fc   :  { %5102 = vmatpush3.bf16.msra.mxu0 %v5291_v1  ;;  %v5328_v1 = vld [vmem:[%s7169_s13 + $0xac] ss:$16 sps:$4 sm:$0xff]  }
 0x5fd   :  { %5103 = vmatprep.subr.bf16.mxu0 %v5636_v28 }
 0x600   :  { %5104 = vmatpush3.bf16.msra.mxu0 %v5292_v2  ;;  %v5323_v2 = vld [vmem:[%s7169_s13 + $0xa0] ss:$16 sps:$4 sm:$0xff]  }
 0x646   :  { %v6147_v4 = vpop.f32.mrb[16].mxu1 }
 0x647   :  { %v5057_v5 = vpop.f32.mrb[17].mxu1 }
 0x648   :  { %v1108_v6 = vpop.f32.mrb[18].mxu1 }
 0x649   :  { %v5058_v7 = vpop.f32.mrb[19].mxu1 }
 0x6b9   :  { %v1151_v8 = vpop.f32.mrb[20].mxu1 }
 0x6ba   :  { %v5063_v9 = vpop.f32.mrb[21].mxu1 }
 0x6bb   :  { %v1154_v10 = vpop.f32.mrb[22].mxu1 }
 0x6bc   :  { %v5064_v11 = vpop.f32.mrb[23].mxu1 }
 0x6c1   :  { %v1236_v12 = vpop.f32.mrb[24].mxu1 }
 0x6c2   :  { %v1304_v14 = vmul.f32 0.125, %v1236_v12  ;;  %v5069_v17 = vpop.f32.mrb[25].mxu1 }
 0x6c3   :  { %v1239_v19 = vpop.f32.mrb[26].mxu1 }
 0x6c4   :  { %v5070_v22 = vpop.f32.mrb[27].mxu1  ;;  %v1306_v23 = vsel %vm1036_vm6, %v1304_v14, -inf }
 0x6c5   :  { %1307 = vmax.xlane.f32.xlu1 %v1306_v23 }
 0x6c9   :  { %v1298_v24 = vpop.f32.mrb[28].mxu1 }
 0x6ca   :  { %v1305_v27 = vmul.f32 0.125, %v1298_v24  ;;  %v5075_v29 = vpop.f32.mrb[29].mxu1 }
 0x6cb   :  { %v1301_v30 = vpop.f32.mrb[30].mxu1 }
 0x6cc   :  { %v5076_v32 = vpop.f32.mrb[31].mxu1  ;;  %v1309_v33 = vsel %vm1036_vm6, %v1305_v27, -inf }
 0x6cd   :  { %1310 = vmax.xlane.f32.xlu0 %v1309_v33 }
 0x6d6   :  { %1175 = vrot.lane.b32.xlu1 %v6066_v35, %s5634_s3 }
 0x6da   :  { %1158 = vrot.lane.b32.xlu1 %v1151_v8, %s5634_s3 }
 0x752   :  { %v1308_v36 = vpop.xlane.xlu1 %1307 }
 0x753   :  { %v1312_v37 = vsub.f32 %v1304_v14, %v1308_v36 }
 0x755   :  { %v1314_v38 = vmul.f32 1.442695, %v1312_v37 }
 0x756   :  { %v1176_v31 = vpop.permute.xlu1 %1175 }
 0x757   :  { %5505 = vpow2.f32 %v1314_v38  ;;  %v1179_v35 = vpack.c.bf16 %v1176_v31, %v6115_v13 }
 0x759   :  { %v1385_v51 = vshrl.u32 %v1179_v35, 16  ;;  %v1388_v52 = vshll.u32 %v1179_v35, 16 }
 0x75a   :  { %v1311_v40 = vpop.xlane.xlu0 %1310  ;;  %v1159_v12 = vpop.permute.xlu1 %1158 }
 0x75b   :  { %v1313_v41 = vsub.f32 %v1305_v27, %v1311_v40  ;;  %v1387_v53 = vrot.slane %v1385_v51, 2  ;;  %v1390_v42 = vrot.slane %v1388_v52, 3  ;;  %v1161_v22 = vsel %vm941_vm4, %v6147_v4, %v1159_v12  ;;  %v4471_v27 = vld [vmem:[%s7166_s10] ss:$0 sm:$0xff]  ;;  %v5338_v12 = vld [vmem:[%s7169_s13 + $0xe8] ss:$16 sps:$4 sm:$0xff]  }
 0x75d   :  { %v1316_v43 = vmul.f32 1.442695, %v1313_v41  ;;  %v1391_v54 = vor.u32 %v1390_v42, %v1387_v53  ;;  %v5293_v41 = vld [vmem:[%s7169_s13] ss:$16 sps:$4 sm:$0xff]  }
 0x75f   :  { %5507 = vpow2.f32 %v1316_v43  ;;  %v1396_v44 = vand.u32 %v1391_v54, %v6096_v50  ;;  %v5296_v43 = vld [vmem:[%s7169_s13 + $0x8] ss:$16 sps:$4 sm:$0xff]   ;;  %v5307_v54 = vld [vmem:[%s7169_s13 + $0x44] ss:$16 sps:$4 sm:$0xff]  }
 0x761   :  { %v5506_v45 = vpop.eup %5505 }
 0x762   :  { %v1318_v46 = vsel %vm1036_vm6, %v5506_v45, 0.0 }
 0x763   :  { %1319 = vadd.xlane.f32.xlu0 %v1318_v46  ;;  %v5304_v46 = vld [vmem:[%s7169_s13 + $0x2c] ss:$16 sps:$4 sm:$0xff]  }
 0x769   :  { %v5508_v47 = vpop.eup %5507 }
 0x76a   :  { %v1321_v48 = vsel %vm1036_vm6, %v5508_v47, 0.0 }
 0x76b   :  { %1322 = vadd.xlane.f32.xlu0 %v1321_v48  ;;  %v5302_v48 = vld [vmem:[%s7169_s13 + $0x28] ss:$16 sps:$4 sm:$0xff]  }
 0x7f0   :  { %v1320_v39 = vpop.xlane.xlu0 %1319 }
 0x7f1   :  { %5509 = vrcp.f32 %v1320_v39 }
 0x7f8   :  { %v1323_v26 = vpop.xlane.xlu0 %1322 }
 0x7f9   :  { %5511 = vrcp.f32 %v1323_v26 }
 0x7fb   :  { %v5510_v34 = vpop.eup %5509 }
 0x7fc   :  { %v1326_v55 = vmul.f32 %v5510_v34, %v5506_v45  ;;  %v5301_v45 = vld [vmem:[%s7169_s13 + $0x24] ss:$16 sps:$4 sm:$0xff]  }
 0x7fe   :  { %v1328_v56 = vpack.c.bf16 %v1326_v55, %v1326_v55  ;;  %v5310_v55 = vld [vmem:[%s7169_s13 + $0x4c] ss:$16 sps:$4 sm:$0xff]  }
 0x800   :  { %5080 = vmatmul.mubr.msk.bf16.vlgmr.msra.gmra.mrb[32].mxu1 %vm1061_vm7, %v1328_v56  ;;  %v5305_v56 = vld [vmem:[%s7169_s13 + $0x40] ss:$16 sps:$4 sm:$0xff]  }
 0x801   :  { %5084 = vmatpush3.bf16.msra.mxu1 %v1396_v44  ;;  %5085 = vmatprep.mubr.msk.bf16.mxu1 %vm5638_vm3, %v5636_v28  ;;  %v5308_v44 = vld [vmem:[%s7169_s13 + $0x48] ss:$16 sps:$4 sm:$0xff]  }
 0x803   :  { %v5512_v13 = vpop.eup %5511 }
 0x804   :  { %v1327_v57 = vmul.f32 %v5512_v13, %v5508_v47  ;;  %v5299_v47 = vld [vmem:[%s7169_s13 + $0x20] ss:$16 sps:$4 sm:$0xff]   ;;  %v5313_v13 = vld [vmem:[%s7169_s13 + $0x64] ss:$16 sps:$4 sm:$0xff]  }
 0x806   :  { %v1329_v58 = vpack.c.bf16 %v1327_v57, %v1327_v57  ;;  %v5316_v57 = vld [vmem:[%s7169_s13 + $0x6c] ss:$16 sps:$4 sm:$0xff]  }
 0x808   :  { %5086 = vmatmul.mubr.msk.bf16.vlgmr.msra.gmra.mrb[36].mxu1 %vm1061_vm7, %v1329_v58  ;;  %v5311_v58 = vld [vmem:[%s7169_s13 + $0x60] ss:$16 sps:$4 sm:$0xff]  }
 0x809   :  { %1851 = vmatprep.mubr.bf16.mxu1 %v5637_v60 }
 0x8d3   :  { %v1378_v3 = vpop.f32.mrb[32].mxu1 }
 0x8d4   :  { %v5081_v5 = vpop.f32.mrb[33].mxu1 }
 0x8d5   :  { %v1381_v6 = vpop.f32.mrb[34].mxu1  ;;  %v5331_v5 = vld [vmem:[%s7169_s13 + $0xc4] ss:$16 sps:$4 sm:$0xff]  }
 0x8d6   :  { %v5082_v7 = vpop.f32.mrb[35].mxu1  ;;  %v5334_v6 = vld [vmem:[%s7169_s13 + $0xcc] ss:$16 sps:$4 sm:$0xff]  }
 0x8d7   :  { %v5329_v7 = vld [vmem:[%s7169_s13 + $0xc0] ss:$16 sps:$4 sm:$0xff]  }
 0x8db   :  { %v1432_v8 = vpop.f32.mrb[36].mxu1 }
 0x8dc   :  { %1439 = vrot.lane.b32.xlu0 %v1432_v8, %s5634_s3  ;;  %v5087_v9 = vpop.f32.mrb[37].mxu1  ;;  %v5332_v8 = vld [vmem:[%s7169_s13 + $0xc8] ss:$16 sps:$4 sm:$0xff]  }
 0x8dd   :  { %v1435_v10 = vpop.f32.mrb[38].mxu1  ;;  %v5337_v9 = vld [vmem:[%s7169_s13 + $0xe4] ss:$16 sps:$4 sm:$0xff]  }
 0x8de   :  { %v5088_v11 = vpop.f32.mrb[39].mxu1  ;;  %v5340_v10 = vld [vmem:[%s7169_s13 + $0xec] ss:$16 sps:$4 sm:$0xff]  }
 0x8df   :  { %v5335_v11 = vld [vmem:[%s7169_s13 + $0xe0] ss:$16 sps:$4 sm:$0xff]  }
 0x94e   :  { %v1440_v14 = vpop.permute.xlu0 %1439 }
 0x94f   :  { %v1442_v17 = vsel %vm941_vm4, %v1378_v3, %v1440_v14  ;;  %v5326_v3 = vld [vmem:[%s7169_s13 + $0xa8] ss:$16 sps:$4 sm:$0xff]  }
 0x950   :  { %v1444_v19 = vrot.slane %v1442_v17, 3 }
 0x952   :  { %v1446_v23 = vsel %vm615_vm2, %v1161_v22, %v1444_v19 }
 0x953   :  { %v1464_v24 = vpack.c.bf16 %v1444_v19, %v1446_v23 }
 0x955   :  { %5106 = vmatmul.mubr.bf16.vlgmr.msra.gmra.mrb[12].mxu0 %v1464_v24 }
 0x956   :  { %1894 = vmatprep.mubr.bf16.mxu0 %v5637_v60 }
 0xa28   :  { %v1553_v29 = vpop.f32.mrb[12].mxu0 }
 0xa29   :  { %v1554_v30 = vadd.f32 %v4471_v27, %v1553_v29  ;;  %v5107_v32 = vpop.f32.mrb[13].mxu0 }
 0xa2a   :  { %v1556_v33 = vpop.f32.mrb[14].mxu0 }
 0xa2b   :  { %v6180_v36 = vadd.f32 %v1554_v30, %v5932_v25  ;;  %v1557_v37 = vadd.f32 %v4471_v27, %v1556_v33  ;;  %v5108_v38 = vpop.f32.mrb[15].mxu0  ;;  %v5295_v25 = vld [vmem:[%s7169_s13 + $0x4] ss:$16 sps:$4 sm:$0xff]   ;;  %v4480_v30 = vld [vmem:[%s7167_s11] ss:$0 sm:$0xff] }
 0xa2c   :  { %1819 = vmatprep.subr.bf16.mxu1 %v5295_v25  ;;  %v4481_v38 = vld [vmem:[%s7168_s12] ss:$0 sm:$0xff] }
 0xa2d   :  { %v6183_v4 = vadd.f32 %v1557_v37, %v5926_v21  ;;  %1564 = vadd.xlane.f32.xlu0 %v6180_v36  ;;  %v5298_v21 = vld [vmem:[%s7169_s13 + $0xc] ss:$16 sps:$4 sm:$0xff]   ;;  %1820 = vmatpush1.bf16.msra.mxu1 %v5293_v41 }
 0xa2e   :  { %1862 = vmatprep.subr.bf16.mxu0 %v5298_v21  ;;  %1821 = vmatprep.subr.bf16.mxu1 %v5301_v45  ;;  %v5341_v21 = vld [vmem:[%s7171_s15 + $0x40] sm:$0xff]  }
 0xa2f   :  { %v1566_v40 = vsel %vm621_vm1, %v6183_v4, 0.0  ;;  %1863 = vmatpush1.bf16.msra.mxu0 %v5296_v43  ;;  %v5342_v45 = vld [vmem:[%s7171_s15 + $0xc0] sm:$0xff]  }
 0xa30   :  { %1567 = vadd.xlane.f32.xlu1 %v1566_v40  ;;  %1864 = vmatprep.subr.bf16.mxu0 %v5304_v46  ;;  %v5343_v46 = vld [vmem:[%s7171_s15] sm:$0xff]  }
 0xa31   :  { %1822 = vmatpush1.bf16.msra.mxu1 %v5299_v47  ;;  %v5344_v47 = vld [vmem:[%s7171_s15 + $0x80] sm:$0xff]  }
 0xa32   :  { %1823 = vmatprep.subr.bf16.mxu1 %v5307_v54  ;;  %v5355_v54 = vld [vmem:[%s7171_s15 + $0x18] sm:$0xff]  }
 0xa33   :  { %1865 = vmatpush1.bf16.msra.mxu0 %v5302_v48  ;;  %v5345_v48 = vld [vmem:[%s7171_s15 + $0x48] sm:$0xff]  }
 0xa34   :  { %1866 = vmatprep.subr.bf16.mxu0 %v5310_v55  ;;  %v5356_v55 = vld [vmem:[%s7171_s15 + $0x98] sm:$0xff]  }
 0xa35   :  { %1824 = vmatpush1.bf16.msra.mxu1 %v5305_v56  ;;  %v5357_v56 = vld [vmem:[%s7171_s15 + $0x60] sm:$0xff]  }
 0xa36   :  { %1825 = vmatprep.subr.bf16.mxu1 %v5313_v13  ;;  %v5359_v13 = vld [vmem:[%s7171_s15 + $0x20] sm:$0xff]  }
 0xa37   :  { %1867 = vmatpush1.bf16.msra.mxu0 %v5308_v44  ;;  %v5358_v44 = vld [vmem:[%s7171_s15 + $0xe0] sm:$0xff]  }
 0xa38   :  { %1868 = vmatprep.subr.bf16.mxu0 %v5316_v57  ;;  %v5360_v57 = vld [vmem:[%s7171_s15 + $0xa0] sm:$0xff]  }
 0xa39   :  { %1826 = vmatpush1.bf16.msra.mxu1 %v5311_v58  ;;  %v5361_v58 = vld [vmem:[%s7171_s15 + $0x68] sm:$0xff]  }
 0xa3a   :  { %1827 = vmatprep.subr.bf16.mxu1 %v5319_v61  ;;  %v5363_v61 = vld [vmem:[%s7171_s15 + $0x28] sm:$0xff]  }
 0xa3b   :  { %1869 = vmatpush1.bf16.msra.mxu0 %v5314_v59  ;;  %v5362_v59 = vld [vmem:[%s7171_s15 + $0xe8] sm:$0xff]  }
 0xa3c   :  { %1870 = vmatprep.subr.bf16.mxu0 %v5322_v62  ;;  %v5364_v62 = vld [vmem:[%s7171_s15 + $0xa8] sm:$0xff]  }
 0xa3d   :  { %1828 = vmatpush1.bf16.msra.mxu1 %v5317_v63  ;;  %v5365_v63 = vld [vmem:[%s7171_s15 + $0x70] sm:$0xff]  }
 0xa3e   :  { %1829 = vmatprep.subr.bf16.mxu1 %v5325_v49  ;;  %v5367_v49 = vld [vmem:[%s7171_s15 + $0x30] sm:$0xff]  }
 0xa3f   :  { %1871 = vmatpush1.bf16.msra.mxu0 %v5320_v0  ;;  %v5366_v0 = vld [vmem:[%s7171_s15 + $0xf0] sm:$0xff]  }
 0xa40   :  { %1872 = vmatprep.subr.bf16.mxu0 %v5328_v1  ;;  %v5368_v1 = vld [vmem:[%s7171_s15 + $0xb0] sm:$0xff]  }
 0xa41   :  { %1830 = vmatpush1.bf16.msra.mxu1 %v5323_v2  ;;  %v5369_v2 = vld [vmem:[%s7171_s15 + $0x78] sm:$0xff]  }
 0xa42   :  { %1831 = vmatprep.subr.bf16.mxu1 %v5331_v5  ;;  %v5371_v5 = vld [vmem:[%s7171_s15 + $0x38] sm:$0xff]  }
 0xa43   :  { %1873 = vmatpush1.bf16.msra.mxu0 %v5326_v3  ;;  %v5370_v3 = vld [vmem:[%s7171_s15 + $0xf8] sm:$0xff]  }
 0xa44   :  { %1874 = vmatprep.subr.bf16.mxu0 %v5334_v6  ;;  %v5372_v6 = vld [vmem:[%s7171_s15 + $0xb8] sm:$0xff]  }
 0xa45   :  { %1832 = vmatpush1.bf16.msra.mxu1 %v5329_v7  ;;  %v1636_v7 = vld [vmem:[%s7170_s14] sm:$0xf] }
 0xa46   :  { %1833 = vmatprep.subr.bf16.mxu1 %v5337_v9  ;;  %v1642_v9 = vrot.slane %v1636_v7, %v6046_v16 }
 0xa47   :  { %1875 = vmatpush1.bf16.msra.mxu0 %v5332_v8  ;;  %v1653_v8 = vsub.s32 3, %v6043_v15 }
 0xa48   :  { %1876 = vmatprep.subr.bf16.mxu0 %v5340_v10  ;;  %v1650_v10 = vrot.slane %v1636_v7, %v6056_v20 }
 0xa49   :  { %1834 = vmatpush1.bf16.msra.mxu1 %v5335_v11  ;;  %v1646_v11 = vrot.slane %v1636_v7, %v6052_v18 }
 0xa4a   :  { %4899 = vmatprep.subr.bf16.mxu1 %v5341_v21 }
 0xa4b   :  { %1877 = vmatpush1.bf16.msra.mxu0 %v5338_v12  ;;  %v1654_v12 = vrot.slane %v1636_v7, %v1653_v8 }
 0xa4c   :  { %4921 = vmatprep.subr.bf16.mxu0 %v5342_v45 }
 0xaba   :  { %v1565_v31 = vpop.xlane.xlu0 %1564 }
 0xabb   :  { %v1569_v35 = vmul.f32 0.0078125, %v1565_v31  ;;  %v5346_v31 = vld [vmem:[%s7171_s15 + $0xc8] sm:$0xff]  }
 0xabd   :  { %v6213_v39 = vsub.f32 %v6180_v36, %v1569_v35  ;;  %v1568_v51 = vpop.xlane.xlu1 %1567  ;;  %v5347_v35 = vld [vmem:[%s7171_s15 + $0x8] sm:$0xff]  }
 0xabe   :  { %v1570_v52 = vmul.f32 0.0078125, %v1568_v51  ;;  %v5349_v51 = vld [vmem:[%s7171_s15 + $0x50] sm:$0xff]  }
 0xabf   :  { %v1573_v53 = vmul.f32 %v6213_v39, %v6213_v39 }
 0xac0   :  { %v6218_v42 = vsub.f32 %v6183_v4, %v1570_v52  ;;  %v5350_v52 = vld [vmem:[%s7171_s15 + $0xd0] sm:$0xff]  }
 0xac1   :  { %1575 = vadd.xlane.f32.xlu0 %v1573_v53  ;;  %v5351_v53 = vld [vmem:[%s7171_s15 + $0x10] sm:$0xff]  }
 0xac2   :  { %v1574_v26 = vmul.f32 %v6218_v42, %v6218_v42 }
 0xac4   :  { %v1577_v34 = vsel %vm621_vm1, %v1574_v26, 0.0  ;;  %v5353_v26 = vld [vmem:[%s7171_s15 + $0x58] sm:$0xff]  }
 0xac5   :  { %1578 = vadd.xlane.f32.xlu1 %v1577_v34  ;;  %v5354_v34 = vld [vmem:[%s7171_s15 + $0xd8] sm:$0xff]  }
 0xb4e   :  { %v1576_v14 = vpop.xlane.xlu0 %1575 }
 0xb4f   :  { %v1580_v17 = vmul.f32 0.0078125, %v1576_v14 }
 0xb51   :  { %v1582_v19 = vadd.f32 1e-06, %v1580_v17 }
 0xb52   :  { %v1579_v22 = vpop.xlane.xlu1 %1578 }
 0xb53   :  { %5513 = vrsqrt.f32 %v1582_v19  ;;  %v1581_v23 = vmul.f32 0.0078125, %v1579_v22 }
 0xb55   :  { %v1583_v24 = vadd.f32 1e-06, %v1581_v23 }
 0xb57   :  { %5515 = vrsqrt.f32 %v1583_v24 }
 0xb5d   :  { %v5514_v27 = vpop.eup %5513 }
 0xb5e   :  { %v1586_v29 = vmul.f32 %v5514_v27, %v6213_v39  ;;  %v5348_v39 = vld [vmem:[%s7171_s15 + $0x88] sm:$0xff]  }
 0xb60   :  { %v1594_v37 = vmul.f32 %v4480_v30, %v1586_v29 }
 0xb61   :  { %v5516_v32 = vpop.eup %5515 }
 0xb62   :  { %v1587_v33 = vmul.f32 %v5516_v32, %v6218_v42  ;;  %v1602_v41 = vadd.f32 %v4481_v38, %v1594_v37  ;;  %v5352_v42 = vld [vmem:[%s7171_s15 + $0x90] sm:$0xff]  }
 0xb64   :  { %v1595_v40 = vmul.f32 %v4480_v30, %v1587_v33 }
 0xb66   :  { %v1603_v25 = vadd.f32 %v4481_v38, %v1595_v40 }
 0xb68   :  { %v1637_v43 = vpack.c.bf16 %v1603_v25, %v1602_v41 }
 0xb6a   :  { %1852 = vmatmul.mubr.bf16.vlgmr.msra.gmra.mrb[40].mxu1 %v1637_v43  ;;  %1895 = vmatmul.mubr.bf16.vlgmr.msra.gmra.mrb[16].mxu0 %v1637_v43 }
 0xb6b   :  { %4900 = vmatpush3.bf16.msra.mxu1 %v5343_v46  ;;  %4922 = vmatpush3.bf16.msra.mxu0 %v5344_v47 }
 0xb6c   :  { %4901 = vmatprep.subr.bf16.mxu1 %v5345_v48  ;;  %4923 = vmatprep.subr.bf16.mxu0 %v5346_v31 }
 0xb6f   :  { %4902 = vmatpush3.bf16.msra.mxu1 %v5347_v35  ;;  %4924 = vmatpush3.bf16.msra.mxu0 %v5348_v39 }
 0xb70   :  { %4903 = vmatprep.subr.bf16.mxu1 %v5349_v51  ;;  %4925 = vmatprep.subr.bf16.mxu0 %v5350_v52 }
 0xb73   :  { %4904 = vmatpush3.bf16.msra.mxu1 %v5351_v53  ;;  %4926 = vmatpush3.bf16.msra.mxu0 %v5352_v42 }
 0xb74   :  { %4905 = vmatprep.subr.bf16.mxu1 %v5353_v26  ;;  %4927 = vmatprep.subr.bf16.mxu0 %v5354_v34 }
 0xb77   :  { %4906 = vmatpush3.bf16.msra.mxu1 %v5355_v54  ;;  %4928 = vmatpush3.bf16.msra.mxu0 %v5356_v55 }
 0xb78   :  { %4907 = vmatprep.subr.bf16.mxu1 %v5357_v56  ;;  %4929 = vmatprep.subr.bf16.mxu0 %v5358_v44 }
 0xb7b   :  { %4908 = vmatpush3.bf16.msra.mxu1 %v5359_v13  ;;  %4930 = vmatpush3.bf16.msra.mxu0 %v5360_v57 }
 0xb7c   :  { %4909 = vmatprep.subr.bf16.mxu1 %v5361_v58  ;;  %4931 = vmatprep.subr.bf16.mxu0 %v5362_v59 }
 0xb7f   :  { %4910 = vmatpush3.bf16.msra.mxu1 %v5363_v61  ;;  %4932 = vmatpush3.bf16.msra.mxu0 %v5364_v62 }
 0xb80   :  { %4911 = vmatprep.subr.bf16.mxu1 %v5365_v63  ;;  %4933 = vmatprep.subr.bf16.mxu0 %v5366_v0 }
 0xb83   :  { %4912 = vmatpush3.bf16.msra.mxu1 %v5367_v49  ;;  %4934 = vmatpush3.bf16.msra.mxu0 %v5368_v1 }
 0xb84   :  { %4913 = vmatprep.subr.bf16.mxu1 %v5369_v2  ;;  %4935 = vmatprep.subr.bf16.mxu0 %v5370_v3 }
 0xb87   :  { %4914 = vmatpush3.bf16.msra.mxu1 %v5371_v5  ;;  %4936 = vmatpush3.bf16.msra.mxu0 %v5372_v6 }
 0xb88   :  { %5109 = vmatprep.subr.bf16.mxu0 %v5636_v28 }
 0xc3d   :  { %v1853_v14 = vpop.f32.mrb[40].mxu1  ;;  %v1896_v17 = vpop.f32.mrb[16].mxu0 }
 0xc3e   :  { %v1854_v19 = vadd.f32 %v1853_v14, %v1642_v9  ;;  %v6409_v22 = vadd.f32 %v1896_v17, %v1650_v10  ;;  %v1855_v23 = vpop.f32.mrb[41].mxu1  ;;  %v1898_v24 = vpop.f32.mrb[17].mxu0 }
 0xc3f   :  { %v6411_v27 = vadd.f32 %v1855_v23, %v1646_v11  ;;  %v6413_v29 = vadd.f32 %v1898_v24, %v1654_v12  ;;  %v1857_v30 = vpop.f32.mrb[42].mxu1  ;;  %v1900_v32 = vpop.f32.mrb[18].mxu0 }
 0xc40   :  { %v6415_v33 = vmul.f32 0.70710677, %v1854_v19  ;;  %v6418_v37 = vmul.f32 0.70710677, %v6409_v22  ;;  %v1859_v21 = vpop.f32.mrb[43].mxu1  ;;  %v1902_v47 = vpop.f32.mrb[19].mxu0  ;;  %v6430_v52 = vadd.f32 %v1857_v30, %v1642_v9  ;;  %v6435_v26 = vadd.f32 %v1900_v32, %v1650_v10 }
 0xc41   :  { %v6421_v38 = vmul.f32 0.70710677, %v6411_v27  ;;  %v6427_v43 = vmul.f32 0.70710677, %v6413_v29  ;;  %v6437_v54 = vadd.f32 %v1859_v21, %v1646_v11  ;;  %v6447_v0 = vadd.f32 %v1902_v47, %v1654_v12 }
 0xc42   :  { %v1937_v40 = vand.u32 2147483647, %v6415_v33  ;;  %v1939_v41 = vand.u32 2147483647, %v6418_v37  ;;  %v6433_v42 = vmul.f32 0.70710677, %v6430_v52 }
 0xc43   :  { %v1938_v25 = vand.u32 2147483647, %v6421_v38  ;;  %v1940_v39 = vand.u32 2147483647, %v6427_v43  ;;  %v6441_v13 = vmul.f32 0.70710677, %v6435_v26 }
 0xc44   :  { %v1945_v45 = vmul.f32 0.3275911, %v1937_v40  ;;  %v1947_v46 = vmul.f32 0.3275911, %v1939_v41  ;;  %v2049_v55 = vmul.f32 %v1937_v40, %v1937_v40  ;;  %v1941_v56 = vand.u32 2147483647, %v6433_v42 }
 0xc45   :  { %v1946_v48 = vmul.f32 0.3275911, %v1938_v25  ;;  %v1948_v53 = vmul.f32 0.3275911, %v1940_v39  ;;  %v2051_v44 = vmul.f32 %v1939_v41, %v1939_v41  ;;  %v2050_v58 = vmul.f32 %v1938_v25, %v1938_v25 }
 0xc46   :  { %v1953_v31 = vadd.f32 1.0, %v1945_v45  ;;  %v1955_v35 = vadd.f32 1.0, %v1947_v46  ;;  %v1949_v57 = vmul.f32 0.3275911, %v1941_v56  ;;  %v1943_v59 = vand.u32 2147483647, %v6441_v13 }
 0xc47   :  { %v1954_v51 = vadd.f32 1.0, %v1946_v48  ;;  %v1956_v34 = vadd.f32 1.0, %v1948_v53  ;;  %v6445_v61 = vmul.f32 0.70710677, %v6437_v54  ;;  %v2057_v62 = vsub.f32 0.0, %v2049_v55 }
 0xc48   :  { %5517 = vrcp.f32 %v1953_v31  ;;  %v1957_v63 = vadd.f32 1.0, %v1949_v57  ;;  %v2059_v49 = vsub.f32 0.0, %v2051_v44  ;;  %v1951_v1 = vmul.f32 0.3275911, %v1943_v59 }
 0xc49   :  { %5519 = vrcp.f32 %v1955_v35  ;;  %v1942_v2 = vand.u32 2147483647, %v6445_v61  ;;  %v6452_v5 = vmul.f32 0.5, %v1854_v19  ;;  %v2052_v6 = vmul.f32 %v1940_v39, %v1940_v39 }
 0xc4a   :  { %5521 = vrcp.f32 %v1954_v51  ;;  %v2058_v10 = vsub.f32 0.0, %v2050_v58  ;;  %v1959_v11 = vadd.f32 1.0, %v1951_v1  ;;  %v2065_v17 = vmul.f32 1.442695, %v2057_v62 }
 0xc4b   :  { %5523 = vrcp.f32 %v1956_v34  ;;  %v1950_v14 = vmul.f32 0.3275911, %v1942_v2  ;;  %v6459_v23 = vmul.f32 0.70710677, %v6447_v0  ;;  %v2069_v30 = vmul.f32 1.442695, %v2059_v49 }
 0xc4c   :  { %5525 = vrcp.f32 %v1957_v63  ;;  %v6464_v40 = vmul.f32 0.5, %v6409_v22  ;;  %v2060_v25 = vsub.f32 0.0, %v2052_v6  ;;  %v2067_v47 = vmul.f32 1.442695, %v2058_v10 }
 0xc4d   :  { %5527 = vrcp.f32 %v1959_v11  ;;  %v1958_v19 = vadd.f32 1.0, %v1950_v14  ;;  %v1944_v21 = vand.u32 2147483647, %v6459_v23  ;;  %v2053_v48 = vmul.f32 %v1941_v56, %v1941_v56 }
 0xc4e   :  { %v2055_v39 = vmul.f32 %v1943_v59, %v1943_v59  ;;  %v2071_v44 = vmul.f32 1.442695, %v2060_v25  ;;  %vm1921_vm8 = vcmp.ge.f32.partialorder %v6415_v33, 0.0  ;;  %vm1923_vm9 = vcmp.ge.f32.partialorder %v6418_v37, 0.0 }
 0xc4f   :  { %5529 = vrcp.f32 %v1958_v19  ;;  %v1952_v51 = vmul.f32 0.3275911, %v1944_v21  ;;  %v2061_v49 = vsub.f32 0.0, %v2053_v48  ;;  %vm1922_vm10 = vcmp.ge.f32.partialorder %v6421_v38, 0.0 }
 0xc50   :  { %5531 = vpow2.f32 %v2065_v17  ;;  %v2063_v1 = vsub.f32 0.0, %v2055_v39  ;;  %v2054_v17 = vmul.f32 %v1942_v2, %v1942_v2  ;;  %vm1925_vm11 = vcmp.ge.f32.partialorder %v6433_v42, 0.0 }
 0xc51   :  { %5533 = vpow2.f32 %v2069_v30  ;;  %v1960_v57 = vadd.f32 1.0, %v1952_v51  ;;  %vm1927_vm12 = vcmp.ge.f32.partialorder %v6441_v13, 0.0  ;;  %vm1924_vm13 = vcmp.ge.f32.partialorder %v6427_v43, 0.0 }
 0xc52   :  { %v6450_v3 = vpop.eup %5517  ;;  %5535 = vpow2.f32 %v2067_v47  ;;  %v2077_v47 = vmul.f32 1.442695, %v2063_v1  ;;  %vm1926_vm14 = vcmp.ge.f32.partialorder %v6445_v61, 0.0  ;;  %vm1928_vm15 = vcmp.ge.f32.partialorder %v6459_v23, 0.0 }
 0xc53   :  { %v6454_v7 = vpop.eup %5519  ;;  %v1977_v9 = vmul.f32 1.0614054, %v6450_v3  ;;  %5537 = vrcp.f32 %v1960_v57  ;;  %v1912_v23 = vmul.f32 0.5, %v6447_v0 }
 0xc54   :  { %v1979_v12 = vmul.f32 1.0614054, %v6454_v7  ;;  %v6461_v32 = vpop.eup %5521  ;;  %5539 = vpow2.f32 %v2071_v44 }
 0xc55   :  { %v1985_v24 = vadd.f32 -1.4531521, %v1977_v9  ;;  %v1978_v46 = vmul.f32 1.0614054, %v6461_v32  ;;  %v6469_v31 = vpop.eup %5523 }
 0xc56   :  { %v1987_v41 = vadd.f32 -1.4531521, %v1979_v12  ;;  %v1980_v34 = vmul.f32 1.0614054, %v6469_v31  ;;  %v6475_v63 = vpop.eup %5525 }
 0xc57   :  { %v1993_v45 = vmul.f32 %v6450_v3, %v1985_v24  ;;  %v1986_v22 = vadd.f32 -1.4531521, %v1978_v46  ;;  %v1981_v11 = vmul.f32 1.0614054, %v6475_v63  ;;  %v6481_v12 = vpop.eup %5527 }
 0xc58   :  { %v1995_v35 = vmul.f32 %v6454_v7, %v1987_v41  ;;  %v1988_v62 = vadd.f32 -1.4531521, %v1980_v34  ;;  %v1983_v46 = vmul.f32 1.0614054, %v6481_v12  ;;  %v2062_v34 = vsub.f32 0.0, %v2054_v17 }
 0xc59   :  { %v2001_v53 = vadd.f32 1.4214138, %v1993_v45  ;;  %v1994_v56 = vmul.f32 %v6461_v32, %v1986_v22  ;;  %v1989_v41 = vadd.f32 -1.4531521, %v1981_v11  ;;  %v2073_v45 = vmul.f32 1.442695, %v2061_v49  ;;  %v6489_v51 = vpop.eup %5529 }
 0xc5a   :  { %v2003_v55 = vadd.f32 1.4214138, %v1995_v35  ;;  %v1996_v10 = vmul.f32 %v6469_v31, %v1988_v62  ;;  %v1991_v22 = vadd.f32 -1.4531521, %v1983_v46  ;;  %v5532_v44 = vpop.eup %5531  ;;  %v1982_v1 = vmul.f32 1.0614054, %v6489_v51 }
 0xc5b   :  { %v2009_v58 = vmul.f32 %v6450_v3, %v2001_v53  ;;  %v2002_v9 = vadd.f32 1.4214138, %v1994_v56  ;;  %v1997_v2 = vmul.f32 %v6475_v63, %v1989_v41  ;;  %5541 = vpow2.f32 %v2073_v45 }
 0xc5c   :  { %v2011_v59 = vmul.f32 %v6454_v7, %v2003_v55  ;;  %v2004_v19 = vadd.f32 1.4214138, %v1996_v10  ;;  %v2056_v55 = vmul.f32 %v1944_v21, %v1944_v21  ;;  %v1999_v49 = vmul.f32 %v6481_v12, %v1991_v22 }
 0xc5d   :  { %v2017_v6 = vadd.f32 -0.28449672, %v2009_v58  ;;  %v2010_v30 = vmul.f32 %v6461_v32, %v2002_v9  ;;  %v2005_v62 = vadd.f32 1.4214138, %v1997_v2  ;;  %5543 = vpow2.f32 %v2077_v47 }
 0xc5e   :  { %v2019_v14 = vadd.f32 -0.28449672, %v2011_v59  ;;  %v2012_v39 = vmul.f32 %v6469_v31, %v2004_v19  ;;  %v5534_v59 = vpop.eup %5533  ;;  %v2064_v45 = vsub.f32 0.0, %v2056_v55 }
 0xc5f   :  { %v2025_v24 = vmul.f32 %v6450_v3, %v2017_v6  ;;  %v2018_v35 = vadd.f32 -0.28449672, %v2010_v30  ;;  %v5536_v6 = vpop.eup %5535  ;;  %v1990_v30 = vadd.f32 -1.4531521, %v1982_v1 }
 0xc60   :  { %v2027_v25 = vmul.f32 %v6454_v7, %v2019_v14  ;;  %v2020_v56 = vadd.f32 -0.28449672, %v2012_v39  ;;  %v6499_v11 = vpop.eup %5537  ;;  %v5640_v14 = vmov -1.0   ;;  %v2079_v37 = vmul.f32 1.442695, %v2064_v45 }
 0xc61   :  { %v2033_v48 = vadd.f32 0.2548296, %v2025_v24  ;;  %v2026_v58 = vmul.f32 %v6461_v32, %v2018_v35  ;;  %v1929_v17 = vsel %vm1921_vm8, 1.0, %v5640_v14  ;;  %v2007_v24 = vadd.f32 1.4214138, %v1999_v49 }
 0xc62   :  { %v2035_v53 = vadd.f32 0.2548296, %v2027_v25  ;;  %v2028_v21 = vmul.f32 %v6469_v31, %v2020_v56  ;;  %v2075_v25 = vmul.f32 1.442695, %v2062_v34  ;;  %v1931_v46 = vsel %vm1923_vm9, 1.0, %v5640_v14 }
 0xc63   :  { %v2041_v57 = vmul.f32 %v6450_v3, %v2033_v48  ;;  %v2034_v10 = vadd.f32 0.2548296, %v2026_v58  ;;  %v2013_v3 = vmul.f32 %v6475_v63, %v2005_v62  ;;  %v2015_v48 = vmul.f32 %v6481_v12, %v2007_v24 }
 0xc64   :  { %v2043_v9 = vmul.f32 %v6454_v7, %v2035_v53  ;;  %v5540_v7 = vpop.eup %5539  ;;  %v1998_v35 = vmul.f32 %v6489_v51, %v1990_v30  ;;  %v1984_v39 = vmul.f32 1.0614054, %v6499_v11  ;;  %v2036_v47 = vadd.f32 0.2548296, %v2028_v21 }
 0xc65   :  { %v2081_v19 = vmul.f32 %v5532_v44, %v2041_v57  ;;  %v2021_v41 = vadd.f32 -0.28449672, %v2013_v3  ;;  %v2042_v2 = vmul.f32 %v6461_v32, %v2034_v10  ;;  %v2023_v22 = vadd.f32 -0.28449672, %v2015_v48  ;;  %v5542_v1 = vpop.eup %5541 }
 0xc66   :  { %v2083_v33 = vmul.f32 %v5534_v59, %v2043_v9  ;;  %v2006_v34 = vadd.f32 1.4214138, %v1998_v35  ;;  %v1992_v55 = vadd.f32 -1.4531521, %v1984_v39  ;;  %5545 = vpow2.f32 %v2075_v25 }
 0xc67   :  { %v2029_v53 = vmul.f32 %v6475_v63, %v2021_v41  ;;  %v2089_v44 = vsub.f32 1.0, %v2081_v19  ;;  %v2031_v58 = vmul.f32 %v6481_v12, %v2023_v22  ;;  %v2082_v32 = vmul.f32 %v5536_v6, %v2042_v2  ;;  %v5544_v19 = vpop.eup %5543 }
 0xc68   :  { %v2014_v56 = vmul.f32 %v6489_v51, %v2006_v34  ;;  %v2000_v62 = vmul.f32 %v6499_v11, %v1992_v55  ;;  %v2091_v59 = vsub.f32 1.0, %v2083_v33  ;;  %v2044_v9 = vmul.f32 %v6469_v31, %v2036_v47 }
 0xc69   :  { %v2037_v57 = vadd.f32 0.2548296, %v2029_v53  ;;  %v2039_v10 = vadd.f32 0.2548296, %v2031_v58  ;;  %v2097_v24 = vmul.f32 %v2089_v44, %v1929_v17  ;;  %v1930_v38 = vsel %vm1922_vm10, 1.0, %v5640_v14 }
 0xc6a   :  { %v2022_v21 = vadd.f32 -0.28449672, %v2014_v56  ;;  %v2008_v3 = vadd.f32 1.4214138, %v2000_v62  ;;  %5547 = vpow2.f32 %v2079_v37  ;;  %v1933_v41 = vsel %vm1925_vm11, 1.0, %v5640_v14 }
 0xc6b   :  { %v2045_v49 = vmul.f32 %v6475_v63, %v2037_v57  ;;  %v2047_v6 = vmul.f32 %v6481_v12, %v2039_v10  ;;  %v2099_v25 = vmul.f32 %v2091_v59, %v1931_v46  ;;  %v2090_v45 = vsub.f32 1.0, %v2082_v32 }
 0xc6c   :  { %v2030_v42 = vmul.f32 %v6489_v51, %v2022_v21  ;;  %v2016_v63 = vmul.f32 %v6499_v11, %v2008_v3  ;;  %v2084_v48 = vmul.f32 %v5540_v7, %v2044_v9  ;;  %v2105_v33 = vadd.f32 1.0, %v2097_v24 }
 0xc6d   :  { %v2085_v30 = vmul.f32 %v5542_v1, %v2045_v49  ;;  %v2087_v17 = vmul.f32 %v5544_v19, %v2047_v6  ;;  %v1909_v2 = vmul.f32 0.5, %v6430_v52  ;;  %v1935_v12 = vsel %vm1927_vm12, 1.0, %v5640_v14 }
 0xc6e   :  { %v2038_v35 = vadd.f32 0.2548296, %v2030_v42  ;;  %v2024_v39 = vadd.f32 -0.28449672, %v2016_v63  ;;  %v2107_v55 = vadd.f32 1.0, %v2099_v25  ;;  %v2098_v13 = vmul.f32 %v2090_v45, %v1930_v38 }
 0xc6f   :  { %v2093_v31 = vsub.f32 1.0, %v2085_v30  ;;  %v2095_v53 = vsub.f32 1.0, %v2087_v17  ;;  %v2092_v44 = vsub.f32 1.0, %v2084_v48  ;;  %v2113_v52 = vmul.f32 %v2105_v33, %v6452_v5 }
 0xc70   :  { %v2046_v22 = vmul.f32 %v6489_v51, %v2038_v35  ;;  %v2032_v46 = vmul.f32 %v6499_v11, %v2024_v39  ;;  %v5546_v34 = vpop.eup %5545  ;;  %v1932_v56 = vsel %vm1924_vm13, 1.0, %v5640_v14  ;;  %v1911_v51 = vmul.f32 0.5, %v6435_v26 }
 0xc71   :  { %v2101_v47 = vmul.f32 %v2093_v31, %v1933_v41  ;;  %v2103_v57 = vmul.f32 %v2095_v53, %v1935_v12  ;;  %v1934_v32 = vsel %vm1926_vm14, 1.0, %v5640_v14  ;;  %v2115_v9 = vmul.f32 %v2107_v55, %v6464_v40 }
 0xc72   :  { %v2086_v37 = vmul.f32 %v5546_v34, %v2046_v22  ;;  %v2040_v58 = vadd.f32 0.2548296, %v2032_v46  ;;  %v2106_v10 = vadd.f32 1.0, %v2098_v13  ;;  %v2100_v5 = vmul.f32 %v2092_v44, %v1932_v56  ;;  %v5375_v56 = vld [vmem:[%s7163_s7 + $0xc4] ss:$12 sps:$4 sm:$0xff]  }
 0xc73   :  { %v2109_v7 = vadd.f32 1.0, %v2101_v47  ;;  %v2111_v59 = vadd.f32 1.0, %v2103_v57  ;;  %v1906_v38 = vmul.f32 0.5, %v6411_v27  ;;  %v1910_v30 = vmul.f32 0.5, %v6437_v54  ;;  %2696 = vmatprep.subr.bf16.mxu1 %v5375_v56 }
 0xc74   :  { %v2094_v49 = vsub.f32 1.0, %v2086_v37  ;;  %v2048_v1 = vmul.f32 %v6499_v11, %v2040_v58  ;;  %v5548_v61 = vpop.eup %5547  ;;  %v1936_v11 = vsel %vm1928_vm15, 1.0, %v5640_v14  ;;  %v2108_v42 = vadd.f32 1.0, %v2100_v5  ;;  %v5380_v5 = vld [vmem:[%s7163_s7 + $0xe0] ss:$12 sps:$4 sm:$0xff]  }
 0xc75   :  { %v2117_v62 = vmul.f32 %v2109_v7, %v1909_v2  ;;  %v2119_v3 = vmul.f32 %v2111_v59, %v1911_v51  ;;  %v2114_v6 = vmul.f32 %v2106_v10, %v1906_v38  ;;  %v1908_v25 = vmul.f32 0.5, %v6413_v29  ;;  %v4514_v29 = vld [vmem:[%s7172_s16] ss:$0 sm:$0xff]  ;;  %v5387_v38 = vld [vmem:[%s7163_s7 + $0x10c] ss:$12 sps:$4 sm:$0xff]  }
 0xc76   :  { %v2102_v43 = vmul.f32 %v2094_v49, %v1934_v32  ;;  %v2088_v24 = vmul.f32 %v5548_v61, %v2048_v1 }
 0xc77   :  { %v2186_v21 = vpack.c.bf16 %v2117_v62, %v2113_v52  ;;  %v2188_v26 = vpack.c.bf16 %v2119_v3, %v2115_v9  ;;  %v2116_v48 = vmul.f32 %v2108_v42, %v1908_v25  ;;  %v5373_v52 = vld [vmem:[%s7163_s7 + $0xc0] ss:$12 sps:$4 sm:$0xff]   ;;  %v5377_v62 = vld [vmem:[%s7163_s7 + $0xd8] ss:$12 sps:$4 sm:$0xff]  }
 0xc78   :  { %v2110_v19 = vadd.f32 1.0, %v2102_v43  ;;  %v2096_v41 = vsub.f32 1.0, %v2088_v24  ;;  %v5383_v3 = vld [vmem:[%s7163_s7 + $0xf4] ss:$12 sps:$4 sm:$0xff]   ;;  %v5381_v43 = vld [vmem:[%s7163_s7 + $0xf0] ss:$12 sps:$4 sm:$0xff]  }
 0xc79   :  { %v5384_v24 = vld [vmem:[%s7163_s7 + $0xf8] ss:$12 sps:$4 sm:$0xff]   ;;  %v5399_v25 = vld [vmem:[%s7163_s7 + $0x154] ss:$12 sps:$4 sm:$0xff]  }
 0xc7a   :  { %v2118_v40 = vmul.f32 %v2110_v19, %v1910_v30  ;;  %v2104_v63 = vmul.f32 %v2096_v41, %v1936_v11  ;;  %v5388_v30 = vld [vmem:[%s7163_s7 + $0x110] ss:$12 sps:$4 sm:$0xff]   ;;  %v5389_v41 = vld [vmem:[%s7163_s7 + $0x120] ss:$12 sps:$4 sm:$0xff]   ;;  %v5392_v11 = vld [vmem:[%s7163_s7 + $0x128] ss:$12 sps:$4 sm:$0xff]  }
 0xc7b   :  { %v5391_v19 = vld [vmem:[%s7163_s7 + $0x124] ss:$12 sps:$4 sm:$0xff]  }
 0xc7c   :  { %v2112_v45 = vadd.f32 1.0, %v2104_v63  ;;  %v2187_v31 = vpack.c.bf16 %v2118_v40, %v2114_v6  ;;  %v5395_v6 = vld [vmem:[%s7163_s7 + $0x13c] ss:$12 sps:$4 sm:$0xff]   ;;  %v5393_v42 = vld [vmem:[%s7163_s7 + $0x138] ss:$12 sps:$4 sm:$0xff]  }
 0xc7d   :  { %v5396_v40 = vld [vmem:[%s7163_s7 + $0x140] ss:$12 sps:$4 sm:$0xff]   ;;  %v5397_v63 = vld [vmem:[%s7163_s7 + $0x150] ss:$12 sps:$4 sm:$0xff]  }
 0xc7e   :  { %v2120_v17 = vmul.f32 %v2112_v45, %v1912_v23  ;;  %2420 = vmatprep.mubr.bf16.mxu1 %v2187_v31  ;;  %v5400_v23 = vld [vmem:[%s7163_s7 + $0x158] ss:$12 sps:$4 sm:$0xff]   ;;  %v5401_v31 = vld [vmem:[%s7163_s7 + $0x168] ss:$12 sps:$4 sm:$0xff]  }
 0xc7f   :  { %2421 = vmatmul.mubr.bf16.vlgmr.msra.gmra.mrb[44].mxu1 %v2186_v21  ;;  %v5403_v45 = vld [vmem:[%s7163_s7 + $0x16c] ss:$12 sps:$4 sm:$0xff]  }
 0xc80   :  { %v2189_v27 = vpack.c.bf16 %v2120_v17, %v2116_v48  ;;  %2728 = vmatprep.mubr.bf16.mxu1 %v5637_v60  ;;  %2697 = vmatpush1.bf16.msra.mxu1 %v5373_v52  ;;  %v5404_v48 = vld [vmem:[%s7163_s7 + $0x170] ss:$12 sps:$4 sm:$0xff]  }
 0xc82   :  { %2461 = vmatprep.mubr.bf16.mxu0 %v2189_v27 }
 0xc83   :  { %2462 = vmatmul.mubr.bf16.vlgmr.msra.gmra.mrb[20].mxu0 %v2188_v26  ;;  %v5385_v26 = vld [vmem:[%s7163_s7 + $0x108] ss:$12 sps:$4 sm:$0xff]  }
 0xc84   :  { %5125 = vmatprep.mubr.msk.bf16.mxu0 %vm5638_vm3, %v5636_v28 }
 0xd52   :  { %v4915_v54 = vpop.f32.mrb[44].mxu1 }
 0xd53   :  { %v4916_v0 = vpop.f32.mrb[45].mxu1 }
 0xd54   :  { %v4917_v35 = vadd.f32 %v4916_v0, %v4915_v54  ;;  %v4918_v39 = vpop.f32.mrb[46].mxu1 }
 0xd55   :  { %v4919_v33 = vpop.f32.mrb[47].mxu1 }
 0xd56   :  { %v4937_v2 = vpop.f32.mrb[20].mxu0  ;;  %v2423_v47 = vadd.f32 %v4917_v35, %v4514_v29  ;;  %v4920_v12 = vadd.f32 %v4919_v33, %v4918_v39 }
 0xd57   :  { %v4938_v53 = vpop.f32.mrb[21].mxu0 }
 0xd58   :  { %v4939_v22 = vadd.f32 %v4938_v53, %v4937_v2  ;;  %v4940_v46 = vpop.f32.mrb[22].mxu0  ;;  %v2426_v34 = vadd.f32 %v4920_v12, %v4514_v29  ;;  %v4549_v2 = vld [vmem:[%s7161_s5 + $0x1] ss:$0 sm:$0xff] }
 0xd59   :  { %v4941_v55 = vpop.f32.mrb[23].mxu0 }
 0xd5a   :  { %v2464_v13 = vadd.f32 %v4939_v22, %v2423_v47  ;;  %v4942_v7 = vadd.f32 %v4941_v55, %v4940_v46  ;;  %v4550_v22 = vld [vmem:[%s7162_s6 + $0x1] ss:$0 sm:$0xff] }
 0xd5c   :  { %v2467_v44 = vadd.f32 %v4942_v7, %v2426_v34  ;;  %v6552_v57 = vadd.f32 %v2464_v13, %v6180_v36  ;;  %v5376_v36 = vld [vmem:[%s7163_s7 + $0xc8] ss:$12 sps:$4 sm:$0xff]   ;;  %v4583_v7 = vld [vmem:[%s7164_s8 + $0x3] sm:$0x7] }
 0xd5d   :  { %5110 = vmatpush3.bf16.msra.mxu0 %v5376_v36  ;;  %v2564_v52 = vrot.slane %v4583_v7, %v6056_v20 }
 0xd5e   :  { %v6555_v37 = vadd.f32 %v2467_v44, %v6183_v4  ;;  %2476 = vadd.xlane.f32.xlu1 %v6552_v57  ;;  %v5379_v4 = vld [vmem:[%s7163_s7 + $0xdc] ss:$12 sps:$4 sm:$0xff]   ;;  %5111 = vmatprep.subr.bf16.mxu0 %v5636_v28  ;;  %v2556_v44 = vrot.slane %v4583_v7, %v6046_v16 }
 0xd5f   :  { %2698 = vmatprep.subr.bf16.mxu1 %v5379_v4 }
 0xd60   :  { %v2478_v58 = vsel %vm621_vm1, %v6555_v37, 0.0  ;;  %2699 = vmatpush1.bf16.msra.mxu1 %v5377_v62 }
 0xd61   :  { %2479 = vadd.xlane.f32.xlu0 %v2478_v58  ;;  %5112 = vmatpush3.bf16.msra.mxu0 %v5380_v5  ;;  %v2560_v58 = vrot.slane %v4583_v7, %v6052_v18 }
 0xd62   :  { %5113 = vmatprep.subr.bf16.mxu0 %v5636_v28  ;;  %2700 = vmatprep.subr.bf16.mxu1 %v5383_v3 }
 0xd64   :  { %2701 = vmatpush1.bf16.msra.mxu1 %v5381_v43 }
 0xd65   :  { %5114 = vmatpush3.bf16.msra.mxu0 %v5384_v24  ;;  %2702 = vmatprep.subr.bf16.mxu1 %v5387_v38 }
 0xd66   :  { %5115 = vmatprep.subr.bf16.mxu0 %v5636_v28 }
 0xd68   :  { %2703 = vmatpush1.bf16.msra.mxu1 %v5385_v26 }
 0xd69   :  { %5116 = vmatpush3.bf16.msra.mxu0 %v5388_v30  ;;  %2704 = vmatprep.subr.bf16.mxu1 %v5391_v19 }
 0xd6a   :  { %5117 = vmatprep.subr.bf16.mxu0 %v5636_v28 }
 0xd6c   :  { %2705 = vmatpush1.bf16.msra.mxu1 %v5389_v41 }
 0xd6d   :  { %5118 = vmatpush3.bf16.msra.mxu0 %v5392_v11  ;;  %2706 = vmatprep.subr.bf16.mxu1 %v5395_v6 }
 0xd6e   :  { %5119 = vmatprep.subr.bf16.mxu0 %v5636_v28 }
 0xd70   :  { %2707 = vmatpush1.bf16.msra.mxu1 %v5393_v42 }
 0xd71   :  { %5120 = vmatpush3.bf16.msra.mxu0 %v5396_v40  ;;  %2708 = vmatprep.subr.bf16.mxu1 %v5399_v25 }
 0xd72   :  { %5121 = vmatprep.subr.bf16.mxu0 %v5636_v28 }
 0xd74   :  { %2709 = vmatpush1.bf16.msra.mxu1 %v5397_v63 }
 0xd75   :  { %5122 = vmatpush3.bf16.msra.mxu0 %v5400_v23  ;;  %2710 = vmatprep.subr.bf16.mxu1 %v5403_v45 }
 0xd76   :  { %5123 = vmatprep.subr.bf16.mxu0 %v5636_v28 }
 0xd78   :  { %2711 = vmatpush1.bf16.msra.mxu1 %v5401_v31 }
 0xd79   :  { %5124 = vmatpush3.bf16.msra.mxu0 %v5404_v48  ;;  %5129 = vmatprep.subr.bf16.mxu1 %v5636_v28 }
 0xd7a   :  { %5153 = vmatprep.subr.bf16.mxu0 %v5636_v28 }
 0xdeb   :  { %v2477_v51 = vpop.xlane.xlu1 %2476 }
 0xdec   :  { %v2481_v59 = vmul.f32 0.0078125, %v2477_v51 }
 0xdee   :  { %v6577_v32 = vsub.f32 %v6552_v57, %v2481_v59  ;;  %v2480_v49 = vpop.xlane.xlu0 %2479 }
 0xdef   :  { %v2482_v1 = vmul.f32 0.0078125, %v2480_v49 }
 0xdf0   :  { %v2485_v61 = vmul.f32 %v6577_v32, %v6577_v32 }
 0xdf1   :  { %v6582_v9 = vsub.f32 %v6555_v37, %v2482_v1 }
 0xdf2   :  { %2487 = vadd.xlane.f32.xlu0 %v2485_v61 }
 0xdf3   :  { %v2486_v10 = vmul.f32 %v6582_v9, %v6582_v9 }
 0xdf5   :  { %v2489_v21 = vsel %vm621_vm1, %v2486_v10, 0.0 }
 0xdf6   :  { %2490 = vadd.xlane.f32.xlu1 %v2489_v21 }
 0xe7f   :  { %v2488_v17 = vpop.xlane.xlu0 %2487 }
 0xe80   :  { %v2492_v27 = vmul.f32 0.0078125, %v2488_v17 }
 0xe82   :  { %v2494_v54 = vadd.f32 1e-06, %v2492_v27 }
 0xe83   :  { %v2491_v29 = vpop.xlane.xlu1 %2490 }
 0xe84   :  { %5549 = vrsqrt.f32 %v2494_v54  ;;  %v2493_v0 = vmul.f32 0.0078125, %v2491_v29 }
 0xe86   :  { %v2495_v35 = vadd.f32 1e-06, %v2493_v0 }
 0xe88   :  { %5551 = vrsqrt.f32 %v2495_v35 }
 0xe8e   :  { %v5550_v39 = vpop.eup %5549 }
 0xe8f   :  { %v2498_v33 = vmul.f32 %v5550_v39, %v6577_v32 }
 0xe91   :  { %v2506_v53 = vmul.f32 %v4549_v2, %v2498_v33 }
 0xe92   :  { %v5552_v47 = vpop.eup %5551 }
 0xe93   :  { %v2499_v12 = vmul.f32 %v5552_v47, %v6582_v9  ;;  %v2514_v34 = vadd.f32 %v4550_v22, %v2506_v53 }
 0xe95   :  { %v2507_v46 = vmul.f32 %v4549_v2, %v2499_v12 }
 0xe97   :  { %v2515_v55 = vadd.f32 %v4550_v22, %v2507_v46 }
 0xe99   :  { %v2551_v13 = vpack.c.bf16 %v2515_v55, %v2514_v34 }
 0xe9b   :  { %2729 = vmatmul.mubr.bf16.vlgmr.msra.gmra.mrb[48].mxu1 %v2551_v13  ;;  %5126 = vmatmul.mubr.bf16.vlgmr.msra.gmra.mrb[24].mxu0 %v2551_v13 }
 0xe9c   :  { %5131 = vmatprep.mubr.msk.bf16.mxu1 %vm5638_vm3, %v5636_v28  ;;  %5155 = vmatprep.mubr.msk.bf16.mxu0 %vm5638_vm3, %v5636_v28 }
 0xf6e   :  { %v2730_v56 = vpop.f32.mrb[48].mxu1  ;;  %v2773_v36 = vpop.f32.mrb[24].mxu0 }
 0xf6f   :  { %v2731_v4 = vadd.f32 %v2730_v56, %v2556_v44  ;;  %v2732_v62 = vpop.f32.mrb[49].mxu1  ;;  %v5127_v51 = vpop.f32.mrb[25].mxu0  ;;  %v6670_v1 = vadd.f32 %v2773_v36, %v2564_v52 }
 0xf70   :  { %v2733_v59 = vadd.f32 %v2732_v62, %v2560_v58  ;;  %v2734_v32 = vpop.f32.mrb[50].mxu1  ;;  %v2776_v49 = vpop.f32.mrb[26].mxu0 }
 0xf71   :  { %v6672_v61 = vadd.f32 %v2776_v49, %v2564_v52  ;;  %v2736_v9 = vpop.f32.mrb[51].mxu1  ;;  %v5128_v10 = vpop.f32.mrb[27].mxu0  ;;  %2781 = vrot.lane.b32.xlu1 %v2731_v4, %s5634_s3  ;;  %v6675_v5 = vadd.f32 %v2734_v32, %v2556_v44  ;;  %v2784_v40 = vpack.c.bf16 %v2731_v4, %v2731_v4  ;;  %v2796_v2 = vpack.c.bf16 %v6670_v1, %v6670_v1 }
 0xf72   :  { %v2790_v21 = vpack.c.bf16 %v2733_v59, %v2733_v59  ;;  %v2737_v3 = vadd.f32 %v2736_v9, %v2560_v58  ;;  %2787 = vrot.lane.b32.xlu0 %v2733_v59, %s5634_s3 }
 0xf73   :  { %v3029_v43 = vpack.c.bf16 %v6672_v61, %v6670_v1  ;;  %v3017_v26 = vpack.c.bf16 %v6675_v5, %v2731_v4  ;;  %v2920_v53 = vand.u32 %v2796_v2, %v6096_v50 }
 0xf74   :  { %v3023_v24 = vpack.c.bf16 %v2737_v3, %v2733_v59  ;;  %v2802_v38 = vsel %vm941_vm4, %v2790_v21, 0 }
 0xf75   :  { %5130 = vmatpush3.bf16.xpose.msra.mxu1 %v2802_v38  ;;  %v3182_v41 = vshrl.u32 %v3029_v43, 16  ;;  %v3185_v11 = vshll.u32 %v3029_v43, 16  ;;  %v3032_v63 = vshrl.u32 %v3017_v26, 16  ;;  %v3035_v25 = vshll.u32 %v3017_v26, 16 }
 0xf76   :  { %v3040_v30 = vshrl.u32 %v3023_v24, 16  ;;  %v3043_v19 = vshll.u32 %v3023_v24, 16  ;;  %5135 = vmatprep.subr.bf16.mxu1 %v5636_v28 }
 0xf77   :  { %v3184_v45 = vrot.slane %v3182_v41, 2  ;;  %v3187_v31 = vrot.slane %v3185_v11, 3  ;;  %v3034_v17 = vrot.slane %v3032_v63, 2  ;;  %v3037_v27 = vrot.slane %v3035_v25, 3 }
 0xf78   :  { %v3042_v6 = vrot.slane %v3040_v30, 2  ;;  %v3045_v42 = vrot.slane %v3043_v19, 3 }
 0xf79   :  { %v3188_v54 = vor.u32 %v3187_v31, %v3184_v45  ;;  %v3038_v29 = vor.u32 %v3037_v27, %v3034_v17 }
 0xf7a   :  { %v3046_v23 = vor.u32 %v3045_v42, %v3042_v6 }
 0xf7b   :  { %v3193_v0 = vand.u32 %v3188_v54, %v6096_v50 }
 0xf7c   :  { %5132 = vmatmul.mubr.msk.bf16.vlgmr.msra.gmra.mrb[52].mxu1 %vm941_vm4, %v2784_v40  ;;  %v3051_v48 = vsel %vm941_vm4, %v3046_v23, 0 }
 0xf7d   :  { %5154 = vmatpush3.bf16.xpose.msra.mxu0 %v3051_v48  ;;  %5137 = vmatprep.mubr.msk.bf16.mxu1 %vm5638_vm3, %v5636_v28 }
 0xf7e   :  { %5165 = vmatprep.subr.bf16.mxu0 %v5636_v28 }
 0xf84   :  { %5156 = vmatmul.mubr.msk.bf16.vlgmr.msra.gmra.mrb[28].mxu0 %vm941_vm4, %v3038_v29 }
 0xf85   :  { %5166 = vmatpush3.bf16.msra.mxu0 %v3193_v0  ;;  %5167 = vmatprep.mubr.msk.bf16.mxu0 %vm5638_vm3, %v5636_v28 }
 0xf86   :  { %5177 = vmatprep.subr.bf16.mxu0 %v5636_v28 }
 0xfe3   :  { %v6701_v47 = vpop.permute.xlu1 %2781 }
 0xfe4   :  { %v6693_v35 = vpop.permute.xlu0 %2787  ;;  %v2785_v12 = vpack.c.bf16 %v6701_v47, %v6701_v47 }
 0xfe5   :  { %v2791_v39 = vpack.c.bf16 %v6693_v35, %v6693_v35 }
 0xfe7   :  { %v2848_v33 = vsel %vm941_vm4, %v2791_v39, 0 }
 0xfe8   :  { %5136 = vmatpush3.bf16.xpose.msra.mxu1 %v2848_v33 }
 0xfe9   :  { %5141 = vmatprep.subr.bf16.mxu1 %v5636_v28 }
 0xfef   :  { %5138 = vmatmul.mubr.msk.bf16.vlgmr.msra.gmra.mrb[56].mxu1 %vm941_vm4, %v2785_v12 }
 0xff0   :  { %5142 = vmatpush3.bf16.msra.mxu1 %v2920_v53  ;;  %5143 = vmatprep.mubr.msk.bf16.mxu1 %vm5638_vm3, %v5636_v28 }
 0xff1   :  { %5147 = vmatprep.subr.bf16.mxu1 %v5636_v28 }
0x104f   :  { %v2838_v22 = vpop.f32.mrb[52].mxu1 }
0x1050   :  { %v2890_v46 = vmul.f32 0.125, %v2838_v22  ;;  %v5133_v34 = vpop.f32.mrb[53].mxu1 }
0x1051   :  { %v2841_v55 = vpop.f32.mrb[54].mxu1 }
0x1052   :  { %v5134_v13 = vpop.f32.mrb[55].mxu1  ;;  %v2892_v7 = vsel %vm1036_vm6, %v2890_v46, -inf }
0x1053   :  { %2893 = vmax.xlane.f32.xlu1 %v2892_v7 }
0x1057   :  { %v3087_v44 = vpop.f32.mrb[28].mxu0 }
0x1058   :  { %v5157_v58 = vpop.f32.mrb[29].mxu0 }
0x1059   :  { %v3090_v52 = vpop.f32.mrb[30].mxu0 }
0x105a   :  { %v5158_v56 = vpop.f32.mrb[31].mxu0 }
0x1064   :  { %3020 = vrot.lane.b32.xlu1 %v2737_v3, %s5634_s3  ;;  %v3155_v3 = vmul.f32 0.125, %v3087_v44 }
0x1066   :  { %v3157_v24 = vsel %vm1036_vm6, %v3155_v3, -inf }
0x10c2   :  { %v2884_v36 = vpop.f32.mrb[56].mxu1 }
0x10c3   :  { %v2891_v4 = vmul.f32 0.125, %v2884_v36  ;;  %v5139_v62 = vpop.f32.mrb[57].mxu1 }
0x10c4   :  { %v2887_v51 = vpop.f32.mrb[58].mxu1 }
0x10c5   :  { %v5140_v59 = vpop.f32.mrb[59].mxu1  ;;  %v2895_v32 = vsel %vm1036_vm6, %v2891_v4, -inf }
0x10c6   :  { %2896 = vmax.xlane.f32.xlu0 %v2895_v32 }
0x10e0   :  { %v2894_v49 = vpop.xlane.xlu1 %2893 }
0x10e1   :  { %v2898_v9 = vsub.f32 %v2890_v46, %v2894_v49 }
0x10e3   :  { %v2900_v10 = vmul.f32 1.442695, %v2898_v9 }
0x10e5   :  { %5553 = vpow2.f32 %v2900_v10 }
0x10ef   :  { %v5554_v21 = vpop.eup %5553 }
0x10f0   :  { %v2904_v43 = vsel %vm1036_vm6, %v5554_v21, 0.0 }
0x10f1   :  { %2905 = vadd.xlane.f32.xlu0 %v2904_v43 }
0x1107   :  { %2793 = vrot.lane.b32.xlu0 %v6670_v1, %s5634_s3 }
0x1126   :  { %3158 = vmax.xlane.f32.xlu0 %v3157_v24 }
0x1153   :  { %v2897_v38 = vpop.xlane.xlu0 %2896 }
0x1154   :  { %v2899_v26 = vsub.f32 %v2891_v4, %v2897_v38 }
0x1156   :  { %v2902_v30 = vmul.f32 1.442695, %v2899_v26 }
0x1158   :  { %5555 = vpow2.f32 %v2902_v30 }
0x1162   :  { %v5556_v19 = vpop.eup %5555 }
0x1163   :  { %v2907_v41 = vsel %vm1036_vm6, %v5556_v19, 0.0 }
0x1164   :  { %2908 = vadd.xlane.f32.xlu1 %v2907_v41 }
0x1175   :  { %3014 = vrot.lane.b32.xlu1 %v6675_v5, %s5634_s3  ;;  %v3021_v5 = vpop.permute.xlu1 %3020 }
0x1176   :  { %v3024_v23 = vpack.c.bf16 %v3021_v5, %v6693_v35 }
0x1178   :  { %v3102_v31 = vshrl.u32 %v3024_v23, 16  ;;  %v3105_v48 = vshll.u32 %v3024_v23, 16 }
0x117a   :  { %v3104_v27 = vrot.slane %v3102_v31, 2  ;;  %v3107_v54 = vrot.slane %v3105_v48, 3 }
0x117c   :  { %v3108_v39 = vor.u32 %v3107_v54, %v3104_v27 }
0x117e   :  { %v2906_v11 = vpop.xlane.xlu0 %2905  ;;  %v3113_v22 = vsel %vm941_vm4, %v3108_v39, 0 }
0x117f   :  { %5557 = vrcp.f32 %v2906_v11 }
0x1182   :  { %v6720_v6 = vpop.permute.xlu0 %2793 }
0x1183   :  { %v2797_v42 = vpack.c.bf16 %v6720_v6, %v6720_v6 }
0x1185   :  { %v2966_v25 = vand.u32 %v2797_v42, %v6096_v50 }
0x1189   :  { %v5558_v1 = vpop.eup %5557 }
0x118a   :  { %v2912_v40 = vmul.f32 %v5558_v1, %v5554_v21 }
0x118c   :  { %v2914_v63 = vpack.c.bf16 %v2912_v40, %v2912_v40 }
0x118e   :  { %5144 = vmatmul.mubr.msk.bf16.vlgmr.msra.gmra.mrb[60].mxu1 %vm1061_vm7, %v2914_v63 }
0x118f   :  { %5148 = vmatpush3.bf16.msra.mxu1 %v2966_v25  ;;  %5149 = vmatprep.mubr.msk.bf16.mxu1 %vm5638_vm3, %v5636_v28 }
0x1190   :  { %5159 = vmatprep.subr.bf16.mxu1 %v5636_v28 }
0x11b3   :  { %v3159_v44 = vpop.xlane.xlu0 %3158 }
0x11b4   :  { %v3163_v58 = vsub.f32 %v3155_v3, %v3159_v44 }
0x11b6   :  { %v3165_v52 = vmul.f32 1.442695, %v3163_v58 }
0x11f1   :  { %v2909_v45 = vpop.xlane.xlu1 %2908 }
0x11f2   :  { %5559 = vrcp.f32 %v2909_v45 }
0x11f3   :  { %5561 = vpow2.f32 %v3165_v52 }
0x11f5   :  { %v3015_v17 = vpop.permute.xlu1 %3014 }
0x11f6   :  { %v3018_v29 = vpack.c.bf16 %v3015_v17, %v6701_v47 }
0x11f8   :  { %v3094_v2 = vshrl.u32 %v3018_v29, 16  ;;  %v3097_v12 = vshll.u32 %v3018_v29, 16 }
0x11fa   :  { %v3096_v35 = vrot.slane %v3094_v2, 2  ;;  %v3099_v46 = vrot.slane %v3097_v12, 3  ;;  %v5407_v2 = vld [vmem:[#allocation2 + $0x50] sm:$0xff]   ;;  %v5409_v12 = vld [vmem:[#allocation2 + $0x60] sm:$0xff]  }
0x11fc   :  { %v5560_v0 = vpop.eup %5559  ;;  %v3100_v34 = vor.u32 %v3099_v46, %v3096_v35  ;;  %v5412_v35 = vld [vmem:[#allocation2 + $0x78] sm:$0xff]  }
0x11fd   :  { %v2913_v33 = vmul.f32 %v5560_v0, %v5556_v19  ;;  %v5562_v21 = vpop.eup %5561 }
0x11fe   :  { %v3169_v43 = vsel %vm1036_vm6, %v5562_v21, 0.0 }
0x11ff   :  { %v2915_v53 = vpack.c.bf16 %v2913_v33, %v2913_v33  ;;  %v5406_v33 = vld [vmem:[#allocation2 + $0x48] sm:$0xff]  }
0x1201   :  { %5150 = vmatmul.mubr.msk.bf16.vlgmr.msra.gmra.mrb[64].mxu1 %vm1061_vm7, %v2915_v53  ;;  %v5410_v53 = vld [vmem:[#allocation2 + $0x68] sm:$0xff]  }
0x1202   :  { %5160 = vmatpush3.bf16.xpose.msra.mxu1 %v3113_v22  ;;  %5161 = vmatprep.mubr.msk.bf16.mxu1 %vm5638_vm3, %v5636_v28  ;;  %v5411_v22 = vld [vmem:[#allocation2 + $0x70] sm:$0xff]  }
0x1203   :  { %5171 = vmatprep.subr.bf16.mxu1 %v5636_v28 }
0x1209   :  { %5162 = vmatmul.mubr.msk.bf16.vlgmr.msra.gmra.mrb[68].mxu1 %vm941_vm4, %v3100_v34 }
0x120a   :  { %5173 = vmatprep.mubr.msk.bf16.mxu1 %vm5638_vm3, %v5636_v28 }
0x1261   :  { %v6739_v47 = vpop.f32.mrb[60].mxu1 }
0x1262   :  { %v5145_v55 = vpop.f32.mrb[61].mxu1 }
0x1263   :  { %v2959_v13 = vpop.f32.mrb[62].mxu1 }
0x1264   :  { %v5146_v7 = vpop.f32.mrb[63].mxu1 }
0x12d4   :  { %v6741_v56 = vpop.f32.mrb[64].mxu1 }
0x12d5   :  { %v5151_v36 = vpop.f32.mrb[65].mxu1 }
0x12d6   :  { %v3005_v4 = vpop.f32.mrb[66].mxu1 }
0x12d7   :  { %v5152_v62 = vpop.f32.mrb[67].mxu1 }
0x12d8   :  { %v4617_v62 = vld [vmem:[%s7166_s10 + $0x1] ss:$0 sm:$0xff] }
0x12dc   :  { %v3149_v51 = vpop.f32.mrb[68].mxu1 }
0x12dd   :  { %v3156_v59 = vmul.f32 0.125, %v3149_v51  ;;  %v5163_v32 = vpop.f32.mrb[69].mxu1 }
0x12de   :  { %v3152_v49 = vpop.f32.mrb[70].mxu1 }
0x12df   :  { %v5164_v9 = vpop.f32.mrb[71].mxu1  ;;  %v3160_v10 = vsel %vm1036_vm6, %v3156_v59, -inf }
0x12e0   :  { %3161 = vmax.xlane.f32.xlu1 %v3160_v10 }
0x12e4   :  { %3170 = vadd.xlane.f32.xlu1 %v3169_v43  ;;  %v5416_v43 = vld [vmem:[%s7169_s13 + $0x108] ss:$16 sps:$4 sm:$0xff]  }
0x136d   :  { %v3162_v3 = vpop.xlane.xlu1 %3161 }
0x136e   :  { %v3164_v24 = vsub.f32 %v3156_v59, %v3162_v3  ;;  %v5421_v3 = vld [vmem:[%s7169_s13 + $0x124] ss:$16 sps:$4 sm:$0xff]  }
0x1370   :  { %v3167_v38 = vmul.f32 1.442695, %v3164_v24  ;;  %v5424_v24 = vld [vmem:[%s7169_s13 + $0x12c] ss:$16 sps:$4 sm:$0xff]  }
0x1371   :  { %v3171_v26 = vpop.xlane.xlu1 %3170 }
0x1372   :  { %5563 = vpow2.f32 %v3167_v38  ;;  %v5419_v38 = vld [vmem:[%s7169_s13 + $0x120] ss:$16 sps:$4 sm:$0xff]  }
0x1373   :  { %5565 = vrcp.f32 %v3171_v26  ;;  %v5422_v26 = vld [vmem:[%s7169_s13 + $0x128] ss:$16 sps:$4 sm:$0xff]  }
0x137c   :  { %v5564_v30 = vpop.eup %5563 }
0x137d   :  { %v5566_v19 = vpop.eup %5565  ;;  %v3172_v41 = vsel %vm1036_vm6, %v5564_v30, 0.0 }
0x137e   :  { %v3177_v11 = vmul.f32 %v5566_v19, %v5562_v21  ;;  %3173 = vadd.xlane.f32.xlu0 %v3172_v41  ;;  %v5413_v21 = vld [vmem:[%s7169_s13 + $0x100] ss:$16 sps:$4 sm:$0xff]  }
0x1380   :  { %v3179_v1 = vpack.c.bf16 %v3177_v11, %v3177_v11 }
0x1382   :  { %5168 = vmatmul.mubr.msk.bf16.vlgmr.msra.gmra.mrb[32].mxu0 %vm1061_vm7, %v3179_v1 }
0x1383   :  { %5193 = vmatprep.mubr.msk.bf16.mxu0 %vm5638_vm3, %v5636_v28 }
0x1394   :  { %3026 = vrot.lane.b32.xlu0 %v6672_v61, %s5634_s3 }
0x140b   :  { %v3174_v42 = vpop.xlane.xlu0 %3173 }
0x140c   :  { %5567 = vrcp.f32 %v3174_v42 }
0x140f   :  { %v3027_v40 = vpop.permute.xlu0 %3026 }
0x1410   :  { %v3030_v63 = vpack.c.bf16 %v3027_v40, %v6720_v6  ;;  %v5405_v6 = vld [vmem:[#allocation2 + $0x40] sm:$0xff]  }
0x1411   :  { %5178 = vmatpush3.bf16.msra.mxu0 %v5405_v6  ;;  %v5445_v6 = vld [vmem:[%s7169_s13 + $0x1a4] ss:$16 sps:$4 sm:$0xff]  }
0x1412   :  { %v3236_v25 = vshrl.u32 %v3030_v63, 16  ;;  %v3239_v5 = vshll.u32 %v3030_v63, 16  ;;  %5179 = vmatprep.subr.bf16.mxu0 %v5636_v28 }
0x1414   :  { %v3238_v23 = vrot.slane %v3236_v25, 2  ;;  %v3241_v45 = vrot.slane %v3239_v5, 3  ;;  %v5427_v5 = vld [vmem:[%s7169_s13 + $0x144] ss:$16 sps:$4 sm:$0xff]  }
0x1415   :  { %5180 = vmatpush3.bf16.msra.mxu0 %v5406_v33  ;;  %v5448_v33 = vld [vmem:[%s7169_s13 + $0x1ac] ss:$16 sps:$4 sm:$0xff]  }
0x1416   :  { %v5568_v31 = vpop.eup %5567  ;;  %v3242_v48 = vor.u32 %v3241_v45, %v3238_v23  ;;  %5181 = vmatprep.subr.bf16.mxu0 %v5636_v28  ;;  %v5430_v23 = vld [vmem:[%s7169_s13 + $0x14c] ss:$16 sps:$4 sm:$0xff]   ;;  %v5425_v45 = vld [vmem:[%s7169_s13 + $0x140] ss:$16 sps:$4 sm:$0xff]  }
0x1417   :  { %v3178_v17 = vmul.f32 %v5568_v31, %v5564_v30  ;;  %v5428_v31 = vld [vmem:[%s7169_s13 + $0x148] ss:$16 sps:$4 sm:$0xff]  }
0x1418   :  { %v3247_v27 = vand.u32 %v3242_v48, %v6096_v50  ;;  %v5408_v50 = vld [vmem:[#allocation2 + $0x58] sm:$0xff]   ;;  %v5433_v48 = vld [vmem:[%s7169_s13 + $0x164] ss:$16 sps:$4 sm:$0xff]  }
0x1419   :  { %v3180_v54 = vpack.c.bf16 %v3178_v17, %v3178_v17  ;;  %5182 = vmatpush3.bf16.msra.mxu0 %v5407_v2  ;;  %v5436_v17 = vld [vmem:[%s7169_s13 + $0x16c] ss:$16 sps:$4 sm:$0xff]   ;;  %v5443_v2 = vld [vmem:[%s7169_s13 + $0x1a0] ss:$16 sps:$4 sm:$0xff]  }
0x141a   :  { %5172 = vmatpush3.bf16.msra.mxu1 %v3247_v27  ;;  %5183 = vmatprep.subr.bf16.mxu0 %v5636_v28  ;;  %v5431_v27 = vld [vmem:[%s7169_s13 + $0x160] ss:$16 sps:$4 sm:$0xff]  }
0x141d   :  { %5174 = vmatmul.mubr.msk.bf16.vlgmr.msra.gmra.mrb[72].mxu1 %vm1061_vm7, %v3180_v54  ;;  %5184 = vmatpush3.bf16.msra.mxu0 %v5408_v50  ;;  %v5434_v54 = vld [vmem:[%s7169_s13 + $0x168] ss:$16 sps:$4 sm:$0xff]  }
0x141e   :  { %3708 = vmatprep.mubr.bf16.mxu1 %v5637_v60  ;;  %5185 = vmatprep.subr.bf16.mxu0 %v5636_v28  ;;  %v5446_v50 = vld [vmem:[%s7169_s13 + $0x1a8] ss:$16 sps:$4 sm:$0xff]  }
0x1421   :  { %5186 = vmatpush3.bf16.msra.mxu0 %v5409_v12  ;;  %v5449_v12 = vld [vmem:[%s7169_s13 + $0x1c0] ss:$16 sps:$4 sm:$0xff]  }
0x1422   :  { %5187 = vmatprep.subr.bf16.mxu0 %v5636_v28 }
0x1425   :  { %5188 = vmatpush3.bf16.msra.mxu0 %v5410_v53  ;;  %v5451_v53 = vld [vmem:[%s7169_s13 + $0x1c4] ss:$16 sps:$4 sm:$0xff]  }
0x1426   :  { %5189 = vmatprep.subr.bf16.mxu0 %v5636_v28 }
0x1429   :  { %5190 = vmatpush3.bf16.msra.mxu0 %v5411_v22  ;;  %v5452_v22 = vld [vmem:[%s7169_s13 + $0x1c8] ss:$16 sps:$4 sm:$0xff]  }
0x142a   :  { %5191 = vmatprep.subr.bf16.mxu0 %v5636_v28 }
0x142d   :  { %5192 = vmatpush3.bf16.msra.mxu0 %v5412_v35  ;;  %v5454_v35 = vld [vmem:[%s7169_s13 + $0x1cc] ss:$16 sps:$4 sm:$0xff]  }
0x1455   :  { %v3229_v61 = vpop.f32.mrb[32].mxu0 }
0x1456   :  { %v5169_v29 = vpop.f32.mrb[33].mxu0 }
0x1457   :  { %v3232_v0 = vpop.f32.mrb[34].mxu0  ;;  %v5442_v29 = vld [vmem:[%s7169_s13 + $0x18c] ss:$16 sps:$4 sm:$0xff]  }
0x1458   :  { %v5170_v39 = vpop.f32.mrb[35].mxu0  ;;  %v5437_v0 = vld [vmem:[%s7169_s13 + $0x180] ss:$16 sps:$4 sm:$0xff]  }
0x1459   :  { %v5440_v39 = vld [vmem:[%s7169_s13 + $0x188] ss:$16 sps:$4 sm:$0xff]  }
0x14f0   :  { %v3283_v46 = vpop.f32.mrb[72].mxu1 }
0x14f1   :  { %3290 = vrot.lane.b32.xlu1 %v3283_v46, %s5634_s3  ;;  %v5175_v34 = vpop.f32.mrb[73].mxu1  ;;  %v5457_v46 = vld [vmem:[%s7169_s13 + $0x1e4] ss:$16 sps:$4 sm:$0xff]  }
0x14f2   :  { %v3286_v55 = vpop.f32.mrb[74].mxu1  ;;  %v5460_v34 = vld [vmem:[%s7169_s13 + $0x1ec] ss:$16 sps:$4 sm:$0xff]  }
0x14f3   :  { %v5176_v13 = vpop.f32.mrb[75].mxu1  ;;  %v5455_v55 = vld [vmem:[%s7169_s13 + $0x1e0] ss:$16 sps:$4 sm:$0xff]  }
0x14f4   :  { %v5458_v13 = vld [vmem:[%s7169_s13 + $0x1e8] ss:$16 sps:$4 sm:$0xff]  }
0x14f5   :  { %3009 = vrot.lane.b32.xlu1 %v6741_v56, %s5634_s3 }
0x1563   :  { %v3291_v7 = vpop.permute.xlu1 %3290 }
0x1564   :  { %v3293_v44 = vsel %vm941_vm4, %v3229_v61, %v3291_v7  ;;  %v5439_v61 = vld [vmem:[%s7169_s13 + $0x184] ss:$16 sps:$4 sm:$0xff]  }
0x1565   :  { %v3295_v58 = vrot.slane %v3293_v44, 3 }
0x1567   :  { %v3010_v52 = vpop.permute.xlu1 %3009 }
0x1568   :  { %v3012_v36 = vsel %vm941_vm4, %v6739_v47, %v3010_v52 }
0x1569   :  { %v3297_v28 = vsel %vm615_vm2, %v3012_v36, %v3295_v58 }
0x156a   :  { %v3317_v4 = vpack.c.bf16 %v3295_v58, %v3297_v28 }
0x156c   :  { %5194 = vmatmul.mubr.bf16.vlgmr.msra.gmra.mrb[36].mxu0 %v3317_v4 }
0x156d   :  { %3751 = vmatprep.mubr.bf16.mxu0 %v5637_v60 }
0x163f   :  { %v3406_v51 = vpop.f32.mrb[36].mxu0 }
0x1640   :  { %v3407_v56 = vadd.f32 %v4617_v62, %v3406_v51  ;;  %v5195_v59 = vpop.f32.mrb[37].mxu0  ;;  %v4628_v51 = vld [vmem:[%s7167_s11 + $0x1] ss:$0 sm:$0xff] }
0x1641   :  { %v3409_v32 = vpop.f32.mrb[38].mxu0 }
0x1642   :  { %v6774_v49 = vadd.f32 %v3407_v56, %v6552_v57  ;;  %v3410_v9 = vadd.f32 %v4617_v62, %v3409_v32  ;;  %v5196_v10 = vpop.f32.mrb[39].mxu0  ;;  %v5415_v57 = vld [vmem:[%s7169_s13 + $0x104] ss:$16 sps:$4 sm:$0xff]  }
0x1643   :  { %3676 = vmatprep.subr.bf16.mxu1 %v5415_v57 }
0x1644   :  { %v6777_v47 = vadd.f32 %v3410_v9, %v6555_v37  ;;  %3419 = vadd.xlane.f32.xlu1 %v6774_v49  ;;  %v5418_v37 = vld [vmem:[%s7169_s13 + $0x10c] ss:$16 sps:$4 sm:$0xff]   ;;  %3677 = vmatpush1.bf16.msra.mxu1 %v5413_v21  ;;  %v4629_v9 = vld [vmem:[%s7168_s12 + $0x1] ss:$0 sm:$0xff] }
0x1645   :  { %3719 = vmatprep.subr.bf16.mxu0 %v5418_v37  ;;  %3678 = vmatprep.subr.bf16.mxu1 %v5421_v3  ;;  %v5462_v37 = vld [vmem:[%s7171_s15 + $0x1c0] sm:$0xff]  }
0x1646   :  { %v3421_v60 = vsel %vm621_vm1, %v6777_v47, 0.0  ;;  %3720 = vmatpush1.bf16.msra.mxu0 %v5416_v43  ;;  %v5461_v43 = vld [vmem:[%s7171_s15 + $0x140] sm:$0xff]  }
0x1647   :  { %3422 = vadd.xlane.f32.xlu0 %v3421_v60  ;;  %3721 = vmatprep.subr.bf16.mxu0 %v5424_v24  ;;  %v5463_v3 = vld [vmem:[%s7171_s15 + $0x100] sm:$0xff]  }
0x1648   :  { %3679 = vmatpush1.bf16.msra.mxu1 %v5419_v38  ;;  %v5464_v24 = vld [vmem:[%s7171_s15 + $0x180] sm:$0xff]   ;;  %v5465_v38 = vld [vmem:[%s7171_s15 + $0x148] sm:$0xff]  }
0x1649   :  { %3680 = vmatprep.subr.bf16.mxu1 %v5427_v5  ;;  %v5476_v5 = vld [vmem:[%s7171_s15 + $0x198] sm:$0xff]  }
0x164a   :  { %3722 = vmatpush1.bf16.msra.mxu0 %v5422_v26  ;;  %v5466_v26 = vld [vmem:[%s7171_s15 + $0x1c8] sm:$0xff]  }
0x164b   :  { %3723 = vmatprep.subr.bf16.mxu0 %v5430_v23  ;;  %v5477_v23 = vld [vmem:[%s7171_s15 + $0x160] sm:$0xff]  }
0x164c   :  { %3681 = vmatpush1.bf16.msra.mxu1 %v5425_v45  ;;  %v5478_v45 = vld [vmem:[%s7171_s15 + $0x1e0] sm:$0xff]  }
0x164d   :  { %3682 = vmatprep.subr.bf16.mxu1 %v5433_v48  ;;  %v5480_v48 = vld [vmem:[%s7171_s15 + $0x1a0] sm:$0xff]  }
0x164e   :  { %3724 = vmatpush1.bf16.msra.mxu0 %v5428_v31  ;;  %v5479_v31 = vld [vmem:[%s7171_s15 + $0x120] sm:$0xff]  }
0x164f   :  { %3725 = vmatprep.subr.bf16.mxu0 %v5436_v17  ;;  %v5481_v17 = vld [vmem:[%s7171_s15 + $0x168] sm:$0xff]  }
0x1650   :  { %3683 = vmatpush1.bf16.msra.mxu1 %v5431_v27  ;;  %v5482_v27 = vld [vmem:[%s7171_s15 + $0x1e8] sm:$0xff]  }
0x1651   :  { %3684 = vmatprep.subr.bf16.mxu1 %v5439_v61  ;;  %v5484_v61 = vld [vmem:[%s7171_s15 + $0x1a8] sm:$0xff]  }
0x1652   :  { %3726 = vmatpush1.bf16.msra.mxu0 %v5434_v54  ;;  %v5483_v54 = vld [vmem:[%s7171_s15 + $0x128] sm:$0xff]  }
0x1653   :  { %3727 = vmatprep.subr.bf16.mxu0 %v5442_v29  ;;  %v5485_v29 = vld [vmem:[%s7171_s15 + $0x170] sm:$0xff]  }
0x1654   :  { %3685 = vmatpush1.bf16.msra.mxu1 %v5437_v0  ;;  %v5486_v0 = vld [vmem:[%s7171_s15 + $0x1f0] sm:$0xff]  }
0x1655   :  { %3686 = vmatprep.subr.bf16.mxu1 %v5445_v6  ;;  %v5488_v6 = vld [vmem:[%s7171_s15 + $0x1b0] sm:$0xff]  }
0x1656   :  { %3728 = vmatpush1.bf16.msra.mxu0 %v5440_v39  ;;  %v5487_v39 = vld [vmem:[%s7171_s15 + $0x130] sm:$0xff]  }
0x1657   :  { %3729 = vmatprep.subr.bf16.mxu0 %v5448_v33  ;;  %v5489_v33 = vld [vmem:[%s7171_s15 + $0x178] sm:$0xff]  }
0x1658   :  { %3687 = vmatpush1.bf16.msra.mxu1 %v5443_v2  ;;  %v5490_v2 = vld [vmem:[%s7171_s15 + $0x1f8] sm:$0xff]  }
0x1659   :  { %3688 = vmatprep.subr.bf16.mxu1 %v5451_v53  ;;  %v4662_v53 = vld [vmem:[%s7170_s14 + $0x4] sm:$0xf] }
0x165a   :  { %3730 = vmatpush1.bf16.msra.mxu0 %v5446_v50  ;;  %v5491_v50 = vld [vmem:[%s7171_s15 + $0x138] sm:$0xff]  }
0x165b   :  { %3731 = vmatprep.subr.bf16.mxu0 %v5454_v35  ;;  %v3507_v35 = vrot.slane %v4662_v53, %v6056_v20 }
0x165c   :  { %3689 = vmatpush1.bf16.msra.mxu1 %v5449_v12  ;;  %v5492_v12 = vld [vmem:[%s7171_s15 + $0x1b8] sm:$0xff]  }
0x165d   :  { %3690 = vmatprep.subr.bf16.mxu1 %v5457_v46  ;;  %v3503_v46 = vrot.slane %v4662_v53, %v6052_v18 }
0x165e   :  { %3732 = vmatpush1.bf16.msra.mxu0 %v5452_v22  ;;  %v3499_v22 = vrot.slane %v4662_v53, %v6046_v16 }
0x165f   :  { %3733 = vmatprep.subr.bf16.mxu0 %v5460_v34  ;;  %v3511_v34 = vrot.slane %v4662_v53, %v1653_v8 }
0x1660   :  { %3691 = vmatpush1.bf16.msra.mxu1 %v5455_v55 }
0x1661   :  { %4977 = vmatprep.subr.bf16.mxu1 %v5461_v43 }
0x1662   :  { %3734 = vmatpush1.bf16.msra.mxu0 %v5458_v13 }
0x1663   :  { %4999 = vmatprep.subr.bf16.mxu0 %v5462_v37 }
0x16d1   :  { %v3420_v30 = vpop.xlane.xlu1 %3419 }
0x16d2   :  { %v3424_v19 = vmul.f32 0.0078125, %v3420_v30  ;;  %v5467_v30 = vld [vmem:[%s7171_s15 + $0x108] sm:$0xff]  }
0x16d4   :  { %v6807_v41 = vsub.f32 %v6774_v49, %v3424_v19  ;;  %v3423_v11 = vpop.xlane.xlu0 %3422  ;;  %v5468_v19 = vld [vmem:[%s7171_s15 + $0x188] sm:$0xff]  }
0x16d5   :  { %v3425_v1 = vmul.f32 0.0078125, %v3423_v11  ;;  %v5470_v11 = vld [vmem:[%s7171_s15 + $0x1d0] sm:$0xff]  }
0x16d6   :  { %v3428_v42 = vmul.f32 %v6807_v41, %v6807_v41 }
0x16d7   :  { %v6812_v40 = vsub.f32 %v6777_v47, %v3425_v1  ;;  %v5471_v1 = vld [vmem:[%s7171_s15 + $0x110] sm:$0xff]  }
0x16d8   :  { %3430 = vadd.xlane.f32.xlu0 %v3428_v42  ;;  %v5472_v42 = vld [vmem:[%s7171_s15 + $0x190] sm:$0xff]  }
0x16d9   :  { %v3429_v63 = vmul.f32 %v6812_v40, %v6812_v40 }
0x16db   :  { %v3432_v25 = vsel %vm621_vm1, %v3429_v63, 0.0  ;;  %v5474_v63 = vld [vmem:[%s7171_s15 + $0x1d8] sm:$0xff]  }
0x16dc   :  { %3433 = vadd.xlane.f32.xlu0 %v3432_v25  ;;  %v5475_v25 = vld [vmem:[%s7171_s15 + $0x118] sm:$0xff]  }
0x1765   :  { %v3431_v7 = vpop.xlane.xlu0 %3430 }
0x1766   :  { %v3435_v44 = vmul.f32 0.0078125, %v3431_v7 }
0x1768   :  { %v3437_v58 = vadd.f32 1e-06, %v3435_v44 }
0x1769   :  { %v3434_v52 = vpop.xlane.xlu0 %3433 }
0x176a   :  { %5569 = vrsqrt.f32 %v3437_v58  ;;  %v3436_v36 = vmul.f32 0.0078125, %v3434_v52 }
0x176c   :  { %v3438_v28 = vadd.f32 1e-06, %v3436_v36 }
0x176e   :  { %5571 = vrsqrt.f32 %v3438_v28 }
0x1774   :  { %v5570_v4 = vpop.eup %5569 }
0x1775   :  { %v3441_v62 = vmul.f32 %v5570_v4, %v6807_v41  ;;  %v5469_v41 = vld [vmem:[%s7171_s15 + $0x150] sm:$0xff]  }
0x1777   :  { %v3449_v32 = vmul.f32 %v4628_v51, %v3441_v62 }
0x1778   :  { %v5572_v56 = vpop.eup %5571 }
0x1779   :  { %v3442_v59 = vmul.f32 %v5572_v56, %v6812_v40  ;;  %v3457_v60 = vadd.f32 %v4629_v9, %v3449_v32  ;;  %v5473_v40 = vld [vmem:[%s7171_s15 + $0x158] sm:$0xff]  }
0x177b   :  { %v3450_v10 = vmul.f32 %v4628_v51, %v3442_v59 }
0x177d   :  { %v3458_v21 = vadd.f32 %v4629_v9, %v3450_v10 }
0x177f   :  { %v3494_v57 = vpack.c.bf16 %v3458_v21, %v3457_v60 }
0x1781   :  { %3709 = vmatmul.mubr.bf16.vlgmr.msra.gmra.mrb[76].mxu1 %v3494_v57  ;;  %3752 = vmatmul.mubr.bf16.vlgmr.msra.gmra.mrb[40].mxu0 %v3494_v57 }
0x1782   :  { %4978 = vmatpush3.bf16.msra.mxu1 %v5463_v3  ;;  %5000 = vmatpush3.bf16.msra.mxu0 %v5464_v24 }
0x1783   :  { %4979 = vmatprep.subr.bf16.mxu1 %v5465_v38  ;;  %5001 = vmatprep.subr.bf16.mxu0 %v5466_v26 }
0x1786   :  { %4980 = vmatpush3.bf16.msra.mxu1 %v5467_v30  ;;  %5002 = vmatpush3.bf16.msra.mxu0 %v5468_v19 }
0x1787   :  { %4981 = vmatprep.subr.bf16.mxu1 %v5469_v41  ;;  %5003 = vmatprep.subr.bf16.mxu0 %v5470_v11 }
0x178a   :  { %4982 = vmatpush3.bf16.msra.mxu1 %v5471_v1  ;;  %5004 = vmatpush3.bf16.msra.mxu0 %v5472_v42 }
0x178b   :  { %4983 = vmatprep.subr.bf16.mxu1 %v5473_v40  ;;  %5005 = vmatprep.subr.bf16.mxu0 %v5474_v63 }
0x178e   :  { %4984 = vmatpush3.bf16.msra.mxu1 %v5475_v25  ;;  %5006 = vmatpush3.bf16.msra.mxu0 %v5476_v5 }
0x178f   :  { %4985 = vmatprep.subr.bf16.mxu1 %v5477_v23  ;;  %5007 = vmatprep.subr.bf16.mxu0 %v5478_v45 }
0x1792   :  { %4986 = vmatpush3.bf16.msra.mxu1 %v5479_v31  ;;  %5008 = vmatpush3.bf16.msra.mxu0 %v5480_v48 }
0x1793   :  { %4987 = vmatprep.subr.bf16.mxu1 %v5481_v17  ;;  %5009 = vmatprep.subr.bf16.mxu0 %v5482_v27 }
0x1796   :  { %4988 = vmatpush3.bf16.msra.mxu1 %v5483_v54  ;;  %5010 = vmatpush3.bf16.msra.mxu0 %v5484_v61 }
0x1797   :  { %4989 = vmatprep.subr.bf16.mxu1 %v5485_v29  ;;  %5011 = vmatprep.subr.bf16.mxu0 %v5486_v0 }
0x179a   :  { %4990 = vmatpush3.bf16.msra.mxu1 %v5487_v39  ;;  %5012 = vmatpush3.bf16.msra.mxu0 %v5488_v6 }
0x179b   :  { %4991 = vmatprep.subr.bf16.mxu1 %v5489_v33  ;;  %5013 = vmatprep.subr.bf16.mxu0 %v5490_v2 }
0x179e   :  { %4992 = vmatpush3.bf16.msra.mxu1 %v5491_v50  ;;  %5014 = vmatpush3.bf16.msra.mxu0 %v5492_v12 }
0x1854   :  { %v3710_v55 = vpop.f32.mrb[76].mxu1  ;;  %v3753_v13 = vpop.f32.mrb[40].mxu0 }
0x1855   :  { %v3711_v7 = vadd.f32 %v3710_v55, %v3499_v22  ;;  %v7001_v44 = vadd.f32 %v3753_v13, %v3507_v35  ;;  %v3712_v58 = vpop.f32.mrb[77].mxu1  ;;  %v3755_v52 = vpop.f32.mrb[41].mxu0 }
0x1856   :  { %v7003_v36 = vadd.f32 %v3712_v58, %v3503_v46  ;;  %v7005_v28 = vadd.f32 %v3755_v52, %v3511_v34  ;;  %v3714_v4 = vpop.f32.mrb[78].mxu1  ;;  %v3757_v16 = vpop.f32.mrb[42].mxu0 }
0x1857   :  { %v7007_v62 = vmul.f32 0.70710677, %v3711_v7  ;;  %v7010_v18 = vmul.f32 0.70710677, %v7001_v44  ;;  %v3716_v59 = vpop.f32.mrb[79].mxu1  ;;  %v3759_v10 = vpop.f32.mrb[43].mxu0  ;;  %v7022_v3 = vadd.f32 %v3714_v4, %v3499_v22  ;;  %v7027_v26 = vadd.f32 %v3757_v16, %v3507_v35 }
0x1858   :  { %v7013_v15 = vmul.f32 0.70710677, %v7003_v36  ;;  %v7019_v56 = vmul.f32 0.70710677, %v7005_v28  ;;  %v7029_v19 = vadd.f32 %v3716_v59, %v3503_v46  ;;  %v7039_v31 = vadd.f32 %v3759_v10, %v3511_v34 }
0x1859   :  { %v3794_v20 = vand.u32 2147483647, %v7007_v62  ;;  %v3796_v8 = vand.u32 2147483647, %v7010_v18  ;;  %v7025_v38 = vmul.f32 0.70710677, %v7022_v3 }
0x185a   :  { %v3795_v51 = vand.u32 2147483647, %v7013_v15  ;;  %v3797_v43 = vand.u32 2147483647, %v7019_v56  ;;  %v7033_v42 = vmul.f32 0.70710677, %v7027_v26 }
0x185b   :  { %v3802_v32 = vmul.f32 0.3275911, %v3794_v20  ;;  %v3804_v9 = vmul.f32 0.3275911, %v3796_v8  ;;  %v3906_v41 = vmul.f32 %v3794_v20, %v3794_v20  ;;  %v3798_v11 = vand.u32 2147483647, %v7025_v38 }
0x185c   :  { %v3803_v60 = vmul.f32 0.3275911, %v3795_v51  ;;  %v3805_v24 = vmul.f32 0.3275911, %v3797_v43  ;;  %v3908_v1 = vmul.f32 %v3796_v8, %v3796_v8  ;;  %v3907_v63 = vmul.f32 %v3795_v51, %v3795_v51 }
0x185d   :  { %v3810_v21 = vadd.f32 1.0, %v3802_v32  ;;  %v3812_v57 = vadd.f32 1.0, %v3804_v9  ;;  %v3806_v40 = vmul.f32 0.3275911, %v3798_v11  ;;  %v3800_v25 = vand.u32 2147483647, %v7033_v42 }
0x185e   :  { %v3811_v37 = vadd.f32 1.0, %v3803_v60  ;;  %v3813_v30 = vadd.f32 1.0, %v3805_v24  ;;  %v7037_v5 = vmul.f32 0.70710677, %v7029_v19  ;;  %v3914_v23 = vsub.f32 0.0, %v3906_v41 }
0x185f   :  { %5573 = vrcp.f32 %v3810_v21  ;;  %v3814_v45 = vadd.f32 1.0, %v3806_v40  ;;  %v3916_v48 = vsub.f32 0.0, %v3908_v1  ;;  %v3808_v17 = vmul.f32 0.3275911, %v3800_v25 }
0x1860   :  { %5575 = vrcp.f32 %v3812_v57  ;;  %v3799_v27 = vand.u32 2147483647, %v7037_v5  ;;  %v7044_v61 = vmul.f32 0.5, %v3711_v7  ;;  %v3909_v29 = vmul.f32 %v3797_v43, %v3797_v43 }
0x1861   :  { %5577 = vrcp.f32 %v3811_v37  ;;  %v3915_v6 = vsub.f32 0.0, %v3907_v63  ;;  %v3816_v33 = vadd.f32 1.0, %v3808_v17  ;;  %v3922_v50 = vmul.f32 1.442695, %v3914_v23 }
0x1862   :  { %5579 = vrcp.f32 %v3813_v30  ;;  %v3807_v2 = vmul.f32 0.3275911, %v3799_v27  ;;  %v7051_v53 = vmul.f32 0.70710677, %v7039_v31  ;;  %v3926_v35 = vmul.f32 1.442695, %v3916_v48 }
0x1863   :  { %5581 = vrcp.f32 %v3814_v45  ;;  %v7056_v55 = vmul.f32 0.5, %v7001_v44  ;;  %v3917_v7 = vsub.f32 0.0, %v3909_v29  ;;  %v3924_v16 = vmul.f32 1.442695, %v3915_v6 }
0x1864   :  { %5583 = vrcp.f32 %v3816_v33  ;;  %v3815_v46 = vadd.f32 1.0, %v3807_v2  ;;  %v3801_v58 = vand.u32 2147483647, %v7051_v53  ;;  %v3910_v20 = vmul.f32 %v3798_v11, %v3798_v11 }
0x1865   :  { %v3912_v59 = vmul.f32 %v3800_v25, %v3800_v25  ;;  %v3928_v21 = vmul.f32 1.442695, %v3917_v7  ;;  %vm3778_vm0 = vcmp.ge.f32.partialorder %v7007_v62, 0.0  ;;  %v3911_v48 = vmul.f32 %v3799_v27, %v3799_v27 }
0x1866   :  { %5585 = vrcp.f32 %v3815_v46  ;;  %v3809_v32 = vmul.f32 0.3275911, %v3801_v58  ;;  %v3918_v11 = vsub.f32 0.0, %v3910_v20  ;;  %v3913_v20 = vmul.f32 %v3801_v58, %v3801_v58 }
0x1867   :  { %5587 = vpow2.f32 %v3922_v50  ;;  %v3920_v1 = vsub.f32 0.0, %v3912_v59  ;;  %vm3780_vm2 = vcmp.ge.f32.partialorder %v7010_v18, 0.0  ;;  %vm3779_vm3 = vcmp.ge.f32.partialorder %v7013_v15, 0.0 }
0x1868   :  { %5589 = vpow2.f32 %v3926_v35  ;;  %v3817_v57 = vadd.f32 1.0, %v3809_v32  ;;  %v3930_v50 = vmul.f32 1.442695, %v3918_v11  ;;  %vm3782_vm4 = vcmp.ge.f32.partialorder %v7025_v38, 0.0 }
0x1869   :  { %v7042_v54 = vpop.eup %5573  ;;  %5591 = vpow2.f32 %v3924_v16  ;;  %v3919_v16 = vsub.f32 0.0, %v3911_v48  ;;  %v3787_v15 = vsel %vm3779_vm3, 1.0, %v5640_v14  ;;  %vm3784_vm5 = vcmp.ge.f32.partialorder %v7033_v42, 0.0 }
0x186a   :  { %v7046_v0 = vpop.eup %5575  ;;  %v3834_v39 = vmul.f32 1.0614054, %v7042_v54  ;;  %5593 = vrcp.f32 %v3817_v57  ;;  %vm3781_vm6 = vcmp.ge.f32.partialorder %v7019_v56, 0.0  ;;  %vm3783_vm7 = vcmp.ge.f32.partialorder %v7037_v5, 0.0 }
0x186b   :  { %v3836_v12 = vmul.f32 1.0614054, %v7046_v0  ;;  %v7053_v34 = vpop.eup %5577  ;;  %5595 = vpow2.f32 %v3928_v21  ;;  %vm3785_vm8 = vcmp.ge.f32.partialorder %v7051_v53, 0.0  ;;  %v3769_v53 = vmul.f32 0.5, %v7039_v31 }
0x186c   :  { %v3842_v22 = vadd.f32 -1.4531521, %v3834_v39  ;;  %v3835_v4 = vmul.f32 1.0614054, %v7053_v34  ;;  %v7061_v8 = vpop.eup %5579  ;;  %5597 = vpow2.f32 %v3930_v50 }
0x186d   :  { %v3844_v13 = vadd.f32 -1.4531521, %v3836_v12  ;;  %v3837_v10 = vmul.f32 1.0614054, %v7061_v8  ;;  %v7067_v30 = vpop.eup %5581 }
0x186e   :  { %v3850_v52 = vmul.f32 %v7042_v54, %v3842_v22  ;;  %v3843_v44 = vadd.f32 -1.4531521, %v3835_v4  ;;  %v3838_v23 = vmul.f32 1.0614054, %v7067_v30  ;;  %v7073_v17 = vpop.eup %5583  ;;  %v3934_v22 = vmul.f32 1.442695, %v3920_v1 }
0x186f   :  { %v3852_v51 = vmul.f32 %v7046_v0, %v3844_v13  ;;  %v3845_v24 = vadd.f32 -1.4531521, %v3837_v10  ;;  %v3840_v12 = vmul.f32 1.0614054, %v7073_v17 }
0x1870   :  { %v3858_v9 = vadd.f32 1.4214138, %v3850_v52  ;;  %v3851_v37 = vmul.f32 %v7053_v34, %v3843_v44  ;;  %v3846_v33 = vadd.f32 -1.4531521, %v3838_v23  ;;  %v7081_v7 = vpop.eup %5585  ;;  %5599 = vpow2.f32 %v3934_v22 }
0x1871   :  { %v3860_v60 = vadd.f32 1.4214138, %v3852_v51  ;;  %v3853_v25 = vmul.f32 %v7061_v8, %v3845_v24  ;;  %v3848_v4 = vadd.f32 -1.4531521, %v3840_v12  ;;  %v5588_v51 = vpop.eup %5587  ;;  %v3839_v21 = vmul.f32 1.0614054, %v7081_v7 }
0x1872   :  { %v3866_v43 = vmul.f32 %v7042_v54, %v3858_v9  ;;  %v3859_v63 = vadd.f32 1.4214138, %v3851_v37  ;;  %v3854_v27 = vmul.f32 %v7067_v30, %v3846_v33  ;;  %v5590_v10 = vpop.eup %5589  ;;  %v3921_v23 = vsub.f32 0.0, %v3913_v20 }
0x1873   :  { %v3868_v41 = vmul.f32 %v7046_v0, %v3860_v60  ;;  %v3861_v6 = vadd.f32 1.4214138, %v3853_v25  ;;  %v3856_v60 = vmul.f32 %v7073_v17, %v3848_v4  ;;  %v5592_v57 = vpop.eup %5591  ;;  %v3847_v1 = vadd.f32 -1.4531521, %v3839_v21 }
0x1874   :  { %v3874_v40 = vadd.f32 -0.28449672, %v3866_v43  ;;  %v3867_v39 = vmul.f32 %v7053_v34, %v3859_v63  ;;  %v3862_v44 = vadd.f32 1.4214138, %v3854_v27  ;;  %v7091_v24 = vpop.eup %5593  ;;  %v3932_v25 = vmul.f32 1.442695, %v3919_v16 }
0x1875   :  { %v3876_v45 = vadd.f32 -0.28449672, %v3868_v41  ;;  %v3869_v13 = vmul.f32 %v7061_v8, %v3861_v6  ;;  %v3786_v41 = vsel %vm3778_vm0, 1.0, %v5640_v14  ;;  %v3864_v11 = vadd.f32 1.4214138, %v3856_v60 }
0x1876   :  { %v3882_v29 = vmul.f32 %v7042_v54, %v3874_v40  ;;  %v3875_v46 = vadd.f32 -0.28449672, %v3867_v39  ;;  %v3841_v39 = vmul.f32 1.0614054, %v7091_v24  ;;  %5601 = vpow2.f32 %v3932_v25 }
0x1877   :  { %v3884_v2 = vmul.f32 %v7046_v0, %v3876_v45  ;;  %v3877_v9 = vadd.f32 -0.28449672, %v3869_v13  ;;  %v5596_v45 = vpop.eup %5595  ;;  %v3872_v48 = vmul.f32 %v7073_v17, %v3864_v11  ;;  %v3936_v18 = vmul.f32 1.442695, %v3921_v23 }
0x1878   :  { %v3890_v35 = vadd.f32 0.2548296, %v3882_v29  ;;  %v3883_v32 = vmul.f32 %v7053_v34, %v3875_v46  ;;  %v3855_v29 = vmul.f32 %v7081_v7, %v3847_v1  ;;  %v3849_v22 = vadd.f32 -1.4531521, %v3841_v39  ;;  %v5598_v20 = vpop.eup %5597 }
0x1879   :  { %v3892_v52 = vadd.f32 0.2548296, %v3884_v2  ;;  %v3885_v58 = vmul.f32 %v7061_v8, %v3877_v9  ;;  %v3880_v50 = vadd.f32 -0.28449672, %v3872_v48  ;;  %5603 = vpow2.f32 %v3936_v18 }
0x187a   :  { %v3898_v59 = vmul.f32 %v7042_v54, %v3890_v35  ;;  %v3891_v37 = vadd.f32 0.2548296, %v3883_v32  ;;  %v3870_v54 = vmul.f32 %v7067_v30, %v3862_v44  ;;  %v3863_v12 = vadd.f32 1.4214138, %v3855_v29  ;;  %v5600_v60 = vpop.eup %5599 }
0x187b   :  { %v3900_v43 = vmul.f32 %v7046_v0, %v3892_v52  ;;  %v3788_v0 = vsel %vm3780_vm2, 1.0, %v5640_v14  ;;  %v3893_v33 = vadd.f32 0.2548296, %v3885_v58  ;;  %v3888_v13 = vmul.f32 %v7073_v17, %v3880_v50 }
0x187c   :  { %v3938_v40 = vmul.f32 %v5588_v51, %v3898_v59  ;;  %v3878_v63 = vadd.f32 -0.28449672, %v3870_v54  ;;  %v3899_v6 = vmul.f32 %v7053_v34, %v3891_v37  ;;  %v3871_v27 = vmul.f32 %v7081_v7, %v3863_v12 }
0x187d   :  { %v3940_v62 = vmul.f32 %v5590_v10, %v3900_v43  ;;  %v3857_v52 = vmul.f32 %v7091_v24, %v3849_v22  ;;  %v3901_v51 = vmul.f32 %v7061_v8, %v3893_v33  ;;  %v3896_v59 = vadd.f32 0.2548296, %v3888_v13 }
0x187e   :  { %v3886_v2 = vmul.f32 %v7067_v30, %v3878_v63  ;;  %v3946_v35 = vsub.f32 1.0, %v3938_v40  ;;  %v3939_v34 = vmul.f32 %v5592_v57, %v3899_v6  ;;  %v3879_v32 = vadd.f32 -0.28449672, %v3871_v27 }
0x187f   :  { %v3948_v4 = vsub.f32 1.0, %v3940_v62  ;;  %v3865_v9 = vadd.f32 1.4214138, %v3857_v52  ;;  %v3790_v21 = vsel %vm3782_vm4, 1.0, %v5640_v14  ;;  %v3904_v57 = vmul.f32 %v7073_v17, %v3896_v59 }
0x1880   :  { %v3894_v46 = vadd.f32 0.2548296, %v3886_v2  ;;  %v3954_v44 = vmul.f32 %v3946_v35, %v3786_v41  ;;  %v3887_v38 = vmul.f32 %v7081_v7, %v3879_v32  ;;  %v3947_v37 = vsub.f32 1.0, %v3939_v34  ;;  %v5602_v48 = vpop.eup %5601 }
0x1881   :  { %v3956_v43 = vmul.f32 %v3948_v4, %v3788_v0  ;;  %v3941_v58 = vmul.f32 %v5596_v45, %v3901_v51  ;;  %v3944_v54 = vmul.f32 %v5600_v60, %v3904_v57  ;;  %v3766_v40 = vmul.f32 0.5, %v7022_v3 }
0x1882   :  { %v3902_v16 = vmul.f32 %v7067_v30, %v3894_v46  ;;  %v3873_v30 = vmul.f32 %v7091_v24, %v3865_v9  ;;  %v3895_v41 = vadd.f32 0.2548296, %v3887_v38  ;;  %v3962_v1 = vadd.f32 1.0, %v3954_v44 }
0x1883   :  { %v3792_v17 = vsel %vm3784_vm5, 1.0, %v5640_v14  ;;  %v3952_v25 = vsub.f32 1.0, %v3944_v54  ;;  %v3964_v29 = vadd.f32 1.0, %v3956_v43  ;;  %v3955_v42 = vmul.f32 %v3947_v37, %v3787_v15  ;;  %v5604_v5 = vpop.eup %5603 }
0x1884   :  { %v3942_v10 = vmul.f32 %v5598_v20, %v3902_v16  ;;  %v3881_v11 = vadd.f32 -0.28449672, %v3873_v30  ;;  %v3903_v23 = vmul.f32 %v7081_v7, %v3895_v41  ;;  %v3949_v39 = vsub.f32 1.0, %v3941_v58 }
0x1885   :  { %v3960_v62 = vmul.f32 %v3952_v25, %v3792_v17  ;;  %v3970_v3 = vmul.f32 %v3962_v1, %v7044_v61  ;;  %v3789_v2 = vsel %vm3781_vm6, 1.0, %v5640_v14  ;;  %v3768_v7 = vmul.f32 0.5, %v7027_v26 }
0x1886   :  { %v3950_v8 = vsub.f32 1.0, %v3942_v10  ;;  %v3889_v0 = vmul.f32 %v7091_v24, %v3881_v11  ;;  %v3943_v6 = vmul.f32 %v5602_v48, %v3903_v23  ;;  %v3791_v22 = vsel %vm3783_vm7, 1.0, %v5640_v14 }
0x1887   :  { %v3968_v12 = vadd.f32 1.0, %v3960_v62  ;;  %v3972_v18 = vmul.f32 %v3964_v29, %v7056_v55  ;;  %v3963_v13 = vadd.f32 1.0, %v3955_v42  ;;  %v3957_v61 = vmul.f32 %v3949_v39, %v3789_v2 }
0x1888   :  { %v3958_v63 = vmul.f32 %v3950_v8, %v3790_v21  ;;  %v3897_v33 = vadd.f32 0.2548296, %v3889_v0  ;;  %v3951_v35 = vsub.f32 1.0, %v3943_v6  ;;  %v3763_v34 = vmul.f32 0.5, %v7003_v36 }
0x1889   :  { %v3976_v52 = vmul.f32 %v3968_v12, %v3768_v7  ;;  %v3767_v16 = vmul.f32 0.5, %v7029_v19  ;;  %v3965_v32 = vadd.f32 1.0, %v3957_v61  ;;  %v3765_v44 = vmul.f32 0.5, %v7005_v28 }
0x188a   :  { %v3966_v45 = vadd.f32 1.0, %v3958_v63  ;;  %v3905_v46 = vmul.f32 %v7091_v24, %v3897_v33  ;;  %v3959_v56 = vmul.f32 %v3951_v35, %v3791_v22  ;;  %v3793_v24 = vsel %vm3785_vm8, 1.0, %v5640_v14  ;;  %v4760_v14 = vld [vmem:[%s7172_s16 + $0x1] ss:$0 sm:$0xff]  ;;  %v4793_v22 = vld [vmem:[%s7173_s17] ss:$0 sm:$0xff] }
0x188b   :  { %v4047_v26 = vpack.c.bf16 %v3976_v52, %v3972_v18  ;;  %v3971_v59 = vmul.f32 %v3963_v13, %v3763_v34  ;;  %v3973_v60 = vmul.f32 %v3965_v32, %v3765_v44 }
0x188c   :  { %v3974_v50 = vmul.f32 %v3966_v45, %v3766_v40  ;;  %v3945_v4 = vmul.f32 %v5604_v5, %v3905_v46  ;;  %v3967_v20 = vadd.f32 1.0, %v3959_v56  ;;  %v4794_v46 = vld [vmem:[%s7174_s18] ss:$0 sm:$0xff] }
0x188e   :  { %v4045_v27 = vpack.c.bf16 %v3974_v50, %v3970_v3  ;;  %v3953_v51 = vsub.f32 1.0, %v3945_v4  ;;  %v3975_v55 = vmul.f32 %v3967_v20, %v3767_v16 }
0x1890   :  { %v3961_v9 = vmul.f32 %v3953_v51, %v3793_v24  ;;  %v4046_v10 = vpack.c.bf16 %v3975_v55, %v3971_v59 }
0x1892   :  { %v3969_v15 = vadd.f32 1.0, %v3961_v9  ;;  %4279 = vmatprep.mubr.bf16.mxu1 %v4046_v10 }
0x1893   :  { %4280 = vmatmul.mubr.bf16.vlgmr.msra.gmra.mrb[80].mxu1 %v4045_v27 }
0x1894   :  { %v3977_v21 = vmul.f32 %v3969_v15, %v3769_v53 }
0x1896   :  { %v4048_v36 = vpack.c.bf16 %v3977_v21, %v3973_v60 }
0x1898   :  { %4320 = vmatprep.mubr.bf16.mxu0 %v4048_v36 }
0x1899   :  { %4321 = vmatmul.mubr.bf16.vlgmr.msra.gmra.mrb[44].mxu0 %v4047_v26 }
0x1966   :  { %v4993_v19 = vpop.f32.mrb[80].mxu1 }
0x1967   :  { %v4994_v57 = vpop.f32.mrb[81].mxu1 }
0x1968   :  { %v4995_v38 = vadd.f32 %v4994_v57, %v4993_v19  ;;  %v4996_v30 = vpop.f32.mrb[82].mxu1 }
0x1969   :  { %v4997_v28 = vpop.f32.mrb[83].mxu1 }
0x196a   :  { %v4282_v31 = vadd.f32 %v4995_v38, %v4760_v14  ;;  %v4998_v37 = vadd.f32 %v4997_v28, %v4996_v30 }
0x196c   :  { %v5015_v43 = vpop.f32.mrb[44].mxu0  ;;  %v4285_v41 = vadd.f32 %v4998_v37, %v4760_v14 }
0x196d   :  { %v5016_v8 = vpop.f32.mrb[45].mxu0 }
0x196e   :  { %v5017_v58 = vadd.f32 %v5016_v8, %v5015_v43  ;;  %v5018_v54 = vpop.f32.mrb[46].mxu0 }
0x196f   :  { %v5019_v11 = vpop.f32.mrb[47].mxu0 }
0x1970   :  { %v4323_v1 = vadd.f32 %v5017_v58, %v4282_v31  ;;  %v5020_v40 = vadd.f32 %v5019_v11, %v5018_v54 }
0x1972   :  { %v4326_v63 = vadd.f32 %v5020_v40, %v4285_v41  ;;  %v4329_v17 = vadd.f32 %v4323_v1, %v6774_v49 }
0x1974   :  { %4333 = vadd.xlane.f32.xlu1 %v4329_v17  ;;  %v4330_v25 = vadd.f32 %v4326_v63, %v6777_v47 }
0x1976   :  { %v4335_v23 = vsel %vm621_vm1, %v4330_v25, 0.0 }
0x1977   :  { %4336 = vadd.xlane.f32.xlu0 %v4335_v23 }
0x1a01   :  { %v4334_v0 = vpop.xlane.xlu1 %4333 }
0x1a02   :  { %v4338_v48 = vmul.f32 0.0078125, %v4334_v0 }
0x1a04   :  { %v4340_v29 = vsub.f32 %v4329_v17, %v4338_v48  ;;  %v4337_v42 = vpop.xlane.xlu0 %4336 }
0x1a05   :  { %v4339_v45 = vmul.f32 0.0078125, %v4337_v42 }
0x1a06   :  { %v4342_v39 = vmul.f32 %v4340_v29, %v4340_v29 }
0x1a07   :  { %v4341_v62 = vsub.f32 %v4330_v25, %v4339_v45 }
0x1a08   :  { %4344 = vadd.xlane.f32.xlu0 %v4342_v39 }
0x1a09   :  { %v4343_v6 = vmul.f32 %v4341_v62, %v4341_v62 }
0x1a0b   :  { %v4346_v33 = vsel %vm621_vm1, %v4343_v6, 0.0 }
0x1a0c   :  { %4347 = vadd.xlane.f32.xlu1 %v4346_v33 }
0x1a95   :  { %v4345_v3 = vpop.xlane.xlu0 %4344 }
0x1a96   :  { %v4349_v49 = vmul.f32 0.0078125, %v4345_v3 }
0x1a98   :  { %v4351_v2 = vadd.f32 1e-06, %v4349_v49 }
0x1a99   :  { %v4348_v50 = vpop.xlane.xlu1 %4347 }
0x1a9a   :  { %5605 = vrsqrt.f32 %v4351_v2  ;;  %v4350_v47 = vmul.f32 0.0078125, %v4348_v50 }
0x1a9c   :  { %v4352_v7 = vadd.f32 1e-06, %v4350_v47 }
0x1a9e   :  { %5607 = vrsqrt.f32 %v4352_v7 }
0x1aa4   :  { %v5606_v12 = vpop.eup %5605 }
0x1aa5   :  { %v4355_v35 = vmul.f32 %v5606_v12, %v4340_v29 }
0x1aa7   :  { %v4363_v5 = vmul.f32 %v4793_v22, %v4355_v35 }
0x1aa8   :  { %v5608_v18 = vpop.eup %5607 }
0x1aa9   :  { %v4371_v13 = vadd.f32 %v4794_v46, %v4363_v5  ;;  %v4356_v27 = vmul.f32 %v5608_v18, %v4341_v62 }
0x1aab   :  { %v4797_v61 = vpack.c.bf16 %v4371_v13, %v4371_v13  ;;  %v4364_v52 = vmul.f32 %v4793_v22, %v4356_v27 }
0x1aad   :  { %4381 = vst [vmem:[%s7175_s19] sm:$0xf] %v4797_v61  ;;  %v4372_v56 = vadd.f32 %v4794_v46, %v4364_v52 }
0x1aaf   :  { %v4798_v4 = vpack.c.bf16 %v4372_v56, %v4372_v56 }
0x1ab1   :  { %4382 = vst [vmem:[%s7175_s19 + $0x4] sm:$0x1] %v4798_v4 }
0x1ab2   :  { %4387 = vsyncpa [#allocation3], 1 }

// kernel: blip_decoder_forward.3
= control target key start
LH: loop header
LB: loop body
LE: loop exit
PB: predicated region body
PF: predicated region fallthrough
CT: control target
= control target key end

     0   :  { %s8585_s6 = smov 1   ;;  %s8586_s10 = smov 2   ;;  %s10091_s0 = inlined_call_operand.smem [shape: u32[30], index: -1, kind: input, shape index: {}] }
   0x1   :  { %s8649_s5 = sld [smem:[%s10091_s0]]   ;;  %s8587_s14 = smov 3  }
   0x2   :  { %s8654_s9 = sld [smem:[%s10091_s0 + %s8585_s6]]   ;;  %s8588_s18 = smov 4  }
   0x3   :  { %s8659_s13 = sld [smem:[%s10091_s0 + %s8586_s10]]   ;;  %s8589_s22 = smov 5  }
   0x4   :  { %s8664_s17 = sld [smem:[%s10091_s0 + %s8587_s14]]   ;;  %s8590_s26 = smov 6  }
   0x5   :  { %s8669_s21 = sld [smem:[%s10091_s0 + %s8588_s18]]   ;;  %s8591_s30 = smov 7  }
   0x6   :  { %s8674_s25 = sld [smem:[%s10091_s0 + %s8589_s22]]   ;;  %s8592_s4 = smov 8  }
   0x7   :  { %s8679_s29 = sld [smem:[%s10091_s0 + %s8590_s26]]   ;;  %s8593_s10 = smov 9  }
   0x8   :  { %10102 = sst [smem:[#allocation36_spill]] %s8654_s9  ;;  %s8594_s15 = smov 10  }
   0x9   :  { %10103 = sst [smem:[#allocation37_spill]] %s8659_s13  ;;  %s8595_s20 = smov 11  }
   0xa   :  { %10104 = sst [smem:[#allocation38_spill]] %s8664_s17  ;;  %s8596_s26 = smov 12  }
   0xb   :  { %10105 = sst [smem:[#allocation39_spill]] %s8669_s21  ;;  %s8597_s1 = smov 13  }
   0xc   :  { %s8684_s3 = sld [smem:[%s10091_s0 + %s8591_s30]]   ;;  %s8598_s7 = smov 14  }
   0xd   :  { %s8689_s8 = sld [smem:[%s10091_s0 + %s8592_s4]]   ;;  %s8600_s22 = smov 16  }
   0xe   :  { %s8694_s14 = sld [smem:[%s10091_s0 + %s8593_s10]]   ;;  %s8601_s28 = smov 17  }
   0xf   :  { %s8699_s19 = sld [smem:[%s10091_s0 + %s8594_s15]]   ;;  %s8599_s15 = smov 15  }
  0x10   :  { %s8704_s24 = sld [smem:[%s10091_s0 + %s8595_s20]]  }
  0x11   :  { %s8709_s30 = sld [smem:[%s10091_s0 + %s8596_s26]]  }
  0x12   :  { %10106 = sst [smem:[#allocation40_spill]] %s8684_s3 }
  0x13   :  { %10107 = sst [smem:[#allocation41_spill]] %s8689_s8 }
  0x14   :  { %s8714_s6 = sld [smem:[%s10091_s0 + %s8597_s1]]  }
  0x15   :  { %s8719_s12 = sld [smem:[%s10091_s0 + %s8598_s7]]   ;;  %s8602_s7 = smov 18  }
  0x16   :  { %s8724_s20 = sld [smem:[%s10091_s0 + %s8599_s15]]   ;;  %s8603_s15 = smov 19  }
  0x17   :  { %s8729_s27 = sld [smem:[%s10091_s0 + %s8600_s22]]   ;;  %s8604_s22 = smov 20  }
  0x18   :  { %s8734_s4 = sld [smem:[%s10091_s0 + %s8601_s28]]   ;;  %s8605_s28 = smov 21  }
  0x19   :  { %s8739_s21 = sld [smem:[%s10091_s0 + %s8602_s7]]   ;;  %s8606_s7 = smov 22  }
  0x1a   :  { %s8754_s17 = sld [smem:[%s10091_s0 + %s8605_s28]]   ;;  %s8609_s28 = smov 25  }
  0x1b   :  { %s8759_s8 = sld [smem:[%s10091_s0 + %s8606_s7]]   ;;  %s8610_s7 = smov 26  }
  0x1c   :  { %10108 = sst [smem:[#allocation42_spill]] %s8724_s20 }
  0x1d   :  { %10109 = sst [smem:[#allocation43_spill]] %s8729_s27 }
  0x1e   :  { %s8744_s20 = sld [smem:[%s10091_s0 + %s8603_s15]]   ;;  %s8607_s15 = smov 23  }
  0x1f   :  { %s8749_s27 = sld [smem:[%s10091_s0 + %s8604_s22]]   ;;  %s8608_s22 = smov 24  }
  0x20   :  { %10110 = sst [smem:[#allocation44_spill]] %s8754_s17 }
  0x21   :  { %10111 = sst [smem:[#allocation45_spill]] %s8759_s8 }
  0x22   :  { %s8764_s3 = sld [smem:[%s10091_s0 + %s8607_s15]]   ;;  %s8611_s15 = smov 27  }
  0x23   :  { %s8769_s9 = sld [smem:[%s10091_s0 + %s8608_s22]]   ;;  %s8612_s22 = smov 28  }
  0x24   :  { %s8774_s17 = sld [smem:[%s10091_s0 + %s8609_s28]]   ;;  %s8613_s28 = smov 29  }
  0x25   :  { %s8779_s8 = sld [smem:[%s10091_s0 + %s8610_s7]]  }
  0x26   :  { %s8789_s13 = sld [smem:[%s10091_s0 + %s8612_s22]]  }
  0x28   :  { %10112 = sst [smem:[#allocation46_spill]] %s8764_s3 }
  0x29   :  { %10113 = sst [smem:[#allocation47_spill]] %s8769_s9 }
  0x2a   :  { %s8784_s3 = sld [smem:[%s10091_s0 + %s8611_s15]]  }
  0x2b   :  { %s8794_s9 = sld [smem:[%s10091_s0 + %s8613_s28]]  }
  0x2c   :  { %64 = vsyncpa [#allocation4], 0 }
  0x2d   :  { %65 = vsyncpa [#allocation3], 0 }
  0x2e   :  { %66 = vsyncpa [#allocation7], 0 }
  0x2f   :  { %67 = vsyncpa [#allocation10], 0 }
  0x30   :  { %68 = vsyncpa [#allocation13], 0 }
  0x31   :  { %69 = vsyncpa [#allocation16], 0 }
  0x32   :  { %70 = vsyncpa [#allocation19], 0 }
  0x33   :  { %71 = vsyncpa [#allocation22], 0 }
  0x34   :  { %72 = vsyncpa [#allocation25], 0  ;;  %s8614_s7 = smov [#allocation6]   ;;  %s8615_s11 = smov [#allocation9]  }
  0x35   :  { %s107_s10 = sshll.u32 %s8614_s7, 4  ;;  %s132_s15 = sshll.u32 %s8615_s11, 4  ;;  %s108_s10 = int_to_ptr.vmem [resolvable:$true] %s107_s10  ;;  %s8796_s15 = int_to_ptr.vmem [resolvable:$true] %s132_s15 }
  0x36   :  { %s8225_s0 = scalar_lea.hbm %s8679_s29, 16 }
  0x37   :  { %p8226_p0 = scmp.ne.s32.totalorder %s8679_s29, %s8225_s0  ;;  %p8229_p1 = scmp.lt.u32.totalorder %s8225_s0, %s8679_s29 }
  0x39   :  { %p8231_p2 = pnand %p8229_p1, %p8226_p0 }
  0x3b   :  { %8234 = shalt.err (!%p8231_p2)
}
  0x3c   :  { %s8235_s16 = scalar_lea.vmem %s108_s10, 16  ;;  %s8239_s18 = scalar_lea.vmem %s108_s10, 32 }
  0x3d   :  { %p8236_p3 = scmp.ne.s32.totalorder %s108_s10, %s8235_s16  ;;  %p8240_p4 = scmp.lt.s32.totalorder %s108_s10, %s108_s10 }
  0x3e   :  { %p8241_p5 = scmp.lt.s32.totalorder %s8239_s18, %s8235_s16 }
  0x40   :  { %p8242_p6 = por %p8241_p5, %p8240_p4 }
  0x42   :  { %p8243_p7 = pnand %p8242_p6, %p8236_p3 }
  0x44   :  { %8246 = shalt.err (!%p8243_p7)
}
  0x45   :  { %110 = dma.hbm_to_vmem [thread:$0]  %s8679_s29, 16, %s108_s10, [#allocation7]  }
  0x46   :  { %s8247_s22 = scalar_lea.hbm %s8699_s19, 32 }
  0x47   :  { %p8248_p8 = scmp.ne.s32.totalorder %s8699_s19, %s8247_s22  ;;  %p8251_p9 = scmp.lt.u32.totalorder %s8247_s22, %s8699_s19 }
  0x49   :  { %p8253_p10 = pnand %p8251_p9, %p8248_p8 }
  0x4b   :  { %8256 = shalt.err (!%p8253_p10)
}
  0x4c   :  { %s8257_s23 = scalar_lea.vmem %s8796_s15, 32  ;;  %p8262_p12 = scmp.lt.s32.totalorder %s8796_s15, %s8796_s15 }
  0x4d   :  { %p8258_p11 = scmp.ne.s32.totalorder %s8796_s15, %s8257_s23  ;;  %p8263_p13 = scmp.lt.s32.totalorder %s8257_s23, %s8257_s23 }
  0x4f   :  { %p8264_p0 = por %p8263_p13, %p8262_p12 }
  0x51   :  { %p8265_p1 = pnand %p8264_p0, %p8258_p11 }
  0x53   :  { %8268 = shalt.err (!%p8265_p1)
}
  0x54   :  { %s8616_s26 = smov 16   ;;  %s8617_s29 = smov 1  }
  0x55   :  { %138 = dma.hbm_to_vmem [thread:$0]  %s8699_s19, 32, %s8796_s15, [#allocation10], %s8616_s26, %s8616_s26, %s8617_s29  }
  0x56   :  { %s8618_s28 = smov [#allocation12]   ;;  %s8619_s2 = smov [#allocation15]  }
  0x57   :  { %s156_s1 = sshll.u32 %s8618_s28, 4  ;;  %s180_s7 = sshll.u32 %s8619_s2, 4  ;;  %s157_s1 = int_to_ptr.vmem [resolvable:$true] %s156_s1  ;;  %s8814_s7 = int_to_ptr.vmem [resolvable:$true] %s180_s7 }
  0x58   :  { %s8269_s10 = scalar_lea.hbm %s8709_s30, 32 }
  0x59   :  { %p8270_p2 = scmp.ne.s32.totalorder %s8709_s30, %s8269_s10  ;;  %p8273_p3 = scmp.lt.u32.totalorder %s8269_s10, %s8709_s30 }
  0x5b   :  { %p8275_p4 = pnand %p8273_p3, %p8270_p2 }
  0x5d   :  { %8278 = shalt.err (!%p8275_p4)
}
  0x5e   :  { %s8279_s11 = scalar_lea.vmem %s157_s1, 32  ;;  %p8284_p6 = scmp.lt.s32.totalorder %s157_s1, %s157_s1 }
  0x5f   :  { %p8280_p5 = scmp.ne.s32.totalorder %s157_s1, %s8279_s11  ;;  %p8285_p7 = scmp.lt.s32.totalorder %s8279_s11, %s8279_s11 }
  0x61   :  { %p8286_p8 = por %p8285_p7, %p8284_p6 }
  0x63   :  { %p8287_p9 = pnand %p8286_p8, %p8280_p5 }
  0x65   :  { %8290 = shalt.err (!%p8287_p9)
}
  0x66   :  { %162 = dma.hbm_to_vmem [thread:$0]  %s8709_s30, 32, %s157_s1, [#allocation13], %s8616_s26, %s8616_s26, %s8617_s29  }
  0x67   :  { %s8291_s19 = scalar_lea.hbm %s8719_s12, 32 }
  0x68   :  { %p8292_p10 = scmp.ne.s32.totalorder %s8719_s12, %s8291_s19  ;;  %p8295_p11 = scmp.lt.u32.totalorder %s8291_s19, %s8719_s12 }
  0x6a   :  { %p8297_p12 = pnand %p8295_p11, %p8292_p10 }
  0x6c   :  { %8300 = shalt.err (!%p8297_p12)
}
  0x6d   :  { %s8301_s15 = scalar_lea.vmem %s8814_s7, 32  ;;  %p8306_p0 = scmp.lt.s32.totalorder %s8814_s7, %s8814_s7 }
  0x6e   :  { %p8302_p13 = scmp.ne.s32.totalorder %s8814_s7, %s8301_s15  ;;  %p8307_p1 = scmp.lt.s32.totalorder %s8301_s15, %s8301_s15 }
  0x70   :  { %p8308_p2 = por %p8307_p1, %p8306_p0 }
  0x72   :  { %p8309_p3 = pnand %p8308_p2, %p8302_p13 }
  0x74   :  { %8312 = shalt.err (!%p8309_p3)
}
  0x75   :  { %186 = dma.hbm_to_vmem [thread:$0]  %s8719_s12, 32, %s8814_s7, [#allocation16], %s8616_s26, %s8616_s26, %s8617_s29  }
  0x76   :  { %s8620_s30 = smov [#allocation18]   ;;  %s8621_s16 = smov [#allocation21]  }
  0x77   :  { %s208_s0 = sshll.u32 %s8620_s30, 4  ;;  %s232_s18 = sshll.u32 %s8621_s16, 4  ;;  %s209_s0 = int_to_ptr.vmem [resolvable:$true] %s208_s0  ;;  %s8835_s18 = int_to_ptr.vmem [resolvable:$true] %s232_s18 }
  0x78   :  { %s8313_s22 = scalar_lea.hbm %s8739_s21, 32 }
  0x79   :  { %p8314_p4 = scmp.ne.s32.totalorder %s8739_s21, %s8313_s22  ;;  %p8317_p5 = scmp.lt.u32.totalorder %s8313_s22, %s8739_s21 }
  0x7b   :  { %p8319_p6 = pnand %p8317_p5, %p8314_p4 }
  0x7d   :  { %8322 = shalt.err (!%p8319_p6)
}
  0x7e   :  { %s8323_s23 = scalar_lea.vmem %s209_s0, 32  ;;  %p8328_p8 = scmp.lt.s32.totalorder %s209_s0, %s209_s0 }
  0x7f   :  { %p8324_p7 = scmp.ne.s32.totalorder %s209_s0, %s8323_s23  ;;  %p8329_p9 = scmp.lt.s32.totalorder %s8323_s23, %s8323_s23 }
  0x81   :  { %p8330_p10 = por %p8329_p9, %p8328_p8 }
  0x83   :  { %p8331_p11 = pnand %p8330_p10, %p8324_p7 }
  0x85   :  { %8334 = shalt.err (!%p8331_p11)
}
  0x86   :  { %214 = dma.hbm_to_vmem [thread:$0]  %s8739_s21, 32, %s209_s0, [#allocation19], %s8616_s26, %s8616_s26, %s8617_s29  }
  0x87   :  { %s8335_s12 = scalar_lea.hbm %s8749_s27, 32 }
  0x88   :  { %p8336_p12 = scmp.ne.s32.totalorder %s8749_s27, %s8335_s12  ;;  %p8339_p13 = scmp.lt.u32.totalorder %s8335_s12, %s8749_s27 }
  0x8a   :  { %p8341_p0 = pnand %p8339_p13, %p8336_p12 }
  0x8c   :  { %8344 = shalt.err (!%p8341_p0)
}
  0x8d   :  { %s8345_s28 = scalar_lea.vmem %s8835_s18, 32  ;;  %p8350_p2 = scmp.lt.s32.totalorder %s8835_s18, %s8835_s18 }
  0x8e   :  { %p8346_p1 = scmp.ne.s32.totalorder %s8835_s18, %s8345_s28  ;;  %p8351_p3 = scmp.lt.s32.totalorder %s8345_s28, %s8345_s28 }
  0x90   :  { %p8352_p4 = por %p8351_p3, %p8350_p2 }
  0x92   :  { %p8353_p5 = pnand %p8352_p4, %p8346_p1 }
  0x94   :  { %8356 = shalt.err (!%p8353_p5)
}
  0x95   :  { %238 = dma.hbm_to_vmem [thread:$0]  %s8749_s27, 32, %s8835_s18, [#allocation22], %s8616_s26, %s8616_s26, %s8617_s29  }
  0x96   :  { %s79_s21 = sshll.u32 %s8649_s5, 4  ;;  %s8622_s1 = smov [#allocation24]   ;;  %s80_s21 = int_to_ptr.vmem [resolvable:$true] %s79_s21 }
  0x97   :  { %s262_s2 = sshll.u32 %s8622_s1, 4  ;;  %s8357_s7 = scalar_lea.hbm %s8774_s17, 32  ;;  %s263_s2 = int_to_ptr.vmem [resolvable:$true] %s262_s2 }
  0x98   :  { %p8358_p6 = scmp.ne.s32.totalorder %s8774_s17, %s8357_s7  ;;  %p8361_p7 = scmp.lt.u32.totalorder %s8357_s7, %s8774_s17 }
  0x9a   :  { %p8363_p8 = pnand %p8361_p7, %p8358_p6 }
  0x9c   :  { %8366 = shalt.err (!%p8363_p8)
}
  0x9d   :  { %s8367_s10 = scalar_lea.vmem %s263_s2, 32  ;;  %p8372_p10 = scmp.lt.s32.totalorder %s263_s2, %s263_s2 }
  0x9e   :  { %p8368_p9 = scmp.ne.s32.totalorder %s263_s2, %s8367_s10  ;;  %p8373_p11 = scmp.lt.s32.totalorder %s8367_s10, %s8367_s10 }
  0xa0   :  { %p8374_p12 = por %p8373_p11, %p8372_p10 }
  0xa2   :  { %p8375_p13 = pnand %p8374_p12, %p8368_p9 }
  0xa4   :  { %8378 = shalt.err (!%p8375_p13)
}
  0xa5   :  { %268 = dma.hbm_to_vmem [thread:$0]  %s8774_s17, 32, %s263_s2, [#allocation25], %s8616_s26, %s8616_s26, %s8617_s29  }
  0xa6   :  { %s8379_s5 = scalar_lea.vmem %s80_s21, 16  ;;  %p8384_p1 = scmp.lt.s32.totalorder %s80_s21, %s80_s21 }
  0xa7   :  { %p8380_p0 = scmp.ne.s32.totalorder %s80_s21, %s8379_s5  ;;  %p8385_p2 = scmp.lt.s32.totalorder %s8379_s5, %s8379_s5 }
  0xa9   :  { %p8386_p3 = por %p8385_p2, %p8384_p1 }
  0xab   :  { %p8387_p4 = pnand %p8386_p3, %p8380_p0 }
  0xad   :  { %8390 = shalt.err (!%p8387_p4)
}
  0xae   :  { %s8623_s27 = smov [#allocation2]   ;;  %s8624_s11 = smov [#allocation5]  }
  0xaf   :  { %82 = dma.vmem_to_smem %s80_s21, 16, %s8623_s27, [#allocation4]  }
  0xb0   :  { %s97_s19 = sshll.u32 %s8624_s11, 4  ;;  %s8625_s15 = smov [#allocation8]   ;;  %s98_s19 = int_to_ptr.vmem [resolvable:$true] %s97_s19 }
  0xb1   :  { %s120_s30 = sshll.u32 %s8625_s15, 4  ;;  %s8391_s17 = scalar_lea.hbm %s8674_s25, 16  ;;  %s8864_s30 = int_to_ptr.vmem [resolvable:$true] %s120_s30 }
  0xb2   :  { %p8392_p5 = scmp.ne.s32.totalorder %s8674_s25, %s8391_s17  ;;  %p8395_p6 = scmp.lt.u32.totalorder %s8391_s17, %s8674_s25 }
  0xb4   :  { %p8397_p7 = pnand %p8395_p6, %p8392_p5 }
  0xb6   :  { %8400 = shalt.err (!%p8397_p7)
}
  0xb7   :  { %s8401_s0 = scalar_lea.vmem %s98_s19, 16  ;;  %s8405_s16 = scalar_lea.vmem %s98_s19, 32 }
  0xb8   :  { %p8402_p8 = scmp.ne.s32.totalorder %s98_s19, %s8401_s0  ;;  %p8406_p9 = scmp.lt.s32.totalorder %s98_s19, %s98_s19 }
  0xb9   :  { %p8407_p10 = scmp.lt.s32.totalorder %s8405_s16, %s8401_s0 }
  0xbb   :  { %p8408_p11 = por %p8407_p10, %p8406_p9 }
  0xbd   :  { %p8409_p12 = pnand %p8408_p11, %p8402_p8 }
  0xbf   :  { %8412 = shalt.err (!%p8409_p12)
}
  0xc0   :  { %100 = dma.hbm_to_vmem [thread:$0]  %s8674_s25, 16, %s98_s19, [#allocation3]  }
  0xc1   :  { %s8413_s18 = scalar_lea.hbm %s8694_s14, 2048 }
  0xc2   :  { %p8414_p13 = scmp.ne.s32.totalorder %s8694_s14, %s8413_s18  ;;  %p8417_p0 = scmp.lt.u32.totalorder %s8413_s18, %s8694_s14 }
  0xc4   :  { %p8419_p1 = pnand %p8417_p0, %p8414_p13 }
  0xc6   :  { %8422 = shalt.err (!%p8419_p1)
}
  0xc7   :  { %s8423_s22 = scalar_lea.vmem %s8864_s30, 2048  ;;  %p8428_p3 = scmp.lt.s32.totalorder %s8864_s30, %s8864_s30 }
  0xc8   :  { %p8424_p2 = scmp.ne.s32.totalorder %s8864_s30, %s8423_s22  ;;  %p8429_p4 = scmp.lt.s32.totalorder %s8423_s22, %s8423_s22 }
  0xca   :  { %p8430_p5 = por %p8429_p4, %p8428_p3 }
  0xcc   :  { %p8431_p6 = pnand %p8430_p5, %p8424_p2 }
  0xce   :  { %8434 = shalt.err (!%p8431_p6)
}
  0xcf   :  { %s8626_s23 = smov 64   ;;  %s8627_s25 = smov 4  }
  0xd0   :  { %126 = dma.hbm_to_vmem [thread:$0]  %s8694_s14, 2048, %s8864_s30, [#allocation7], %s8626_s23, %s8626_s23, %s8627_s25  }
  0xd1   :  { %s8628_s12 = smov [#allocation11]   ;;  %s8629_s21 = smov [#allocation14]  }
  0xd2   :  { %s144_s28 = sshll.u32 %s8628_s12, 4  ;;  %s168_s1 = sshll.u32 %s8629_s21, 4  ;;  %s145_s28 = int_to_ptr.vmem [resolvable:$true] %s144_s28  ;;  %s8882_s1 = int_to_ptr.vmem [resolvable:$true] %s168_s1 }
  0xd3   :  { %s8435_s2 = scalar_lea.hbm %s8704_s24, 32 }
  0xd4   :  { %p8436_p7 = scmp.ne.s32.totalorder %s8704_s24, %s8435_s2  ;;  %p8439_p8 = scmp.lt.u32.totalorder %s8435_s2, %s8704_s24 }
  0xd6   :  { %p8441_p9 = pnand %p8439_p8, %p8436_p7 }
  0xd8   :  { %8444 = shalt.err (!%p8441_p9)
}
  0xd9   :  { %s8445_s7 = scalar_lea.vmem %s145_s28, 32  ;;  %p8450_p11 = scmp.lt.s32.totalorder %s145_s28, %s145_s28 }
  0xda   :  { %p8446_p10 = scmp.ne.s32.totalorder %s145_s28, %s8445_s7  ;;  %p8451_p12 = scmp.lt.s32.totalorder %s8445_s7, %s8445_s7 }
  0xdc   :  { %p8452_p13 = por %p8451_p12, %p8450_p11 }
  0xde   :  { %p8453_p0 = pnand %p8452_p13, %p8446_p10 }
  0xe0   :  { %8456 = shalt.err (!%p8453_p0)
}
  0xe1   :  { %150 = dma.hbm_to_vmem [thread:$0]  %s8704_s24, 32, %s145_s28, [#allocation10], %s8616_s26, %s8616_s26, %s8617_s29  }
  0xe2   :  { %s8457_s14 = scalar_lea.hbm %s8714_s6, 2048 }
  0xe3   :  { %p8458_p1 = scmp.ne.s32.totalorder %s8714_s6, %s8457_s14  ;;  %p8461_p2 = scmp.lt.u32.totalorder %s8457_s14, %s8714_s6 }
  0xe5   :  { %p8463_p3 = pnand %p8461_p2, %p8458_p1 }
  0xe7   :  { %8466 = shalt.err (!%p8463_p3)
}
  0xe8   :  { %s8467_s10 = scalar_lea.vmem %s8882_s1, 2048  ;;  %p8472_p5 = scmp.lt.s32.totalorder %s8882_s1, %s8882_s1 }
  0xe9   :  { %p8468_p4 = scmp.ne.s32.totalorder %s8882_s1, %s8467_s10  ;;  %p8473_p6 = scmp.lt.s32.totalorder %s8467_s10, %s8467_s10 }
  0xeb   :  { %p8474_p7 = por %p8473_p6, %p8472_p5 }
  0xed   :  { %p8475_p8 = pnand %p8474_p7, %p8468_p4 }
  0xef   :  { %8478 = shalt.err (!%p8475_p8)
}
  0xf0   :  { %174 = dma.hbm_to_vmem [thread:$0]  %s8714_s6, 2048, %s8882_s1, [#allocation13], %s8626_s23, %s8626_s23, %s8627_s25  }
  0xf1   :  { %s8630_s24 = smov [#allocation17]   ;;  %s8631_s27 = smov [#allocation20]  }
  0xf2   :  { %s196_s5 = sshll.u32 %s8630_s24, 4  ;;  %s220_s11 = sshll.u32 %s8631_s27, 4  ;;  %s197_s5 = int_to_ptr.vmem [resolvable:$true] %s196_s5  ;;  %s8903_s11 = int_to_ptr.vmem [resolvable:$true] %s220_s11 }
  0xf3   :  { %s8479_s19 = scalar_lea.hbm %s8734_s4, 2048 }
  0xf4   :  { %p8480_p9 = scmp.ne.s32.totalorder %s8734_s4, %s8479_s19  ;;  %p8483_p10 = scmp.lt.u32.totalorder %s8479_s19, %s8734_s4 }
  0xf6   :  { %p8485_p11 = pnand %p8483_p10, %p8480_p9 }
  0xf8   :  { %8488 = shalt.err (!%p8485_p11)
}
  0xf9   :  { %s8489_s15 = scalar_lea.vmem %s197_s5, 2048  ;;  %p8494_p13 = scmp.lt.s32.totalorder %s197_s5, %s197_s5 }
  0xfa   :  { %p8490_p12 = scmp.ne.s32.totalorder %s197_s5, %s8489_s15  ;;  %p8495_p0 = scmp.lt.s32.totalorder %s8489_s15, %s8489_s15 }
  0xfc   :  { %p8496_p1 = por %p8495_p0, %p8494_p13 }
  0xfe   :  { %p8497_p2 = pnand %p8496_p1, %p8490_p12 }
 0x100   :  { %8500 = shalt.err (!%p8497_p2)
}
 0x101   :  { %202 = dma.hbm_to_vmem [thread:$0]  %s8734_s4, 2048, %s197_s5, [#allocation16], %s8626_s23, %s8626_s23, %s8627_s25  }
 0x102   :  { %s8501_s6 = scalar_lea.hbm %s8744_s20, 32 }
 0x103   :  { %p8502_p3 = scmp.ne.s32.totalorder %s8744_s20, %s8501_s6  ;;  %p8505_p4 = scmp.lt.u32.totalorder %s8501_s6, %s8744_s20 }
 0x105   :  { %p8507_p5 = pnand %p8505_p4, %p8502_p3 }
 0x107   :  { %8510 = shalt.err (!%p8507_p5)
}
 0x108   :  { %s8511_s30 = scalar_lea.vmem %s8903_s11, 32  ;;  %p8516_p7 = scmp.lt.s32.totalorder %s8903_s11, %s8903_s11 }
 0x109   :  { %p8512_p6 = scmp.ne.s32.totalorder %s8903_s11, %s8511_s30  ;;  %p8517_p8 = scmp.lt.s32.totalorder %s8511_s30, %s8511_s30 }
 0x10b   :  { %p8518_p9 = por %p8517_p8, %p8516_p7 }
 0x10d   :  { %p8519_p10 = pnand %p8518_p9, %p8512_p6 }
 0x10f   :  { %8522 = shalt.err (!%p8519_p10)
}
 0x110   :  { %s10114_s4 = sld [smem:[#allocation47_spill]]  ;;  %s8632_s17 = smov [#allocation23]  }
 0x111   :  { %226 = dma.hbm_to_vmem [thread:$0]  %s8744_s20, 32, %s8903_s11, [#allocation19], %s8616_s26, %s8616_s26, %s8617_s29  }
 0x112   :  { %s250_s0 = sshll.u32 %s8632_s17, 4  ;;  %s8633_s16 = smov [#allocation26]   ;;  %s251_s0 = int_to_ptr.vmem [resolvable:$true] %s250_s0 }
 0x113   :  { %s274_s18 = sshll.u32 %s8633_s16, 4  ;;  %s8924_s18 = int_to_ptr.vmem [resolvable:$true] %s274_s18 }
 0x116   :  { %s8523_s22 = scalar_lea.hbm %s10114_s4, 32 }
 0x117   :  { %p8524_p11 = scmp.ne.s32.totalorder %s10114_s4, %s8523_s22  ;;  %p8527_p12 = scmp.lt.u32.totalorder %s8523_s22, %s10114_s4 }
 0x119   :  { %p8529_p13 = pnand %p8527_p12, %p8524_p11 }
 0x11b   :  { %8532 = shalt.err (!%p8529_p13)
}
 0x11c   :  { %s8533_s25 = scalar_lea.vmem %s251_s0, 32  ;;  %p8538_p1 = scmp.lt.s32.totalorder %s251_s0, %s251_s0 }
 0x11d   :  { %p8534_p0 = scmp.ne.s32.totalorder %s251_s0, %s8533_s25  ;;  %p8539_p2 = scmp.lt.s32.totalorder %s8533_s25, %s8533_s25 }
 0x11f   :  { %p8540_p3 = por %p8539_p2, %p8538_p1 }
 0x121   :  { %p8541_p4 = pnand %p8540_p3, %p8534_p0 }
 0x123   :  { %8544 = shalt.err (!%p8541_p4)
}
 0x124   :  { %256 = dma.hbm_to_vmem [thread:$0]  %s10114_s4, 32, %s251_s0, [#allocation22], %s8616_s26, %s8616_s26, %s8617_s29  }
 0x125   :  { %s8545_s20 = scalar_lea.hbm %s8779_s8, 32 }
 0x126   :  { %p8546_p5 = scmp.ne.s32.totalorder %s8779_s8, %s8545_s20  ;;  %p8549_p6 = scmp.lt.u32.totalorder %s8545_s20, %s8779_s8 }
 0x128   :  { %p8551_p7 = pnand %p8549_p6, %p8546_p5 }
 0x12a   :  { %8554 = shalt.err (!%p8551_p7)
}
 0x12b   :  { %s8555_s12 = scalar_lea.vmem %s8924_s18, 32  ;;  %p8560_p9 = scmp.lt.s32.totalorder %s8924_s18, %s8924_s18 }
 0x12c   :  { %p8556_p8 = scmp.ne.s32.totalorder %s8924_s18, %s8555_s12  ;;  %p8561_p10 = scmp.lt.s32.totalorder %s8555_s12, %s8555_s12 }
 0x12e   :  { %p8562_p11 = por %p8561_p10, %p8560_p9 }
 0x130   :  { %p8563_p12 = pnand %p8562_p11, %p8556_p8 }
 0x132   :  { %8566 = shalt.err (!%p8563_p12)
}
 0x133   :  { %280 = dma.hbm_to_vmem [thread:$0]  %s8779_s8, 32, %s8924_s18, [#allocation25], %s8616_s26, %s8616_s26, %s8617_s29  }
 0x134   :  { %8567 = dma.done.wait [#allocation4], 16  }
 0x135   :  { %8568 = vsyncadd [#allocation4], 4294967280 }
 0x136   :  { %8569 = dma.done.wait [#allocation3], 16  }
 0x137   :  { %8570 = vsyncadd [#allocation3], 4294967280 }
 0x138   :  { %8571 = dma.done.wait [#allocation7], 2064  }
 0x139   :  { %8572 = vsyncadd [#allocation7], 4294965232 }
 0x13a   :  { %8573 = dma.done.wait [#allocation10], 64  }
 0x13b   :  { %8574 = vsyncadd [#allocation10], 4294967232 }
 0x13c   :  { %8575 = dma.done.wait [#allocation13], 2080  }
 0x13d   :  { %8576 = vsyncadd [#allocation13], 4294965216 }
 0x13e   :  { %8577 = dma.done.wait [#allocation16], 2080  }
 0x13f   :  { %8578 = vsyncadd [#allocation16], 4294965216 }
 0x140   :  { %8579 = dma.done.wait [#allocation19], 64  }
 0x141   :  { %8580 = vsyncadd [#allocation19], 4294967232 }
 0x142   :  { %8581 = dma.done.wait [#allocation22], 64  }
 0x143   :  { %8582 = vsyncadd [#allocation22], 4294967232 }
 0x144   :  { %8583 = dma.done.wait [#allocation25], 64  }
 0x145   :  { %8584 = vsyncadd [#allocation25], 4294967232 }
 0x146   :  { %333 = sfence }
 0x147   :  { %s10115_s8 = sld [smem:[#allocation37_spill]]  ;;  %s10116_s26 = sld [smem:[#allocation36_spill]]  ;;  %v8634_v7 = vmov 0.0   ;;  %v8635_v33 = vmov 0   ;;  %vm8636_vm0 = vmmov 0   ;;  %v381_v56 = vlaneseq }
 0x148   :  { %s10117_s29 = sld [smem:[#allocation40_spill]]  ;;  %7319 = vmatprep.subr.bf16.mxu1 %v8634_v7  ;;  %615 = vmatprep.mubr.bf16.mxu0 %v8635_v33  ;;  %v6570_v47 = vld [vmem:[#allocation5] ss:$0 sm:$0xff]  ;;  %s10118_s28 = sld [smem:[#allocation41_spill]]  ;;  %v6571_v51 = vld [vmem:[#allocation6] ss:$0 sm:$0xff] }
 0x149   :  { %7335 = vmatprep.mubr.msk.bf16.mxu1 %vm8636_vm0, %v8634_v7  ;;  %v9005_v57 = vshrl.u32 %v381_v56, 7  ;;  %vm685_vm1 = vcmask 523264   ;;  %s10119_s21 = sld [smem:[#allocation38_spill]]  ;;  %vm810_vm2 = vcmask 1043456   ;;  %vm782_vm9 = vcmask 64512   ;;  %s10120_s1 = sld [smem:[#allocation42_spill]] }
 0x14a   :  { %s10121_s2 = sld [smem:[#allocation39_spill]]  ;;  %s10122_s7 = sld [smem:[#allocation43_spill]]  ;;  %vm1705_vm10 = vcmask 1041408   ;;  %vm1706_vm11 = vcmask 1042432   ;;  %vm1677_vm12 = vcmask 39936  }
 0x14b   :  { %v9008_v58 = vsub.s32 0, %v9005_v57  ;;  %v9011_v59 = vsub.s32 2, %v9005_v57  ;;  %v9015_v61 = vsub.s32 1, %v9005_v57  ;;  %s10123_s14 = sld [smem:[#allocation44_spill]]  ;;  %s10124_s10 = sld [smem:[#allocation46_spill]] }
 0x14c   :  { %s10125_s24 = sld [smem:[#allocation45_spill]]  ;;  %s7029_s5 = sld [smem:[#allocation2 + $0x1]] }
 0x14d   :  { %v335_v0 = vld [vmem:[%s10115_s8] sm:$0xff]  ;;  %v337_v2 = vld [vmem:[%s10116_s26 + $0x8] sm:$0xff] }
 0x14e   :  { %v336_v1 = vld [vmem:[%s10116_s26] sm:$0xff]  ;;  %v339_v4 = vadd.f32 %v337_v2, %v335_v0  ;;  %v7750_v8 = vld [vmem:[%s10117_s29 + $0x8] ss:$12 sps:$4 sm:$0xff]   ;;  %v7757_v21 = vld [vmem:[%s10117_s29 + $0x30] ss:$12 sps:$4 sm:$0xff]  }
 0x14f   :  { %v338_v3 = vadd.f32 %v336_v1, %v335_v0  ;;  %v7747_v5 = vld [vmem:[%s10117_s29 + $0x4] ss:$12 sps:$4 sm:$0xff]   ;;  %v7749_v6 = vld [vmem:[%s10117_s29] ss:$12 sps:$4 sm:$0xff]   ;;  %v7751_v9 = vld [vmem:[%s10117_s29 + $0x1c] ss:$12 sps:$4 sm:$0xff]   ;;  %7320 = vmatpush3.bf16.msra.mxu1 %v7750_v8 }
 0x150   :  { %583 = vmatprep.subr.bf16.mxu0 %v7747_v5  ;;  %7321 = vmatprep.subr.bf16.mxu1 %v8634_v7  ;;  %v7753_v18 = vld [vmem:[%s10117_s29 + $0x18] ss:$12 sps:$4 sm:$0xff]   ;;  %v7754_v19 = vld [vmem:[%s10117_s29 + $0x20] ss:$12 sps:$4 sm:$0xff]   ;;  %v7761_v24 = vld [vmem:[%s10117_s29 + $0x48] ss:$12 sps:$4 sm:$0xff]  }
 0x151   :  { %342 = vadd.xlane.f32.xlu0 %v338_v3  ;;  %584 = vmatpush1.bf16.msra.mxu0 %v7749_v6  ;;  %v7755_v20 = vld [vmem:[%s10117_s29 + $0x34] ss:$12 sps:$4 sm:$0xff]   ;;  %v7758_v22 = vld [vmem:[%s10117_s29 + $0x38] ss:$12 sps:$4 sm:$0xff]   ;;  %v7762_v25 = vld [vmem:[%s10117_s29 + $0x50] ss:$12 sps:$4 sm:$0xff]  }
 0x152   :  { %585 = vmatprep.subr.bf16.mxu0 %v7751_v9  ;;  %v7759_v23 = vld [vmem:[%s10117_s29 + $0x4c] ss:$12 sps:$4 sm:$0xff]   ;;  %v7763_v26 = vld [vmem:[%s10117_s29 + $0x64] ss:$12 sps:$4 sm:$0xff]   ;;  %v7766_v28 = vld [vmem:[%s10117_s29 + $0x68] ss:$12 sps:$4 sm:$0xff]  }
 0x153   :  { %7322 = vmatpush3.bf16.msra.mxu1 %v7754_v19  ;;  %v7765_v27 = vld [vmem:[%s10117_s29 + $0x60] ss:$12 sps:$4 sm:$0xff]   ;;  %v7767_v29 = vld [vmem:[%s10117_s29 + $0x7c] ss:$12 sps:$4 sm:$0xff]   ;;  %v7769_v30 = vld [vmem:[%s10117_s29 + $0x78] ss:$12 sps:$4 sm:$0xff]  }
 0x154   :  { %7323 = vmatprep.subr.bf16.mxu1 %v8634_v7  ;;  %v7770_v31 = vld [vmem:[%s10117_s29 + $0x80] ss:$12 sps:$4 sm:$0xff]   ;;  %v7773_v34 = vld [vmem:[%s10117_s29 + $0x90] ss:$12 sps:$4 sm:$0xff]   ;;  %v7774_v35 = vld [vmem:[%s10117_s29 + $0x98] ss:$12 sps:$4 sm:$0xff]  }
 0x155   :  { %344 = vadd.xlane.f32.xlu0 %v339_v4  ;;  %586 = vmatpush1.bf16.msra.mxu0 %v7753_v18  ;;  %v7771_v32 = vld [vmem:[%s10117_s29 + $0x94] ss:$12 sps:$4 sm:$0xff]   ;;  %v7775_v36 = vld [vmem:[%s10117_s29 + $0xac] ss:$12 sps:$4 sm:$0xff]   ;;  %v7778_v38 = vld [vmem:[%s10117_s29 + $0xb0] ss:$12 sps:$4 sm:$0xff]  }
 0x156   :  { %587 = vmatprep.subr.bf16.mxu0 %v7755_v20  ;;  %v7777_v37 = vld [vmem:[%s10117_s29 + $0xa8] ss:$12 sps:$4 sm:$0xff]   ;;  %v437_v60 = vld [vmem:[%s10118_s28] sm:$0x7]  ;;  %s7030_s11 = sadd.s32 4294967294, %s7029_s5 }
 0x157   :  { %7324 = vmatpush3.bf16.msra.mxu1 %v7758_v22  ;;  %v443_v62 = vrot.slane %v437_v60, %v9008_v58  ;;  %v451_v63 = vrot.slane %v437_v60, %v9011_v59  ;;  %v447_v0 = vrot.slane %v437_v60, %v9015_v61 }
 0x158   :  { %7325 = vmatprep.subr.bf16.mxu1 %v8634_v7 }
 0x159   :  { %588 = vmatpush1.bf16.msra.mxu0 %v7757_v21 }
 0x15a   :  { %589 = vmatprep.subr.bf16.mxu0 %v7759_v23 }
 0x15b   :  { %7326 = vmatpush3.bf16.msra.mxu1 %v7762_v25  ;;  %v384_v25 = vand.u32 127, %v381_v56 }
 0x15c   :  { %7327 = vmatprep.subr.bf16.mxu1 %v8634_v7 }
 0x15d   :  { %590 = vmatpush1.bf16.msra.mxu0 %v7761_v24  ;;  %v385_v24 = vld [vmem:[%s10119_s21] sm:$0x3]  ;;  %vm386_vm4 = vcmp.le.s32.totalorder %v384_v25, %v9005_v57 }
 0x15e   :  { %591 = vmatprep.subr.bf16.mxu0 %v7763_v26  ;;  %vm387_vm3 = vcmp.gt.f32.partialorder %v385_v24, 0.0 }
 0x15f   :  { %7328 = vmatpush3.bf16.msra.mxu1 %v7766_v28  ;;  %v388_v26 = vsel %vm387_vm3, 1, %v8635_v33  ;;  %v8637_v28 = vmov -10000.0  }
 0x160   :  { %7329 = vmatprep.subr.bf16.mxu1 %v8634_v7 }
 0x161   :  { %592 = vmatpush1.bf16.msra.mxu0 %v7765_v27  ;;  %v399_v27 = vrot.slane %v388_v26, %v9015_v61 }
 0x162   :  { %593 = vmatprep.subr.bf16.mxu0 %v7767_v29 }
 0x163   :  { %7330 = vmatpush3.bf16.msra.mxu1 %v7770_v31  ;;  %vm400_vm5 = vcmp.eq.s32.totalorder %v399_v27, 1 }
 0x164   :  { %7331 = vmatprep.subr.bf16.mxu1 %v8634_v7  ;;  %vm401_vm6 = vmand %vm386_vm4, %vm400_vm5 }
 0x165   :  { %594 = vmatpush1.bf16.msra.mxu0 %v7769_v30  ;;  %v9050_v29 = vsel %vm401_vm6, 0.0, %v8637_v28 }
 0x166   :  { %595 = vmatprep.subr.bf16.mxu0 %v7771_v32 }
 0x167   :  { %7332 = vmatpush3.bf16.msra.mxu1 %v7774_v35 }
 0x168   :  { %7333 = vmatprep.subr.bf16.mxu1 %v8634_v7 }
 0x169   :  { %596 = vmatpush1.bf16.msra.mxu0 %v7773_v34 }
 0x16a   :  { %597 = vmatprep.subr.bf16.mxu0 %v7775_v36 }
 0x16b   :  { %7334 = vmatpush3.bf16.msra.mxu1 %v7778_v38  ;;  %v392_v38 = vrot.slane %v388_v26, %v9008_v58 }
 0x16c   :  { %7339 = vmatprep.subr.bf16.mxu1 %v8634_v7 }
 0x16d   :  { %598 = vmatpush1.bf16.msra.mxu0 %v7777_v37  ;;  %vm393_vm7 = vcmp.eq.s32.totalorder %v392_v38, 1 }
 0x16e   :  { %7363 = vmatprep.subr.bf16.mxu0 %v8634_v7  ;;  %vm394_vm8 = vmand %vm386_vm4, %vm393_vm7 }
 0x1de   :  { %v343_v10 = vpop.xlane.xlu0 %342 }
 0x1df   :  { %v347_v11 = vmul.f32 0.0078125, %v343_v10 }
 0x1e1   :  { %v8954_v12 = vsub.f32 %v338_v3, %v347_v11 }
 0x1e2   :  { %v345_v13 = vpop.xlane.xlu0 %344 }
 0x1e3   :  { %v348_v14 = vmul.f32 0.0078125, %v345_v13  ;;  %v351_v15 = vmul.f32 %v8954_v12, %v8954_v12 }
 0x1e5   :  { %v8958_v16 = vsub.f32 %v339_v4, %v348_v14  ;;  %353 = vadd.xlane.f32.xlu1 %v351_v15 }
 0x1e7   :  { %v352_v17 = vmul.f32 %v8958_v16, %v8958_v16 }
 0x1e9   :  { %355 = vadd.xlane.f32.xlu1 %v352_v17 }
 0x272   :  { %v354_v39 = vpop.xlane.xlu1 %353 }
 0x273   :  { %v357_v40 = vmul.f32 0.0078125, %v354_v39 }
 0x275   :  { %v359_v41 = vadd.f32 1e-12, %v357_v40  ;;  %v9064_v40 = vsel %vm394_vm8, 0.0, %v8637_v28 }
 0x276   :  { %v356_v42 = vpop.xlane.xlu1 %355 }
 0x277   :  { %8068 = vrsqrt.f32 %v359_v41  ;;  %v358_v43 = vmul.f32 0.0078125, %v356_v42 }
 0x279   :  { %v360_v44 = vadd.f32 1e-12, %v358_v43 }
 0x27b   :  { %8070 = vrsqrt.f32 %v360_v44 }
 0x281   :  { %v8069_v45 = vpop.eup %8068 }
 0x282   :  { %v363_v46 = vmul.f32 %v8069_v45, %v8954_v12 }
 0x284   :  { %v371_v50 = vmul.f32 %v6570_v47, %v363_v46 }
 0x285   :  { %v8071_v48 = vpop.eup %8070 }
 0x286   :  { %v364_v49 = vmul.f32 %v8071_v48, %v8958_v16  ;;  %v8995_v53 = vadd.f32 %v6571_v51, %v371_v50 }
 0x288   :  { %v372_v52 = vmul.f32 %v6570_v47, %v364_v49 }
 0x28a   :  { %v8997_v54 = vadd.f32 %v6571_v51, %v372_v52 }
 0x28c   :  { %v438_v55 = vpack.c.bf16 %v8997_v54, %v8995_v53 }
 0x28e   :  { %616 = vmatmul.mubr.bf16.vlgmr.msra.gmra.mrb[0].mxu0 %v438_v55  ;;  %7336 = vmatmul.mubr.bf16.vlgmr.msra.gmra.mrb[0].mxu1 %v438_v55 }
 0x28f   :  { %7341 = vmatprep.mubr.msk.bf16.mxu1 %vm8636_vm0, %v8634_v7  ;;  %7365 = vmatprep.mubr.msk.bf16.mxu0 %vm8636_vm0, %v8634_v7 }
 0x361   :  { %v617_v1 = vpop.f32.mrb[0].mxu0  ;;  %v660_v2 = vpop.f32.mrb[0].mxu1 }
 0x362   :  { %v618_v3 = vadd.f32 %v617_v1, %v443_v62  ;;  %v9020_v4 = vadd.f32 %v660_v2, %v451_v63  ;;  %v619_v5 = vpop.f32.mrb[1].mxu0  ;;  %v7337_v6 = vpop.f32.mrb[1].mxu1 }
 0x363   :  { %v620_v8 = vadd.f32 %v619_v5, %v447_v0  ;;  %v621_v9 = vpop.f32.mrb[2].mxu0  ;;  %v663_v10 = vpop.f32.mrb[2].mxu1 }
 0x364   :  { %v623_v11 = vpop.f32.mrb[3].mxu0  ;;  %v7338_v12 = vpop.f32.mrb[3].mxu1  ;;  %668 = vrot.lane.b32.xlu1 %v618_v3, %s8626_s23  ;;  %v9025_v17 = vadd.f32 %v663_v10, %v451_v63  ;;  %v9029_v19 = vadd.f32 %v621_v9, %v443_v62  ;;  %v671_v20 = vpack.c.bf16 %v618_v3, %v618_v3  ;;  %v683_v35 = vpack.c.bf16 %v9020_v4, %v9020_v4 }
 0x365   :  { %v677_v13 = vpack.c.bf16 %v620_v8, %v620_v8  ;;  %v624_v14 = vadd.f32 %v623_v11, %v447_v0  ;;  %674 = vrot.lane.b32.xlu0 %v620_v8, %s8626_s23 }
 0x366   :  { %v921_v21 = vpack.c.bf16 %v9025_v17, %v9025_v17  ;;  %v909_v22 = vpack.c.bf16 %v9029_v19, %v9029_v19  ;;  %v812_v37 = vsel %vm810_vm2, %v683_v35, 0 }
 0x367   :  { %v915_v15 = vpack.c.bf16 %v624_v14, %v624_v14  ;;  %v690_v16 = vsel %vm685_vm1, %v677_v13, 0 }
 0x368   :  { %7340 = vmatpush3.bf16.xpose.msra.mxu1 %v690_v16  ;;  %v1047_v23 = vsel %vm810_vm2, %v921_v21, 0 }
 0x369   :  { %v927_v18 = vsel %vm685_vm1, %v915_v15, 0  ;;  %7345 = vmatprep.subr.bf16.mxu1 %v8634_v7 }
 0x36a   :  { %7364 = vmatpush3.bf16.xpose.msra.mxu0 %v927_v18 }
 0x36b   :  { %7375 = vmatprep.subr.bf16.mxu0 %v8634_v7 }
 0x36f   :  { %7342 = vmatmul.mubr.msk.bf16.vlgmr.msra.gmra.mrb[4].mxu1 %vm685_vm1, %v671_v20 }
 0x370   :  { %7347 = vmatprep.mubr.msk.bf16.mxu1 %vm8636_vm0, %v8634_v7 }
 0x371   :  { %7366 = vmatmul.mubr.msk.bf16.vlgmr.msra.gmra.mrb[4].mxu0 %vm685_vm1, %v909_v22 }
 0x372   :  { %7376 = vmatpush3.bf16.msra.mxu0 %v1047_v23  ;;  %7377 = vmatprep.mubr.msk.bf16.mxu0 %vm8636_vm0, %v8634_v7 }
 0x373   :  { %7387 = vmatprep.subr.bf16.mxu0 %v8634_v7 }
 0x3d6   :  { %v669_v34 = vpop.permute.xlu1 %668 }
 0x3d7   :  { %v675_v30 = vpop.permute.xlu0 %674  ;;  %v672_v36 = vpack.c.bf16 %v669_v34, %v669_v34 }
 0x3d8   :  { %v678_v31 = vpack.c.bf16 %v675_v30, %v675_v30 }
 0x3da   :  { %v736_v32 = vsel %vm685_vm1, %v678_v31, 0 }
 0x3db   :  { %7346 = vmatpush3.bf16.xpose.msra.mxu1 %v736_v32 }
 0x3dc   :  { %7351 = vmatprep.subr.bf16.mxu1 %v8634_v7 }
 0x3e2   :  { %7348 = vmatmul.mubr.msk.bf16.vlgmr.msra.gmra.mrb[8].mxu1 %vm685_vm1, %v672_v36 }
 0x3e3   :  { %7352 = vmatpush3.bf16.msra.mxu1 %v812_v37  ;;  %7353 = vmatprep.mubr.msk.bf16.mxu1 %vm8636_vm0, %v8634_v7 }
 0x3e4   :  { %7357 = vmatprep.subr.bf16.mxu1 %v8634_v7 }
 0x442   :  { %v726_v39 = vpop.f32.mrb[4].mxu1 }
 0x443   :  { %v778_v41 = vmul.f32 0.125, %v726_v39  ;;  %v7343_v42 = vpop.f32.mrb[5].mxu1 }
 0x444   :  { %v729_v43 = vpop.f32.mrb[6].mxu1  ;;  %v963_v44 = vpop.f32.mrb[4].mxu0 }
 0x445   :  { %v7344_v45 = vpop.f32.mrb[7].mxu1  ;;  %v7367_v46 = vpop.f32.mrb[5].mxu0  ;;  %v780_v47 = vadd.f32 %v778_v41, %v9064_v40  ;;  %v1015_v6 = vmul.f32 0.125, %v963_v44 }
 0x446   :  { %v966_v48 = vpop.f32.mrb[6].mxu0 }
 0x447   :  { %v7368_v49 = vpop.f32.mrb[7].mxu0  ;;  %v783_v50 = vsel %vm782_vm9, %v780_v47, -inf  ;;  %v1017_v8 = vadd.f32 %v1015_v6, %v9050_v29 }
 0x448   :  { %784 = vmax.xlane.f32.xlu1 %v783_v50 }
 0x449   :  { %v1019_v9 = vsel %vm782_vm9, %v1017_v8, -inf }
 0x459   :  { %912 = vrot.lane.b32.xlu1 %v624_v14, %s8626_s23 }
 0x4b5   :  { %v772_v51 = vpop.f32.mrb[8].mxu1 }
 0x4b6   :  { %v779_v52 = vmul.f32 0.125, %v772_v51  ;;  %v7349_v55 = vpop.f32.mrb[9].mxu1 }
 0x4b7   :  { %v775_v56 = vpop.f32.mrb[10].mxu1 }
 0x4b8   :  { %v7350_v60 = vpop.f32.mrb[11].mxu1  ;;  %v781_v62 = vadd.f32 %v779_v52, %v9064_v40 }
 0x4ba   :  { %v786_v63 = vsel %vm782_vm9, %v781_v62, -inf }
 0x4bb   :  { %787 = vmax.xlane.f32.xlu0 %v786_v63 }
 0x4d5   :  { %v785_v0 = vpop.xlane.xlu1 %784 }
 0x4d6   :  { %v789_v1 = vsub.f32 %v780_v47, %v785_v0 }
 0x4d8   :  { %v791_v2 = vmul.f32 1.442695, %v789_v1 }
 0x4d9   :  { %v913_v23 = vpop.permute.xlu1 %912 }
 0x4da   :  { %8072 = vpow2.f32 %v791_v2  ;;  %v916_v25 = vpack.c.bf16 %v913_v23, %v913_v23  ;;  %v7784_v23 = vld [vmem:[#allocation8 + $0x28] sm:$0xff]  }
 0x4dc   :  { %v973_v28 = vsel %vm685_vm1, %v916_v25, 0 }
 0x4e4   :  { %v8073_v3 = vpop.eup %8072 }
 0x4e5   :  { %v795_v5 = vsel %vm782_vm9, %v8073_v3, 0.0 }
 0x4e6   :  { %796 = vadd.xlane.f32.xlu0 %v795_v5 }
 0x4fc   :  { %680 = vrot.lane.b32.xlu0 %v9020_v4, %s8626_s23 }
 0x51b   :  { %1020 = vmax.xlane.f32.xlu0 %v1019_v9 }
 0x548   :  { %v788_v10 = vpop.xlane.xlu0 %787 }
 0x549   :  { %v790_v11 = vsub.f32 %v781_v62, %v788_v10 }
 0x54b   :  { %v793_v12 = vmul.f32 1.442695, %v790_v11 }
 0x54d   :  { %8074 = vpow2.f32 %v793_v12 }
 0x557   :  { %v8075_v13 = vpop.eup %8074 }
 0x558   :  { %v798_v14 = vsel %vm782_vm9, %v8075_v13, 0.0 }
 0x559   :  { %799 = vadd.xlane.f32.xlu1 %v798_v14 }
 0x56a   :  { %906 = vrot.lane.b32.xlu1 %v9029_v19, %s8626_s23 }
 0x573   :  { %v797_v15 = vpop.xlane.xlu0 %796 }
 0x574   :  { %8076 = vrcp.f32 %v797_v15 }
 0x577   :  { %v681_v4 = vpop.permute.xlu0 %680 }
 0x578   :  { %v684_v20 = vpack.c.bf16 %v681_v4, %v681_v4 }
 0x57a   :  { %v858_v22 = vsel %vm810_vm2, %v684_v20, 0  ;;  %v7781_v20 = vld [vmem:[#allocation8 + $0x10] sm:$0xff]  }
 0x57e   :  { %v8077_v16 = vpop.eup %8076 }
 0x57f   :  { %v803_v18 = vmul.f32 %v8077_v16, %v8073_v3  ;;  %v7779_v16 = vld [vmem:[#allocation8] sm:$0xff]  }
 0x581   :  { %v805_v21 = vpack.c.bf16 %v803_v18, %v803_v18  ;;  %v7780_v18 = vld [vmem:[#allocation8 + $0x8] sm:$0xff]  }
 0x583   :  { %7354 = vmatmul.mubr.msk.bf16.vlgmr.msra.gmra.mrb[12].mxu1 %vm782_vm9, %v805_v21  ;;  %v7782_v21 = vld [vmem:[#allocation8 + $0x18] sm:$0xff]  }
 0x584   :  { %7358 = vmatpush3.bf16.msra.mxu1 %v858_v22  ;;  %7359 = vmatprep.mubr.msk.bf16.mxu1 %vm8636_vm0, %v8634_v7  ;;  %v7783_v22 = vld [vmem:[#allocation8 + $0x20] sm:$0xff]  }
 0x585   :  { %7369 = vmatprep.subr.bf16.mxu1 %v8634_v7 }
 0x5a8   :  { %v1021_v37 = vpop.xlane.xlu0 %1020 }
 0x5a9   :  { %v1025_v38 = vsub.f32 %v1017_v8, %v1021_v37 }
 0x5ab   :  { %v1027_v39 = vmul.f32 1.442695, %v1025_v38 }
 0x5e6   :  { %v800_v24 = vpop.xlane.xlu1 %799 }
 0x5e7   :  { %8078 = vrcp.f32 %v800_v24  ;;  %v7785_v24 = vld [vmem:[#allocation8 + $0x30] sm:$0xff]  }
 0x5e8   :  { %8080 = vpow2.f32 %v1027_v39  ;;  %v6604_v39 = vld [vmem:[#allocation9] ss:$0 sm:$0xff] }
 0x5ea   :  { %v907_v30 = vpop.permute.xlu1 %906 }
 0x5eb   :  { %v910_v31 = vpack.c.bf16 %v907_v30, %v907_v30 }
 0x5f1   :  { %v8079_v19 = vpop.eup %8078 }
 0x5f2   :  { %v804_v26 = vmul.f32 %v8079_v19, %v8075_v13  ;;  %v8081_v52 = vpop.eup %8080  ;;  %v7786_v19 = vld [vmem:[#allocation8 + $0x38] sm:$0xff]  }
 0x5f3   :  { %v1031_v55 = vsel %vm782_vm9, %v8081_v52, 0.0 }
 0x5f4   :  { %v806_v27 = vpack.c.bf16 %v804_v26, %v804_v26 }
 0x5f6   :  { %7360 = vmatmul.mubr.msk.bf16.vlgmr.msra.gmra.mrb[16].mxu1 %vm782_vm9, %v806_v27 }
 0x5f7   :  { %7370 = vmatpush3.bf16.xpose.msra.mxu1 %v973_v28  ;;  %7371 = vmatprep.mubr.msk.bf16.mxu1 %vm8636_vm0, %v8634_v7 }
 0x5f8   :  { %7381 = vmatprep.subr.bf16.mxu1 %v8634_v7 }
 0x5fe   :  { %7372 = vmatmul.mubr.msk.bf16.vlgmr.msra.gmra.mrb[20].mxu1 %vm685_vm1, %v910_v31 }
 0x5ff   :  { %7383 = vmatprep.mubr.msk.bf16.mxu1 %vm8636_vm0, %v8634_v7 }
 0x656   :  { %v9092_v32 = vpop.f32.mrb[12].mxu1 }
 0x657   :  { %v7355_v34 = vpop.f32.mrb[13].mxu1 }
 0x658   :  { %v851_v35 = vpop.f32.mrb[14].mxu1 }
 0x659   :  { %v7356_v36 = vpop.f32.mrb[15].mxu1 }
 0x6c9   :  { %v9094_v41 = vpop.f32.mrb[16].mxu1 }
 0x6ca   :  { %v7361_v42 = vpop.f32.mrb[17].mxu1 }
 0x6cb   :  { %v897_v43 = vpop.f32.mrb[18].mxu1 }
 0x6cc   :  { %v7362_v44 = vpop.f32.mrb[19].mxu1 }
 0x6d1   :  { %v1009_v45 = vpop.f32.mrb[20].mxu1 }
 0x6d2   :  { %v1016_v46 = vmul.f32 0.125, %v1009_v45  ;;  %v7373_v47 = vpop.f32.mrb[21].mxu1 }
 0x6d3   :  { %v1012_v48 = vpop.f32.mrb[22].mxu1 }
 0x6d4   :  { %v7374_v49 = vpop.f32.mrb[23].mxu1  ;;  %v1018_v50 = vadd.f32 %v1016_v46, %v9050_v29  ;;  %v7787_v48 = vld [vmem:[%s10120_s1] ss:$8 sps:$4 sm:$0xff]  }
 0x6d5   :  { %v7789_v49 = vld [vmem:[%s10120_s1 + $0x4] ss:$8 sps:$4 sm:$0xff]  }
 0x6d6   :  { %v1022_v51 = vsel %vm782_vm9, %v1018_v50, -inf }
 0x6d7   :  { %1023 = vmax.xlane.f32.xlu1 %v1022_v51  ;;  %v7799_v51 = vld [vmem:[#allocation14] sm:$0xff]  }
 0x6db   :  { %1032 = vadd.xlane.f32.xlu1 %v1031_v55  ;;  %v7795_v55 = vld [vmem:[%s10120_s1 + $0x24] ss:$8 sps:$4 sm:$0xff]  }
 0x764   :  { %v1024_v56 = vpop.xlane.xlu1 %1023 }
 0x765   :  { %v1026_v60 = vsub.f32 %v1018_v50, %v1024_v56  ;;  %v7792_v50 = vld [vmem:[%s10120_s1 + $0x14] ss:$8 sps:$4 sm:$0xff]   ;;  %v7796_v56 = vld [vmem:[%s10120_s1 + $0x30] ss:$8 sps:$4 sm:$0xff]  }
 0x767   :  { %v1029_v62 = vmul.f32 1.442695, %v1026_v60  ;;  %v7802_v60 = vld [vmem:[%s10120_s1 + $0x44] ss:$8 sps:$4 sm:$0xff]  }
 0x768   :  { %v1033_v63 = vpop.xlane.xlu1 %1032 }
 0x769   :  { %8082 = vpow2.f32 %v1029_v62  ;;  %v7800_v62 = vld [vmem:[%s10120_s1 + $0x40] ss:$8 sps:$4 sm:$0xff]  }
 0x76a   :  { %8084 = vrcp.f32 %v1033_v63 }
 0x773   :  { %v8083_v0 = vpop.eup %8082 }
 0x774   :  { %v8085_v1 = vpop.eup %8084  ;;  %v1034_v2 = vsel %vm782_vm9, %v8083_v0, 0.0 }
 0x775   :  { %v1039_v3 = vmul.f32 %v8085_v1, %v8081_v52  ;;  %1035 = vadd.xlane.f32.xlu0 %v1034_v2  ;;  %v7790_v52 = vld [vmem:[%s10120_s1 + $0x10] ss:$8 sps:$4 sm:$0xff]  }
 0x777   :  { %v1041_v5 = vpack.c.bf16 %v1039_v3, %v1039_v3 }
 0x779   :  { %7378 = vmatmul.mubr.msk.bf16.vlgmr.msra.gmra.mrb[8].mxu0 %vm782_vm9, %v1041_v5 }
 0x77a   :  { %7403 = vmatprep.mubr.msk.bf16.mxu0 %vm8636_vm0, %v8634_v7  ;;  %7388 = vmatpush3.bf16.msra.mxu0 %v7779_v16  ;;  %v7815_v16 = vld [vmem:[#allocation14 + $0x20] sm:$0xff]  }
 0x77b   :  { %7389 = vmatprep.subr.bf16.mxu0 %v8634_v7 }
 0x77e   :  { %7390 = vmatpush3.bf16.msra.mxu0 %v7780_v18  ;;  %v7816_v18 = vld [vmem:[%s10121_s2] sm:$0x1f]  }
 0x77f   :  { %7391 = vmatprep.subr.bf16.mxu0 %v8634_v7 }
 0x782   :  { %7392 = vmatpush3.bf16.msra.mxu0 %v7781_v20  ;;  %v7817_v20 = vld [vmem:[#allocation14 + $0x28] sm:$0xff]  }
 0x783   :  { %7393 = vmatprep.subr.bf16.mxu0 %v8634_v7 }
 0x786   :  { %7394 = vmatpush3.bf16.msra.mxu0 %v7782_v21  ;;  %v7818_v21 = vld [vmem:[#allocation14 + $0x30] sm:$0xff]  }
 0x787   :  { %7395 = vmatprep.subr.bf16.mxu0 %v8634_v7 }
 0x78a   :  { %7396 = vmatpush3.bf16.msra.mxu0 %v7783_v22  ;;  %v7819_v22 = vld [vmem:[#allocation14 + $0x38] sm:$0xff]  }
 0x78b   :  { %918 = vrot.lane.b32.xlu0 %v9025_v17, %s8626_s23  ;;  %7397 = vmatprep.subr.bf16.mxu0 %v8634_v7 }
 0x78e   :  { %7398 = vmatpush3.bf16.msra.mxu0 %v7784_v23 }
 0x78f   :  { %7399 = vmatprep.subr.bf16.mxu0 %v8634_v7 }
 0x792   :  { %7400 = vmatpush3.bf16.msra.mxu0 %v7785_v24 }
 0x793   :  { %7401 = vmatprep.subr.bf16.mxu0 %v8634_v7 }
 0x796   :  { %7402 = vmatpush3.bf16.msra.mxu0 %v7786_v19 }
 0x797   :  { %1522 = vmatprep.subr.bf16.mxu0 %v7789_v49 }
 0x802   :  { %v1036_v6 = vpop.xlane.xlu0 %1035 }
 0x803   :  { %8086 = vrcp.f32 %v1036_v6 }
 0x806   :  { %v919_v8 = vpop.permute.xlu0 %918 }
 0x807   :  { %v922_v9 = vpack.c.bf16 %v919_v8, %v919_v8 }
 0x809   :  { %v1093_v10 = vsel %vm810_vm2, %v922_v9, 0  ;;  %v7803_v9 = vld [vmem:[#allocation14 + $0x8] sm:$0xff]  }
 0x80a   :  { %7382 = vmatpush3.bf16.msra.mxu1 %v1093_v10  ;;  %v7806_v10 = vld [vmem:[%s10120_s1 + $0x54] ss:$8 sps:$4 sm:$0xff]  }
 0x80b   :  { %7407 = vmatprep.subr.bf16.mxu1 %v8634_v7 }
 0x80d   :  { %v8087_v11 = vpop.eup %8086 }
 0x80e   :  { %v1040_v12 = vmul.f32 %v8087_v11, %v8083_v0  ;;  %v7804_v11 = vld [vmem:[%s10120_s1 + $0x50] ss:$8 sps:$4 sm:$0xff]  }
 0x810   :  { %v1042_v13 = vpack.c.bf16 %v1040_v12, %v1040_v12  ;;  %v7807_v12 = vld [vmem:[#allocation14 + $0x10] sm:$0xff]  }
 0x812   :  { %7384 = vmatmul.mubr.msk.bf16.vlgmr.msra.gmra.mrb[24].mxu1 %vm782_vm9, %v1042_v13  ;;  %v7810_v13 = vld [vmem:[%s10120_s1 + $0x64] ss:$8 sps:$4 sm:$0xff]  }
 0x813   :  { %7423 = vmatprep.mubr.msk.bf16.mxu1 %vm8636_vm0, %v8634_v7  ;;  %7408 = vmatpush3.bf16.msra.mxu1 %v7799_v51 }
 0x814   :  { %7409 = vmatprep.subr.bf16.mxu1 %v8634_v7 }
 0x817   :  { %7410 = vmatpush3.bf16.msra.mxu1 %v7803_v9 }
 0x818   :  { %7411 = vmatprep.subr.bf16.mxu1 %v8634_v7 }
 0x81b   :  { %7412 = vmatpush3.bf16.msra.mxu1 %v7807_v12 }
 0x81c   :  { %7413 = vmatprep.subr.bf16.mxu1 %v8634_v7 }
 0x84c   :  { %v1083_v14 = vpop.f32.mrb[8].mxu0 }
 0x84d   :  { %v7379_v15 = vpop.f32.mrb[9].mxu0 }
 0x84e   :  { %v1086_v17 = vpop.f32.mrb[10].mxu0  ;;  %v7811_v15 = vld [vmem:[#allocation14 + $0x18] sm:$0xff]  }
 0x84f   :  { %v7380_v4 = vpop.f32.mrb[11].mxu0  ;;  %v7814_v17 = vld [vmem:[%s10120_s1 + $0x74] ss:$8 sps:$4 sm:$0xff]   ;;  %7414 = vmatpush3.bf16.msra.mxu1 %v7811_v15  ;;  %v8638_v15 = vmov 65535  }
 0x850   :  { %v7812_v4 = vld [vmem:[%s10120_s1 + $0x70] ss:$8 sps:$4 sm:$0xff]   ;;  %7415 = vmatprep.subr.bf16.mxu1 %v8634_v7 }
 0x853   :  { %7416 = vmatpush3.bf16.msra.mxu1 %v7815_v16 }
 0x854   :  { %7417 = vmatprep.subr.bf16.mxu1 %v8634_v7 }
 0x857   :  { %7418 = vmatpush3.bf16.msra.mxu1 %v7817_v20 }
 0x858   :  { %7419 = vmatprep.subr.bf16.mxu1 %v8634_v7 }
 0x85b   :  { %7420 = vmatpush3.bf16.msra.mxu1 %v7818_v21 }
 0x85c   :  { %7421 = vmatprep.subr.bf16.mxu1 %v8634_v7 }
 0x85f   :  { %7422 = vmatpush3.bf16.msra.mxu1 %v7819_v22 }
 0x860   :  { %7427 = vmatprep.subr.bf16.mxu1 %v8634_v7 }
 0x8e5   :  { %v1129_v25 = vpop.f32.mrb[24].mxu1 }
 0x8e6   :  { %v7727_v26 = vpack.i.bf16 %v1129_v25, %v9094_v41  ;;  %v7385_v27 = vpop.f32.mrb[25].mxu1 }
 0x8e7   :  { %v1132_v28 = vpop.f32.mrb[26].mxu1 }
 0x8e8   :  { %7728 = vrot.lane.b32.xlu1 %v7727_v26, %s8626_s23  ;;  %v7386_v30 = vpop.f32.mrb[27].mxu1 }
 0x95a   :  { %v7729_v31 = vpop.permute.xlu1 %7728 }
 0x95b   :  { %v7731_v34 = vunpack.i.h.bf16 %v7729_v31  ;;  %v7730_v35 = vunpack.i.l.bf16 %v7729_v31  ;;  %v6613_v31 = vld [vmem:[#allocation11] ss:$0 sm:$0xff] }
 0x95d   :  { %v1139_v36 = vsel %vm685_vm1, %v1083_v14, %v7731_v34  ;;  %v904_v37 = vsel %vm685_vm1, %v9092_v32, %v7730_v35  ;;  %v7808_v14 = vld [vmem:[%s10120_s1 + $0x60] ss:$8 sps:$4 sm:$0xff]  }
 0x95e   :  { %v1157_v38 = vpack.c.bf16 %v1139_v36, %v904_v37  ;;  %v6614_v37 = vld [vmem:[#allocation12] ss:$0 sm:$0xff] }
 0x960   :  { %7404 = vmatmul.mubr.bf16.vlgmr.msra.gmra.mrb[12].mxu0 %v1157_v38 }
 0x961   :  { %1554 = vmatprep.mubr.bf16.mxu0 %v8635_v33  ;;  %1523 = vmatpush1.bf16.msra.mxu0 %v7787_v48 }
 0x962   :  { %1524 = vmatprep.subr.bf16.mxu0 %v7792_v50 }
 0x965   :  { %1525 = vmatpush1.bf16.msra.mxu0 %v7790_v52 }
 0x966   :  { %1526 = vmatprep.subr.bf16.mxu0 %v7795_v55 }
 0xa33   :  { %v1246_v41 = vpop.f32.mrb[12].mxu0 }
 0xa34   :  { %v1247_v42 = vadd.f32 %v6604_v39, %v1246_v41  ;;  %v7405_v43 = vpop.f32.mrb[13].mxu0 }
 0xa35   :  { %v1249_v44 = vpop.f32.mrb[14].mxu0  ;;  %v1424_v43 = vld [vmem:[%s10122_s7] sm:$0x3] }
 0xa36   :  { %v1250_v45 = vadd.f32 %v6604_v39, %v1249_v44  ;;  %v7406_v46 = vpop.f32.mrb[15].mxu0  ;;  %v1253_v47 = vadd.f32 %v1247_v42, %v8995_v53  ;;  %v7793_v53 = vld [vmem:[%s10120_s1 + $0x20] ss:$8 sps:$4 sm:$0xff]   ;;  %v1429_v44 = vrot.slane %v1424_v43, %v9008_v58 }
 0xa37   :  { %1527 = vmatpush1.bf16.msra.mxu0 %v7793_v53 }
 0xa38   :  { %1257 = vadd.xlane.f32.xlu1 %v1253_v47  ;;  %v1254_v32 = vadd.f32 %v1250_v45, %v8997_v54  ;;  %v7798_v54 = vld [vmem:[%s10120_s1 + $0x34] ss:$8 sps:$4 sm:$0xff]  }
 0xa39   :  { %1528 = vmatprep.subr.bf16.mxu0 %v7798_v54 }
 0xa3a   :  { %1259 = vadd.xlane.f32.xlu0 %v1254_v32 }
 0xa3b   :  { %1529 = vmatpush1.bf16.msra.mxu0 %v7796_v56 }
 0xa3c   :  { %1530 = vmatprep.subr.bf16.mxu0 %v7802_v60 }
 0xa3f   :  { %1531 = vmatpush1.bf16.msra.mxu0 %v7800_v62 }
 0xa40   :  { %1532 = vmatprep.subr.bf16.mxu0 %v7806_v10  ;;  %v6615_v10 = vld [vmem:[#allocation15] ss:$0 sm:$0xff] }
 0xa43   :  { %1533 = vmatpush1.bf16.msra.mxu0 %v7804_v11 }
 0xa44   :  { %1534 = vmatprep.subr.bf16.mxu0 %v7810_v13 }
 0xa47   :  { %1535 = vmatpush1.bf16.msra.mxu0 %v7808_v14 }
 0xa48   :  { %1536 = vmatprep.subr.bf16.mxu0 %v7814_v17  ;;  %v1707_v17 = vsel %vm1705_vm10, 4294967295, %v8638_v15 }
 0xa4b   :  { %1537 = vmatpush1.bf16.msra.mxu0 %v7812_v4 }
 0xa4c   :  { %7451 = vmatprep.subr.bf16.mxu0 %v8634_v7 }
 0xa4e   :  { %1555 = vmatmul.mubr.bf16.vlgmr.msra.gmra.mrb[16].mxu0 %v7816_v18 }
 0xa4f   :  { %7453 = vmatprep.mubr.msk.bf16.mxu0 %vm8636_vm0, %v8634_v7 }
 0xac5   :  { %v1258_v63 = vpop.xlane.xlu1 %1257 }
 0xac6   :  { %v1261_v0 = vmul.f32 0.0078125, %v1258_v63  ;;  %v1433_v63 = vrot.slane %v1424_v43, %v9015_v61 }
 0xac7   :  { %v1260_v1 = vpop.xlane.xlu0 %1259 }
 0xac8   :  { %v1263_v2 = vsub.f32 %v1253_v47, %v1261_v0  ;;  %v1262_v3 = vmul.f32 0.0078125, %v1260_v1 }
 0xaca   :  { %v1264_v5 = vsub.f32 %v1254_v32, %v1262_v3  ;;  %v1265_v6 = vmul.f32 %v1263_v2, %v1263_v2 }
 0xacc   :  { %1267 = vadd.xlane.f32.xlu0 %v1265_v6  ;;  %v1266_v8 = vmul.f32 %v1264_v5, %v1264_v5 }
 0xad0   :  { %1269 = vadd.xlane.f32.xlu0 %v1266_v8 }
 0xb21   :  { %v1556_v45 = vpop.f32.mrb[16].mxu0 }
 0xb22   :  { %v1557_v46 = vadd.f32 %v1556_v45, %v1429_v44  ;;  %v1558_v47 = vpop.f32.mrb[17].mxu0 }
 0xb23   :  { %v1560_v32 = vpop.f32.mrb[18].mxu0  ;;  %v9172_v0 = vadd.f32 %v1558_v47, %v1433_v63 }
 0xb24   :  { %v1575_v48 = vpack.c.bf16 %v1557_v46, %v1557_v46  ;;  %v9163_v49 = vadd.f32 %v1560_v32, %v1429_v44  ;;  %v1562_v50 = vpop.f32.mrb[19].mxu0  ;;  %1572 = vrot.lane.b32.xlu1 %v1557_v46, %s8626_s23 }
 0xb25   :  { %v9174_v1 = vadd.f32 %v1562_v50, %v1433_v63 }
 0xb26   :  { %v1813_v51 = vpack.c.bf16 %v9163_v49, %v1557_v46  ;;  %v1587_v52 = vsel %vm685_vm1, %v1575_v48, 0 }
 0xb28   :  { %v1822_v55 = vshrl.u32 %v1813_v51, 16  ;;  %v1825_v53 = vshll.u32 %v1813_v51, 16 }
 0xb2a   :  { %v1824_v54 = vrot.slane %v1822_v55, 2  ;;  %v1827_v56 = vrot.slane %v1825_v53, 3 }
 0xb2c   :  { %v1828_v60 = vor.u32 %v1827_v56, %v1824_v54 }
 0xb2e   :  { %v1833_v62 = vsel %vm685_vm1, %v1828_v60, 0 }
 0xb2f   :  { %7452 = vmatpush3.bf16.xpose.msra.mxu0 %v1833_v62 }
 0xb30   :  { %7463 = vmatprep.subr.bf16.mxu0 %v8634_v7 }
 0xb59   :  { %v1268_v23 = vpop.xlane.xlu0 %1267 }
 0xb5a   :  { %v1271_v24 = vmul.f32 0.0078125, %v1268_v23  ;;  %v9184_v23 = vsel %vm1706_vm11, %v1707_v17, 0 }
 0xb5c   :  { %v1273_v19 = vadd.f32 1e-12, %v1271_v24 }
 0xb5d   :  { %v1270_v25 = vpop.xlane.xlu0 %1269 }
 0xb5e   :  { %8088 = vrsqrt.f32 %v1273_v19  ;;  %v1272_v26 = vmul.f32 0.0078125, %v1270_v25  ;;  %v1581_v25 = vpack.c.bf16 %v9172_v0, %v9172_v0 }
 0xb60   :  { %v1274_v27 = vadd.f32 1e-12, %v1272_v26 }
 0xb62   :  { %8090 = vrsqrt.f32 %v1274_v27 }
 0xb68   :  { %v8089_v28 = vpop.eup %8088 }
 0xb69   :  { %v1277_v30 = vmul.f32 %v8089_v28, %v1263_v2  ;;  %v1819_v2 = vpack.c.bf16 %v9174_v1, %v9172_v0  ;;  %v1710_v28 = vand.u32 %v9184_v23, %v1581_v25 }
 0xb6b   :  { %v1285_v36 = vmul.f32 %v6613_v31, %v1277_v30  ;;  %v1956_v3 = vshrl.u32 %v1819_v2, 16 }
 0xb6c   :  { %v8091_v34 = vpop.eup %8090 }
 0xb6d   :  { %v1278_v35 = vmul.f32 %v8091_v34, %v1264_v5  ;;  %v9153_v39 = vadd.f32 %v6614_v37, %v1285_v36  ;;  %v1959_v5 = vshll.u32 %v1819_v2, 16  ;;  %v1958_v8 = vrot.slane %v1956_v3, 2 }
 0xb6f   :  { %v1286_v38 = vmul.f32 %v6613_v31, %v1278_v35  ;;  %v1961_v9 = vrot.slane %v1959_v5, 3 }
 0xb71   :  { %v9155_v41 = vadd.f32 %v6614_v37, %v1286_v38  ;;  %v1962_v4 = vor.u32 %v1961_v9, %v1958_v8 }
 0xb73   :  { %v1312_v42 = vpack.c.bf16 %v9155_v41, %v9153_v39  ;;  %v1967_v19 = vand.u32 %v1962_v4, %v9184_v23 }
 0xb75   :  { %7424 = vmatmul.mubr.bf16.vlgmr.msra.gmra.mrb[28].mxu1 %v1312_v42 }
 0xb76   :  { %7429 = vmatprep.mubr.msk.bf16.mxu1 %vm8636_vm0, %v8634_v7  ;;  %7428 = vmatpush3.bf16.xpose.msra.mxu1 %v1587_v52 }
 0xb77   :  { %7433 = vmatprep.subr.bf16.mxu1 %v8634_v7 }
 0xb96   :  { %v9178_v6 = vpop.permute.xlu1 %1572 }
 0xb97   :  { %v1576_v11 = vpack.c.bf16 %v9178_v6, %v9178_v6 }
 0xb99   :  { %v1633_v22 = vsel %vm685_vm1, %v1576_v11, 0 }
 0xc48   :  { %v1401_v12 = vpop.f32.mrb[28].mxu1 }
 0xc49   :  { %v1402_v13 = vadd.f32 %v6615_v10, %v1401_v12  ;;  %v7425_v14 = vpop.f32.mrb[29].mxu1 }
 0xc4a   :  { %v1404_v16 = vpop.f32.mrb[30].mxu1 }
 0xc4b   :  { %v1569_v18 = vpack.c.bf16 %v1402_v13, %v1402_v13  ;;  %v1405_v20 = vadd.f32 %v6615_v10, %v1404_v16  ;;  %1566 = vrot.lane.b32.xlu0 %v1402_v13, %s8626_s23  ;;  %v7426_v21 = vpop.f32.mrb[31].mxu1 }
 0xc4d   :  { %v1807_v24 = vpack.c.bf16 %v1405_v20, %v1405_v20  ;;  %7430 = vmatmul.mubr.msk.bf16.vlgmr.msra.gmra.mrb[32].mxu1 %vm685_vm1, %v1569_v18 }
 0xc4e   :  { %7434 = vmatpush3.bf16.xpose.msra.mxu1 %v1633_v22  ;;  %7435 = vmatprep.mubr.msk.bf16.mxu1 %vm8636_vm0, %v8634_v7 }
 0xc4f   :  { %7454 = vmatmul.mubr.msk.bf16.vlgmr.msra.gmra.mrb[20].mxu0 %vm685_vm1, %v1807_v24  ;;  %7439 = vmatprep.subr.bf16.mxu1 %v8634_v7 }
 0xc50   :  { %7464 = vmatpush3.bf16.msra.mxu0 %v1967_v19  ;;  %7465 = vmatprep.mubr.msk.bf16.mxu0 %vm8636_vm0, %v8634_v7 }
 0xc51   :  { %7475 = vmatprep.subr.bf16.mxu0 %v8634_v7 }
 0xcbd   :  { %v1567_v26 = vpop.permute.xlu0 %1566 }
 0xcbe   :  { %v1570_v27 = vpack.c.bf16 %v1567_v26, %v1567_v26 }
 0xcc0   :  { %7436 = vmatmul.mubr.msk.bf16.vlgmr.msra.gmra.mrb[36].mxu1 %vm685_vm1, %v1570_v27 }
 0xcc1   :  { %7440 = vmatpush3.bf16.msra.mxu1 %v1710_v28  ;;  %7441 = vmatprep.mubr.msk.bf16.mxu1 %vm8636_vm0, %v8634_v7 }
 0xcc2   :  { %7445 = vmatprep.subr.bf16.mxu1 %v8634_v7 }
 0xd20   :  { %v1623_v30 = vpop.f32.mrb[32].mxu1 }
 0xd21   :  { %v1675_v31 = vmul.f32 0.125, %v1623_v30  ;;  %v7431_v34 = vpop.f32.mrb[33].mxu1 }
 0xd22   :  { %v1626_v35 = vpop.f32.mrb[34].mxu1  ;;  %v1869_v36 = vpop.f32.mrb[20].mxu0 }
 0xd23   :  { %v7432_v37 = vpop.f32.mrb[35].mxu1  ;;  %v7455_v38 = vpop.f32.mrb[21].mxu0  ;;  %v1678_v42 = vsel %vm1677_vm12, %v1675_v31, -inf  ;;  %v1929_v12 = vmul.f32 0.125, %v1869_v36 }
 0xd24   :  { %v1872_v43 = vpop.f32.mrb[22].mxu0  ;;  %1679 = vmax.xlane.f32.xlu1 %v1678_v42 }
 0xd25   :  { %v7456_v44 = vpop.f32.mrb[23].mxu0 }
 0xd93   :  { %v1669_v45 = vpop.f32.mrb[36].mxu1 }
 0xd94   :  { %v1676_v46 = vmul.f32 0.125, %v1669_v45  ;;  %v7437_v47 = vpop.f32.mrb[37].mxu1 }
 0xd95   :  { %v1672_v32 = vpop.f32.mrb[38].mxu1 }
 0xd96   :  { %v7438_v48 = vpop.f32.mrb[39].mxu1  ;;  %v1681_v50 = vsel %vm1677_vm12, %v1676_v46, -inf }
 0xd97   :  { %1682 = vmax.xlane.f32.xlu0 %v1681_v50 }
 0xdb1   :  { %v1680_v51 = vpop.xlane.xlu1 %1679 }
 0xdb2   :  { %v1684_v52 = vsub.f32 %v1675_v31, %v1680_v51 }
 0xdb4   :  { %v1686_v55 = vmul.f32 1.442695, %v1684_v52 }
 0xdb6   :  { %8092 = vpow2.f32 %v1686_v55 }
 0xdc0   :  { %v8093_v53 = vpop.eup %8092 }
 0xdc1   :  { %v1690_v54 = vsel %vm1677_vm12, %v8093_v53, 0.0 }
 0xdc2   :  { %1691 = vadd.xlane.f32.xlu1 %v1690_v54 }
 0xdd3   :  { %1578 = vrot.lane.b32.xlu1 %v9172_v0, %s8626_s23 }
 0xdd7   :  { %1804 = vrot.lane.b32.xlu1 %v1405_v20, %s8626_s23 }
 0xe24   :  { %v1683_v56 = vpop.xlane.xlu0 %1682 }
 0xe25   :  { %v1685_v60 = vsub.f32 %v1676_v46, %v1683_v56 }
 0xe27   :  { %v1688_v62 = vmul.f32 1.442695, %v1685_v60 }
 0xe29   :  { %8094 = vpow2.f32 %v1688_v62 }
 0xe33   :  { %v8095_v63 = vpop.eup %8094 }
 0xe34   :  { %v1693_v2 = vsel %vm1677_vm12, %v8095_v63, 0.0 }
 0xe35   :  { %1694 = vadd.xlane.f32.xlu0 %v1693_v2 }
 0xe4b   :  { %1810 = vrot.lane.b32.xlu0 %v9163_v49, %s8626_s23  ;;  %v1931_v49 = vsel %vm1677_vm12, %v1929_v12, -inf }
 0xe4f   :  { %v1692_v3 = vpop.xlane.xlu1 %1691 }
 0xe50   :  { %8096 = vrcp.f32 %v1692_v3 }
 0xe53   :  { %v1579_v5 = vpop.permute.xlu1 %1578 }
 0xe54   :  { %v1582_v9 = vpack.c.bf16 %v1579_v5, %v1579_v5 }
 0xe56   :  { %v1756_v11 = vand.u32 %v9184_v23, %v1582_v9 }
 0xe57   :  { %v1805_v25 = vpop.permute.xlu1 %1804 }
 0xe5a   :  { %v8097_v8 = vpop.eup %8096 }
 0xe5b   :  { %v1698_v10 = vmul.f32 %v8097_v8, %v8093_v53 }
 0xe5d   :  { %v1700_v0 = vpack.c.bf16 %v1698_v10, %v1698_v10 }
 0xe5f   :  { %7442 = vmatmul.mubr.msk.bf16.vlgmr.msra.gmra.mrb[40].mxu1 %vm1677_vm12, %v1700_v0 }
 0xe60   :  { %7446 = vmatpush3.bf16.msra.mxu1 %v1756_v11  ;;  %7447 = vmatprep.mubr.msk.bf16.mxu1 %vm8636_vm0, %v8634_v7 }
 0xe61   :  { %7457 = vmatprep.subr.bf16.mxu1 %v8634_v7 }
 0xe6a   :  { %1932 = vmax.xlane.f32.xlu0 %v1931_v49 }
 0xec2   :  { %v1695_v13 = vpop.xlane.xlu0 %1694 }
 0xec3   :  { %8098 = vrcp.f32 %v1695_v13 }
 0xec6   :  { %v1811_v14 = vpop.permute.xlu0 %1810 }
 0xec7   :  { %v1814_v15 = vpack.c.bf16 %v1811_v14, %v9178_v6  ;;  %v1808_v6 = vpack.c.bf16 %v1805_v25, %v1805_v25  ;;  %v7820_v14 = vld [vmem:[#allocation17] sm:$0xff]  }
 0xec9   :  { %v1876_v17 = vshrl.u32 %v1814_v15, 16  ;;  %v1879_v4 = vshll.u32 %v1814_v15, 16  ;;  %v7821_v15 = vld [vmem:[#allocation17 + $0x8] sm:$0xff]  }
 0xecb   :  { %v1878_v16 = vrot.slane %v1876_v17, 2  ;;  %v1881_v18 = vrot.slane %v1879_v4, 3  ;;  %v7822_v17 = vld [vmem:[#allocation17 + $0x10] sm:$0xff]   ;;  %v7823_v4 = vld [vmem:[#allocation17 + $0x18] sm:$0xff]  }
 0xecd   :  { %v8099_v20 = vpop.eup %8098  ;;  %v1882_v22 = vor.u32 %v1881_v18, %v1878_v16  ;;  %v7824_v16 = vld [vmem:[#allocation17 + $0x20] sm:$0xff]   ;;  %v7825_v18 = vld [vmem:[#allocation17 + $0x28] sm:$0xff]  }
 0xece   :  { %v1699_v21 = vmul.f32 %v8099_v20, %v8095_v63  ;;  %v7826_v20 = vld [vmem:[#allocation17 + $0x30] sm:$0xff]  }
 0xecf   :  { %v1887_v19 = vsel %vm685_vm1, %v1882_v22, 0 }
 0xed0   :  { %v1701_v24 = vpack.c.bf16 %v1699_v21, %v1699_v21  ;;  %v7827_v21 = vld [vmem:[#allocation17 + $0x38] sm:$0xff]  }
 0xed2   :  { %7448 = vmatmul.mubr.msk.bf16.vlgmr.msra.gmra.mrb[44].mxu1 %vm1677_vm12, %v1701_v24 }
 0xed3   :  { %7458 = vmatpush3.bf16.xpose.msra.mxu1 %v1887_v19  ;;  %7459 = vmatprep.mubr.msk.bf16.mxu1 %vm8636_vm0, %v8634_v7 }
 0xed4   :  { %7469 = vmatprep.subr.bf16.mxu1 %v8634_v7 }
 0xeda   :  { %7460 = vmatmul.mubr.msk.bf16.vlgmr.msra.gmra.mrb[48].mxu1 %vm685_vm1, %v1808_v6 }
 0xedb   :  { %7471 = vmatprep.mubr.msk.bf16.mxu1 %vm8636_vm0, %v8634_v7 }
 0xef7   :  { %v1933_v46 = vpop.xlane.xlu0 %1932 }
 0xef8   :  { %v1937_v47 = vsub.f32 %v1929_v12, %v1933_v46 }
 0xefa   :  { %v1939_v50 = vmul.f32 1.442695, %v1937_v47 }
 0xf32   :  { %v9226_v26 = vpop.f32.mrb[40].mxu1 }
 0xf33   :  { %v7443_v27 = vpop.f32.mrb[41].mxu1 }
 0xf34   :  { %v1749_v28 = vpop.f32.mrb[42].mxu1 }
 0xf35   :  { %v7444_v30 = vpop.f32.mrb[43].mxu1 }
 0xfa5   :  { %v9228_v31 = vpop.f32.mrb[44].mxu1 }
 0xfa6   :  { %v7449_v34 = vpop.f32.mrb[45].mxu1 }
 0xfa7   :  { %v1795_v35 = vpop.f32.mrb[46].mxu1 }
 0xfa8   :  { %v7450_v36 = vpop.f32.mrb[47].mxu1 }
 0xfad   :  { %v1923_v37 = vpop.f32.mrb[48].mxu1 }
 0xfae   :  { %v1930_v38 = vmul.f32 0.125, %v1923_v37  ;;  %v7461_v42 = vpop.f32.mrb[49].mxu1 }
 0xfaf   :  { %v1926_v43 = vpop.f32.mrb[50].mxu1 }
 0xfb0   :  { %v7462_v44 = vpop.f32.mrb[51].mxu1  ;;  %v1934_v45 = vsel %vm1677_vm12, %v1930_v38, -inf  ;;  %v6649_v43 = vld [vmem:[#allocation18] ss:$0 sm:$0xff] }
 0xfb1   :  { %1935 = vmax.xlane.f32.xlu1 %v1934_v45 }
 0xfc2   :  { %1816 = vrot.lane.b32.xlu1 %v9174_v1, %s8626_s23 }
0x103e   :  { %v1936_v32 = vpop.xlane.xlu1 %1935 }
0x103f   :  { %v1938_v48 = vsub.f32 %v1930_v38, %v1936_v32 }
0x1041   :  { %v1941_v51 = vmul.f32 1.442695, %v1938_v48 }
0x1042   :  { %v1817_v52 = vpop.permute.xlu1 %1816 }
0x1043   :  { %8100 = vpow2.f32 %v1941_v51  ;;  %v1820_v55 = vpack.c.bf16 %v1817_v52, %v1579_v5  ;;  %v7828_v51 = vld [vmem:[%s10123_s14] ss:$16 sps:$4 sm:$0xff]   ;;  %v7830_v52 = vld [vmem:[%s10123_s14 + $0x4] ss:$16 sps:$4 sm:$0xff]  }
0x1044   :  { %8102 = vpow2.f32 %v1939_v50 }
0x1045   :  { %v2010_v53 = vshrl.u32 %v1820_v55, 16  ;;  %v2013_v54 = vshll.u32 %v1820_v55, 16  ;;  %v7831_v55 = vld [vmem:[%s10123_s14 + $0x8] ss:$16 sps:$4 sm:$0xff]  }
0x1047   :  { %v2012_v56 = vrot.slane %v2010_v53, 2  ;;  %v2015_v60 = vrot.slane %v2013_v54, 3  ;;  %v7833_v53 = vld [vmem:[%s10123_s14 + $0xc] ss:$16 sps:$4 sm:$0xff]   ;;  %v7836_v54 = vld [vmem:[%s10123_s14 + $0x24] ss:$16 sps:$4 sm:$0xff]  }
0x1049   :  { %v2016_v62 = vor.u32 %v2015_v60, %v2012_v56  ;;  %v7839_v56 = vld [vmem:[%s10123_s14 + $0x2c] ss:$16 sps:$4 sm:$0xff]   ;;  %v7834_v60 = vld [vmem:[%s10123_s14 + $0x20] ss:$16 sps:$4 sm:$0xff]  }
0x104b   :  { %v2021_v63 = vand.u32 %v2016_v62, %v9184_v23 }
0x104d   :  { %v8101_v2 = vpop.eup %8100  ;;  %7470 = vmatpush3.bf16.msra.mxu1 %v2021_v63 }
0x104e   :  { %v1946_v1 = vsel %vm1677_vm12, %v8101_v2, 0.0  ;;  %v8103_v3 = vpop.eup %8102  ;;  %2438 = vmatprep.subr.bf16.mxu1 %v7830_v52 }
0x104f   :  { %1947 = vadd.xlane.f32.xlu0 %v1946_v1  ;;  %v1943_v8 = vsel %vm1677_vm12, %v8103_v3, 0.0 }
0x1053   :  { %1944 = vadd.xlane.f32.xlu0 %v1943_v8 }
0x10dc   :  { %v1948_v9 = vpop.xlane.xlu0 %1947 }
0x10dd   :  { %8104 = vrcp.f32 %v1948_v9 }
0x10e0   :  { %v1945_v5 = vpop.xlane.xlu0 %1944 }
0x10e1   :  { %8106 = vrcp.f32 %v1945_v5  ;;  %v7842_v5 = vld [vmem:[%s10123_s14 + $0x44] ss:$16 sps:$4 sm:$0xff]  }
0x10e7   :  { %v8105_v10 = vpop.eup %8104 }
0x10e8   :  { %v1952_v0 = vmul.f32 %v8105_v10, %v8101_v2  ;;  %v7845_v10 = vld [vmem:[%s10123_s14 + $0x4c] ss:$16 sps:$4 sm:$0xff]  }
0x10ea   :  { %v1954_v11 = vpack.c.bf16 %v1952_v0, %v1952_v0  ;;  %v7840_v0 = vld [vmem:[%s10123_s14 + $0x40] ss:$16 sps:$4 sm:$0xff]  }
0x10eb   :  { %v8107_v12 = vpop.eup %8106 }
0x10ec   :  { %v1951_v49 = vmul.f32 %v8107_v12, %v8103_v3  ;;  %7472 = vmatmul.mubr.msk.bf16.vlgmr.msra.gmra.mrb[52].mxu1 %vm1677_vm12, %v1954_v11  ;;  %v7843_v11 = vld [vmem:[%s10123_s14 + $0x48] ss:$16 sps:$4 sm:$0xff]   ;;  %v7848_v12 = vld [vmem:[%s10123_s14 + $0x64] ss:$16 sps:$4 sm:$0xff]  }
0x10ed   :  { %2470 = vmatprep.mubr.bf16.mxu1 %v8635_v33  ;;  %2439 = vmatpush1.bf16.msra.mxu1 %v7828_v51 }
0x10ee   :  { %v1953_v13 = vpack.c.bf16 %v1951_v49, %v1951_v49  ;;  %2440 = vmatprep.subr.bf16.mxu1 %v7836_v54  ;;  %v7851_v49 = vld [vmem:[%s10123_s14 + $0x6c] ss:$16 sps:$4 sm:$0xff]   ;;  %v7878_v54 = vld [vmem:[%s10124_s10] sm:$0xff]  }
0x10f0   :  { %7466 = vmatmul.mubr.msk.bf16.vlgmr.msra.gmra.mrb[24].mxu0 %vm1677_vm12, %v1953_v13  ;;  %v7846_v13 = vld [vmem:[%s10123_s14 + $0x60] ss:$16 sps:$4 sm:$0xff]  }
0x10f1   :  { %7491 = vmatprep.mubr.msk.bf16.mxu0 %vm8636_vm0, %v8634_v7  ;;  %7476 = vmatpush3.bf16.msra.mxu0 %v7820_v14  ;;  %v7849_v14 = vld [vmem:[%s10123_s14 + $0x68] ss:$16 sps:$4 sm:$0xff]  }
0x10f2   :  { %7477 = vmatprep.subr.bf16.mxu0 %v8634_v7  ;;  %2441 = vmatpush1.bf16.msra.mxu1 %v7834_v60  ;;  %v7880_v60 = vld [vmem:[%s10124_s10 + $0x48] sm:$0xff]  }
0x10f3   :  { %2442 = vmatprep.subr.bf16.mxu1 %v7842_v5  ;;  %v7890_v5 = vld [vmem:[%s10124_s10 + $0x18] sm:$0xff]  }
0x10f5   :  { %7478 = vmatpush3.bf16.msra.mxu0 %v7821_v15  ;;  %v7854_v15 = vld [vmem:[%s10123_s14 + $0x84] ss:$16 sps:$4 sm:$0xff]  }
0x10f6   :  { %7479 = vmatprep.subr.bf16.mxu0 %v8634_v7  ;;  %2443 = vmatpush1.bf16.msra.mxu1 %v7840_v0  ;;  %v7892_v0 = vld [vmem:[%s10124_s10 + $0x60] sm:$0xff]  }
0x10f7   :  { %2444 = vmatprep.subr.bf16.mxu1 %v7848_v12  ;;  %v7894_v12 = vld [vmem:[%s10124_s10 + $0x20] sm:$0xff]  }
0x10f9   :  { %7480 = vmatpush3.bf16.msra.mxu0 %v7822_v17  ;;  %v7857_v17 = vld [vmem:[%s10123_s14 + $0x8c] ss:$16 sps:$4 sm:$0xff]  }
0x10fa   :  { %7481 = vmatprep.subr.bf16.mxu0 %v8634_v7  ;;  %2445 = vmatpush1.bf16.msra.mxu1 %v7846_v13  ;;  %v7896_v13 = vld [vmem:[%s10124_s10 + $0x68] sm:$0xff]  }
0x10fb   :  { %2446 = vmatprep.subr.bf16.mxu1 %v7854_v15  ;;  %v7898_v15 = vld [vmem:[%s10124_s10 + $0x28] sm:$0xff]  }
0x10fd   :  { %7482 = vmatpush3.bf16.msra.mxu0 %v7823_v4  ;;  %v7852_v4 = vld [vmem:[%s10123_s14 + $0x80] ss:$16 sps:$4 sm:$0xff]  }
0x10fe   :  { %7483 = vmatprep.subr.bf16.mxu0 %v8634_v7  ;;  %2447 = vmatpush1.bf16.msra.mxu1 %v7852_v4  ;;  %v7900_v4 = vld [vmem:[%s10124_s10 + $0x70] sm:$0xff]  }
0x1101   :  { %7484 = vmatpush3.bf16.msra.mxu0 %v7824_v16  ;;  %v7855_v16 = vld [vmem:[%s10123_s14 + $0x88] ss:$16 sps:$4 sm:$0xff]  }
0x1102   :  { %7485 = vmatprep.subr.bf16.mxu0 %v8634_v7 }
0x1105   :  { %7486 = vmatpush3.bf16.msra.mxu0 %v7825_v18  ;;  %v7860_v18 = vld [vmem:[%s10123_s14 + $0xa4] ss:$16 sps:$4 sm:$0xff]  }
0x1106   :  { %7487 = vmatprep.subr.bf16.mxu0 %v8634_v7  ;;  %2448 = vmatprep.subr.bf16.mxu1 %v7860_v18  ;;  %v7902_v18 = vld [vmem:[%s10124_s10 + $0x30] sm:$0xff]  }
0x1109   :  { %7488 = vmatpush3.bf16.msra.mxu0 %v7826_v20  ;;  %v7863_v20 = vld [vmem:[%s10123_s14 + $0xac] ss:$16 sps:$4 sm:$0xff]  }
0x110a   :  { %7489 = vmatprep.subr.bf16.mxu0 %v8634_v7 }
0x110d   :  { %7490 = vmatpush3.bf16.msra.mxu0 %v7827_v21  ;;  %v7858_v21 = vld [vmem:[%s10123_s14 + $0xa0] ss:$16 sps:$4 sm:$0xff]  }
0x110e   :  { %2481 = vmatprep.subr.bf16.mxu0 %v7833_v53  ;;  %2449 = vmatpush1.bf16.msra.mxu1 %v7858_v21  ;;  %v7877_v53 = vld [vmem:[%s10124_s10 + $0xc0] sm:$0xff]   ;;  %v7904_v21 = vld [vmem:[%s10124_s10 + $0x78] sm:$0xff]  }
0x11bf   :  { %v2057_v22 = vpop.f32.mrb[52].mxu1 }
0x11c0   :  { %v7732_v24 = vpack.i.bf16 %v2057_v22, %v9228_v31  ;;  %v7473_v19 = vpop.f32.mrb[53].mxu1  ;;  %v7861_v22 = vld [vmem:[%s10123_s14 + $0xa8] ss:$16 sps:$4 sm:$0xff]  }
0x11c1   :  { %v2060_v25 = vpop.f32.mrb[54].mxu1  ;;  %v7869_v19 = vld [vmem:[%s10123_s14 + $0xcc] ss:$16 sps:$4 sm:$0xff]  }
0x11c2   :  { %7733 = vrot.lane.b32.xlu0 %v7732_v24, %s8626_s23  ;;  %v7474_v6 = vpop.f32.mrb[55].mxu1  ;;  %v7866_v24 = vld [vmem:[%s10123_s14 + $0xc4] ss:$16 sps:$4 sm:$0xff]   ;;  %v7864_v25 = vld [vmem:[%s10123_s14 + $0xc0] ss:$16 sps:$4 sm:$0xff]  }
0x11c3   :  { %v2003_v27 = vpop.f32.mrb[24].mxu0  ;;  %v7867_v6 = vld [vmem:[%s10123_s14 + $0xc8] ss:$16 sps:$4 sm:$0xff]   ;;  %2450 = vmatprep.subr.bf16.mxu1 %v7866_v24 }
0x11c4   :  { %v7467_v28 = vpop.f32.mrb[25].mxu0  ;;  %2451 = vmatpush1.bf16.msra.mxu1 %v7864_v25  ;;  %v7906_v24 = vld [vmem:[%s10124_s10 + $0x38] sm:$0xff]   ;;  %v2255_v25 = vld [vmem:[%s10125_s24] sm:$0xf] }
0x11c5   :  { %v2006_v30 = vpop.f32.mrb[26].mxu0  ;;  %v7875_v28 = vld [vmem:[%s10123_s14 + $0xec] ss:$16 sps:$4 sm:$0xff]  }
0x11c6   :  { %v7468_v34 = vpop.f32.mrb[27].mxu0  ;;  %v7870_v30 = vld [vmem:[%s10123_s14 + $0xe0] ss:$16 sps:$4 sm:$0xff]  }
0x11c7   :  { %v7873_v34 = vld [vmem:[%s10123_s14 + $0xe8] ss:$16 sps:$4 sm:$0xff]  }
0x1234   :  { %v7734_v35 = vpop.permute.xlu0 %7733 }
0x1235   :  { %v7736_v36 = vunpack.i.h.bf16 %v7734_v35  ;;  %v7735_v37 = vunpack.i.l.bf16 %v7734_v35 }
0x1237   :  { %v2067_v38 = vsel %vm685_vm1, %v2003_v27, %v7736_v36  ;;  %v1802_v42 = vsel %vm685_vm1, %v9226_v26, %v7735_v37  ;;  %v7872_v27 = vld [vmem:[%s10123_s14 + $0xe4] ss:$16 sps:$4 sm:$0xff]  }
0x1238   :  { %v2085_v31 = vpack.c.bf16 %v2067_v38, %v1802_v42  ;;  %2452 = vmatprep.subr.bf16.mxu1 %v7872_v27  ;;  %v2261_v27 = vrot.slane %v2255_v25, %v9008_v58 }
0x1239   :  { %2453 = vmatpush1.bf16.msra.mxu1 %v7870_v30  ;;  %v2265_v30 = vrot.slane %v2255_v25, %v9015_v61 }
0x123a   :  { %7492 = vmatmul.mubr.bf16.vlgmr.msra.gmra.mrb[28].mxu0 %v2085_v31 }
0x123b   :  { %2513 = vmatprep.mubr.bf16.mxu0 %v8635_v33  ;;  %2482 = vmatpush1.bf16.msra.mxu0 %v7831_v55  ;;  %v7876_v55 = vld [vmem:[%s10124_s10 + $0x40] sm:$0xff]  }
0x123c   :  { %2483 = vmatprep.subr.bf16.mxu0 %v7839_v56  ;;  %v7879_v56 = vld [vmem:[%s10124_s10 + $0x80] sm:$0xff]   ;;  %7163 = vmatprep.subr.bf16.mxu1 %v7876_v55 }
0x130d   :  { %v2174_v44 = vpop.f32.mrb[28].mxu0 }
0x130e   :  { %v2175_v45 = vadd.f32 %v6649_v43, %v2174_v44  ;;  %v7493_v46 = vpop.f32.mrb[29].mxu0 }
0x130f   :  { %v2177_v47 = vpop.f32.mrb[30].mxu0 }
0x1310   :  { %v2178_v32 = vadd.f32 %v6649_v43, %v2177_v47  ;;  %v7494_v48 = vpop.f32.mrb[31].mxu0  ;;  %v2181_v50 = vadd.f32 %v2175_v45, %v9153_v39  ;;  %v7837_v39 = vld [vmem:[%s10123_s14 + $0x28] ss:$16 sps:$4 sm:$0xff]   ;;  %v6658_v45 = vld [vmem:[#allocation20] ss:$0 sm:$0xff] }
0x1311   :  { %2484 = vmatpush1.bf16.msra.mxu0 %v7837_v39  ;;  %v6659_v48 = vld [vmem:[#allocation21] ss:$0 sm:$0xff]  ;;  %v7881_v39 = vld [vmem:[%s10124_s10 + $0xc8] sm:$0xff]  }
0x1312   :  { %2185 = vadd.xlane.f32.xlu1 %v2181_v50  ;;  %v2182_v26 = vadd.f32 %v2178_v32, %v9155_v41  ;;  %2485 = vmatprep.subr.bf16.mxu0 %v7845_v10  ;;  %v7891_v10 = vld [vmem:[%s10124_s10 + $0x98] sm:$0xff]  }
0x1314   :  { %2187 = vadd.xlane.f32.xlu0 %v2182_v26 }
0x1315   :  { %2486 = vmatpush1.bf16.msra.mxu0 %v7843_v11  ;;  %v7893_v11 = vld [vmem:[%s10124_s10 + $0xe0] sm:$0xff]  }
0x1316   :  { %2487 = vmatprep.subr.bf16.mxu0 %v7851_v49  ;;  %v7895_v49 = vld [vmem:[%s10124_s10 + $0xa0] sm:$0xff]  }
0x1319   :  { %2488 = vmatpush1.bf16.msra.mxu0 %v7849_v14  ;;  %v7897_v14 = vld [vmem:[%s10124_s10 + $0xe8] sm:$0xff]  }
0x131a   :  { %2489 = vmatprep.subr.bf16.mxu0 %v7857_v17  ;;  %v7899_v17 = vld [vmem:[%s10124_s10 + $0xa8] sm:$0xff]  }
0x131d   :  { %2490 = vmatpush1.bf16.msra.mxu0 %v7855_v16  ;;  %v7901_v16 = vld [vmem:[%s10124_s10 + $0xf0] sm:$0xff]  }
0x131e   :  { %2491 = vmatprep.subr.bf16.mxu0 %v7863_v20  ;;  %v7903_v20 = vld [vmem:[%s10124_s10 + $0xb0] sm:$0xff]  }
0x1321   :  { %2492 = vmatpush1.bf16.msra.mxu0 %v7861_v22  ;;  %v7905_v22 = vld [vmem:[%s10124_s10 + $0xf8] sm:$0xff]  }
0x1322   :  { %2493 = vmatprep.subr.bf16.mxu0 %v7869_v19  ;;  %v7907_v19 = vld [vmem:[%s10124_s10 + $0xb8] sm:$0xff]  }
0x1325   :  { %2494 = vmatpush1.bf16.msra.mxu0 %v7867_v6  ;;  %v9339_v6 = vsub.s32 3, %v9005_v57 }
0x1326   :  { %2495 = vmatprep.subr.bf16.mxu0 %v7875_v28  ;;  %v2269_v28 = vrot.slane %v2255_v25, %v9011_v59 }
0x1329   :  { %2496 = vmatpush1.bf16.msra.mxu0 %v7873_v34  ;;  %v2273_v34 = vrot.slane %v2255_v25, %v9339_v6 }
0x132a   :  { %7185 = vmatprep.subr.bf16.mxu0 %v7877_v53 }
0x139f   :  { %v2186_v41 = vpop.xlane.xlu1 %2185 }
0x13a0   :  { %v2189_v62 = vmul.f32 0.0078125, %v2186_v41  ;;  %v7882_v41 = vld [vmem:[%s10124_s10 + $0x8] sm:$0xff]  }
0x13a1   :  { %v2188_v63 = vpop.xlane.xlu0 %2187 }
0x13a2   :  { %v9264_v2 = vsub.f32 %v2181_v50, %v2189_v62  ;;  %v2190_v1 = vmul.f32 0.0078125, %v2188_v63  ;;  %v7883_v62 = vld [vmem:[%s10124_s10 + $0x88] sm:$0xff]   ;;  %v7884_v63 = vld [vmem:[%s10124_s10 + $0x50] sm:$0xff]  }
0x13a4   :  { %v9266_v3 = vsub.f32 %v2182_v26, %v2190_v1  ;;  %v2193_v8 = vmul.f32 %v9264_v2, %v9264_v2  ;;  %v7886_v1 = vld [vmem:[%s10124_s10 + $0x10] sm:$0xff]  }
0x13a6   :  { %2195 = vadd.xlane.f32.xlu1 %v2193_v8  ;;  %v2194_v9 = vmul.f32 %v9266_v3, %v9266_v3  ;;  %v7888_v8 = vld [vmem:[%s10124_s10 + $0x58] sm:$0xff]  }
0x13aa   :  { %2197 = vadd.xlane.f32.xlu1 %v2194_v9  ;;  %v7889_v9 = vld [vmem:[%s10124_s10 + $0xd8] sm:$0xff]  }
0x1433   :  { %v2196_v35 = vpop.xlane.xlu1 %2195 }
0x1434   :  { %v2199_v36 = vmul.f32 0.0078125, %v2196_v35 }
0x1436   :  { %v2201_v37 = vadd.f32 1e-12, %v2199_v36 }
0x1437   :  { %v2198_v38 = vpop.xlane.xlu1 %2197 }
0x1438   :  { %8108 = vrsqrt.f32 %v2201_v37  ;;  %v2200_v42 = vmul.f32 0.0078125, %v2198_v38 }
0x143a   :  { %v2202_v31 = vadd.f32 1e-12, %v2200_v42 }
0x143c   :  { %8110 = vrsqrt.f32 %v2202_v31 }
0x1442   :  { %v8109_v43 = vpop.eup %8108 }
0x1443   :  { %v2205_v44 = vmul.f32 %v8109_v43, %v9264_v2  ;;  %v7885_v2 = vld [vmem:[%s10124_s10 + $0xd0] sm:$0xff]  }
0x1445   :  { %v2213_v32 = vmul.f32 %v6658_v45, %v2205_v44 }
0x1446   :  { %v8111_v46 = vpop.eup %8110 }
0x1447   :  { %v2206_v47 = vmul.f32 %v8111_v46, %v9266_v3  ;;  %v9298_v26 = vadd.f32 %v6659_v48, %v2213_v32  ;;  %v7887_v3 = vld [vmem:[%s10124_s10 + $0x90] sm:$0xff]  }
0x1449   :  { %v2214_v50 = vmul.f32 %v6658_v45, %v2206_v47 }
0x144b   :  { %v9300_v51 = vadd.f32 %v6659_v48, %v2214_v50 }
0x144d   :  { %v2256_v52 = vpack.c.bf16 %v9300_v51, %v9298_v26 }
0x144f   :  { %2471 = vmatmul.mubr.bf16.vlgmr.msra.gmra.mrb[56].mxu1 %v2256_v52  ;;  %2514 = vmatmul.mubr.bf16.vlgmr.msra.gmra.mrb[32].mxu0 %v2256_v52 }
0x1450   :  { %7164 = vmatpush3.bf16.msra.mxu1 %v7878_v54  ;;  %7186 = vmatpush3.bf16.msra.mxu0 %v7879_v56 }
0x1451   :  { %7165 = vmatprep.subr.bf16.mxu1 %v7880_v60  ;;  %7187 = vmatprep.subr.bf16.mxu0 %v7881_v39 }
0x1454   :  { %7166 = vmatpush3.bf16.msra.mxu1 %v7882_v41  ;;  %7188 = vmatpush3.bf16.msra.mxu0 %v7883_v62 }
0x1455   :  { %7167 = vmatprep.subr.bf16.mxu1 %v7884_v63  ;;  %7189 = vmatprep.subr.bf16.mxu0 %v7885_v2 }
0x1458   :  { %7168 = vmatpush3.bf16.msra.mxu1 %v7886_v1  ;;  %7190 = vmatpush3.bf16.msra.mxu0 %v7887_v3 }
0x1459   :  { %7169 = vmatprep.subr.bf16.mxu1 %v7888_v8  ;;  %7191 = vmatprep.subr.bf16.mxu0 %v7889_v9 }
0x145c   :  { %7170 = vmatpush3.bf16.msra.mxu1 %v7890_v5  ;;  %7192 = vmatpush3.bf16.msra.mxu0 %v7891_v10 }
0x145d   :  { %7171 = vmatprep.subr.bf16.mxu1 %v7892_v0  ;;  %7193 = vmatprep.subr.bf16.mxu0 %v7893_v11 }
0x1460   :  { %7172 = vmatpush3.bf16.msra.mxu1 %v7894_v12  ;;  %7194 = vmatpush3.bf16.msra.mxu0 %v7895_v49 }
0x1461   :  { %7173 = vmatprep.subr.bf16.mxu1 %v7896_v13  ;;  %7195 = vmatprep.subr.bf16.mxu0 %v7897_v14 }
0x1464   :  { %7174 = vmatpush3.bf16.msra.mxu1 %v7898_v15  ;;  %7196 = vmatpush3.bf16.msra.mxu0 %v7899_v17 }
0x1465   :  { %7175 = vmatprep.subr.bf16.mxu1 %v7900_v4  ;;  %7197 = vmatprep.subr.bf16.mxu0 %v7901_v16 }
0x1468   :  { %7176 = vmatpush3.bf16.msra.mxu1 %v7902_v18  ;;  %7198 = vmatpush3.bf16.msra.mxu0 %v7903_v20 }
0x1469   :  { %7177 = vmatprep.subr.bf16.mxu1 %v7904_v21  ;;  %7199 = vmatprep.subr.bf16.mxu0 %v7905_v22 }
0x146c   :  { %7178 = vmatpush3.bf16.msra.mxu1 %v7906_v24  ;;  %7200 = vmatpush3.bf16.msra.mxu0 %v7907_v19 }
0x146d   :  { %7495 = vmatprep.subr.bf16.mxu0 %v8634_v7 }
0x1522   :  { %v2472_v35 = vpop.f32.mrb[56].mxu1  ;;  %v2515_v36 = vpop.f32.mrb[32].mxu0 }
0x1523   :  { %v2473_v37 = vadd.f32 %v2472_v35, %v2261_v27  ;;  %v9345_v38 = vadd.f32 %v2515_v36, %v2269_v28  ;;  %v2474_v42 = vpop.f32.mrb[57].mxu1  ;;  %v2517_v31 = vpop.f32.mrb[33].mxu0 }
0x1524   :  { %v9347_v43 = vadd.f32 %v2474_v42, %v2265_v30  ;;  %v9349_v44 = vadd.f32 %v2517_v31, %v2273_v34  ;;  %v2476_v45 = vpop.f32.mrb[58].mxu1  ;;  %v2519_v46 = vpop.f32.mrb[34].mxu0 }
0x1525   :  { %v9351_v47 = vmul.f32 0.70710677, %v2473_v37  ;;  %v9354_v32 = vmul.f32 0.70710677, %v9345_v38  ;;  %v2478_v54 = vpop.f32.mrb[59].mxu1  ;;  %v2521_v39 = vpop.f32.mrb[35].mxu0  ;;  %v9366_v3 = vadd.f32 %v2476_v45, %v2261_v27  ;;  %v9371_v5 = vadd.f32 %v2519_v46, %v2269_v28 }
0x1526   :  { %v9357_v48 = vmul.f32 0.70710677, %v9347_v43  ;;  %v9363_v53 = vmul.f32 0.70710677, %v9349_v44  ;;  %v9373_v0 = vadd.f32 %v2478_v54, %v2265_v30  ;;  %v9383_v20 = vadd.f32 %v2521_v39, %v2273_v34 }
0x1527   :  { %v2556_v50 = vand.u32 2147483647, %v9351_v47  ;;  %v2558_v52 = vand.u32 2147483647, %v9354_v32  ;;  %v9369_v9 = vmul.f32 0.70710677, %v9366_v3 }
0x1528   :  { %v2557_v55 = vand.u32 2147483647, %v9357_v48  ;;  %v2559_v2 = vand.u32 2147483647, %v9363_v53  ;;  %v9377_v13 = vmul.f32 0.70710677, %v9371_v5 }
0x1529   :  { %v2564_v56 = vmul.f32 0.3275911, %v2556_v50  ;;  %v2566_v60 = vmul.f32 0.3275911, %v2558_v52  ;;  %v2668_v11 = vmul.f32 %v2556_v50, %v2556_v50  ;;  %v2560_v12 = vand.u32 2147483647, %v9369_v9 }
0x152a   :  { %v2565_v41 = vmul.f32 0.3275911, %v2557_v55  ;;  %v2567_v8 = vmul.f32 0.3275911, %v2559_v2  ;;  %v2670_v49 = vmul.f32 %v2558_v52, %v2558_v52  ;;  %v2669_v15 = vmul.f32 %v2557_v55, %v2557_v55 }
0x152b   :  { %v2572_v62 = vadd.f32 1.0, %v2564_v56  ;;  %v2574_v63 = vadd.f32 1.0, %v2566_v60  ;;  %v2568_v14 = vmul.f32 0.3275911, %v2560_v12  ;;  %v2562_v17 = vand.u32 2147483647, %v9377_v13 }
0x152c   :  { %v2573_v1 = vadd.f32 1.0, %v2565_v41  ;;  %v2575_v10 = vadd.f32 1.0, %v2567_v8  ;;  %v9381_v4 = vmul.f32 0.70710677, %v9373_v0  ;;  %v2676_v16 = vsub.f32 0.0, %v2668_v11 }
0x152d   :  { %8112 = vrcp.f32 %v2572_v62  ;;  %v2576_v18 = vadd.f32 1.0, %v2568_v14  ;;  %v2678_v21 = vsub.f32 0.0, %v2670_v49  ;;  %v2570_v22 = vmul.f32 0.3275911, %v2562_v17 }
0x152e   :  { %8114 = vrcp.f32 %v2574_v63  ;;  %v2561_v24 = vand.u32 2147483647, %v9381_v4  ;;  %v9388_v25 = vmul.f32 0.5, %v2473_v37  ;;  %v2671_v27 = vmul.f32 %v2559_v2, %v2559_v2 }
0x152f   :  { %8116 = vrcp.f32 %v2573_v1  ;;  %v2677_v35 = vsub.f32 0.0, %v2669_v15  ;;  %v2578_v36 = vadd.f32 1.0, %v2570_v22  ;;  %v2684_v31 = vmul.f32 1.442695, %v2676_v16 }
0x1530   :  { %8118 = vrcp.f32 %v2575_v10  ;;  %v2569_v42 = vmul.f32 0.3275911, %v2561_v24  ;;  %v9395_v45 = vmul.f32 0.70710677, %v9383_v20  ;;  %v2688_v50 = vmul.f32 1.442695, %v2678_v21 }
0x1531   :  { %8120 = vrcp.f32 %v2576_v18  ;;  %v9400_v55 = vmul.f32 0.5, %v9345_v38  ;;  %v2679_v56 = vsub.f32 0.0, %v2671_v27  ;;  %v2686_v62 = vmul.f32 1.442695, %v2677_v35 }
0x1532   :  { %8122 = vrcp.f32 %v2578_v36  ;;  %v2577_v37 = vadd.f32 1.0, %v2569_v42  ;;  %v2563_v60 = vand.u32 2147483647, %v9395_v45  ;;  %v2672_v63 = vmul.f32 %v2560_v12, %v2560_v12 }
0x1533   :  { %v2674_v8 = vmul.f32 %v2562_v17, %v2562_v17  ;;  %v2690_v15 = vmul.f32 1.442695, %v2679_v56  ;;  %vm2540_vm13 = vcmp.ge.f32.partialorder %v9351_v47, 0.0  ;;  %vm2542_vm14 = vcmp.ge.f32.partialorder %v9354_v32, 0.0 }
0x1534   :  { %8124 = vrcp.f32 %v2577_v37  ;;  %v2571_v10 = vmul.f32 0.3275911, %v2563_v60  ;;  %v2680_v27 = vsub.f32 0.0, %v2672_v63  ;;  %vm2541_vm15 = vcmp.ge.f32.partialorder %v9357_v48, 0.0 }
0x1535   :  { %8126 = vpow2.f32 %v2684_v31  ;;  %vm2544_vm3 = vcmp.ge.f32.partialorder %v9369_v9, 0.0  ;;  %vm2546_vm4 = vcmp.ge.f32.partialorder %v9377_v13, 0.0  ;;  %vm2543_vm5 = vcmp.ge.f32.partialorder %v9363_v53, 0.0 }
0x1536   :  { %8128 = vpow2.f32 %v2688_v50  ;;  %v2579_v16 = vadd.f32 1.0, %v2571_v10  ;;  %vm2545_vm6 = vcmp.ge.f32.partialorder %v9381_v4, 0.0  ;;  %vm2547_vm7 = vcmp.ge.f32.partialorder %v9395_v45, 0.0 }
0x1537   :  { %v9386_v19 = vpop.eup %8112  ;;  %8130 = vpow2.f32 %v2686_v62  ;;  %v2692_v62 = vmul.f32 1.442695, %v2680_v27  ;;  %v2531_v45 = vmul.f32 0.5, %v9383_v20 }
0x1538   :  { %v9390_v28 = vpop.eup %8114  ;;  %v2596_v30 = vmul.f32 1.0614054, %v9386_v19  ;;  %8132 = vrcp.f32 %v2579_v16  ;;  %v2675_v16 = vmul.f32 %v2563_v60, %v2563_v60 }
0x1539   :  { %v2598_v34 = vmul.f32 1.0614054, %v9390_v28  ;;  %v9397_v52 = vpop.eup %8116  ;;  %8134 = vpow2.f32 %v2690_v15 }
0x153a   :  { %v2604_v46 = vadd.f32 -1.4531521, %v2596_v30  ;;  %v2597_v41 = vmul.f32 1.0614054, %v9397_v52  ;;  %v9405_v2 = vpop.eup %8118  ;;  %v2682_v30 = vsub.f32 0.0, %v2674_v8  ;;  %8136 = vpow2.f32 %v2692_v62 }
0x153b   :  { %v2606_v54 = vadd.f32 -1.4531521, %v2598_v34  ;;  %v2599_v49 = vmul.f32 1.0614054, %v9405_v2  ;;  %v9411_v22 = vpop.eup %8120 }
0x153c   :  { %v2612_v39 = vmul.f32 %v9386_v19, %v2604_v46  ;;  %v2605_v38 = vadd.f32 -1.4531521, %v2597_v41  ;;  %v2600_v31 = vmul.f32 1.0614054, %v9411_v22  ;;  %v2673_v46 = vmul.f32 %v2561_v24, %v2561_v24  ;;  %v9417_v50 = vpop.eup %8122 }
0x153d   :  { %v2614_v1 = vmul.f32 %v9390_v28, %v2606_v54  ;;  %v2607_v21 = vadd.f32 -1.4531521, %v2599_v49  ;;  %v2602_v63 = vmul.f32 1.0614054, %v9417_v50 }
0x153e   :  { %v2620_v11 = vadd.f32 1.4214138, %v2612_v39  ;;  %v2613_v12 = vmul.f32 %v9397_v52, %v2605_v38  ;;  %v2608_v39 = vadd.f32 -1.4531521, %v2600_v31  ;;  %v9425_v38 = vpop.eup %8124  ;;  %v2681_v15 = vsub.f32 0.0, %v2673_v46 }
0x153f   :  { %v2622_v14 = vadd.f32 1.4214138, %v2614_v1  ;;  %v2615_v42 = vmul.f32 %v9405_v2, %v2607_v21  ;;  %v2696_v1 = vmul.f32 1.442695, %v2682_v30 }
0x1540   :  { %v2628_v18 = vmul.f32 %v9386_v19, %v2620_v11  ;;  %v2621_v36 = vadd.f32 1.4214138, %v2613_v12  ;;  %v2616_v24 = vmul.f32 %v9411_v22, %v2608_v39 }
0x1541   :  { %v2630_v17 = vmul.f32 %v9390_v28, %v2622_v14  ;;  %v2623_v56 = vadd.f32 1.4214138, %v2615_v42  ;;  %v2610_v14 = vadd.f32 -1.4531521, %v2602_v63  ;;  %8138 = vpow2.f32 %v2696_v1 }
0x1542   :  { %v2636_v35 = vadd.f32 -0.28449672, %v2628_v18  ;;  %v2629_v54 = vmul.f32 %v9397_v52, %v2621_v36  ;;  %v8127_v18 = vpop.eup %8126  ;;  %v2624_v27 = vadd.f32 1.4214138, %v2616_v24  ;;  %v2601_v36 = vmul.f32 1.0614054, %v9425_v38 }
0x1543   :  { %v2638_v34 = vadd.f32 -0.28449672, %v2630_v17  ;;  %v2631_v11 = vmul.f32 %v9405_v2, %v2623_v56  ;;  %v8129_v30 = vpop.eup %8128  ;;  %v2694_v63 = vmul.f32 1.442695, %v2681_v15 }
0x1544   :  { %v2644_v37 = vmul.f32 %v9386_v19, %v2636_v35  ;;  %v2637_v10 = vadd.f32 -0.28449672, %v2629_v54  ;;  %v2618_v35 = vmul.f32 %v9417_v50, %v2610_v14  ;;  %v8131_v42 = vpop.eup %8130  ;;  %v2609_v39 = vadd.f32 -1.4531521, %v2601_v36 }
0x1545   :  { %v2646_v41 = vmul.f32 %v9390_v28, %v2638_v34  ;;  %v2639_v17 = vadd.f32 -0.28449672, %v2631_v11  ;;  %v9435_v46 = vpop.eup %8132  ;;  %8140 = vpow2.f32 %v2694_v63 }
0x1546   :  { %v2652_v8 = vadd.f32 0.2548296, %v2644_v37  ;;  %v2645_v21 = vmul.f32 %v9397_v52, %v2637_v10  ;;  %v8639_v37 = vmov -1.0   ;;  %v2626_v56 = vadd.f32 1.4214138, %v2618_v35 }
0x1547   :  { %v2654_v49 = vadd.f32 0.2548296, %v2646_v41  ;;  %v2647_v60 = vmul.f32 %v9405_v2, %v2639_v17  ;;  %v2548_v54 = vsel %vm2540_vm13, 1.0, %v8639_v37  ;;  %v2550_v10 = vsel %vm2542_vm14, 1.0, %v8639_v37 }
0x1548   :  { %v2660_v12 = vmul.f32 %v9386_v19, %v2652_v8  ;;  %v2653_v34 = vadd.f32 0.2548296, %v2645_v21  ;;  %v2632_v19 = vmul.f32 %v9411_v22, %v2624_v27  ;;  %v2683_v8 = vsub.f32 0.0, %v2675_v16 }
0x1549   :  { %v2662_v31 = vmul.f32 %v9390_v28, %v2654_v49  ;;  %v8135_v28 = vpop.eup %8134  ;;  %v2634_v11 = vmul.f32 %v9417_v50, %v2626_v56  ;;  %v2617_v24 = vmul.f32 %v9425_v38, %v2609_v39  ;;  %v2603_v49 = vmul.f32 1.0614054, %v9435_v46 }
0x154a   :  { %v2700_v41 = vmul.f32 %v8127_v18, %v2660_v12  ;;  %v2640_v62 = vadd.f32 -0.28449672, %v2632_v19  ;;  %v2661_v14 = vmul.f32 %v9397_v52, %v2653_v34  ;;  %v2655_v1 = vadd.f32 0.2548296, %v2647_v60  ;;  %v8137_v34 = vpop.eup %8136 }
0x154b   :  { %v2702_v47 = vmul.f32 %v8129_v30, %v2662_v31  ;;  %v2642_v12 = vadd.f32 -0.28449672, %v2634_v11  ;;  %v2625_v15 = vadd.f32 1.4214138, %v2617_v24  ;;  %v2611_v16 = vadd.f32 -1.4531521, %v2603_v49  ;;  %v8139_v63 = vpop.eup %8138 }
0x154c   :  { %v2648_v18 = vmul.f32 %v9411_v22, %v2640_v62  ;;  %v2708_v21 = vsub.f32 1.0, %v2700_v41  ;;  %v2698_v32 = vmul.f32 1.442695, %v2683_v8  ;;  %v2701_v52 = vmul.f32 %v8131_v42, %v2661_v14 }
0x154d   :  { %v2650_v27 = vmul.f32 %v9417_v50, %v2642_v12  ;;  %v2633_v35 = vmul.f32 %v9425_v38, %v2625_v15  ;;  %v2619_v30 = vmul.f32 %v9435_v46, %v2611_v16  ;;  %v2710_v36 = vsub.f32 1.0, %v2702_v47 }
0x154e   :  { %v2656_v17 = vadd.f32 0.2548296, %v2648_v18  ;;  %v2663_v60 = vmul.f32 %v9405_v2, %v2655_v1  ;;  %v2716_v41 = vmul.f32 %v2708_v21, %v2548_v54  ;;  %v2549_v48 = vsel %vm2541_vm15, 1.0, %v8639_v37 }
0x154f   :  { %v2658_v19 = vadd.f32 0.2548296, %v2650_v27  ;;  %v2641_v56 = vadd.f32 -0.28449672, %v2633_v35  ;;  %v2627_v39 = vadd.f32 1.4214138, %v2619_v30  ;;  %8142 = vpow2.f32 %v2698_v32  ;;  %v8141_v21 = vpop.eup %8140 }
0x1550   :  { %v2664_v31 = vmul.f32 %v9411_v22, %v2656_v17  ;;  %v2552_v8 = vsel %vm2544_vm3, 1.0, %v8639_v37  ;;  %v2718_v11 = vmul.f32 %v2710_v36, %v2550_v10  ;;  %v2709_v24 = vsub.f32 1.0, %v2701_v52 }
0x1551   :  { %v2666_v42 = vmul.f32 %v9417_v50, %v2658_v19  ;;  %v2649_v9 = vmul.f32 %v9425_v38, %v2641_v56  ;;  %v2635_v22 = vmul.f32 %v9435_v46, %v2627_v39  ;;  %v2703_v49 = vmul.f32 %v8135_v28, %v2663_v60 }
0x1552   :  { %v2704_v62 = vmul.f32 %v8137_v34, %v2664_v31  ;;  %v2724_v1 = vadd.f32 1.0, %v2716_v41  ;;  %v2528_v18 = vmul.f32 0.5, %v9366_v3  ;;  %v2554_v50 = vsel %vm2546_vm4, 1.0, %v8639_v37 }
0x1553   :  { %v2706_v54 = vmul.f32 %v8139_v63, %v2666_v42  ;;  %v2657_v47 = vadd.f32 0.2548296, %v2649_v9  ;;  %v2643_v14 = vadd.f32 -0.28449672, %v2635_v22  ;;  %v2726_v17 = vadd.f32 1.0, %v2718_v11 }
0x1554   :  { %v2712_v2 = vsub.f32 1.0, %v2704_v62  ;;  %v2717_v13 = vmul.f32 %v2709_v24, %v2549_v48  ;;  %v2711_v32 = vsub.f32 1.0, %v2703_v49  ;;  %v2732_v3 = vmul.f32 %v2724_v1, %v9388_v25  ;;  %v6692_v1 = vld [vmem:[#allocation23] ss:$0 sm:$0xff] }
0x1555   :  { %v2714_v15 = vsub.f32 1.0, %v2706_v54  ;;  %v2665_v16 = vmul.f32 %v9425_v38, %v2657_v47  ;;  %v2651_v10 = vmul.f32 %v9435_v46, %v2643_v14  ;;  %v2551_v36 = vsel %vm2543_vm5, 1.0, %v8639_v37 }
0x1556   :  { %v2720_v12 = vmul.f32 %v2712_v2, %v2552_v8  ;;  %v2530_v38 = vmul.f32 0.5, %v9371_v5  ;;  %v2553_v34 = vsel %vm2545_vm6, 1.0, %v8639_v37  ;;  %v2734_v56 = vmul.f32 %v2726_v17, %v9400_v55 }
0x1557   :  { %v2722_v27 = vmul.f32 %v2714_v15, %v2554_v50  ;;  %v2705_v35 = vmul.f32 %v8141_v21, %v2665_v16  ;;  %v2659_v30 = vadd.f32 0.2548296, %v2651_v10  ;;  %v2725_v39 = vadd.f32 1.0, %v2717_v13 }
0x1558   :  { %v2728_v28 = vadd.f32 1.0, %v2720_v12  ;;  %v2719_v25 = vmul.f32 %v2711_v32, %v2551_v36  ;;  %v2525_v63 = vmul.f32 0.5, %v9347_v43  ;;  %v2529_v8 = vmul.f32 0.5, %v9373_v0  ;;  %v7908_v36 = vld [vmem:[%s10117_s29 + $0xc0] ss:$12 sps:$4 sm:$0xff]  }
0x1559   :  { %v2730_v31 = vadd.f32 1.0, %v2722_v27  ;;  %v2713_v60 = vsub.f32 1.0, %v2705_v35  ;;  %v2667_v19 = vmul.f32 %v9435_v46, %v2659_v30  ;;  %v8143_v4 = vpop.eup %8142  ;;  %v2555_v46 = vsel %vm2547_vm7, 1.0, %v8639_v37 }
0x155a   :  { %v2736_v52 = vmul.f32 %v2728_v28, %v2528_v18  ;;  %v2733_v22 = vmul.f32 %v2725_v39, %v2525_v63  ;;  %v2727_v11 = vadd.f32 1.0, %v2719_v25  ;;  %v2527_v2 = vmul.f32 0.5, %v9349_v44  ;;  %v7922_v63 = vld [vmem:[%s10117_s29 + $0x10c] ss:$12 sps:$4 sm:$0xff]  }
0x155b   :  { %v2738_v48 = vmul.f32 %v2730_v31, %v2530_v38  ;;  %v2721_v53 = vmul.f32 %v2713_v60, %v2553_v34  ;;  %v2707_v62 = vmul.f32 %v8143_v4, %v2667_v19  ;;  %v7911_v38 = vld [vmem:[%s10117_s29 + $0xc8] ss:$12 sps:$4 sm:$0xff]   ;;  %v7915_v34 = vld [vmem:[%s10117_s29 + $0xe0] ss:$12 sps:$4 sm:$0xff]   ;;  %v7912_v60 = vld [vmem:[%s10117_s29 + $0xd8] ss:$12 sps:$4 sm:$0xff]  }
0x155c   :  { %v2805_v41 = vpack.c.bf16 %v2736_v52, %v2732_v3  ;;  %v2735_v47 = vmul.f32 %v2727_v11, %v2527_v2  ;;  %v7910_v52 = vld [vmem:[%s10117_s29 + $0xc4] ss:$12 sps:$4 sm:$0xff]   ;;  %v7914_v31 = vld [vmem:[%s10117_s29 + $0xdc] ss:$12 sps:$4 sm:$0xff]   ;;  %v7934_v2 = vld [vmem:[%s10117_s29 + $0x154] ss:$12 sps:$4 sm:$0xff]  }
0x155d   :  { %v2807_v5 = vpack.c.bf16 %v2738_v48, %v2734_v56  ;;  %v2729_v42 = vadd.f32 1.0, %v2721_v53  ;;  %v2715_v9 = vsub.f32 1.0, %v2707_v62  ;;  %3311 = vmatprep.subr.bf16.mxu1 %v7910_v52  ;;  %v7918_v48 = vld [vmem:[%s10117_s29 + $0xf4] ss:$12 sps:$4 sm:$0xff]   ;;  %v7916_v53 = vld [vmem:[%s10117_s29 + $0xf0] ss:$12 sps:$4 sm:$0xff]  }
0x155e   :  { %v7919_v62 = vld [vmem:[%s10117_s29 + $0xf8] ss:$12 sps:$4 sm:$0xff]   ;;  %vm5889_vm15 = vcmask 1040384  }
0x155f   :  { %v2737_v55 = vmul.f32 %v2729_v42, %v2529_v8  ;;  %v2723_v24 = vmul.f32 %v2715_v9, %v2555_v46  ;;  %v7923_v8 = vld [vmem:[%s10117_s29 + $0x110] ss:$12 sps:$4 sm:$0xff]   ;;  %v7924_v9 = vld [vmem:[%s10117_s29 + $0x120] ss:$12 sps:$4 sm:$0xff]   ;;  %v7927_v46 = vld [vmem:[%s10117_s29 + $0x128] ss:$12 sps:$4 sm:$0xff]  }
0x1560   :  { %v7926_v42 = vld [vmem:[%s10117_s29 + $0x124] ss:$12 sps:$4 sm:$0xff]  }
0x1561   :  { %v2731_v49 = vadd.f32 1.0, %v2723_v24  ;;  %v2806_v54 = vpack.c.bf16 %v2737_v55, %v2733_v22  ;;  %v7930_v22 = vld [vmem:[%s10117_s29 + $0x13c] ss:$12 sps:$4 sm:$0xff]   ;;  %v7928_v11 = vld [vmem:[%s10117_s29 + $0x138] ss:$12 sps:$4 sm:$0xff]  }
0x1562   :  { %v7931_v55 = vld [vmem:[%s10117_s29 + $0x140] ss:$12 sps:$4 sm:$0xff]   ;;  %v7932_v24 = vld [vmem:[%s10117_s29 + $0x150] ss:$12 sps:$4 sm:$0xff]  }
0x1563   :  { %v2739_v14 = vmul.f32 %v2731_v49, %v2531_v45  ;;  %3039 = vmatprep.mubr.bf16.mxu1 %v2806_v54  ;;  %v7935_v45 = vld [vmem:[%s10117_s29 + $0x158] ss:$12 sps:$4 sm:$0xff]   ;;  %v7936_v54 = vld [vmem:[%s10117_s29 + $0x168] ss:$12 sps:$4 sm:$0xff]  }
0x1564   :  { %3040 = vmatmul.mubr.bf16.vlgmr.msra.gmra.mrb[60].mxu1 %v2805_v41  ;;  %v7938_v49 = vld [vmem:[%s10117_s29 + $0x16c] ss:$12 sps:$4 sm:$0xff]  }
0x1565   :  { %v2808_v43 = vpack.c.bf16 %v2739_v14, %v2735_v47  ;;  %3343 = vmatprep.mubr.bf16.mxu1 %v8635_v33  ;;  %3312 = vmatpush1.bf16.msra.mxu1 %v7908_v36  ;;  %v7939_v47 = vld [vmem:[%s10117_s29 + $0x170] ss:$12 sps:$4 sm:$0xff]  }
0x1566   :  { %3313 = vmatprep.subr.bf16.mxu1 %v7914_v31 }
0x1567   :  { %3080 = vmatprep.mubr.bf16.mxu0 %v2808_v43 }
0x1568   :  { %3081 = vmatmul.mubr.bf16.vlgmr.msra.gmra.mrb[36].mxu0 %v2807_v5  ;;  %v7920_v5 = vld [vmem:[%s10117_s29 + $0x108] ss:$12 sps:$4 sm:$0xff]  }
0x1569   :  { %7511 = vmatprep.mubr.msk.bf16.mxu0 %vm8636_vm0, %v8634_v7  ;;  %7496 = vmatpush3.bf16.msra.mxu0 %v7911_v38 }
0x156a   :  { %7497 = vmatprep.subr.bf16.mxu0 %v8634_v7  ;;  %3314 = vmatpush1.bf16.msra.mxu1 %v7912_v60 }
0x156b   :  { %3315 = vmatprep.subr.bf16.mxu1 %v7918_v48 }
0x156d   :  { %7498 = vmatpush3.bf16.msra.mxu0 %v7915_v34 }
0x156e   :  { %7499 = vmatprep.subr.bf16.mxu0 %v8634_v7  ;;  %3316 = vmatpush1.bf16.msra.mxu1 %v7916_v53 }
0x156f   :  { %3317 = vmatprep.subr.bf16.mxu1 %v7922_v63 }
0x1571   :  { %7500 = vmatpush3.bf16.msra.mxu0 %v7919_v62 }
0x1572   :  { %7501 = vmatprep.subr.bf16.mxu0 %v8634_v7  ;;  %3318 = vmatpush1.bf16.msra.mxu1 %v7920_v5 }
0x1573   :  { %3319 = vmatprep.subr.bf16.mxu1 %v7926_v42 }
0x1575   :  { %7502 = vmatpush3.bf16.msra.mxu0 %v7923_v8 }
0x1576   :  { %7503 = vmatprep.subr.bf16.mxu0 %v8634_v7  ;;  %3320 = vmatpush1.bf16.msra.mxu1 %v7924_v9 }
0x1577   :  { %3321 = vmatprep.subr.bf16.mxu1 %v7930_v22 }
0x1579   :  { %7504 = vmatpush3.bf16.msra.mxu0 %v7927_v46 }
0x157a   :  { %7505 = vmatprep.subr.bf16.mxu0 %v8634_v7  ;;  %3322 = vmatpush1.bf16.msra.mxu1 %v7928_v11 }
0x157b   :  { %3323 = vmatprep.subr.bf16.mxu1 %v7934_v2 }
0x157d   :  { %7506 = vmatpush3.bf16.msra.mxu0 %v7931_v55 }
0x157e   :  { %7507 = vmatprep.subr.bf16.mxu0 %v8634_v7  ;;  %3324 = vmatpush1.bf16.msra.mxu1 %v7932_v24 }
0x157f   :  { %3325 = vmatprep.subr.bf16.mxu1 %v7938_v49 }
0x1581   :  { %7508 = vmatpush3.bf16.msra.mxu0 %v7935_v45 }
0x1582   :  { %7509 = vmatprep.subr.bf16.mxu0 %v8634_v7  ;;  %3326 = vmatpush1.bf16.msra.mxu1 %v7936_v54 }
0x1583   :  { %7515 = vmatprep.subr.bf16.mxu1 %v8634_v7 }
0x1585   :  { %7510 = vmatpush3.bf16.msra.mxu0 %v7939_v47 }
0x1586   :  { %7539 = vmatprep.subr.bf16.mxu0 %v8634_v7 }
0x1637   :  { %v7179_v0 = vpop.f32.mrb[60].mxu1 }
0x1638   :  { %v7180_v18 = vpop.f32.mrb[61].mxu1 }
0x1639   :  { %v7181_v44 = vadd.f32 %v7180_v18, %v7179_v0  ;;  %v7182_v12 = vpop.f32.mrb[62].mxu1 }
0x163a   :  { %v7183_v20 = vpop.f32.mrb[63].mxu1 }
0x163b   :  { %v7201_v50 = vpop.f32.mrb[36].mxu0  ;;  %v3042_v15 = vadd.f32 %v7181_v44, %v6692_v1  ;;  %v7184_v16 = vadd.f32 %v7183_v20, %v7182_v12  ;;  %v6725_v20 = vld [vmem:[#allocation24] ss:$0 sm:$0xff] }
0x163c   :  { %v7202_v10 = vpop.f32.mrb[37].mxu0 }
0x163d   :  { %v7203_v21 = vadd.f32 %v7202_v10, %v7201_v50  ;;  %v7204_v17 = vpop.f32.mrb[38].mxu0  ;;  %v3045_v13 = vadd.f32 %v7184_v16, %v6692_v1 }
0x163e   :  { %v7205_v28 = vpop.f32.mrb[39].mxu0 }
0x163f   :  { %v3083_v32 = vadd.f32 %v7203_v21, %v3042_v15  ;;  %v7206_v27 = vadd.f32 %v7205_v28, %v7204_v17  ;;  %v6726_v21 = vld [vmem:[#allocation26] ss:$0 sm:$0xff] }
0x1641   :  { %v3086_v35 = vadd.f32 %v7206_v27, %v3045_v13  ;;  %v3089_v30 = vadd.f32 %v3083_v32, %v9298_v26  ;;  %v6759_v27 = vld [vmem:[%s10118_s28 + $0x3] sm:$0x7] }
0x1643   :  { %3093 = vadd.xlane.f32.xlu0 %v3089_v30  ;;  %v3090_v3 = vadd.f32 %v3086_v35, %v9300_v51  ;;  %v3171_v35 = vrot.slane %v6759_v27, %v9008_v58 }
0x1645   :  { %3095 = vadd.xlane.f32.xlu1 %v3090_v3 }
0x16d0   :  { %v3094_v26 = vpop.xlane.xlu0 %3093 }
0x16d1   :  { %v3097_v51 = vmul.f32 0.0078125, %v3094_v26 }
0x16d2   :  { %v3096_v19 = vpop.xlane.xlu1 %3095 }
0x16d3   :  { %v3099_v4 = vsub.f32 %v3089_v30, %v3097_v51  ;;  %v3098_v56 = vmul.f32 0.0078125, %v3096_v19  ;;  %v3179_v30 = vrot.slane %v6759_v27, %v9011_v59 }
0x16d5   :  { %v3100_v39 = vsub.f32 %v3090_v3, %v3098_v56  ;;  %v3101_v41 = vmul.f32 %v3099_v4, %v3099_v4  ;;  %v3175_v3 = vrot.slane %v6759_v27, %v9015_v61 }
0x16d7   :  { %3103 = vadd.xlane.f32.xlu0 %v3101_v41  ;;  %v3102_v25 = vmul.f32 %v3100_v39, %v3100_v39 }
0x16d9   :  { %3105 = vadd.xlane.f32.xlu1 %v3102_v25 }
0x1764   :  { %v3104_v14 = vpop.xlane.xlu0 %3103 }
0x1765   :  { %v3107_v43 = vmul.f32 0.0078125, %v3104_v14 }
0x1766   :  { %v3106_v0 = vpop.xlane.xlu1 %3105 }
0x1767   :  { %v3109_v1 = vadd.f32 1e-12, %v3107_v43  ;;  %v3108_v18 = vmul.f32 0.0078125, %v3106_v0 }
0x1769   :  { %8144 = vrsqrt.f32 %v3109_v1  ;;  %v3110_v44 = vadd.f32 1e-12, %v3108_v18 }
0x176b   :  { %8146 = vrsqrt.f32 %v3110_v44 }
0x1773   :  { %v8145_v12 = vpop.eup %8144 }
0x1774   :  { %v3113_v50 = vmul.f32 %v8145_v12, %v3099_v4 }
0x1775   :  { %v8147_v15 = vpop.eup %8146 }
0x1776   :  { %v3114_v16 = vmul.f32 %v8147_v15, %v3100_v39  ;;  %v3121_v10 = vmul.f32 %v6725_v20, %v3113_v50 }
0x1778   :  { %v3122_v17 = vmul.f32 %v6725_v20, %v3114_v16  ;;  %v9519_v13 = vadd.f32 %v6726_v21, %v3121_v10 }
0x177a   :  { %v9521_v28 = vadd.f32 %v6726_v21, %v3122_v17 }
0x177c   :  { %v3166_v32 = vpack.c.bf16 %v9521_v28, %v9519_v13 }
0x177e   :  { %3344 = vmatmul.mubr.bf16.vlgmr.msra.gmra.mrb[64].mxu1 %v3166_v32  ;;  %7512 = vmatmul.mubr.bf16.vlgmr.msra.gmra.mrb[40].mxu0 %v3166_v32 }
0x177f   :  { %7517 = vmatprep.mubr.msk.bf16.mxu1 %vm8636_vm0, %v8634_v7  ;;  %7541 = vmatprep.mubr.msk.bf16.mxu0 %vm8636_vm0, %v8634_v7 }
0x1851   :  { %v3345_v36 = vpop.f32.mrb[64].mxu1  ;;  %v3388_v52 = vpop.f32.mrb[40].mxu0 }
0x1852   :  { %v3346_v38 = vadd.f32 %v3345_v36, %v3171_v35  ;;  %v9533_v31 = vadd.f32 %v3388_v52, %v3179_v30  ;;  %v3347_v34 = vpop.f32.mrb[65].mxu1  ;;  %v7513_v60 = vpop.f32.mrb[41].mxu0 }
0x1853   :  { %v3348_v26 = vadd.f32 %v3347_v34, %v3175_v3  ;;  %v3349_v51 = vpop.f32.mrb[66].mxu1  ;;  %v3391_v19 = vpop.f32.mrb[42].mxu0 }
0x1854   :  { %v3351_v4 = vpop.f32.mrb[67].mxu1  ;;  %v7514_v56 = vpop.f32.mrb[43].mxu0  ;;  %3396 = vrot.lane.b32.xlu1 %v3346_v38, %s8626_s23  ;;  %v9538_v53 = vadd.f32 %v3391_v19, %v3179_v30  ;;  %v9542_v63 = vadd.f32 %v3349_v51, %v3171_v35  ;;  %v3399_v5 = vpack.c.bf16 %v3346_v38, %v3346_v38  ;;  %v3411_v24 = vpack.c.bf16 %v9533_v31, %v9533_v31 }
0x1855   :  { %v3405_v39 = vpack.c.bf16 %v3348_v26, %v3348_v26  ;;  %v3352_v41 = vadd.f32 %v3351_v4, %v3175_v3  ;;  %3402 = vrot.lane.b32.xlu0 %v3348_v26, %s8626_s23 }
0x1856   :  { %v3646_v8 = vpack.c.bf16 %v9538_v53, %v9538_v53  ;;  %v3634_v42 = vpack.c.bf16 %v9542_v63, %v9542_v63  ;;  %v3537_v45 = vsel %vm810_vm2, %v3411_v24, 0 }
0x1857   :  { %v3640_v25 = vpack.c.bf16 %v3352_v41, %v3352_v41  ;;  %v3417_v48 = vsel %vm685_vm1, %v3405_v39, 0 }
0x1858   :  { %7516 = vmatpush3.bf16.xpose.msra.mxu1 %v3417_v48  ;;  %v3772_v9 = vsel %vm810_vm2, %v3646_v8, 0 }
0x1859   :  { %v3652_v62 = vsel %vm685_vm1, %v3640_v25, 0  ;;  %7521 = vmatprep.subr.bf16.mxu1 %v8634_v7 }
0x185a   :  { %7540 = vmatpush3.bf16.xpose.msra.mxu0 %v3652_v62 }
0x185b   :  { %7551 = vmatprep.subr.bf16.mxu0 %v8634_v7 }
0x185f   :  { %7518 = vmatmul.mubr.msk.bf16.vlgmr.msra.gmra.mrb[68].mxu1 %vm685_vm1, %v3399_v5 }
0x1860   :  { %7523 = vmatprep.mubr.msk.bf16.mxu1 %vm8636_vm0, %v8634_v7 }
0x1861   :  { %7542 = vmatmul.mubr.msk.bf16.vlgmr.msra.gmra.mrb[44].mxu0 %vm685_vm1, %v3634_v42 }
0x1862   :  { %7552 = vmatpush3.bf16.msra.mxu0 %v3772_v9  ;;  %7553 = vmatprep.mubr.msk.bf16.mxu0 %vm8636_vm0, %v8634_v7 }
0x1863   :  { %7563 = vmatprep.subr.bf16.mxu0 %v8634_v7 }
0x18c6   :  { %v3397_v55 = vpop.permute.xlu1 %3396 }
0x18c7   :  { %v3403_v46 = vpop.permute.xlu0 %3402  ;;  %v3400_v2 = vpack.c.bf16 %v3397_v55, %v3397_v55 }
0x18c8   :  { %v3406_v22 = vpack.c.bf16 %v3403_v46, %v3403_v46 }
0x18ca   :  { %v3463_v11 = vsel %vm685_vm1, %v3406_v22, 0 }
0x18cb   :  { %7522 = vmatpush3.bf16.xpose.msra.mxu1 %v3463_v11 }
0x18cc   :  { %7527 = vmatprep.subr.bf16.mxu1 %v8634_v7 }
0x18d2   :  { %7524 = vmatmul.mubr.msk.bf16.vlgmr.msra.gmra.mrb[72].mxu1 %vm685_vm1, %v3400_v2 }
0x18d3   :  { %7528 = vmatpush3.bf16.msra.mxu1 %v3537_v45  ;;  %7529 = vmatprep.mubr.msk.bf16.mxu1 %vm8636_vm0, %v8634_v7 }
0x18d4   :  { %7533 = vmatprep.subr.bf16.mxu1 %v8634_v7 }
0x1932   :  { %v3453_v49 = vpop.f32.mrb[68].mxu1 }
0x1933   :  { %v3505_v54 = vmul.f32 0.125, %v3453_v49  ;;  %v7519_v47 = vpop.f32.mrb[69].mxu1 }
0x1934   :  { %v3456_v14 = vpop.f32.mrb[70].mxu1  ;;  %v3688_v43 = vpop.f32.mrb[44].mxu0 }
0x1935   :  { %v7520_v0 = vpop.f32.mrb[71].mxu1  ;;  %v7543_v1 = vpop.f32.mrb[45].mxu0  ;;  %v3507_v18 = vadd.f32 %v3505_v54, %v9064_v40  ;;  %v3740_v52 = vmul.f32 0.125, %v3688_v43 }
0x1936   :  { %v3691_v44 = vpop.f32.mrb[46].mxu0 }
0x1937   :  { %v7544_v12 = vpop.f32.mrb[47].mxu0  ;;  %v3509_v20 = vsel %vm782_vm9, %v3507_v18, -inf  ;;  %v3742_v38 = vadd.f32 %v3740_v52, %v9050_v29 }
0x1938   :  { %3510 = vmax.xlane.f32.xlu1 %v3509_v20 }
0x1939   :  { %v3744_v34 = vsel %vm782_vm9, %v3742_v38, -inf }
0x1949   :  { %3637 = vrot.lane.b32.xlu1 %v3352_v41, %s8626_s23 }
0x19a5   :  { %v3499_v50 = vpop.f32.mrb[72].mxu1 }
0x19a6   :  { %v3506_v15 = vmul.f32 0.125, %v3499_v50  ;;  %v7525_v16 = vpop.f32.mrb[73].mxu1 }
0x19a7   :  { %v3502_v10 = vpop.f32.mrb[74].mxu1 }
0x19a8   :  { %v7526_v21 = vpop.f32.mrb[75].mxu1  ;;  %v3508_v17 = vadd.f32 %v3506_v15, %v9064_v40 }
0x19aa   :  { %v3512_v32 = vsel %vm782_vm9, %v3508_v17, -inf }
0x19ab   :  { %3513 = vmax.xlane.f32.xlu0 %v3512_v32 }
0x19c5   :  { %v3511_v27 = vpop.xlane.xlu1 %3510 }
0x19c6   :  { %v3515_v35 = vsub.f32 %v3507_v18, %v3511_v27 }
0x19c8   :  { %v3517_v30 = vmul.f32 1.442695, %v3515_v35 }
0x19c9   :  { %v3638_v62 = vpop.permute.xlu1 %3637 }
0x19ca   :  { %8148 = vpow2.f32 %v3517_v30  ;;  %v3641_v8 = vpack.c.bf16 %v3638_v62, %v3638_v62  ;;  %v7944_v62 = vld [vmem:[#allocation8 + $0x60] sm:$0xff]  }
0x19cc   :  { %v3698_v46 = vsel %vm685_vm1, %v3641_v8, 0  ;;  %v7947_v8 = vld [vmem:[#allocation8 + $0x78] sm:$0xff]  }
0x19d4   :  { %v8149_v3 = vpop.eup %8148 }
0x19d5   :  { %v3521_v36 = vsel %vm782_vm9, %v8149_v3, 0.0 }
0x19d6   :  { %3522 = vadd.xlane.f32.xlu0 %v3521_v36 }
0x19ec   :  { %3408 = vrot.lane.b32.xlu0 %v9533_v31, %s8626_s23 }
0x1a0b   :  { %3745 = vmax.xlane.f32.xlu0 %v3744_v34 }
0x1a38   :  { %v3514_v40 = vpop.xlane.xlu0 %3513 }
0x1a39   :  { %v3516_v60 = vsub.f32 %v3508_v17, %v3514_v40 }
0x1a3b   :  { %v3519_v26 = vmul.f32 1.442695, %v3516_v60 }
0x1a3d   :  { %8150 = vpow2.f32 %v3519_v26 }
0x1a47   :  { %v8151_v51 = vpop.eup %8150 }
0x1a48   :  { %v3524_v19 = vsel %vm782_vm9, %v8151_v51, 0.0 }
0x1a49   :  { %3525 = vadd.xlane.f32.xlu1 %v3524_v19 }
0x1a5a   :  { %3631 = vrot.lane.b32.xlu1 %v9542_v63, %s8626_s23 }
0x1a63   :  { %v3523_v4 = vpop.xlane.xlu0 %3522 }
0x1a64   :  { %8152 = vrcp.f32 %v3523_v4 }
0x1a67   :  { %v3409_v31 = vpop.permute.xlu0 %3408 }
0x1a68   :  { %v3412_v41 = vpack.c.bf16 %v3409_v31, %v3409_v31 }
0x1a6a   :  { %v3583_v48 = vsel %vm810_vm2, %v3412_v41, 0  ;;  %v7941_v41 = vld [vmem:[#allocation8 + $0x48] sm:$0xff]  }
0x1a6e   :  { %v8153_v56 = vpop.eup %8152 }
0x1a6f   :  { %v3529_v39 = vmul.f32 %v8153_v56, %v8149_v3 }
0x1a71   :  { %v3531_v25 = vpack.c.bf16 %v3529_v39, %v3529_v39  ;;  %v7940_v39 = vld [vmem:[#allocation8 + $0x40] sm:$0xff]  }
0x1a73   :  { %7530 = vmatmul.mubr.msk.bf16.vlgmr.msra.gmra.mrb[76].mxu1 %vm782_vm9, %v3531_v25  ;;  %v7942_v25 = vld [vmem:[#allocation8 + $0x50] sm:$0xff]  }
0x1a74   :  { %7534 = vmatpush3.bf16.msra.mxu1 %v3583_v48  ;;  %7535 = vmatprep.mubr.msk.bf16.mxu1 %vm8636_vm0, %v8634_v7  ;;  %v7943_v48 = vld [vmem:[#allocation8 + $0x58] sm:$0xff]  }
0x1a75   :  { %7545 = vmatprep.subr.bf16.mxu1 %v8634_v7 }
0x1a98   :  { %v3746_v49 = vpop.xlane.xlu0 %3745 }
0x1a99   :  { %v3750_v54 = vsub.f32 %v3742_v38, %v3746_v49 }
0x1a9b   :  { %v3752_v47 = vmul.f32 1.442695, %v3750_v54 }
0x1ad6   :  { %v3526_v5 = vpop.xlane.xlu1 %3525 }
0x1ad7   :  { %8154 = vrcp.f32 %v3526_v5  ;;  %v7945_v5 = vld [vmem:[#allocation8 + $0x68] sm:$0xff]  }
0x1ad8   :  { %8156 = vpow2.f32 %v3752_v47 }
0x1ada   :  { %v3632_v22 = vpop.permute.xlu1 %3631 }
0x1adb   :  { %v3635_v11 = vpack.c.bf16 %v3632_v22, %v3632_v22 }
0x1ae1   :  { %v8155_v63 = vpop.eup %8154 }
0x1ae2   :  { %v3530_v42 = vmul.f32 %v8155_v63, %v8151_v51  ;;  %v8157_v10 = vpop.eup %8156  ;;  %v7946_v63 = vld [vmem:[#allocation8 + $0x70] sm:$0xff]  }
0x1ae3   :  { %v3756_v21 = vsel %vm782_vm9, %v8157_v10, 0.0 }
0x1ae4   :  { %v3532_v9 = vpack.c.bf16 %v3530_v42, %v3530_v42 }
0x1ae6   :  { %7536 = vmatmul.mubr.msk.bf16.vlgmr.msra.gmra.mrb[80].mxu1 %vm782_vm9, %v3532_v9 }
0x1ae7   :  { %7546 = vmatpush3.bf16.xpose.msra.mxu1 %v3698_v46  ;;  %7547 = vmatprep.mubr.msk.bf16.mxu1 %vm8636_vm0, %v8634_v7 }
0x1ae8   :  { %7557 = vmatprep.subr.bf16.mxu1 %v8634_v7 }
0x1aee   :  { %7548 = vmatmul.mubr.msk.bf16.vlgmr.msra.gmra.mrb[84].mxu1 %vm685_vm1, %v3635_v11 }
0x1aef   :  { %7559 = vmatprep.mubr.msk.bf16.mxu1 %vm8636_vm0, %v8634_v7 }
0x1b46   :  { %v9592_v55 = vpop.f32.mrb[76].mxu1 }
0x1b47   :  { %v7531_v24 = vpop.f32.mrb[77].mxu1 }
0x1b48   :  { %v3576_v2 = vpop.f32.mrb[78].mxu1 }
0x1b49   :  { %v7532_v45 = vpop.f32.mrb[79].mxu1 }
0x1bb9   :  { %v9594_v14 = vpop.f32.mrb[80].mxu1 }
0x1bba   :  { %v7537_v43 = vpop.f32.mrb[81].mxu1 }
0x1bbb   :  { %v3622_v0 = vpop.f32.mrb[82].mxu1 }
0x1bbc   :  { %v7538_v1 = vpop.f32.mrb[83].mxu1 }
0x1bc1   :  { %v3734_v18 = vpop.f32.mrb[84].mxu1 }
0x1bc2   :  { %v3741_v44 = vmul.f32 0.125, %v3734_v18  ;;  %v7549_v12 = vpop.f32.mrb[85].mxu1 }
0x1bc3   :  { %v3737_v20 = vpop.f32.mrb[86].mxu1 }
0x1bc4   :  { %v7550_v50 = vpop.f32.mrb[87].mxu1  ;;  %v3743_v15 = vadd.f32 %v3741_v44, %v9050_v29 }
0x1bc5   :  { %v7948_v50 = vld [vmem:[%s10120_s1 + $0x80] ss:$8 sps:$4 sm:$0xff]  }
0x1bc6   :  { %v3747_v16 = vsel %vm782_vm9, %v3743_v15, -inf }
0x1bc7   :  { %3748 = vmax.xlane.f32.xlu1 %v3747_v16  ;;  %v7953_v16 = vld [vmem:[%s10120_s1 + $0x94] ss:$8 sps:$4 sm:$0xff]  }
0x1bcb   :  { %3757 = vadd.xlane.f32.xlu1 %v3756_v21  ;;  %v7951_v21 = vld [vmem:[%s10120_s1 + $0x90] ss:$8 sps:$4 sm:$0xff]  }
0x1c54   :  { %v3749_v17 = vpop.xlane.xlu1 %3748 }
0x1c55   :  { %v3751_v32 = vsub.f32 %v3743_v15, %v3749_v17  ;;  %v7950_v15 = vld [vmem:[%s10120_s1 + $0x84] ss:$8 sps:$4 sm:$0xff]  }
0x1c56   :  { %v7956_v17 = vld [vmem:[%s10120_s1 + $0xa4] ss:$8 sps:$4 sm:$0xff]  }
0x1c57   :  { %v3754_v27 = vmul.f32 1.442695, %v3751_v32  ;;  %v7957_v32 = vld [vmem:[%s10120_s1 + $0xb0] ss:$8 sps:$4 sm:$0xff]  }
0x1c58   :  { %v3758_v35 = vpop.xlane.xlu1 %3757 }
0x1c59   :  { %8158 = vpow2.f32 %v3754_v27  ;;  %v7963_v27 = vld [vmem:[%s10120_s1 + $0xc4] ss:$8 sps:$4 sm:$0xff]  }
0x1c5a   :  { %8160 = vrcp.f32 %v3758_v35  ;;  %v7961_v35 = vld [vmem:[%s10120_s1 + $0xc0] ss:$8 sps:$4 sm:$0xff]  }
0x1c63   :  { %v8159_v30 = vpop.eup %8158 }
0x1c64   :  { %v8161_v3 = vpop.eup %8160  ;;  %v3759_v36 = vsel %vm782_vm9, %v8159_v30, 0.0 }
0x1c65   :  { %v3764_v52 = vmul.f32 %v8161_v3, %v8157_v10  ;;  %3760 = vadd.xlane.f32.xlu0 %v3759_v36  ;;  %v7960_v10 = vld [vmem:[#allocation14 + $0x40] sm:$0xff]  }
0x1c67   :  { %v3766_v29 = vpack.c.bf16 %v3764_v52, %v3764_v52 }
0x1c69   :  { %7554 = vmatmul.mubr.msk.bf16.vlgmr.msra.gmra.mrb[48].mxu0 %vm782_vm9, %v3766_v29 }
0x1c6a   :  { %7579 = vmatprep.mubr.msk.bf16.mxu0 %vm8636_vm0, %v8634_v7  ;;  %7564 = vmatpush3.bf16.msra.mxu0 %v7940_v39  ;;  %v7973_v39 = vld [vmem:[%s10120_s1 + $0xf0] ss:$8 sps:$4 sm:$0xff]  }
0x1c6b   :  { %7565 = vmatprep.subr.bf16.mxu0 %v8634_v7 }
0x1c6e   :  { %7566 = vmatpush3.bf16.msra.mxu0 %v7941_v41  ;;  %v7976_v41 = vld [vmem:[#allocation14 + $0x60] sm:$0xff]  }
0x1c6f   :  { %7567 = vmatprep.subr.bf16.mxu0 %v8634_v7 }
0x1c72   :  { %7568 = vmatpush3.bf16.msra.mxu0 %v7942_v25  ;;  %v8224_v25 = vld [vmem:[%s10121_s2] sm:$0x1f]  }
0x1c73   :  { %7569 = vmatprep.subr.bf16.mxu0 %v8634_v7 }
0x1c76   :  { %7570 = vmatpush3.bf16.msra.mxu0 %v7943_v48  ;;  %v7977_v48 = vld [vmem:[#allocation14 + $0x68] sm:$0xff]  }
0x1c77   :  { %7571 = vmatprep.subr.bf16.mxu0 %v8634_v7 }
0x1c7a   :  { %7572 = vmatpush3.bf16.msra.mxu0 %v7944_v62  ;;  %v7978_v62 = vld [vmem:[#allocation14 + $0x70] sm:$0xff]  }
0x1c7b   :  { %3643 = vrot.lane.b32.xlu0 %v9538_v53, %s8626_s23  ;;  %7573 = vmatprep.subr.bf16.mxu0 %v8634_v7 }
0x1c7e   :  { %7574 = vmatpush3.bf16.msra.mxu0 %v7945_v5  ;;  %v7979_v5 = vld [vmem:[#allocation14 + $0x78] sm:$0xff]  }
0x1c7f   :  { %7575 = vmatprep.subr.bf16.mxu0 %v8634_v7 }
0x1c82   :  { %7576 = vmatpush3.bf16.msra.mxu0 %v7946_v63 }
0x1c83   :  { %7577 = vmatprep.subr.bf16.mxu0 %v8634_v7 }
0x1c86   :  { %7578 = vmatpush3.bf16.msra.mxu0 %v7947_v8 }
0x1c87   :  { %4249 = vmatprep.subr.bf16.mxu0 %v7950_v15 }
0x1cf2   :  { %v3761_v38 = vpop.xlane.xlu0 %3760 }
0x1cf3   :  { %8162 = vrcp.f32 %v3761_v38 }
0x1cf6   :  { %v3644_v34 = vpop.permute.xlu0 %3643 }
0x1cf7   :  { %v3647_v40 = vpack.c.bf16 %v3644_v34, %v3644_v34 }
0x1cf9   :  { %v3818_v60 = vsel %vm810_vm2, %v3647_v40, 0 }
0x1cfa   :  { %7558 = vmatpush3.bf16.msra.mxu1 %v3818_v60  ;;  %v7964_v60 = vld [vmem:[#allocation14 + $0x48] sm:$0xff]  }
0x1cfb   :  { %7583 = vmatprep.subr.bf16.mxu1 %v8634_v7 }
0x1cfd   :  { %v8163_v26 = vpop.eup %8162 }
0x1cfe   :  { %v3765_v51 = vmul.f32 %v8163_v26, %v8159_v30  ;;  %v7967_v26 = vld [vmem:[%s10120_s1 + $0xd4] ss:$8 sps:$4 sm:$0xff]  }
0x1d00   :  { %v3767_v19 = vpack.c.bf16 %v3765_v51, %v3765_v51  ;;  %v7965_v51 = vld [vmem:[%s10120_s1 + $0xd0] ss:$8 sps:$4 sm:$0xff]  }
0x1d02   :  { %7560 = vmatmul.mubr.msk.bf16.vlgmr.msra.gmra.mrb[88].mxu1 %vm782_vm9, %v3767_v19  ;;  %v7968_v19 = vld [vmem:[#allocation14 + $0x50] sm:$0xff]  }
0x1d03   :  { %7599 = vmatprep.mubr.msk.bf16.mxu1 %vm8636_vm0, %v8634_v7  ;;  %7584 = vmatpush3.bf16.msra.mxu1 %v7960_v10 }
0x1d04   :  { %7585 = vmatprep.subr.bf16.mxu1 %v8634_v7 }
0x1d07   :  { %7586 = vmatpush3.bf16.msra.mxu1 %v7964_v60 }
0x1d08   :  { %7587 = vmatprep.subr.bf16.mxu1 %v8634_v7 }
0x1d0b   :  { %7588 = vmatpush3.bf16.msra.mxu1 %v7968_v19 }
0x1d0c   :  { %7589 = vmatprep.subr.bf16.mxu1 %v8634_v7 }
0x1d3c   :  { %v3808_v4 = vpop.f32.mrb[48].mxu0 }
0x1d3d   :  { %v7555_v31 = vpop.f32.mrb[49].mxu0 }
0x1d3e   :  { %v3811_v53 = vpop.f32.mrb[50].mxu0  ;;  %v7969_v31 = vld [vmem:[%s10120_s1 + $0xe0] ss:$8 sps:$4 sm:$0xff]  }
0x1d3f   :  { %v7556_v56 = vpop.f32.mrb[51].mxu0  ;;  %v7972_v53 = vld [vmem:[#allocation14 + $0x58] sm:$0xff]  }
0x1d40   :  { %v7975_v56 = vld [vmem:[%s10120_s1 + $0xf4] ss:$8 sps:$4 sm:$0xff]   ;;  %7590 = vmatpush3.bf16.msra.mxu1 %v7972_v53 }
0x1d41   :  { %7591 = vmatprep.subr.bf16.mxu1 %v8634_v7 }
0x1d44   :  { %7592 = vmatpush3.bf16.msra.mxu1 %v7976_v41 }
0x1d45   :  { %7593 = vmatprep.subr.bf16.mxu1 %v8634_v7 }
0x1d48   :  { %7594 = vmatpush3.bf16.msra.mxu1 %v7977_v48 }
0x1d49   :  { %7595 = vmatprep.subr.bf16.mxu1 %v8634_v7 }
0x1d4c   :  { %7596 = vmatpush3.bf16.msra.mxu1 %v7978_v62 }
0x1d4d   :  { %7597 = vmatprep.subr.bf16.mxu1 %v8634_v7 }
0x1d50   :  { %7598 = vmatpush3.bf16.msra.mxu1 %v7979_v5 }
0x1d51   :  { %7603 = vmatprep.subr.bf16.mxu1 %v8634_v7 }
0x1dd5   :  { %v3854_v42 = vpop.f32.mrb[88].mxu1 }
0x1dd6   :  { %v7737_v9 = vpack.i.bf16 %v3854_v42, %v9594_v14  ;;  %v7561_v46 = vpop.f32.mrb[89].mxu1  ;;  %v6792_v14 = vld [vmem:[#allocation9 + $0x1] ss:$0 sm:$0xff] }
0x1dd7   :  { %v3857_v22 = vpop.f32.mrb[90].mxu1 }
0x1dd8   :  { %7738 = vrot.lane.b32.xlu1 %v7737_v9, %s8626_s23  ;;  %v7562_v11 = vpop.f32.mrb[91].mxu1 }
0x1e4a   :  { %v7739_v24 = vpop.permute.xlu1 %7738 }
0x1e4b   :  { %v7741_v2 = vunpack.i.h.bf16 %v7739_v24  ;;  %v7740_v45 = vunpack.i.l.bf16 %v7739_v24 }
0x1e4d   :  { %v3864_v49 = vsel %vm685_vm1, %v3808_v4, %v7741_v2  ;;  %v3629_v54 = vsel %vm685_vm1, %v9592_v55, %v7740_v45  ;;  %v7971_v4 = vld [vmem:[%s10120_s1 + $0xe4] ss:$8 sps:$4 sm:$0xff]  }
0x1e4e   :  { %v3884_v47 = vpack.c.bf16 %v3864_v49, %v3629_v54  ;;  %v6801_v2 = vld [vmem:[#allocation11 + $0x1] ss:$0 sm:$0xff] }
0x1e50   :  { %7580 = vmatmul.mubr.bf16.vlgmr.msra.gmra.mrb[52].mxu0 %v3884_v47  ;;  %v6802_v47 = vld [vmem:[#allocation12 + $0x1] ss:$0 sm:$0xff] }
0x1e51   :  { %4281 = vmatprep.mubr.bf16.mxu0 %v8635_v33  ;;  %4250 = vmatpush1.bf16.msra.mxu0 %v7948_v50 }
0x1e52   :  { %4251 = vmatprep.subr.bf16.mxu0 %v7953_v16 }
0x1e55   :  { %4252 = vmatpush1.bf16.msra.mxu0 %v7951_v21 }
0x1e56   :  { %4253 = vmatprep.subr.bf16.mxu0 %v7956_v17 }
0x1f23   :  { %v3973_v43 = vpop.f32.mrb[52].mxu0 }
0x1f24   :  { %v3974_v0 = vadd.f32 %v6792_v14, %v3973_v43  ;;  %v7581_v1 = vpop.f32.mrb[53].mxu0 }
0x1f25   :  { %v3976_v18 = vpop.f32.mrb[54].mxu0 }
0x1f26   :  { %v3977_v44 = vadd.f32 %v6792_v14, %v3976_v18  ;;  %v7582_v12 = vpop.f32.mrb[55].mxu0  ;;  %v3980_v20 = vadd.f32 %v3974_v0, %v9519_v13  ;;  %v7954_v13 = vld [vmem:[%s10120_s1 + $0xa0] ss:$8 sps:$4 sm:$0xff]  }
0x1f27   :  { %4254 = vmatpush1.bf16.msra.mxu0 %v7954_v13  ;;  %v6828_v18 = vld [vmem:[%s10122_s7 + $0x2] sm:$0x3] }
0x1f28   :  { %3986 = vadd.xlane.f32.xlu1 %v3980_v20  ;;  %v3981_v55 = vadd.f32 %v3977_v44, %v9521_v28  ;;  %v7959_v28 = vld [vmem:[%s10120_s1 + $0xb4] ss:$8 sps:$4 sm:$0xff]   ;;  %v4162_v44 = vrot.slane %v6828_v18, %v9008_v58 }
0x1f29   :  { %4255 = vmatprep.subr.bf16.mxu0 %v7959_v28 }
0x1f2a   :  { %3988 = vadd.xlane.f32.xlu0 %v3981_v55 }
0x1f2b   :  { %4256 = vmatpush1.bf16.msra.mxu0 %v7957_v32 }
0x1f2c   :  { %4257 = vmatprep.subr.bf16.mxu0 %v7963_v27 }
0x1f2f   :  { %4258 = vmatpush1.bf16.msra.mxu0 %v7961_v35 }
0x1f30   :  { %4259 = vmatprep.subr.bf16.mxu0 %v7967_v26 }
0x1f33   :  { %4260 = vmatpush1.bf16.msra.mxu0 %v7965_v51  ;;  %v6803_v51 = vld [vmem:[#allocation15 + $0x1] ss:$0 sm:$0xff] }
0x1f34   :  { %4261 = vmatprep.subr.bf16.mxu0 %v7971_v4 }
0x1f37   :  { %4262 = vmatpush1.bf16.msra.mxu0 %v7969_v31 }
0x1f38   :  { %4263 = vmatprep.subr.bf16.mxu0 %v7975_v56 }
0x1f3b   :  { %4264 = vmatpush1.bf16.msra.mxu0 %v7973_v39 }
0x1f3c   :  { %7627 = vmatprep.subr.bf16.mxu0 %v8634_v7 }
0x1f3e   :  { %4282 = vmatmul.mubr.bf16.vlgmr.msra.gmra.mrb[56].mxu0 %v8224_v25 }
0x1f3f   :  { %7629 = vmatprep.mubr.msk.bf16.mxu0 %vm8636_vm0, %v8634_v7 }
0x1fb5   :  { %v3987_v30 = vpop.xlane.xlu1 %3986 }
0x1fb6   :  { %v3990_v3 = vmul.f32 0.0078125, %v3987_v30 }
0x1fb7   :  { %v3989_v36 = vpop.xlane.xlu0 %3988 }
0x1fb8   :  { %v3992_v52 = vsub.f32 %v3980_v20, %v3990_v3  ;;  %v3991_v29 = vmul.f32 0.0078125, %v3989_v36  ;;  %v4166_v3 = vrot.slane %v6828_v18, %v9015_v61 }
0x1fba   :  { %v3993_v38 = vsub.f32 %v3981_v55, %v3991_v29  ;;  %v3994_v34 = vmul.f32 %v3992_v52, %v3992_v52 }
0x1fbc   :  { %3996 = vadd.xlane.f32.xlu0 %v3994_v34  ;;  %v3995_v40 = vmul.f32 %v3993_v38, %v3993_v38 }
0x1fc0   :  { %3998 = vadd.xlane.f32.xlu0 %v3995_v40 }
0x2011   :  { %v4283_v12 = vpop.f32.mrb[56].mxu0 }
0x2012   :  { %v4284_v20 = vadd.f32 %v4283_v12, %v4162_v44  ;;  %v4285_v55 = vpop.f32.mrb[57].mxu0 }
0x2013   :  { %v4287_v50 = vpop.f32.mrb[58].mxu0  ;;  %v4286_v36 = vadd.f32 %v4285_v55, %v4166_v3 }
0x2014   :  { %v4302_v15 = vpack.c.bf16 %v4284_v20, %v4284_v20  ;;  %v9663_v16 = vadd.f32 %v4287_v50, %v4162_v44  ;;  %v4289_v10 = vpop.f32.mrb[59].mxu0  ;;  %4299 = vrot.lane.b32.xlu1 %v4284_v20, %s8626_s23 }
0x2016   :  { %v4535_v21 = vpack.c.bf16 %v9663_v16, %v4284_v20  ;;  %v4314_v17 = vsel %vm685_vm1, %v4302_v15, 0 }
0x2018   :  { %v4544_v13 = vshrl.u32 %v4535_v21, 16  ;;  %v4547_v28 = vshll.u32 %v4535_v21, 16 }
0x201a   :  { %v4546_v32 = vrot.slane %v4544_v13, 2  ;;  %v4549_v27 = vrot.slane %v4547_v28, 3 }
0x201c   :  { %v4550_v35 = vor.u32 %v4549_v27, %v4546_v32 }
0x201e   :  { %v4555_v30 = vsel %vm685_vm1, %v4550_v35, 0 }
0x201f   :  { %7628 = vmatpush3.bf16.xpose.msra.mxu0 %v4555_v30 }
0x2020   :  { %7639 = vmatprep.subr.bf16.mxu0 %v8634_v7 }
0x2049   :  { %v3997_v63 = vpop.xlane.xlu0 %3996 }
0x204a   :  { %v4000_v8 = vmul.f32 0.0078125, %v3997_v63 }
0x204c   :  { %v4002_v42 = vadd.f32 1e-12, %v4000_v8  ;;  %v4308_v8 = vpack.c.bf16 %v4286_v36, %v4286_v36 }
0x204d   :  { %v3999_v9 = vpop.xlane.xlu0 %3998 }
0x204e   :  { %8164 = vrsqrt.f32 %v4002_v42  ;;  %v4001_v46 = vmul.f32 0.0078125, %v3999_v9 }
0x2050   :  { %v4003_v22 = vadd.f32 1e-12, %v4001_v46  ;;  %v4432_v46 = vand.u32 %v4308_v8, %v9184_v23 }
0x2052   :  { %8166 = vrsqrt.f32 %v4003_v22 }
0x2058   :  { %v8165_v11 = vpop.eup %8164 }
0x2059   :  { %v4006_v24 = vmul.f32 %v8165_v11, %v3992_v52  ;;  %v9672_v52 = vadd.f32 %v4289_v10, %v4166_v3 }
0x205b   :  { %v4014_v54 = vmul.f32 %v6801_v2, %v4006_v24  ;;  %v4541_v29 = vpack.c.bf16 %v9672_v52, %v4286_v36 }
0x205c   :  { %v8167_v45 = vpop.eup %8166 }
0x205d   :  { %v4007_v49 = vmul.f32 %v8167_v45, %v3993_v38  ;;  %v9653_v43 = vadd.f32 %v6802_v47, %v4014_v54  ;;  %v4678_v38 = vshrl.u32 %v4541_v29, 16  ;;  %v4681_v34 = vshll.u32 %v4541_v29, 16 }
0x205f   :  { %v4015_v14 = vmul.f32 %v6801_v2, %v4007_v49  ;;  %v4680_v60 = vrot.slane %v4678_v38, 2  ;;  %v4683_v26 = vrot.slane %v4681_v34, 3 }
0x2061   :  { %v9655_v0 = vadd.f32 %v6802_v47, %v4015_v14  ;;  %v4684_v56 = vor.u32 %v4683_v26, %v4680_v60 }
0x2063   :  { %v4043_v1 = vpack.c.bf16 %v9655_v0, %v9653_v43  ;;  %v4689_v63 = vand.u32 %v4684_v56, %v9184_v23 }
0x2065   :  { %7600 = vmatmul.mubr.bf16.vlgmr.msra.gmra.mrb[92].mxu1 %v4043_v1 }
0x2066   :  { %7605 = vmatprep.mubr.msk.bf16.mxu1 %vm8636_vm0, %v8634_v7  ;;  %7604 = vmatpush3.bf16.xpose.msra.mxu1 %v4314_v17 }
0x2067   :  { %7609 = vmatprep.subr.bf16.mxu1 %v8634_v7 }
0x2086   :  { %v9675_v40 = vpop.permute.xlu1 %4299 }
0x2087   :  { %v4303_v19 = vpack.c.bf16 %v9675_v40, %v9675_v40 }
0x2089   :  { %v4360_v62 = vsel %vm685_vm1, %v4303_v19, 0 }
0x2138   :  { %v4132_v4 = vpop.f32.mrb[92].mxu1 }
0x2139   :  { %v4133_v31 = vadd.f32 %v6803_v51, %v4132_v4  ;;  %v7601_v53 = vpop.f32.mrb[93].mxu1 }
0x213a   :  { %v4135_v39 = vpop.f32.mrb[94].mxu1 }
0x213b   :  { %v4296_v41 = vpack.c.bf16 %v4133_v31, %v4133_v31  ;;  %v4136_v25 = vadd.f32 %v6803_v51, %v4135_v39  ;;  %4293 = vrot.lane.b32.xlu0 %v4133_v31, %s8626_s23  ;;  %v7602_v48 = vpop.f32.mrb[95].mxu1 }
0x213d   :  { %v4529_v5 = vpack.c.bf16 %v4136_v25, %v4136_v25  ;;  %7606 = vmatmul.mubr.msk.bf16.vlgmr.msra.gmra.mrb[96].mxu1 %vm685_vm1, %v4296_v41 }
0x213e   :  { %7610 = vmatpush3.bf16.xpose.msra.mxu1 %v4360_v62  ;;  %7611 = vmatprep.mubr.msk.bf16.mxu1 %vm8636_vm0, %v8634_v7 }
0x213f   :  { %7630 = vmatmul.mubr.msk.bf16.vlgmr.msra.gmra.mrb[60].mxu0 %vm685_vm1, %v4529_v5  ;;  %7615 = vmatprep.subr.bf16.mxu1 %v8634_v7 }
0x2140   :  { %7640 = vmatpush3.bf16.msra.mxu0 %v4689_v63  ;;  %7641 = vmatprep.mubr.msk.bf16.mxu0 %vm8636_vm0, %v8634_v7 }
0x2141   :  { %7651 = vmatprep.subr.bf16.mxu0 %v8634_v7 }
0x21ad   :  { %v4294_v42 = vpop.permute.xlu0 %4293 }
0x21ae   :  { %v4297_v9 = vpack.c.bf16 %v4294_v42, %v4294_v42 }
0x21b0   :  { %7612 = vmatmul.mubr.msk.bf16.vlgmr.msra.gmra.mrb[100].mxu1 %vm685_vm1, %v4297_v9 }
0x21b1   :  { %7616 = vmatpush3.bf16.msra.mxu1 %v4432_v46  ;;  %7617 = vmatprep.mubr.msk.bf16.mxu1 %vm8636_vm0, %v8634_v7 }
0x21b2   :  { %7621 = vmatprep.subr.bf16.mxu1 %v8634_v7 }
0x2210   :  { %v4350_v22 = vpop.f32.mrb[96].mxu1 }
0x2211   :  { %v4402_v11 = vmul.f32 0.125, %v4350_v22  ;;  %v7607_v24 = vpop.f32.mrb[97].mxu1 }
0x2212   :  { %v4353_v2 = vpop.f32.mrb[98].mxu1  ;;  %v4591_v45 = vpop.f32.mrb[60].mxu0 }
0x2213   :  { %v7608_v49 = vpop.f32.mrb[99].mxu1  ;;  %v7631_v54 = vpop.f32.mrb[61].mxu0  ;;  %v4404_v47 = vsel %vm1677_vm12, %v4402_v11, -inf  ;;  %v4651_v51 = vmul.f32 0.125, %v4591_v45 }
0x2214   :  { %v4594_v14 = vpop.f32.mrb[62].mxu0  ;;  %4405 = vmax.xlane.f32.xlu1 %v4404_v47 }
0x2215   :  { %v7632_v1 = vpop.f32.mrb[63].mxu0 }
0x2283   :  { %v4396_v18 = vpop.f32.mrb[100].mxu1 }
0x2284   :  { %v4403_v44 = vmul.f32 0.125, %v4396_v18  ;;  %v7613_v12 = vpop.f32.mrb[101].mxu1 }
0x2285   :  { %v4399_v20 = vpop.f32.mrb[102].mxu1 }
0x2286   :  { %v7614_v55 = vpop.f32.mrb[103].mxu1  ;;  %v4407_v50 = vsel %vm1677_vm12, %v4403_v44, -inf }
0x2287   :  { %4408 = vmax.xlane.f32.xlu0 %v4407_v50 }
0x22a1   :  { %v4406_v15 = vpop.xlane.xlu1 %4405 }
0x22a2   :  { %v4410_v10 = vsub.f32 %v4402_v11, %v4406_v15 }
0x22a4   :  { %v4412_v21 = vmul.f32 1.442695, %v4410_v10 }
0x22a6   :  { %8168 = vpow2.f32 %v4412_v21 }
0x22b0   :  { %v8169_v17 = vpop.eup %8168 }
0x22b1   :  { %v4416_v13 = vsel %vm1677_vm12, %v8169_v17, 0.0 }
0x22b2   :  { %4417 = vadd.xlane.f32.xlu1 %v4416_v13 }
0x22c3   :  { %4305 = vrot.lane.b32.xlu1 %v4286_v36, %s8626_s23 }
0x22c7   :  { %4526 = vrot.lane.b32.xlu1 %v4136_v25, %s8626_s23 }
0x2314   :  { %v4409_v28 = vpop.xlane.xlu0 %4408 }
0x2315   :  { %v4411_v32 = vsub.f32 %v4403_v44, %v4409_v28 }
0x2317   :  { %v4414_v27 = vmul.f32 1.442695, %v4411_v32 }
0x2319   :  { %8170 = vpow2.f32 %v4414_v27 }
0x2323   :  { %v8171_v35 = vpop.eup %8170 }
0x2324   :  { %v4419_v30 = vsel %vm1677_vm12, %v8171_v35, 0.0 }
0x2325   :  { %4420 = vadd.xlane.f32.xlu0 %v4419_v30 }
0x233b   :  { %4532 = vrot.lane.b32.xlu0 %v9663_v16, %s8626_s23  ;;  %v4653_v16 = vsel %vm1677_vm12, %v4651_v51, -inf }
0x233f   :  { %v4418_v3 = vpop.xlane.xlu1 %4417 }
0x2340   :  { %8172 = vrcp.f32 %v4418_v3 }
0x2343   :  { %v4306_v29 = vpop.permute.xlu1 %4305 }
0x2344   :  { %v4309_v34 = vpack.c.bf16 %v4306_v29, %v4306_v29 }
0x2346   :  { %v4478_v26 = vand.u32 %v4309_v34, %v9184_v23 }
0x2347   :  { %v4527_v8 = vpop.permute.xlu1 %4526 }
0x234a   :  { %v8173_v38 = vpop.eup %8172 }
0x234b   :  { %v4424_v60 = vmul.f32 %v8173_v38, %v8169_v17 }
0x234d   :  { %v4426_v36 = vpack.c.bf16 %v4424_v60, %v4424_v60 }
0x234f   :  { %7618 = vmatmul.mubr.msk.bf16.vlgmr.msra.gmra.mrb[104].mxu1 %vm1677_vm12, %v4426_v36 }
0x2350   :  { %7622 = vmatpush3.bf16.msra.mxu1 %v4478_v26  ;;  %7623 = vmatprep.mubr.msk.bf16.mxu1 %vm8636_vm0, %v8634_v7 }
0x2351   :  { %7633 = vmatprep.subr.bf16.mxu1 %v8634_v7 }
0x235a   :  { %4654 = vmax.xlane.f32.xlu0 %v4653_v16 }
0x23b2   :  { %v4421_v19 = vpop.xlane.xlu0 %4420 }
0x23b3   :  { %8174 = vrcp.f32 %v4421_v19  ;;  %v7980_v19 = vld [vmem:[#allocation17 + $0x40] sm:$0xff]  }
0x23b6   :  { %v4533_v4 = vpop.permute.xlu0 %4532 }
0x23b7   :  { %v4536_v31 = vpack.c.bf16 %v4533_v4, %v9675_v40  ;;  %v4530_v40 = vpack.c.bf16 %v4527_v8, %v4527_v8  ;;  %v7981_v4 = vld [vmem:[#allocation17 + $0x48] sm:$0xff]  }
0x23b9   :  { %v4598_v53 = vshrl.u32 %v4536_v31, 16  ;;  %v4601_v56 = vshll.u32 %v4536_v31, 16  ;;  %v7982_v31 = vld [vmem:[#allocation17 + $0x50] sm:$0xff]  }
0x23bb   :  { %v4600_v39 = vrot.slane %v4598_v53, 2  ;;  %v4603_v41 = vrot.slane %v4601_v56, 3  ;;  %v7983_v53 = vld [vmem:[#allocation17 + $0x58] sm:$0xff]   ;;  %v7984_v56 = vld [vmem:[#allocation17 + $0x60] sm:$0xff]  }
0x23bd   :  { %v8175_v25 = vpop.eup %8174  ;;  %v4604_v62 = vor.u32 %v4603_v41, %v4600_v39  ;;  %v7985_v39 = vld [vmem:[#allocation17 + $0x68] sm:$0xff]   ;;  %v7986_v41 = vld [vmem:[#allocation17 + $0x70] sm:$0xff]  }
0x23be   :  { %v4425_v48 = vmul.f32 %v8175_v25, %v8171_v35  ;;  %v7987_v25 = vld [vmem:[#allocation17 + $0x78] sm:$0xff]  }
0x23bf   :  { %v4609_v63 = vsel %vm685_vm1, %v4604_v62, 0 }
0x23c0   :  { %v4427_v5 = vpack.c.bf16 %v4425_v48, %v4425_v48 }
0x23c2   :  { %7624 = vmatmul.mubr.msk.bf16.vlgmr.msra.gmra.mrb[108].mxu1 %vm1677_vm12, %v4427_v5 }
0x23c3   :  { %7634 = vmatpush3.bf16.xpose.msra.mxu1 %v4609_v63  ;;  %7635 = vmatprep.mubr.msk.bf16.mxu1 %vm8636_vm0, %v8634_v7 }
0x23c4   :  { %7645 = vmatprep.subr.bf16.mxu1 %v8634_v7 }
0x23ca   :  { %7636 = vmatmul.mubr.msk.bf16.vlgmr.msra.gmra.mrb[112].mxu1 %vm685_vm1, %v4530_v40 }
0x23cb   :  { %7647 = vmatprep.mubr.msk.bf16.mxu1 %vm8636_vm0, %v8634_v7 }
0x23e7   :  { %v4655_v44 = vpop.xlane.xlu0 %4654 }
0x23e8   :  { %v4659_v12 = vsub.f32 %v4651_v51, %v4655_v44 }
0x23ea   :  { %v4661_v50 = vmul.f32 1.442695, %v4659_v12 }
0x2422   :  { %v9718_v42 = vpop.f32.mrb[104].mxu1 }
0x2423   :  { %v7619_v9 = vpop.f32.mrb[105].mxu1 }
0x2424   :  { %v4471_v46 = vpop.f32.mrb[106].mxu1 }
0x2425   :  { %v7620_v22 = vpop.f32.mrb[107].mxu1 }
0x2495   :  { %v9720_v11 = vpop.f32.mrb[108].mxu1 }
0x2496   :  { %v7625_v24 = vpop.f32.mrb[109].mxu1 }
0x2497   :  { %v4517_v2 = vpop.f32.mrb[110].mxu1 }
0x2498   :  { %v7626_v45 = vpop.f32.mrb[111].mxu1 }
0x249d   :  { %v4645_v49 = vpop.f32.mrb[112].mxu1 }
0x249e   :  { %v4652_v54 = vmul.f32 0.125, %v4645_v49  ;;  %v7637_v47 = vpop.f32.mrb[113].mxu1 }
0x249f   :  { %v4648_v14 = vpop.f32.mrb[114].mxu1 }
0x24a0   :  { %v7638_v1 = vpop.f32.mrb[115].mxu1  ;;  %v4656_v18 = vsel %vm1677_vm12, %v4652_v54, -inf }
0x24a1   :  { %4657 = vmax.xlane.f32.xlu1 %v4656_v18 }
0x24b2   :  { %4538 = vrot.lane.b32.xlu1 %v9672_v52, %s8626_s23 }
0x252e   :  { %v4658_v20 = vpop.xlane.xlu1 %4657 }
0x252f   :  { %v4660_v55 = vsub.f32 %v4652_v54, %v4658_v20  ;;  %v6853_v54 = vld [vmem:[#allocation18 + $0x1] ss:$0 sm:$0xff] }
0x2531   :  { %v4663_v15 = vmul.f32 1.442695, %v4660_v55  ;;  %v7988_v55 = vld [vmem:[%s10123_s14 + $0x100] ss:$16 sps:$4 sm:$0xff]  }
0x2532   :  { %v4539_v10 = vpop.permute.xlu1 %4538 }
0x2533   :  { %8176 = vpow2.f32 %v4663_v15  ;;  %v4542_v21 = vpack.c.bf16 %v4539_v10, %v4306_v29  ;;  %v7991_v15 = vld [vmem:[%s10123_s14 + $0x108] ss:$16 sps:$4 sm:$0xff]   ;;  %v7993_v10 = vld [vmem:[%s10123_s14 + $0x10c] ss:$16 sps:$4 sm:$0xff]  }
0x2534   :  { %8178 = vpow2.f32 %v4661_v50  ;;  %v7990_v50 = vld [vmem:[%s10123_s14 + $0x104] ss:$16 sps:$4 sm:$0xff]  }
0x2535   :  { %v4732_v17 = vshrl.u32 %v4542_v21, 16  ;;  %v4735_v13 = vshll.u32 %v4542_v21, 16  ;;  %v7996_v21 = vld [vmem:[%s10123_s14 + $0x124] ss:$16 sps:$4 sm:$0xff]  }
0x2537   :  { %v4734_v28 = vrot.slane %v4732_v17, 2  ;;  %v4737_v32 = vrot.slane %v4735_v13, 3  ;;  %v7999_v17 = vld [vmem:[%s10123_s14 + $0x12c] ss:$16 sps:$4 sm:$0xff]   ;;  %v7994_v13 = vld [vmem:[%s10123_s14 + $0x120] ss:$16 sps:$4 sm:$0xff]  }
0x2539   :  { %v4738_v27 = vor.u32 %v4737_v32, %v4734_v28 }
0x253b   :  { %v4743_v35 = vand.u32 %v4738_v27, %v9184_v23 }
0x253d   :  { %v8177_v30 = vpop.eup %8176  ;;  %7646 = vmatpush3.bf16.msra.mxu1 %v4743_v35 }
0x253e   :  { %v4668_v52 = vsel %vm1677_vm12, %v8177_v30, 0.0  ;;  %v8179_v3 = vpop.eup %8178  ;;  %5166 = vmatprep.subr.bf16.mxu1 %v7990_v50  ;;  %v8037_v50 = vld [vmem:[%s10124_s10 + $0x1c0] sm:$0xff]  }
0x253f   :  { %4669 = vadd.xlane.f32.xlu0 %v4668_v52  ;;  %v4665_v38 = vsel %vm1677_vm12, %v8179_v3, 0.0 }
0x2543   :  { %4666 = vadd.xlane.f32.xlu0 %v4665_v38  ;;  %v8002_v38 = vld [vmem:[%s10123_s14 + $0x144] ss:$16 sps:$4 sm:$0xff]  }
0x25cc   :  { %v4670_v34 = vpop.xlane.xlu0 %4669 }
0x25cd   :  { %8180 = vrcp.f32 %v4670_v34  ;;  %v8005_v34 = vld [vmem:[%s10123_s14 + $0x14c] ss:$16 sps:$4 sm:$0xff]  }
0x25d0   :  { %v4667_v29 = vpop.xlane.xlu0 %4666 }
0x25d1   :  { %8182 = vrcp.f32 %v4667_v29  ;;  %v8000_v29 = vld [vmem:[%s10123_s14 + $0x140] ss:$16 sps:$4 sm:$0xff]  }
0x25d7   :  { %v8181_v60 = vpop.eup %8180 }
0x25d8   :  { %v4674_v36 = vmul.f32 %v8181_v60, %v8177_v30  ;;  %v8003_v60 = vld [vmem:[%s10123_s14 + $0x148] ss:$16 sps:$4 sm:$0xff]  }
0x25da   :  { %v4676_v26 = vpack.c.bf16 %v4674_v36, %v4674_v36  ;;  %v8008_v36 = vld [vmem:[%s10123_s14 + $0x164] ss:$16 sps:$4 sm:$0xff]  }
0x25db   :  { %v8183_v51 = vpop.eup %8182 }
0x25dc   :  { %v4673_v16 = vmul.f32 %v8183_v51, %v8179_v3  ;;  %7648 = vmatmul.mubr.msk.bf16.vlgmr.msra.gmra.mrb[116].mxu1 %vm1677_vm12, %v4676_v26  ;;  %v8011_v26 = vld [vmem:[%s10123_s14 + $0x16c] ss:$16 sps:$4 sm:$0xff]   ;;  %v8006_v51 = vld [vmem:[%s10123_s14 + $0x160] ss:$16 sps:$4 sm:$0xff]  }
0x25dd   :  { %5198 = vmatprep.mubr.bf16.mxu1 %v8635_v33  ;;  %5167 = vmatpush1.bf16.msra.mxu1 %v7988_v55  ;;  %v8036_v55 = vld [vmem:[%s10124_s10 + $0x140] sm:$0xff]  }
0x25de   :  { %v4675_v23 = vpack.c.bf16 %v4673_v16, %v4673_v16  ;;  %5168 = vmatprep.subr.bf16.mxu1 %v7996_v21  ;;  %v8009_v16 = vld [vmem:[%s10123_s14 + $0x168] ss:$16 sps:$4 sm:$0xff]  }
0x25df   :  { %v8040_v21 = vld [vmem:[%s10124_s10 + $0x148] sm:$0xff]  }
0x25e0   :  { %7642 = vmatmul.mubr.msk.bf16.vlgmr.msra.gmra.mrb[64].mxu0 %vm1677_vm12, %v4675_v23  ;;  %v8014_v23 = vld [vmem:[%s10123_s14 + $0x184] ss:$16 sps:$4 sm:$0xff]  }
0x25e1   :  { %7667 = vmatprep.mubr.msk.bf16.mxu0 %vm8636_vm0, %v8634_v7  ;;  %7652 = vmatpush3.bf16.msra.mxu0 %v7980_v19  ;;  %v8017_v19 = vld [vmem:[%s10123_s14 + $0x18c] ss:$16 sps:$4 sm:$0xff]  }
0x25e2   :  { %7653 = vmatprep.subr.bf16.mxu0 %v8634_v7  ;;  %5169 = vmatpush1.bf16.msra.mxu1 %v7994_v13  ;;  %v8042_v13 = vld [vmem:[%s10124_s10 + $0x108] sm:$0xff]  }
0x25e3   :  { %5170 = vmatprep.subr.bf16.mxu1 %v8002_v38  ;;  %v8052_v38 = vld [vmem:[%s10124_s10 + $0x160] sm:$0xff]  }
0x25e5   :  { %7654 = vmatpush3.bf16.msra.mxu0 %v7981_v4  ;;  %v8012_v4 = vld [vmem:[%s10123_s14 + $0x180] ss:$16 sps:$4 sm:$0xff]  }
0x25e6   :  { %7655 = vmatprep.subr.bf16.mxu0 %v8634_v7  ;;  %5171 = vmatpush1.bf16.msra.mxu1 %v8000_v29  ;;  %v8054_v29 = vld [vmem:[%s10124_s10 + $0x120] sm:$0xff]  }
0x25e7   :  { %5172 = vmatprep.subr.bf16.mxu1 %v8008_v36  ;;  %v8056_v36 = vld [vmem:[%s10124_s10 + $0x168] sm:$0xff]  }
0x25e9   :  { %7656 = vmatpush3.bf16.msra.mxu0 %v7982_v31  ;;  %v8015_v31 = vld [vmem:[%s10123_s14 + $0x188] ss:$16 sps:$4 sm:$0xff]  }
0x25ea   :  { %7657 = vmatprep.subr.bf16.mxu0 %v8634_v7  ;;  %5173 = vmatpush1.bf16.msra.mxu1 %v8006_v51  ;;  %v8058_v51 = vld [vmem:[%s10124_s10 + $0x128] sm:$0xff]  }
0x25eb   :  { %5174 = vmatprep.subr.bf16.mxu1 %v8014_v23  ;;  %v8060_v23 = vld [vmem:[%s10124_s10 + $0x170] sm:$0xff]  }
0x25ed   :  { %7658 = vmatpush3.bf16.msra.mxu0 %v7983_v53  ;;  %v8020_v53 = vld [vmem:[%s10123_s14 + $0x1a4] ss:$16 sps:$4 sm:$0xff]  }
0x25ee   :  { %7659 = vmatprep.subr.bf16.mxu0 %v8634_v7  ;;  %5175 = vmatpush1.bf16.msra.mxu1 %v8012_v4  ;;  %v8062_v4 = vld [vmem:[%s10124_s10 + $0x130] sm:$0xff]  }
0x25ef   :  { %5176 = vmatprep.subr.bf16.mxu1 %v8020_v53  ;;  %v8064_v53 = vld [vmem:[%s10124_s10 + $0x178] sm:$0xff]  }
0x25f1   :  { %7660 = vmatpush3.bf16.msra.mxu0 %v7984_v56  ;;  %v8023_v56 = vld [vmem:[%s10123_s14 + $0x1ac] ss:$16 sps:$4 sm:$0xff]  }
0x25f2   :  { %7661 = vmatprep.subr.bf16.mxu0 %v8634_v7 }
0x25f5   :  { %7662 = vmatpush3.bf16.msra.mxu0 %v7985_v39  ;;  %v8018_v39 = vld [vmem:[%s10123_s14 + $0x1a0] ss:$16 sps:$4 sm:$0xff]  }
0x25f6   :  { %7663 = vmatprep.subr.bf16.mxu0 %v8634_v7  ;;  %5177 = vmatpush1.bf16.msra.mxu1 %v8018_v39  ;;  %v8066_v39 = vld [vmem:[%s10124_s10 + $0x138] sm:$0xff]  }
0x25f9   :  { %7664 = vmatpush3.bf16.msra.mxu0 %v7986_v41  ;;  %v8021_v41 = vld [vmem:[%s10123_s14 + $0x1a8] ss:$16 sps:$4 sm:$0xff]  }
0x25fa   :  { %7665 = vmatprep.subr.bf16.mxu0 %v8634_v7 }
0x25fd   :  { %7666 = vmatpush3.bf16.msra.mxu0 %v7987_v25  ;;  %v8024_v25 = vld [vmem:[%s10123_s14 + $0x1c0] ss:$16 sps:$4 sm:$0xff]  }
0x25fe   :  { %5209 = vmatprep.subr.bf16.mxu0 %v7993_v10  ;;  %v8039_v10 = vld [vmem:[%s10124_s10 + $0x180] sm:$0xff]  }
0x26af   :  { %v4779_v48 = vpop.f32.mrb[116].mxu1 }
0x26b0   :  { %v7742_v62 = vpack.i.bf16 %v4779_v48, %v9720_v11  ;;  %v7649_v5 = vpop.f32.mrb[117].mxu1  ;;  %v8026_v48 = vld [vmem:[%s10123_s14 + $0x1c4] ss:$16 sps:$4 sm:$0xff]  }
0x26b1   :  { %v4782_v63 = vpop.f32.mrb[118].mxu1  ;;  %v8029_v5 = vld [vmem:[%s10123_s14 + $0x1cc] ss:$16 sps:$4 sm:$0xff]   ;;  %5178 = vmatprep.subr.bf16.mxu1 %v8026_v48 }
0x26b2   :  { %7743 = vrot.lane.b32.xlu0 %v7742_v62, %s8626_s23  ;;  %v7650_v8 = vpop.f32.mrb[119].mxu1  ;;  %v8027_v62 = vld [vmem:[%s10123_s14 + $0x1c8] ss:$16 sps:$4 sm:$0xff]   ;;  %v8032_v63 = vld [vmem:[%s10123_s14 + $0x1e4] ss:$16 sps:$4 sm:$0xff]   ;;  %5179 = vmatpush1.bf16.msra.mxu1 %v8024_v25  ;;  %s5863_s23 = sld [smem:[#allocation2]] }
0x26b3   :  { %v4725_v40 = vpop.f32.mrb[64].mxu0  ;;  %v8035_v8 = vld [vmem:[%s10123_s14 + $0x1ec] ss:$16 sps:$4 sm:$0xff]   ;;  %5180 = vmatprep.subr.bf16.mxu1 %v8032_v63  ;;  %v6896_v25 = vld [vmem:[%s10125_s24 + $0x4] sm:$0xf] }
0x26b4   :  { %v7643_v9 = vpop.f32.mrb[65].mxu0  ;;  %v4989_v48 = vrot.slane %v6896_v25, %v9008_v58  ;;  %v5001_v63 = vrot.slane %v6896_v25, %v9339_v6 }
0x26b5   :  { %v4728_v46 = vpop.f32.mrb[66].mxu0  ;;  %v8033_v9 = vld [vmem:[%s10123_s14 + $0x1e8] ss:$16 sps:$4 sm:$0xff]  }
0x26b6   :  { %v7644_v22 = vpop.f32.mrb[67].mxu0 }
0x26b8   :  { %s7028_s27 = sadd.s32 4294967294, %s5863_s23 }
0x2724   :  { %v7744_v24 = vpop.permute.xlu0 %7743 }
0x2725   :  { %v7746_v2 = vunpack.i.h.bf16 %v7744_v24  ;;  %v7745_v45 = vunpack.i.l.bf16 %v7744_v24 }
0x2727   :  { %v4789_v49 = vsel %vm685_vm1, %v4725_v40, %v7746_v2  ;;  %v4524_v7 = vsel %vm685_vm1, %v9718_v42, %v7745_v45  ;;  %v8030_v40 = vld [vmem:[%s10123_s14 + $0x1e0] ss:$16 sps:$4 sm:$0xff]  }
0x2728   :  { %v4809_v11 = vpack.c.bf16 %v4789_v49, %v4524_v7  ;;  %5181 = vmatpush1.bf16.msra.mxu1 %v8030_v40 }
0x2729   :  { %7275 = vmatprep.subr.bf16.mxu1 %v8036_v55 }
0x272a   :  { %7668 = vmatmul.mubr.bf16.vlgmr.msra.gmra.mrb[68].mxu0 %v4809_v11 }
0x272b   :  { %5241 = vmatprep.mubr.bf16.mxu0 %v8635_v33  ;;  %5210 = vmatpush1.bf16.msra.mxu0 %v7991_v15  ;;  %v8038_v15 = vld [vmem:[%s10124_s10 + $0x100] sm:$0xff]  }
0x272c   :  { %5211 = vmatprep.subr.bf16.mxu0 %v7999_v17  ;;  %v8041_v17 = vld [vmem:[%s10124_s10 + $0x1c8] sm:$0xff]  }
0x27fd   :  { %v4898_v47 = vpop.f32.mrb[68].mxu0 }
0x27fe   :  { %v4899_v14 = vadd.f32 %v6853_v54, %v4898_v47  ;;  %v7669_v1 = vpop.f32.mrb[69].mxu0 }
0x27ff   :  { %v4901_v18 = vpop.f32.mrb[70].mxu0 }
0x2800   :  { %v4902_v44 = vadd.f32 %v6853_v54, %v4901_v18  ;;  %v7670_v12 = vpop.f32.mrb[71].mxu0  ;;  %v4905_v20 = vadd.f32 %v4899_v14, %v9653_v43  ;;  %v7997_v43 = vld [vmem:[%s10123_s14 + $0x128] ss:$16 sps:$4 sm:$0xff]   ;;  %v6862_v54 = vld [vmem:[#allocation20 + $0x1] ss:$0 sm:$0xff] }
0x2801   :  { %5212 = vmatpush1.bf16.msra.mxu0 %v7997_v43  ;;  %v6863_v18 = vld [vmem:[#allocation21 + $0x1] ss:$0 sm:$0xff]  ;;  %v8043_v43 = vld [vmem:[%s10124_s10 + $0x188] sm:$0xff]  }
0x2802   :  { %4911 = vadd.xlane.f32.xlu1 %v4905_v20  ;;  %v4906_v42 = vadd.f32 %v4902_v44, %v9655_v0  ;;  %5213 = vmatprep.subr.bf16.mxu0 %v8005_v34  ;;  %v8053_v34 = vld [vmem:[%s10124_s10 + $0x1e0] sm:$0xff]  }
0x2804   :  { %4913 = vadd.xlane.f32.xlu0 %v4906_v42 }
0x2805   :  { %5214 = vmatpush1.bf16.msra.mxu0 %v8003_v60  ;;  %v8055_v60 = vld [vmem:[%s10124_s10 + $0x1a0] sm:$0xff]  }
0x2806   :  { %5215 = vmatprep.subr.bf16.mxu0 %v8011_v26  ;;  %v8057_v26 = vld [vmem:[%s10124_s10 + $0x1e8] sm:$0xff]  }
0x2809   :  { %5216 = vmatpush1.bf16.msra.mxu0 %v8009_v16  ;;  %v8059_v16 = vld [vmem:[%s10124_s10 + $0x1a8] sm:$0xff]  }
0x280a   :  { %5217 = vmatprep.subr.bf16.mxu0 %v8017_v19  ;;  %v8061_v19 = vld [vmem:[%s10124_s10 + $0x1f0] sm:$0xff]  }
0x280d   :  { %5218 = vmatpush1.bf16.msra.mxu0 %v8015_v31  ;;  %v8063_v31 = vld [vmem:[%s10124_s10 + $0x1b0] sm:$0xff]  }
0x280e   :  { %5219 = vmatprep.subr.bf16.mxu0 %v8023_v56  ;;  %v8065_v56 = vld [vmem:[%s10124_s10 + $0x1f8] sm:$0xff]  }
0x2811   :  { %5220 = vmatpush1.bf16.msra.mxu0 %v8021_v41  ;;  %v8067_v41 = vld [vmem:[%s10124_s10 + $0x1b8] sm:$0xff]  }
0x2812   :  { %5221 = vmatprep.subr.bf16.mxu0 %v8029_v5  ;;  %v4993_v5 = vrot.slane %v6896_v25, %v9015_v61 }
0x2815   :  { %5222 = vmatpush1.bf16.msra.mxu0 %v8027_v62  ;;  %v4997_v62 = vrot.slane %v6896_v25, %v9011_v59 }
0x2816   :  { %5223 = vmatprep.subr.bf16.mxu0 %v8035_v8 }
0x2819   :  { %5224 = vmatpush1.bf16.msra.mxu0 %v8033_v9 }
0x281a   :  { %7297 = vmatprep.subr.bf16.mxu0 %v8037_v50 }
0x288f   :  { %v4912_v0 = vpop.xlane.xlu1 %4911 }
0x2890   :  { %v4915_v28 = vmul.f32 0.0078125, %v4912_v0  ;;  %v8044_v0 = vld [vmem:[%s10124_s10 + $0x150] sm:$0xff]  }
0x2891   :  { %v4914_v32 = vpop.xlane.xlu0 %4913 }
0x2892   :  { %v9756_v27 = vsub.f32 %v4905_v20, %v4915_v28  ;;  %v4916_v35 = vmul.f32 0.0078125, %v4914_v32  ;;  %v8045_v28 = vld [vmem:[%s10124_s10 + $0x1d0] sm:$0xff]  }
0x2893   :  { %v8046_v32 = vld [vmem:[%s10124_s10 + $0x110] sm:$0xff]  }
0x2894   :  { %v9758_v30 = vsub.f32 %v4906_v42, %v4916_v35  ;;  %v4919_v52 = vmul.f32 %v9756_v27, %v9756_v27  ;;  %v8048_v35 = vld [vmem:[%s10124_s10 + $0x158] sm:$0xff]  }
0x2896   :  { %4921 = vadd.xlane.f32.xlu1 %v4919_v52  ;;  %v4920_v3 = vmul.f32 %v9758_v30, %v9758_v30  ;;  %v8050_v52 = vld [vmem:[%s10124_s10 + $0x118] sm:$0xff]  }
0x289a   :  { %4923 = vadd.xlane.f32.xlu1 %v4920_v3  ;;  %v8051_v3 = vld [vmem:[%s10124_s10 + $0x198] sm:$0xff]  }
0x2923   :  { %v4922_v46 = vpop.xlane.xlu1 %4921 }
0x2924   :  { %v4925_v22 = vmul.f32 0.0078125, %v4922_v46 }
0x2926   :  { %v4927_v24 = vadd.f32 1e-12, %v4925_v22 }
0x2927   :  { %v4924_v2 = vpop.xlane.xlu1 %4923 }
0x2928   :  { %8184 = vrsqrt.f32 %v4927_v24  ;;  %v4926_v45 = vmul.f32 0.0078125, %v4924_v2 }
0x292a   :  { %v4928_v49 = vadd.f32 1e-12, %v4926_v45 }
0x292c   :  { %8186 = vrsqrt.f32 %v4928_v49 }
0x2932   :  { %v8185_v7 = vpop.eup %8184 }
0x2933   :  { %v4931_v11 = vmul.f32 %v8185_v7, %v9756_v27  ;;  %v8047_v27 = vld [vmem:[%s10124_s10 + $0x190] sm:$0xff]  }
0x2935   :  { %v4939_v1 = vmul.f32 %v6862_v54, %v4931_v11 }
0x2936   :  { %v8187_v47 = vpop.eup %8186 }
0x2937   :  { %v4932_v14 = vmul.f32 %v8187_v47, %v9758_v30  ;;  %v9790_v12 = vadd.f32 %v6863_v18, %v4939_v1  ;;  %v8049_v30 = vld [vmem:[%s10124_s10 + $0x1d8] sm:$0xff]  }
0x2939   :  { %v4940_v44 = vmul.f32 %v6862_v54, %v4932_v14 }
0x293b   :  { %v9792_v20 = vadd.f32 %v6863_v18, %v4940_v44 }
0x293d   :  { %v4984_v42 = vpack.c.bf16 %v9792_v20, %v9790_v12 }
0x293f   :  { %5199 = vmatmul.mubr.bf16.vlgmr.msra.gmra.mrb[120].mxu1 %v4984_v42  ;;  %5242 = vmatmul.mubr.bf16.vlgmr.msra.gmra.mrb[72].mxu0 %v4984_v42 }
0x2940   :  { %7276 = vmatpush3.bf16.msra.mxu1 %v8038_v15  ;;  %7298 = vmatpush3.bf16.msra.mxu0 %v8039_v10 }
0x2941   :  { %7277 = vmatprep.subr.bf16.mxu1 %v8040_v21  ;;  %7299 = vmatprep.subr.bf16.mxu0 %v8041_v17 }
0x2944   :  { %7278 = vmatpush3.bf16.msra.mxu1 %v8042_v13  ;;  %7300 = vmatpush3.bf16.msra.mxu0 %v8043_v43 }
0x2945   :  { %7279 = vmatprep.subr.bf16.mxu1 %v8044_v0  ;;  %7301 = vmatprep.subr.bf16.mxu0 %v8045_v28 }
0x2948   :  { %7280 = vmatpush3.bf16.msra.mxu1 %v8046_v32  ;;  %7302 = vmatpush3.bf16.msra.mxu0 %v8047_v27 }
0x2949   :  { %7281 = vmatprep.subr.bf16.mxu1 %v8048_v35  ;;  %7303 = vmatprep.subr.bf16.mxu0 %v8049_v30 }
0x294c   :  { %7282 = vmatpush3.bf16.msra.mxu1 %v8050_v52  ;;  %7304 = vmatpush3.bf16.msra.mxu0 %v8051_v3 }
0x294d   :  { %7283 = vmatprep.subr.bf16.mxu1 %v8052_v38  ;;  %7305 = vmatprep.subr.bf16.mxu0 %v8053_v34 }
0x2950   :  { %7284 = vmatpush3.bf16.msra.mxu1 %v8054_v29  ;;  %7306 = vmatpush3.bf16.msra.mxu0 %v8055_v60 }
0x2951   :  { %7285 = vmatprep.subr.bf16.mxu1 %v8056_v36  ;;  %7307 = vmatprep.subr.bf16.mxu0 %v8057_v26 }
0x2954   :  { %7286 = vmatpush3.bf16.msra.mxu1 %v8058_v51  ;;  %7308 = vmatpush3.bf16.msra.mxu0 %v8059_v16 }
0x2955   :  { %7287 = vmatprep.subr.bf16.mxu1 %v8060_v23  ;;  %7309 = vmatprep.subr.bf16.mxu0 %v8061_v19 }
0x2958   :  { %7288 = vmatpush3.bf16.msra.mxu1 %v8062_v4  ;;  %7310 = vmatpush3.bf16.msra.mxu0 %v8063_v31 }
0x2959   :  { %7289 = vmatprep.subr.bf16.mxu1 %v8064_v53  ;;  %7311 = vmatprep.subr.bf16.mxu0 %v8065_v56 }
0x295c   :  { %7290 = vmatpush3.bf16.msra.mxu1 %v8066_v39  ;;  %7312 = vmatpush3.bf16.msra.mxu0 %v8067_v41 }
0x2a12   :  { %v5200_v8 = vpop.f32.mrb[120].mxu1  ;;  %v5243_v40 = vpop.f32.mrb[72].mxu0 }
0x2a13   :  { %v5201_v9 = vadd.f32 %v5200_v8, %v4989_v48  ;;  %v9833_v46 = vadd.f32 %v5243_v40, %v4997_v62  ;;  %v5202_v22 = vpop.f32.mrb[121].mxu1  ;;  %v5245_v24 = vpop.f32.mrb[73].mxu0 }
0x2a14   :  { %v9835_v2 = vadd.f32 %v5202_v22, %v4993_v5  ;;  %v9837_v45 = vadd.f32 %v5245_v24, %v5001_v63  ;;  %v5204_v49 = vpop.f32.mrb[122].mxu1  ;;  %v5247_v7 = vpop.f32.mrb[74].mxu0 }
0x2a15   :  { %v9839_v11 = vmul.f32 0.70710677, %v5201_v9  ;;  %v9842_v54 = vmul.f32 0.70710677, %v9833_v46  ;;  %v5206_v42 = vpop.f32.mrb[123].mxu1  ;;  %v5249_v15 = vpop.f32.mrb[75].mxu0  ;;  %v9854_v0 = vadd.f32 %v5204_v49, %v4989_v48  ;;  %v9859_v27 = vadd.f32 %v5247_v7, %v4997_v62 }
0x2a16   :  { %v9845_v47 = vmul.f32 0.70710677, %v9835_v2  ;;  %v9851_v44 = vmul.f32 0.70710677, %v9837_v45  ;;  %v9861_v30 = vadd.f32 %v5206_v42, %v4993_v5  ;;  %v9871_v23 = vadd.f32 %v5249_v15, %v5001_v63 }
0x2a17   :  { %v5284_v14 = vand.u32 2147483647, %v9839_v11  ;;  %v5286_v1 = vand.u32 2147483647, %v9842_v54  ;;  %v9857_v32 = vmul.f32 0.70710677, %v9854_v0 }
0x2a18   :  { %v5285_v18 = vand.u32 2147483647, %v9845_v47  ;;  %v5287_v13 = vand.u32 2147483647, %v9851_v44  ;;  %v9865_v34 = vmul.f32 0.70710677, %v9859_v27 }
0x2a19   :  { %v5292_v55 = vmul.f32 0.3275911, %v5284_v14  ;;  %v5294_v50 = vmul.f32 0.3275911, %v5286_v1  ;;  %v5396_v52 = vmul.f32 %v5284_v14, %v5284_v14  ;;  %v5288_v3 = vand.u32 2147483647, %v9857_v32 }
0x2a1a   :  { %v5293_v10 = vmul.f32 0.3275911, %v5285_v18  ;;  %v5295_v28 = vmul.f32 0.3275911, %v5287_v13  ;;  %v5398_v38 = vmul.f32 %v5286_v1, %v5286_v1  ;;  %v5397_v60 = vmul.f32 %v5285_v18, %v5285_v18 }
0x2a1b   :  { %v5300_v21 = vadd.f32 1.0, %v5292_v55  ;;  %v5302_v17 = vadd.f32 1.0, %v5294_v50  ;;  %v5296_v29 = vmul.f32 0.3275911, %v5288_v3  ;;  %v5290_v36 = vand.u32 2147483647, %v9865_v34 }
0x2a1c   :  { %v5301_v43 = vadd.f32 1.0, %v5293_v10  ;;  %v5303_v35 = vadd.f32 1.0, %v5295_v28  ;;  %v9869_v26 = vmul.f32 0.70710677, %v9861_v30  ;;  %v5404_v51 = vsub.f32 0.0, %v5396_v52 }
0x2a1d   :  { %8188 = vrcp.f32 %v5300_v21  ;;  %v5304_v16 = vadd.f32 1.0, %v5296_v29  ;;  %v5406_v19 = vsub.f32 0.0, %v5398_v38  ;;  %v5298_v4 = vmul.f32 0.3275911, %v5290_v36 }
0x2a1e   :  { %8190 = vrcp.f32 %v5302_v17  ;;  %v5289_v31 = vand.u32 2147483647, %v9869_v26  ;;  %v9876_v56 = vmul.f32 0.5, %v5201_v9  ;;  %v5399_v39 = vmul.f32 %v5287_v13, %v5287_v13 }
0x2a1f   :  { %8192 = vrcp.f32 %v5301_v43  ;;  %v5405_v48 = vsub.f32 0.0, %v5397_v60  ;;  %v5306_v62 = vadd.f32 1.0, %v5298_v4  ;;  %v5412_v8 = vmul.f32 1.442695, %v5404_v51 }
0x2a20   :  { %8194 = vrcp.f32 %v5303_v35  ;;  %v5297_v5 = vmul.f32 0.3275911, %v5289_v31  ;;  %v9883_v40 = vmul.f32 0.70710677, %v9871_v23  ;;  %v5416_v24 = vmul.f32 1.442695, %v5406_v19 }
0x2a21   :  { %8196 = vrcp.f32 %v5304_v16  ;;  %v9888_v7 = vmul.f32 0.5, %v9833_v46  ;;  %v5407_v1 = vsub.f32 0.0, %v5399_v39  ;;  %v5414_v50 = vmul.f32 1.442695, %v5405_v48 }
0x2a22   :  { %8198 = vrcp.f32 %v5306_v62  ;;  %v5305_v9 = vadd.f32 1.0, %v5297_v5  ;;  %v5291_v18 = vand.u32 2147483647, %v9883_v40  ;;  %v5400_v15 = vmul.f32 %v5288_v3, %v5288_v3 }
0x2a23   :  { %v5402_v17 = vmul.f32 %v5290_v36, %v5290_v36  ;;  %v5418_v52 = vmul.f32 1.442695, %v5407_v1  ;;  %vm5268_vm0 = vcmp.ge.f32.partialorder %v9839_v11, 0.0  ;;  %v5401_v5 = vmul.f32 %v5289_v31, %v5289_v31 }
0x2a24   :  { %8200 = vrcp.f32 %v5305_v9  ;;  %v5299_v13 = vmul.f32 0.3275911, %v5291_v18  ;;  %v5408_v16 = vsub.f32 0.0, %v5400_v15  ;;  %vm5270_vm1 = vcmp.ge.f32.partialorder %v9842_v54, 0.0 }
0x2a25   :  { %8202 = vpow2.f32 %v5412_v8  ;;  %v5410_v19 = vsub.f32 0.0, %v5402_v17  ;;  %vm5269_vm2 = vcmp.ge.f32.partialorder %v9845_v47, 0.0  ;;  %vm5272_vm8 = vcmp.ge.f32.partialorder %v9857_v32, 0.0 }
0x2a26   :  { %8204 = vpow2.f32 %v5416_v24  ;;  %v5307_v38 = vadd.f32 1.0, %v5299_v13  ;;  %v5420_v1 = vmul.f32 1.442695, %v5408_v16  ;;  %v5277_v47 = vsel %vm5269_vm2, 1.0, %v8639_v37 }
0x2a27   :  { %v9874_v53 = vpop.eup %8188  ;;  %8206 = vpow2.f32 %v5414_v50  ;;  %vm5274_vm9 = vcmp.ge.f32.partialorder %v9865_v34, 0.0  ;;  %vm5271_vm10 = vcmp.ge.f32.partialorder %v9851_v44, 0.0  ;;  %vm5273_vm11 = vcmp.ge.f32.partialorder %v9869_v26, 0.0 }
0x2a28   :  { %v9878_v41 = vpop.eup %8190  ;;  %v5324_v25 = vmul.f32 1.0614054, %v9874_v53  ;;  %8208 = vrcp.f32 %v5307_v38  ;;  %vm5275_vm12 = vcmp.ge.f32.partialorder %v9883_v40, 0.0  ;;  %v5259_v40 = vmul.f32 0.5, %v9871_v23 }
0x2a29   :  { %v5326_v63 = vmul.f32 1.0614054, %v9878_v41  ;;  %v9885_v49 = vpop.eup %8192  ;;  %8210 = vpow2.f32 %v5418_v52 }
0x2a2a   :  { %v5332_v22 = vadd.f32 -1.4531521, %v5324_v25  ;;  %v5325_v55 = vmul.f32 1.0614054, %v9885_v49  ;;  %v9893_v10 = vpop.eup %8194  ;;  %8212 = vpow2.f32 %v5420_v1 }
0x2a2b   :  { %v5334_v14 = vadd.f32 -1.4531521, %v5326_v63  ;;  %v5327_v28 = vmul.f32 1.0614054, %v9893_v10  ;;  %v9899_v51 = vpop.eup %8196 }
0x2a2c   :  { %v5340_v42 = vmul.f32 %v9874_v53, %v5332_v22  ;;  %v5333_v46 = vadd.f32 -1.4531521, %v5325_v55  ;;  %v5328_v48 = vmul.f32 1.0614054, %v9899_v51  ;;  %v9905_v8 = vpop.eup %8198  ;;  %v5424_v55 = vmul.f32 1.442695, %v5410_v19 }
0x2a2d   :  { %v5342_v21 = vmul.f32 %v9878_v41, %v5334_v14  ;;  %v5335_v60 = vadd.f32 -1.4531521, %v5327_v28  ;;  %v5403_v28 = vmul.f32 %v5291_v18, %v5291_v18 }
0x2a2e   :  { %v5348_v43 = vadd.f32 1.4214138, %v5340_v42  ;;  %v5341_v3 = vmul.f32 %v9885_v49, %v5333_v46  ;;  %v5336_v9 = vadd.f32 -1.4531521, %v5328_v48  ;;  %v5330_v42 = vmul.f32 1.0614054, %v9905_v8  ;;  %v9913_v17 = vpop.eup %8200 }
0x2a2f   :  { %v5350_v35 = vadd.f32 1.4214138, %v5342_v21  ;;  %v5343_v25 = vmul.f32 %v9893_v10, %v5335_v60  ;;  %v5409_v46 = vsub.f32 0.0, %v5401_v5  ;;  %v5329_v16 = vmul.f32 1.0614054, %v9913_v17 }
0x2a30   :  { %v5356_v29 = vmul.f32 %v9874_v53, %v5348_v43  ;;  %v5349_v39 = vadd.f32 1.4214138, %v5341_v3  ;;  %v5344_v31 = vmul.f32 %v9899_v51, %v5336_v9  ;;  %v5338_v43 = vadd.f32 -1.4531521, %v5330_v42 }
0x2a31   :  { %v5358_v36 = vmul.f32 %v9878_v41, %v5350_v35  ;;  %v5351_v24 = vadd.f32 1.4214138, %v5343_v25  ;;  %v8203_v35 = vpop.eup %8202  ;;  %v5276_v48 = vsel %vm5268_vm0, 1.0, %v8639_v37  ;;  %8214 = vpow2.f32 %v5424_v55 }
0x2a32   :  { %v5364_v4 = vadd.f32 -0.28449672, %v5356_v29  ;;  %v5357_v22 = vmul.f32 %v9885_v49, %v5349_v39  ;;  %v5352_v3 = vadd.f32 1.4214138, %v5344_v31  ;;  %v8205_v60 = vpop.eup %8204  ;;  %v5337_v5 = vadd.f32 -1.4531521, %v5329_v16 }
0x2a33   :  { %v5366_v62 = vadd.f32 -0.28449672, %v5358_v36  ;;  %v5359_v21 = vmul.f32 %v9893_v10, %v5351_v24  ;;  %v5346_v36 = vmul.f32 %v9905_v8, %v5338_v43  ;;  %v8207_v19 = vpop.eup %8206  ;;  %v5422_v24 = vmul.f32 1.442695, %v5409_v46 }
0x2a34   :  { %v5372_v63 = vmul.f32 %v9874_v53, %v5364_v4  ;;  %v5365_v15 = vadd.f32 -0.28449672, %v5357_v22  ;;  %v9923_v25 = vpop.eup %8208  ;;  %v5411_v9 = vsub.f32 0.0, %v5403_v28  ;;  %v5345_v42 = vmul.f32 %v9913_v17, %v5337_v5 }
0x2a35   :  { %v5374_v14 = vmul.f32 %v9878_v41, %v5366_v62  ;;  %v5367_v29 = vadd.f32 -0.28449672, %v5359_v21  ;;  %v5354_v62 = vadd.f32 1.4214138, %v5346_v36  ;;  %8216 = vpow2.f32 %v5422_v24 }
0x2a36   :  { %v5380_v50 = vadd.f32 0.2548296, %v5372_v63  ;;  %v5373_v38 = vmul.f32 %v9885_v49, %v5365_v15  ;;  %v5426_v54 = vmul.f32 1.442695, %v5411_v9  ;;  %v5280_v5 = vsel %vm5272_vm8, 1.0, %v8639_v37 }
0x2a37   :  { %v5382_v13 = vadd.f32 0.2548296, %v5374_v14  ;;  %v5375_v18 = vmul.f32 %v9893_v10, %v5367_v29  ;;  %v8211_v14 = vpop.eup %8210  ;;  %v5362_v1 = vmul.f32 %v9905_v8, %v5354_v62 }
0x2a38   :  { %v5388_v52 = vmul.f32 %v9874_v53, %v5380_v50  ;;  %v5381_v39 = vadd.f32 0.2548296, %v5373_v38  ;;  %v5360_v53 = vmul.f32 %v9899_v51, %v5352_v3  ;;  %v5331_v50 = vmul.f32 1.0614054, %v9923_v25 }
0x2a39   :  { %v5390_v4 = vmul.f32 %v9878_v41, %v5382_v13  ;;  %v5278_v41 = vsel %vm5270_vm1, 1.0, %v8639_v37  ;;  %v5383_v55 = vadd.f32 0.2548296, %v5375_v18  ;;  %v5370_v31 = vadd.f32 -0.28449672, %v5362_v1 }
0x2a3a   :  { %v5428_v63 = vmul.f32 %v8203_v35, %v5388_v52  ;;  %v5368_v22 = vadd.f32 -0.28449672, %v5360_v53  ;;  %v5389_v15 = vmul.f32 %v9885_v49, %v5381_v39  ;;  %v5353_v13 = vadd.f32 1.4214138, %v5345_v42 }
0x2a3b   :  { %v5430_v11 = vmul.f32 %v8205_v60, %v5390_v4  ;;  %v5339_v43 = vadd.f32 -1.4531521, %v5331_v50  ;;  %v5378_v35 = vmul.f32 %v9905_v8, %v5370_v31  ;;  %v8213_v60 = vpop.eup %8212  ;;  %v5391_v36 = vmul.f32 %v9893_v10, %v5383_v55 }
0x2a3c   :  { %v5376_v21 = vmul.f32 %v9899_v51, %v5368_v22  ;;  %v5436_v46 = vsub.f32 1.0, %v5428_v63  ;;  %v5361_v52 = vmul.f32 %v9913_v17, %v5353_v13  ;;  %v5429_v49 = vmul.f32 %v8207_v19, %v5389_v15  ;;  %v8215_v62 = vpop.eup %8214 }
0x2a3d   :  { %v5347_v38 = vmul.f32 %v9923_v25, %v5339_v43  ;;  %v5438_v29 = vsub.f32 1.0, %v5430_v11  ;;  %v5386_v16 = vadd.f32 0.2548296, %v5378_v35  ;;  %8218 = vpow2.f32 %v5426_v54 }
0x2a3e   :  { %v5384_v28 = vadd.f32 0.2548296, %v5376_v21  ;;  %v5369_v4 = vadd.f32 -0.28449672, %v5361_v52  ;;  %v5444_v18 = vmul.f32 %v5436_v46, %v5276_v48  ;;  %v5437_v22 = vsub.f32 1.0, %v5429_v49 }
0x2a3f   :  { %v5355_v39 = vadd.f32 1.4214138, %v5347_v38  ;;  %v5394_v19 = vmul.f32 %v9905_v8, %v5386_v16  ;;  %v5446_v63 = vmul.f32 %v5438_v29, %v5278_v41  ;;  %v5431_v24 = vmul.f32 %v8211_v14, %v5391_v36  ;;  %v8217_v21 = vpop.eup %8216 }
0x2a40   :  { %v5392_v3 = vmul.f32 %v9899_v51, %v5384_v28  ;;  %v5377_v32 = vmul.f32 %v9913_v17, %v5369_v4  ;;  %v5452_v42 = vadd.f32 1.0, %v5444_v18  ;;  %v5256_v50 = vmul.f32 0.5, %v9854_v0 }
0x2a41   :  { %v5363_v51 = vmul.f32 %v9923_v25, %v5355_v39  ;;  %v5434_v48 = vmul.f32 %v8215_v62, %v5394_v19  ;;  %v5282_v8 = vsel %vm5274_vm9, 1.0, %v8639_v37  ;;  %v5454_v31 = vadd.f32 1.0, %v5446_v63 }
0x2a42   :  { %v5432_v53 = vmul.f32 %v8213_v60, %v5392_v3  ;;  %v5385_v9 = vadd.f32 0.2548296, %v5377_v32  ;;  %v5445_v34 = vmul.f32 %v5437_v22, %v5277_v47  ;;  %v5439_v13 = vsub.f32 1.0, %v5431_v24 }
0x2a43   :  { %v5371_v1 = vadd.f32 -0.28449672, %v5363_v51  ;;  %v5442_v15 = vsub.f32 1.0, %v5434_v48  ;;  %v5460_v0 = vmul.f32 %v5452_v42, %v9876_v56  ;;  %v5279_v54 = vsel %vm5271_vm10, 1.0, %v8639_v37 }
0x2a44   :  { %v5440_v10 = vsub.f32 1.0, %v5432_v53  ;;  %v5393_v55 = vmul.f32 %v9913_v17, %v5385_v9  ;;  %v5258_v17 = vmul.f32 0.5, %v9859_v27  ;;  %v5281_v38 = vsel %vm5273_vm11, 1.0, %v8639_v37 }
0x2a45   :  { %v5379_v41 = vmul.f32 %v9923_v25, %v5371_v1  ;;  %v5450_v43 = vmul.f32 %v5442_v15, %v5282_v8  ;;  %v5462_v3 = vmul.f32 %v5454_v31, %v9888_v7  ;;  %v5453_v60 = vadd.f32 1.0, %v5445_v34 }
0x2a46   :  { %v5448_v11 = vmul.f32 %v5440_v10, %v5280_v5  ;;  %v5433_v46 = vmul.f32 %v8217_v21, %v5393_v55  ;;  %v5447_v56 = vmul.f32 %v5439_v13, %v5279_v54  ;;  %v5253_v39 = vmul.f32 0.5, %v9835_v2 }
0x2a47   :  { %v5387_v28 = vadd.f32 0.2548296, %v5379_v41  ;;  %v5458_v52 = vadd.f32 1.0, %v5450_v43  ;;  %v8219_v26 = vpop.eup %8218  ;;  %v5257_v18 = vmul.f32 0.5, %v9861_v30  ;;  %v5255_v32 = vmul.f32 0.5, %v9837_v45 }
0x2a48   :  { %v5456_v14 = vadd.f32 1.0, %v5448_v11  ;;  %v5441_v29 = vsub.f32 1.0, %v5433_v46  ;;  %v5461_v62 = vmul.f32 %v5453_v60, %v5253_v39  ;;  %v5455_v5 = vadd.f32 1.0, %v5447_v56  ;;  %v6993_v30 = vld [vmem:[#allocation23 + $0x1] ss:$0 sm:$0xff]  ;;  %v5899_v60 = vld [vmem:[%s8784_s3 + $0x40] sm:$0xff] }
0x2a49   :  { %v5395_v49 = vmul.f32 %v9923_v25, %v5387_v28  ;;  %v5466_v16 = vmul.f32 %v5458_v52, %v5258_v17  ;;  %v5283_v25 = vsel %vm5275_vm12, 1.0, %v8639_v37  ;;  %v5895_v17 = vld [vmem:[%s8784_s3 + $0x20] sm:$0xff]  ;;  %v5892_v52 = vld [vmem:[%s8784_s3 + $0x8] sm:$0xff] }
0x2a4a   :  { %v5464_v35 = vmul.f32 %v5456_v14, %v5256_v50  ;;  %v5449_v44 = vmul.f32 %v5441_v29, %v5281_v38  ;;  %v5463_v22 = vmul.f32 %v5455_v5, %v5255_v32  ;;  %v5896_v29 = vld [vmem:[%s8784_s3 + $0x28] sm:$0xff]  ;;  %v5915_v32 = vld [vmem:[%s8784_s3 + $0xc0] sm:$0xff] }
0x2a4b   :  { %v5435_v4 = vmul.f32 %v8219_v26, %v5395_v49  ;;  %v5537_v27 = vpack.c.bf16 %v5466_v16, %v5462_v3  ;;  %v7033_v26 = vcombine.low %v5892_v52, %v5896_v29  ;;  %v7034_v3 = vcombine.high %v5892_v52, %v5896_v29  ;;  %v5900_v56 = vld [vmem:[%s8784_s3 + $0x48] sm:$0xff]  ;;  %v5951_v29 = vld [vmem:[%s8784_s3 + $0x1e0] sm:$0xff] }
0x2a4c   :  { %v5535_v36 = vpack.c.bf16 %v5464_v35, %v5460_v0  ;;  %v5457_v47 = vadd.f32 1.0, %v5449_v44  ;;  %v5904_v44 = vld [vmem:[%s8784_s3 + $0x68] sm:$0xff] }
0x2a4d   :  { %v5443_v53 = vsub.f32 1.0, %v5435_v4  ;;  %6359 = vmatprep.subr.bf16.mxu0 %v7034_v3  ;;  %v7041_v39 = vcombine.low %v5900_v56, %v5904_v44  ;;  %v5952_v3 = vld [vmem:[%s8784_s3 + $0x1e8] sm:$0xff] }
0x2a4e   :  { %v5465_v7 = vmul.f32 %v5457_v47, %v5257_v18  ;;  %v5907_v18 = vld [vmem:[%s8784_s3 + $0x80] sm:$0xff] }
0x2a4f   :  { %v5451_v19 = vmul.f32 %v5443_v53, %v5283_v25  ;;  %v5911_v47 = vld [vmem:[%s8784_s3 + $0xa0] sm:$0xff]  ;;  %v5908_v53 = vld [vmem:[%s8784_s3 + $0x88] sm:$0xff] }
0x2a50   :  { %v5536_v63 = vpack.c.bf16 %v5465_v7, %v5461_v62  ;;  %v7048_v25 = vcombine.high %v5907_v18, %v5911_v47  ;;  %v5912_v62 = vld [vmem:[%s8784_s3 + $0xa8] sm:$0xff]  ;;  %v7047_v5 = vcombine.low %v5907_v18, %v5911_v47 }
0x2a51   :  { %v5459_v51 = vadd.f32 1.0, %v5451_v19  ;;  %v7049_v7 = vcombine.low %v5908_v53, %v5912_v62  ;;  %v7050_v19 = vcombine.high %v5908_v53, %v5912_v62 }
0x2a52   :  { %5769 = vmatprep.mubr.bf16.mxu1 %v5536_v63 }
0x2a53   :  { %v5467_v10 = vmul.f32 %v5459_v51, %v5259_v40  ;;  %5770 = vmatmul.mubr.bf16.vlgmr.msra.gmra.mrb[124].mxu1 %v5535_v36  ;;  %v5903_v36 = vld [vmem:[%s8784_s3 + $0x60] sm:$0xff]  ;;  %v5916_v51 = vld [vmem:[%s8784_s3 + $0xc8] sm:$0xff] }
0x2a54   :  { %6350 = vmatprep.mubr.bf16.mxu1 %v8635_v33  ;;  %v7040_v16 = vcombine.high %v5899_v60, %v5903_v36  ;;  %v7039_v4 = vcombine.low %v5899_v60, %v5903_v36  ;;  %v5919_v40 = vld [vmem:[%s8784_s3 + $0xe0] sm:$0xff] }
0x2a55   :  { %v5538_v2 = vpack.c.bf16 %v5467_v10, %v5463_v22  ;;  %v7056_v63 = vcombine.high %v5915_v32, %v5919_v40  ;;  %v5920_v22 = vld [vmem:[%s8784_s3 + $0xe8] sm:$0xff]  ;;  %v7055_v10 = vcombine.low %v5915_v32, %v5919_v40  ;;  %v5865_v40 = vstv %s7028_s27 }
0x2a56   :  { %vm5866_vm13 = vcmp.eq.s32.totalorder %v9005_v57, %v5865_v40 }
0x2a57   :  { %5810 = vmatprep.mubr.bf16.mxu0 %v5538_v2  ;;  %v7057_v2 = vcombine.low %v5916_v51, %v5920_v22 }
0x2a58   :  { %5811 = vmatmul.mubr.bf16.vlgmr.msra.gmra.mrb[76].mxu0 %v5537_v27  ;;  %v7042_v27 = vcombine.high %v5900_v56, %v5904_v44 }
0x2a59   :  { %6391 = vmatprep.mubr.bf16.mxu0 %v8635_v33  ;;  %6360 = vmatpush1.bf16.msra.mxu0 %v7033_v26  ;;  %v5948_v26 = vld [vmem:[%s8784_s3 + $0x1c8] sm:$0xff] }
0x2a5a   :  { %6361 = vmatprep.subr.bf16.mxu0 %v7042_v27 }
0x2a5d   :  { %6362 = vmatpush1.bf16.msra.mxu0 %v7041_v39 }
0x2a5e   :  { %6363 = vmatprep.subr.bf16.mxu0 %v7050_v19  ;;  %v7026_v19 = vld [vmem:[#allocation24 + $0x1] ss:$0 sm:$0xff] }
0x2a61   :  { %6364 = vmatpush1.bf16.msra.mxu0 %v7049_v7 }
0x2b26   :  { %v7291_v37 = vpop.f32.mrb[124].mxu1 }
0x2b27   :  { %v7292_v24 = vpop.f32.mrb[125].mxu1 }
0x2b28   :  { %v7293_v48 = vadd.f32 %v7292_v24, %v7291_v37  ;;  %v7294_v45 = vpop.f32.mrb[126].mxu1  ;;  %v7058_v37 = vcombine.high %v5916_v51, %v5920_v22  ;;  %v5927_v24 = vld [vmem:[%s8784_s3 + $0x120] sm:$0xff] }
0x2b29   :  { %v7295_v9 = vpop.f32.mrb[127].mxu1 }
0x2b2a   :  { %v5772_v1 = vadd.f32 %v7293_v48, %v6993_v30  ;;  %v7296_v42 = vadd.f32 %v7295_v9, %v7294_v45  ;;  %v5924_v48 = vld [vmem:[%s8784_s3 + $0x108] sm:$0xff]  ;;  %6365 = vmatprep.subr.bf16.mxu0 %v7058_v37 }
0x2b2b   :  { %v7313_v23 = vpop.f32.mrb[76].mxu0  ;;  %6366 = vmatpush1.bf16.msra.mxu0 %v7057_v2  ;;  %v5878_v2 = vstv %s7030_s11 }
0x2b2c   :  { %v7314_v50 = vpop.f32.mrb[77].mxu0  ;;  %v5775_v15 = vadd.f32 %v7296_v42, %v6993_v30  ;;  %v5923_v30 = vld [vmem:[%s8784_s3 + $0x100] sm:$0xff]  ;;  %vm5879_vm14 = vcmp.eq.s32.totalorder %v9005_v57, %v5878_v2  ;;  %v5945_v2 = vld [vmem:[%s8784_s3 + $0x1b0] sm:$0xff] }
0x2b2d   :  { %v7315_v11 = vadd.f32 %v7314_v50, %v7313_v23  ;;  %v7316_v8 = vpop.f32.mrb[78].mxu0  ;;  %v7063_v45 = vcombine.low %v5923_v30, %v5927_v24  ;;  %v7064_v9 = vcombine.high %v5923_v30, %v5927_v24  ;;  %v5928_v23 = vld [vmem:[%s8784_s3 + $0x128] sm:$0xff]  ;;  %v5935_v42 = vld [vmem:[%s8784_s3 + $0x160] sm:$0xff] }
0x2b2e   :  { %v7317_v55 = vpop.f32.mrb[79].mxu0  ;;  %v7065_v50 = vcombine.low %v5924_v48, %v5928_v23 }
0x2b2f   :  { %v5813_v41 = vadd.f32 %v7315_v11, %v5772_v1  ;;  %v7318_v21 = vadd.f32 %v7317_v55, %v7316_v8  ;;  %v5931_v1 = vld [vmem:[%s8784_s3 + $0x140] sm:$0xff]  ;;  %v7066_v11 = vcombine.high %v5924_v48, %v5928_v23  ;;  %v5936_v55 = vld [vmem:[%s8784_s3 + $0x168] sm:$0xff] }
0x2b30   :  { %v7072_v8 = vcombine.high %v5931_v1, %v5935_v42 }
0x2b31   :  { %v5816_v31 = vadd.f32 %v7318_v21, %v5775_v15  ;;  %v5819_v34 = vadd.f32 %v5813_v41, %v9790_v12  ;;  %v5932_v15 = vld [vmem:[%s8784_s3 + $0x148] sm:$0xff]  ;;  %v5939_v21 = vld [vmem:[%s8784_s3 + $0x180] sm:$0xff]  ;;  %6367 = vmatprep.subr.bf16.mxu0 %v7066_v11 }
0x2b32   :  { %v7074_v41 = vcombine.high %v5932_v15, %v5936_v55  ;;  %6368 = vmatpush1.bf16.msra.mxu0 %v7065_v50 }
0x2b33   :  { %5825 = vadd.xlane.f32.xlu0 %v5819_v34  ;;  %v5820_v14 = vadd.f32 %v5816_v31, %v9792_v20  ;;  %v5891_v20 = vld [vmem:[%s8784_s3] sm:$0xff] }
0x2b34   :  { %v7032_v38 = vcombine.high %v5891_v20, %v5895_v17  ;;  %v7031_v49 = vcombine.low %v5891_v20, %v5895_v17  ;;  %v5943_v31 = vld [vmem:[%s8784_s3 + $0x1a0] sm:$0xff]  ;;  %v10018_v20 = vld [vmem:[%s8784_s3 + $0x18] sm:$0xff]  ;;  %6369 = vmatprep.subr.bf16.mxu0 %v7074_v41 }
0x2b35   :  { %5827 = vadd.xlane.f32.xlu1 %v5820_v14  ;;  %v10021_v17 = vld [vmem:[%s8784_s3 + $0x38] sm:$0xff]  ;;  %v7079_v60 = vcombine.low %v5939_v21, %v5943_v31 }
0x2b36   :  { %6318 = vmatprep.subr.bf16.mxu1 %v7032_v38  ;;  %v5947_v38 = vld [vmem:[%s8784_s3 + $0x1c0] sm:$0xff]  ;;  %v7038_v27 = vcombine.high %v10018_v20, %v10021_v17 }
0x2b37   :  { %6319 = vmatpush1.bf16.msra.mxu1 %v7031_v49  ;;  %v7037_v49 = vcombine.low %v10018_v20, %v10021_v17  ;;  %v7088_v56 = vcombine.high %v5947_v38, %v5951_v29  ;;  %v7087_v44 = vcombine.low %v5947_v38, %v5951_v29  ;;  %v5909_v38 = vld [vmem:[%s8784_s3 + $0x90] sm:$0xff] }
0x2b38   :  { %6320 = vmatprep.subr.bf16.mxu1 %v7040_v16  ;;  %v7090_v16 = vcombine.high %v5948_v26, %v5952_v3  ;;  %v5913_v29 = vld [vmem:[%s8784_s3 + $0xb0] sm:$0xff] }
0x2b39   :  { %v5925_v17 = vld [vmem:[%s8784_s3 + $0x110] sm:$0xff] }
0x2b3b   :  { %6321 = vmatpush1.bf16.msra.mxu1 %v7039_v4  ;;  %v7089_v4 = vcombine.low %v5948_v26, %v5952_v3  ;;  %v5910_v26 = vld [vmem:[%s8784_s3 + $0x98] sm:$0xff] }
0x2b3c   :  { %6322 = vmatprep.subr.bf16.mxu1 %v7048_v25  ;;  %v5914_v3 = vld [vmem:[%s8784_s3 + $0xb8] sm:$0xff] }
0x2b3f   :  { %6323 = vmatpush1.bf16.msra.mxu1 %v7047_v5 }
0x2b40   :  { %6324 = vmatprep.subr.bf16.mxu1 %v7056_v63  ;;  %v7027_v63 = vld [vmem:[#allocation26 + $0x1] ss:$0 sm:$0xff] }
0x2b43   :  { %6325 = vmatpush1.bf16.msra.mxu1 %v7055_v10 }
0x2b44   :  { %6326 = vmatprep.subr.bf16.mxu1 %v7064_v9 }
0x2b47   :  { %6327 = vmatpush1.bf16.msra.mxu1 %v7063_v45 }
0x2b48   :  { %6328 = vmatprep.subr.bf16.mxu1 %v7072_v8 }
0x2bc0   :  { %v5826_v13 = vpop.xlane.xlu0 %5825 }
0x2bc1   :  { %v5829_v43 = vmul.f32 0.0078125, %v5826_v13  ;;  %v7071_v13 = vcombine.low %v5931_v1, %v5935_v42 }
0x2bc2   :  { %v5828_v46 = vpop.xlane.xlu1 %5827 }
0x2bc3   :  { %v9973_v28 = vsub.f32 %v5819_v34, %v5829_v43  ;;  %v5830_v0 = vmul.f32 0.0078125, %v5828_v46  ;;  %v5940_v34 = vld [vmem:[%s8784_s3 + $0x188] sm:$0xff]  ;;  %v10010_v43 = vld [vmem:[%s8784_s3 + $0x10] sm:$0xff]  ;;  %6329 = vmatpush1.bf16.msra.mxu1 %v7071_v13 }
0x2bc4   :  { %v10013_v46 = vld [vmem:[%s8784_s3 + $0x30] sm:$0xff] }
0x2bc5   :  { %v9975_v54 = vsub.f32 %v5820_v14, %v5830_v0  ;;  %v5833_v35 = vmul.f32 %v9973_v28, %v9973_v28  ;;  %v5944_v14 = vld [vmem:[%s8784_s3 + $0x1a8] sm:$0xff]  ;;  %v7073_v0 = vcombine.low %v5932_v15, %v5936_v55  ;;  %v7036_v39 = vcombine.high %v10010_v43, %v10013_v46  ;;  %v5901_v55 = vld [vmem:[%s8784_s3 + $0x50] sm:$0xff] }
0x2bc6   :  { %v7082_v52 = vcombine.high %v5940_v34, %v5944_v14  ;;  %v7081_v36 = vcombine.low %v5940_v34, %v5944_v14  ;;  %v5902_v34 = vld [vmem:[%s8784_s3 + $0x58] sm:$0xff] }
0x2bc7   :  { %5835 = vadd.xlane.f32.xlu0 %v5833_v35  ;;  %v5834_v12 = vmul.f32 %v9975_v54, %v9975_v54  ;;  %v7080_v35 = vcombine.high %v5939_v21, %v5943_v31  ;;  %6370 = vmatpush1.bf16.msra.mxu0 %v7073_v0  ;;  %v5905_v31 = vld [vmem:[%s8784_s3 + $0x70] sm:$0xff]  ;;  %v5906_v14 = vld [vmem:[%s8784_s3 + $0x78] sm:$0xff] }
0x2bc8   :  { %6371 = vmatprep.subr.bf16.mxu0 %v7082_v52  ;;  %v7046_v52 = vcombine.high %v5902_v34, %v5906_v14 }
0x2bc9   :  { %5837 = vadd.xlane.f32.xlu1 %v5834_v12  ;;  %v7035_v12 = vcombine.low %v10010_v43, %v10013_v46  ;;  %6330 = vmatprep.subr.bf16.mxu1 %v7080_v35  ;;  %v7044_v35 = vcombine.high %v5901_v55, %v5905_v31  ;;  %v7051_v43 = vcombine.low %v5909_v38, %v5913_v29 }
0x2bca   :  { %6331 = vmatpush1.bf16.msra.mxu1 %v7079_v60  ;;  %v7043_v60 = vcombine.low %v5901_v55, %v5905_v31  ;;  %v7053_v46 = vcombine.low %v5910_v26, %v5914_v3 }
0x2bcb   :  { %6372 = vmatpush1.bf16.msra.mxu0 %v7081_v36  ;;  %6332 = vmatprep.subr.bf16.mxu1 %v7088_v56  ;;  %v7045_v36 = vcombine.low %v5902_v34, %v5906_v14  ;;  %v7052_v56 = vcombine.high %v5909_v38, %v5913_v29 }
0x2bcc   :  { %6373 = vmatprep.subr.bf16.mxu0 %v7090_v16  ;;  %v7054_v16 = vcombine.high %v5910_v26, %v5914_v3 }
0x2bce   :  { %6333 = vmatpush1.bf16.msra.mxu1 %v7087_v44  ;;  %v5917_v44 = vld [vmem:[%s8784_s3 + $0xd0] sm:$0xff] }
0x2bcf   :  { %6374 = vmatpush1.bf16.msra.mxu0 %v7089_v4  ;;  %6400 = vmatprep.subr.bf16.mxu1 %v7036_v39  ;;  %v5921_v4 = vld [vmem:[%s8784_s3 + $0xf0] sm:$0xff]  ;;  %v5918_v39 = vld [vmem:[%s8784_s3 + $0xd8] sm:$0xff] }
0x2bd0   :  { %6441 = vmatprep.subr.bf16.mxu0 %v7038_v27  ;;  %v5922_v27 = vld [vmem:[%s8784_s3 + $0xf8] sm:$0xff] }
0x2bd1   :  { %v7062_v20 = vcombine.high %v5918_v39, %v5922_v27 }
0x2c54   :  { %v5836_v18 = vpop.xlane.xlu0 %5835 }
0x2c55   :  { %v5839_v47 = vmul.f32 0.0078125, %v5836_v18  ;;  %v5926_v18 = vld [vmem:[%s8784_s3 + $0x118] sm:$0xff] }
0x2c56   :  { %v5838_v53 = vpop.xlane.xlu1 %5837 }
0x2c57   :  { %v5841_v25 = vadd.f32 1e-12, %v5839_v47  ;;  %v5840_v62 = vmul.f32 0.0078125, %v5838_v53  ;;  %v5930_v47 = vld [vmem:[%s8784_s3 + $0x138] sm:$0xff]  ;;  %v7059_v53 = vcombine.low %v5917_v44, %v5921_v4 }
0x2c59   :  { %8220 = vrsqrt.f32 %v5841_v25  ;;  %v5842_v5 = vadd.f32 1e-12, %v5840_v62  ;;  %v7070_v62 = vcombine.high %v5926_v18, %v5930_v47 }
0x2c5b   :  { %8222 = vrsqrt.f32 %v5842_v5  ;;  %v5933_v5 = vld [vmem:[%s8784_s3 + $0x150] sm:$0xff] }
0x2c63   :  { %v8221_v7 = vpop.eup %8220 }
0x2c64   :  { %v5845_v32 = vmul.f32 %v8221_v7, %v9973_v28  ;;  %v5937_v7 = vld [vmem:[%s8784_s3 + $0x170] sm:$0xff] }
0x2c65   :  { %v8223_v51 = vpop.eup %8222 }
0x2c66   :  { %v5853_v22 = vmul.f32 %v7026_v19, %v5845_v32  ;;  %v5846_v10 = vmul.f32 %v8223_v51, %v9975_v54  ;;  %v5938_v32 = vld [vmem:[%s8784_s3 + $0x178] sm:$0xff]  ;;  %v7069_v51 = vcombine.low %v5926_v18, %v5930_v47 }
0x2c68   :  { %v5861_v37 = vadd.f32 %v7027_v63, %v5853_v22  ;;  %v5854_v30 = vmul.f32 %v7026_v19, %v5846_v10  ;;  %v5934_v19 = vld [vmem:[%s8784_s3 + $0x158] sm:$0xff]  ;;  %v5941_v10 = vld [vmem:[%s8784_s3 + $0x190] sm:$0xff] }
0x2c69   :  { %v7078_v22 = vcombine.high %v5934_v19, %v5938_v32 }
0x2c6a   :  { %v5862_v24 = vadd.f32 %v7027_v63, %v5854_v30  ;;  %v5869_v48 = vsel %vm5866_vm13, %v5861_v37, 0.0  ;;  %v7076_v63 = vcombine.high %v5933_v5, %v5937_v7  ;;  %v5942_v37 = vld [vmem:[%s8784_s3 + $0x198] sm:$0xff] }
0x2c6b   :  { %v5870_v45 = vrot.slane %v5869_v48, 4  ;;  %v5946_v30 = vld [vmem:[%s8784_s3 + $0x1b8] sm:$0xff] }
0x2c6c   :  { %v5882_v28 = vsel %vm5879_vm14, %v5862_v24, 0.0  ;;  %v7075_v24 = vcombine.low %v5933_v5, %v5937_v7 }
0x2c6d   :  { %v5871_v9 = vadd.f32 %v5870_v45, %v5869_v48  ;;  %v5883_v23 = vrot.slane %v5882_v28, 4  ;;  %v7077_v48 = vcombine.low %v5934_v19, %v5938_v32  ;;  %v7084_v45 = vcombine.high %v5941_v10, %v5945_v2 }
0x2c6f   :  { %v5872_v1 = vrot.slane %v5871_v9, 2  ;;  %v5884_v42 = vadd.f32 %v5883_v23, %v5882_v28  ;;  %v7086_v28 = vcombine.high %v5942_v37, %v5946_v30  ;;  %v5953_v23 = vld [vmem:[%s8784_s3 + $0x1f0] sm:$0xff] }
0x2c71   :  { %v5873_v54 = vadd.f32 %v5872_v1, %v5871_v9  ;;  %v5885_v50 = vrot.slane %v5884_v42, 2  ;;  %v5949_v9 = vld [vmem:[%s8784_s3 + $0x1d0] sm:$0xff]  ;;  %v5950_v1 = vld [vmem:[%s8784_s3 + $0x1d8] sm:$0xff] }
0x2c73   :  { %v5874_v11 = vrot.slane %v5873_v54, 1  ;;  %v5886_v8 = vadd.f32 %v5885_v50, %v5884_v42  ;;  %v5954_v42 = vld [vmem:[%s8784_s3 + $0x1f8] sm:$0xff]  ;;  %v7085_v50 = vcombine.low %v5942_v37, %v5946_v30 }
0x2c74   :  { %v7093_v55 = vcombine.low %v5950_v1, %v5954_v42 }
0x2c75   :  { %v5887_v15 = vrot.slane %v5886_v8, 1  ;;  %v5875_v41 = vadd.f32 %v5874_v11, %v5873_v54  ;;  %v7083_v54 = vcombine.low %v5941_v10, %v5945_v2  ;;  %v7092_v11 = vcombine.high %v5949_v9, %v5953_v23 }
0x2c77   :  { %v5888_v21 = vadd.f32 %v5887_v15, %v5886_v8  ;;  %v7094_v8 = vcombine.high %v5950_v1, %v5954_v42  ;;  %v7091_v15 = vcombine.low %v5949_v9, %v5953_v23 }
0x2c79   :  { %v5890_v13 = vsel %vm5889_vm15, %v5875_v41, %v5888_v21  ;;  %v5955_v41 = vld [vmem:[%s8789_s13] sm:$0xff]  ;;  %v8640_v21 = vmov 1983009808  }
0x2c7a   :  { %v10041_v0 = vpack.c.bf16 %v5890_v13, %v5890_v13  ;;  %v6493_v31 = vunpack.c.l.s4 %v8640_v21  ;;  %v5961_v34 = vrot.slane %v5955_v41, %v9008_v58  ;;  %v5969_v14 = vrot.slane %v5955_v41, %v9011_v59 }
0x2c7b   :  { %v5965_v13 = vrot.slane %v5955_v41, %v9015_v61 }
0x2c7c   :  { %6351 = vmatmul.mubr.bf16.vlgmr.msra.gmra.mrb[128].mxu1 %v10041_v0  ;;  %6392 = vmatmul.mubr.bf16.vlgmr.msra.gmra.mrb[80].mxu0 %v10041_v0 }
0x2c7d   :  { %6401 = vmatpush1.bf16.msra.mxu1 %v7035_v12  ;;  %6442 = vmatpush1.bf16.msra.mxu0 %v7037_v49  ;;  %v7060_v12 = vcombine.high %v5917_v44, %v5921_v4  ;;  %v5929_v49 = vld [vmem:[%s8784_s3 + $0x130] sm:$0xff] }
0x2c7e   :  { %6402 = vmatprep.subr.bf16.mxu1 %v7044_v35  ;;  %6443 = vmatprep.subr.bf16.mxu0 %v7046_v52  ;;  %v7068_v25 = vcombine.high %v5925_v17, %v5929_v49  ;;  %v7067_v40 = vcombine.low %v5925_v17, %v5929_v49  ;;  %v6494_v35 = vunpack.c.0.s8 %v6493_v31  ;;  %v5973_v52 = vrot.slane %v5955_v41, %v9339_v6 }
0x2c7f   :  { %6432 = vmatprep.mubr.bf16.mxu1 %v8635_v33  ;;  %6473 = vmatprep.mubr.bf16.mxu0 %v8635_v33  ;;  %v7061_v33 = vcombine.low %v5918_v39, %v5922_v27  ;;  %v5988_v17 = vsub.s32 7, %v9005_v57 }
0x2c81   :  { %6403 = vmatpush1.bf16.msra.mxu1 %v7043_v60  ;;  %6444 = vmatpush1.bf16.msra.mxu0 %v7045_v36 }
0x2c82   :  { %6404 = vmatprep.subr.bf16.mxu1 %v7052_v56  ;;  %6445 = vmatprep.subr.bf16.mxu0 %v7054_v16  ;;  %v6497_v56 = vsub.s32 %v6494_v35, %v9005_v57 }
0x2c85   :  { %6405 = vmatpush1.bf16.msra.mxu1 %v7051_v43  ;;  %6446 = vmatpush1.bf16.msra.mxu0 %v7053_v46  ;;  %v5976_v46 = vsub.s32 4, %v9005_v57 }
0x2c86   :  { %6406 = vmatprep.subr.bf16.mxu1 %v7060_v12  ;;  %6447 = vmatprep.subr.bf16.mxu0 %v7062_v20  ;;  %v5984_v12 = vsub.s32 6, %v9005_v57  ;;  %v5980_v20 = vsub.s32 5, %v9005_v57 }
0x2c87   :  { %v5977_v49 = vrot.slane %v5955_v41, %v5976_v46 }
0x2c88   :  { %v5985_v18 = vrot.slane %v5955_v41, %v5984_v12  ;;  %v5981_v47 = vrot.slane %v5955_v41, %v5980_v20 }
0x2c89   :  { %6407 = vmatpush1.bf16.msra.mxu1 %v7059_v53  ;;  %6448 = vmatpush1.bf16.msra.mxu0 %v7061_v33  ;;  %v5989_v53 = vrot.slane %v5955_v41, %v5988_v17 }
0x2c8a   :  { %6408 = vmatprep.subr.bf16.mxu1 %v7068_v25  ;;  %6449 = vmatprep.subr.bf16.mxu0 %v7070_v62 }
0x2c8d   :  { %6409 = vmatpush1.bf16.msra.mxu1 %v7067_v40  ;;  %6450 = vmatpush1.bf16.msra.mxu0 %v7069_v51 }
0x2c8e   :  { %6410 = vmatprep.subr.bf16.mxu1 %v7076_v63  ;;  %6451 = vmatprep.subr.bf16.mxu0 %v7078_v22 }
0x2c91   :  { %6411 = vmatpush1.bf16.msra.mxu1 %v7075_v24  ;;  %6452 = vmatpush1.bf16.msra.mxu0 %v7077_v48 }
0x2c92   :  { %6412 = vmatprep.subr.bf16.mxu1 %v7084_v45  ;;  %6453 = vmatprep.subr.bf16.mxu0 %v7086_v28 }
0x2c95   :  { %6413 = vmatpush1.bf16.msra.mxu1 %v7083_v54  ;;  %6454 = vmatpush1.bf16.msra.mxu0 %v7085_v50 }
0x2c96   :  { %6414 = vmatprep.subr.bf16.mxu1 %v7092_v11  ;;  %6455 = vmatprep.subr.bf16.mxu0 %v7094_v8 }
0x2c99   :  { %6415 = vmatpush1.bf16.msra.mxu1 %v7091_v15  ;;  %6456 = vmatpush1.bf16.msra.mxu0 %v7093_v55 }
0x2c9c   :  { %6433 = vmatmul.mubr.bf16.vlgmr.msra.gmra.mrb[132].mxu1 %v10041_v0  ;;  %6474 = vmatmul.mubr.bf16.vlgmr.msra.gmra.mrb[84].mxu0 %v10041_v0 }
0x2d4f   :  { %v6352_v38 = vpop.f32.mrb[128].mxu1  ;;  %v6393_v29 = vpop.f32.mrb[80].mxu0 }
0x2d50   :  { %v6353_v26 = vadd.f32 %v6352_v38, %v5961_v34  ;;  %v6394_v3 = vadd.f32 %v6393_v29, %v5969_v14  ;;  %v6354_v60 = vpop.f32.mrb[129].mxu1  ;;  %v6395_v36 = vpop.f32.mrb[81].mxu0 }
0x2d51   :  { %v6355_v0 = vadd.f32 %v6354_v60, %v5965_v13  ;;  %v6396_v16 = vadd.f32 %v6395_v36, %v5973_v52  ;;  %v6356_v44 = vpop.f32.mrb[130].mxu1  ;;  %v6397_v58 = vpop.f32.mrb[82].mxu0 }
0x2d52   :  { %v6357_v4 = vpop.f32.mrb[131].mxu1  ;;  %v6398_v59 = vpop.f32.mrb[83].mxu0 }
0x2d53   :  { %v6490_v39 = vcombine.low %v6353_v26, %v6355_v0  ;;  %v6491_v61 = vcombine.low %v6394_v3, %v6396_v16 }
0x2d55   :  { %v6498_v27 = vrot.slane %v6490_v39, %v6497_v56  ;;  %v6505_v43 = vrot.slane %v6491_v61, %v6497_v56 }
0x2d57   :  { %v6506_v6 = vcombine.low %v6498_v27, %v6505_v43 }
0x2d59   :  { %6526 = vst [vmem:[%s8794_s9] sm:$0xff] %v6506_v6 }
0x2d6f   :  { %v6434_v33 = vpop.f32.mrb[132].mxu1  ;;  %v6475_v25 = vpop.f32.mrb[84].mxu0 }
0x2d70   :  { %v6435_v62 = vadd.f32 %v6434_v33, %v5977_v49  ;;  %v6476_v5 = vadd.f32 %v6475_v25, %v5985_v18  ;;  %v6436_v7 = vpop.f32.mrb[133].mxu1  ;;  %v6477_v19 = vpop.f32.mrb[85].mxu0 }
0x2d71   :  { %v6437_v32 = vadd.f32 %v6436_v7, %v5981_v47  ;;  %v6478_v40 = vadd.f32 %v6477_v19, %v5989_v53  ;;  %v6438_v51 = vpop.f32.mrb[134].mxu1  ;;  %v6479_v63 = vpop.f32.mrb[86].mxu0 }
0x2d72   :  { %v6439_v22 = vpop.f32.mrb[135].mxu1  ;;  %v6480_v10 = vpop.f32.mrb[87].mxu0 }
0x2d73   :  { %v6507_v2 = vcombine.low %v6435_v62, %v6437_v32  ;;  %v6508_v37 = vcombine.low %v6476_v5, %v6478_v40 }
0x2d75   :  { %v6515_v57 = vrot.slane %v6507_v2, %v6497_v56  ;;  %v6522_v30 = vrot.slane %v6508_v37, %v6497_v56 }
0x2d77   :  { %v6523_v24 = vcombine.low %v6515_v57, %v6522_v30 }
0x2d79   :  { %6527 = vst [vmem:[%s8794_s9 + $0x8] sm:$0xff] %v6523_v24 }
0x2d7a   :  { %6532 = vsyncpa [#allocation3], 1 }
0x2d7b   :  { %6533 = vsyncpa [#allocation7], 1 }
0x2d7c   :  { %6534 = vsyncpa [#allocation10], 1 }
0x2d7d   :  { %6535 = vsyncpa [#allocation13], 1 }
0x2d7e   :  { %6536 = vsyncpa [#allocation16], 1 }
0x2d7f   :  { %6537 = vsyncpa [#allocation19], 1 }
0x2d80   :  { %6538 = vsyncpa [#allocation22], 1 }
0x2d81   :  { %6539 = vsyncpa [#allocation25], 1 }
0x2d82   :  { %6540 = vsyncpa [#allocation4], 1 }

</bundles_post_ra>
